<compile_context>
chip_gen: v5e
topology: v5e:2x2
jax: 0.10.0
libtpu: 0.0.40
codegen_flags: <defaults>
</compile_context>

<pallas_src>
import functools

import jax
import jax.numpy as jnp
from jax import lax
from jax.experimental import pallas as pl
from jax.experimental.pallas import tpu as pltpu


def _round_up(x, m):
    return ((x + m - 1) // m) * m


def _vmem_capacity_bytes(default=64 * 1024 * 1024):
    # v7x has 64 MiB/TC, v5e/v6e 128 MiB; fall back to the smallest if the
    # trace-time query is unavailable.
    try:
        info = pltpu.get_tpu_info()
        cap = int(getattr(info, "vmem_capacity_bytes", 0))
        if cap > 0:
            return cap
    except Exception:
        pass
    return default


def _vmem_footprint(th, halo, wpa, ci, co, cb, ob):
    # Rough per-step VMEM estimate: double-buffered blocks + live temporaries.
    n = th * wpa
    lw = (th + halo) * wpa
    pipelined = 2 * (ci * th * wpa * cb + ci * halo * wpa * cb
                     + co * wpa * 4 + co * n * ob)
    weights = 2 * ((4 * co * ci + 24 * co * ci + 4 * co * co) * cb + 4 * co * 4)
    temps = ((3 * ci * lw + 8 * ci * n + 4 * co * n) * cb
             + (4 * co * n + 3 * co * n) * 4)
    return int(1.25 * (pipelined + weights + temps))


def _choose_tile_rows(H, halo, batch, footprint_fn, budget):
    # TH must be a multiple of HALO (exact-halo BlockSpec trick); pick the
    # largest multiple that fits the VMEM budget and is not uselessly > H.
    kmax = max(1, -(-H // halo))
    if batch == 1 and kmax >= 2:
        kmax = -(-kmax // 2)          # keep >=2 row tiles for 2-TC sharding
    th = halo
    for k in range(1, kmax + 1):
        cand = k * halo
        if footprint_fn(cand) <= budget:
            th = cand
        else:
            break
    return th


# -----------------------------------------------------------------------------
# Pallas kernel: ASPP forward for one (batch, row-tile) per grid step.
# -----------------------------------------------------------------------------
def _aspp_kernel(dilations, TH, HALO, P, Wpa,
                 xm_ref, xh_ref, g1_ref, wc_ref, woff_ref, bconv_ref, wbt_ref,
                 o_ref):
    f32 = jnp.float32
    cdt = wc_ref.dtype                      # matmul operand dtype
    Ci = xm_ref.shape[1]
    Co = wc_ref.shape[0] // 4
    Nsp = TH * Wpa                          # output lanes per step (rows * padded W)
    LW = (TH + HALO) * Wpa                  # working window (rows incl. halo)

    # Contiguous working window: this tile's TH rows + the 2P halo rows below.
    xw = jnp.concatenate([xm_ref[0], xh_ref[0]], axis=1)            # (Ci, LW)

    # One XLU roll per distinct column shift, shared across all row offsets.
    roll_cache = {0: xw}

    def shifted(dw):
        if dw not in roll_cache:
            roll_cache[dw] = pltpu.roll(xw, shift=(-dw) % LW, axis=1)
        return roll_cache[dw]

    def slab(dh, dw):
        # (Ci, TH*Wpa) tap operand: 128-aligned lane slice of a rolled window.
        start = (P + dh) * Wpa
        return shifted(dw)[:, start:start + Nsp]

    # Packed centre matmul: 1x1 branch + centre taps of the 3 dilated branches.
    c = jnp.dot(wc_ref[...], slab(0, 0),
                preferred_element_type=f32) + bconv_ref[...]        # (4*Co, Nsp)

    feats = [jnp.maximum(c[0:Co], 0.0).astype(cdt)]                 # branch 2
    for bi, d in enumerate(dilations):
        offs = [(-d, -d), (-d, 0), (-d, d), (0, -d),
                (0, d), (d, -d), (d, 0), (d, d)]
        rhs = jnp.concatenate([slab(dh, dw) for dh, dw in offs], axis=0)
        ob = jnp.dot(woff_ref[bi], rhs, preferred_element_type=f32)  # (Co, Nsp)
        feats.append(jnp.maximum(c[(bi + 1) * Co:(bi + 2) * Co] + ob,
                                 0.0).astype(cdt))

    # Single K-packed bottleneck matmul over the 4 conv-branch features.
    fcat = jnp.concatenate(feats, axis=0)                            # (4*Co, Nsp)
    out = jnp.dot(wbt_ref[...], fcat, preferred_element_type=f32)    # (Co, Nsp)

    # Pooled-branch contribution (+ bottleneck bias), constant along rows:
    # replicate by lane-aligned doubling (no relayout), then aligned trim.
    rep = g1_ref[0]                                                  # (Co, Wpa) f32
    while rep.shape[1] < Nsp:
        rep = jnp.concatenate([rep, rep], axis=1)
    out = out + rep[:, :Nsp]

    o_ref[0] = jnp.maximum(out, 0.0).astype(o_ref.dtype)            # lane-dense store


# -----------------------------------------------------------------------------
# Wrapper: NCHW in / NCHW out (matches the PyTorch module).
# -----------------------------------------------------------------------------
def aspp_forward(x_nchw, params, dilations=(4, 8, 12),
                 compute_dtype=jnp.bfloat16):
    N, Cin, H, W = x_nchw.shape
    Cout = params["bb"].shape[0]
    P = int(max(dilations))
    HALO = 2 * P
    SUB = 16
    Ci_p = _round_up(Cin, SUB)
    Co_p = _round_up(Cout, SUB)
    Wp = W + 2 * P
    Wpa = _round_up(Wp, 128)
    cb = jnp.dtype(compute_dtype).itemsize
    ob = cb                                             # store dtype == compute dtype

    vmem_cap = _vmem_capacity_bytes()
    vmem_limit = max(24 * 1024 * 1024,
                     min(int(0.55 * vmem_cap), 64 * 1024 * 1024))
    budget = int(0.6 * vmem_limit)
    TH = _choose_tile_rows(
        H, HALO, N,
        lambda th: _vmem_footprint(th, HALO, Wpa, Ci_p, Co_p, cb, ob),
        budget)
    nT = pl.cdiv(H, TH)
    R = TH // HALO
    Hpad = nT * TH + HALO
    assert TH % HALO == 0 and (TH * Wpa) % 128 == 0

    x = x_nchw.astype(jnp.float32)

    # ---- hoisted branch 1: mean over H -> 1x1 conv+BN+ReLU -> bottleneck slice.
    pooled = jnp.mean(x, axis=2)                                     # (N, Cin, W)
    f1 = jnp.maximum(
        jnp.einsum("oc,ncw->now", params["w1"], pooled,
                   precision=lax.Precision.HIGHEST)
        + params["b1"][None, :, None], 0.0)                          # (N, Cout, W)
    g1 = (jnp.einsum("oi,niw->now", params["wb1"], f1,
                     precision=lax.Precision.HIGHEST)
          + params["bb"][None, :, None])                             # bb pre-added
    g1 = jnp.pad(g1.astype(jnp.float32),
                 ((0, 0), (0, Co_p - Cout), (P, Wpa - P - W)))       # (N, Co_p, Wpa)

    # ---- zero-padded, channel-padded input, flattened row-major (lanes = H*Wpa).
    x_pad = jnp.pad(x.astype(compute_dtype),
                    ((0, 0), (0, Ci_p - Cin),
                     (P, Hpad - P - H), (P, Wpa - P - W)))
    x_flat = x_pad.reshape(N, Ci_p, Hpad * Wpa)

    # ---- packed + zero-padded weights (channel padding keeps tiles whole).
    def pad_to(a, axis, size):
        pads = [(0, 0)] * a.ndim
        pads[axis] = (0, size - a.shape[axis])
        return jnp.pad(a, pads)

    wc = pad_to(pad_to(params["wc"], 1, Co_p), 2, Ci_p)
    wc = wc.reshape(4 * Co_p, Ci_p).astype(compute_dtype)            # (4Co, Ci)
    woff = pad_to(pad_to(params["woff"], 1, Co_p), 3, Ci_p)
    woff = woff.reshape(3, Co_p, 8 * Ci_p).astype(compute_dtype)     # (3, Co, 8Ci)
    bconv = pad_to(params["bconv"], 1, Co_p).reshape(4 * Co_p, 1)
    bconv = bconv.astype(jnp.float32)                                # (4Co, 1)
    wbt = pad_to(pad_to(params["wbt"], 0, Co_p), 2, Co_p)
    wbt = wbt.reshape(Co_p, 4 * Co_p).astype(compute_dtype)          # (Co, 4Co)

    kernel = functools.partial(_aspp_kernel, tuple(dilations), TH, HALO, P, Wpa)

    flops = int(2 * N * nT * TH * Wpa * (28 * Ci_p * Co_p + 4 * Co_p * Co_p))
    bytes_accessed = int(
        N * nT * (TH + HALO) * Wpa * Ci_p * cb          # single-fetch input + halo
        + N * Co_p * Wpa * 4                            # pooled-branch term
        + N * nT * TH * Wpa * Co_p * ob                 # output writeback
        + (wc.size + woff.size + wbt.size) * cb + bconv.size * 4)

    out = pl.pallas_call(
        kernel,
        out_shape=jax.ShapeDtypeStruct((N, Co_p, nT * TH * Wpa), compute_dtype),
        grid=(N, nT),
        in_specs=[
            # this tile's TH rows (flattened row-major), auto-pipelined.
            pl.BlockSpec((1, Ci_p, TH * Wpa), lambda b, t: (b, 0, t)),
            # exactly the 2P halo rows below the tile (no duplicated full fetch).
            pl.BlockSpec((1, Ci_p, HALO * Wpa),
                         lambda b, t, R=R: (b, 0, (t + 1) * R)),
            # hoisted pooled-branch bottleneck term (+ bias), per batch element.
            pl.BlockSpec((1, Co_p, Wpa), lambda b, t: (b, 0, 0)),
            # grid-invariant (tiny) weights; unchanged block index => no re-DMA.
            pl.BlockSpec((4 * Co_p, Ci_p), lambda b, t: (0, 0)),
            pl.BlockSpec((3, Co_p, 8 * Ci_p), lambda b, t: (0, 0, 0)),
            pl.BlockSpec((4 * Co_p, 1), lambda b, t: (0, 0)),
            pl.BlockSpec((Co_p, 4 * Co_p), lambda b, t: (0, 0)),
        ],
        out_specs=pl.BlockSpec((1, Co_p, TH * Wpa), lambda b, t: (b, 0, t)),
        compiler_params=pltpu.CompilerParams(
            dimension_semantics=("parallel", "parallel"),
            vmem_limit_bytes=vmem_limit),
        cost_estimate=pl.CostEstimate(flops=flops, transcendentals=0,
                                      bytes_accessed=bytes_accessed),
    )(x_flat, x_flat, g1, wc, woff, bconv, wbt)

    # Free reshape (contiguous dims) + one slice: no transpose fix-up needed.
    out = out.reshape(N, Co_p, nT * TH, Wpa)[:, :Cout, :H, P:P + W]
    return out.astype(jnp.float32)


# -----------------------------------------------------------------------------
# Deterministic parameter construction (PyTorch layouts) + BN folding.
# -----------------------------------------------------------------------------
def build_params(key, nin, nout, eps=1e-5):
    keys = jax.random.split(key, 30)
    it = iter(range(30))

    def conv_w(cout, cin, kh, kw):
        return 0.1 * jax.random.normal(keys[next(it)], (cout, cin, kh, kw),
                                       jnp.float32)

    def bn(c):
        gamma = 1.0 + 0.1 * jax.random.normal(keys[next(it)], (c,), jnp.float32)
        beta = 0.1 * jax.random.normal(keys[next(it)], (c,), jnp.float32)
        mean = 0.1 * jax.random.normal(keys[next(it)], (c,), jnp.float32)
        var = 1.0 + 0.5 * jax.random.uniform(keys[next(it)], (c,), jnp.float32)
        return (gamma, beta, mean, var)

    raw = {
        "w1": conv_w(nout, nin, 1, 1), "bn1": bn(nout),
        "w2": conv_w(nout, nin, 1, 1), "bn2": bn(nout),
        "w3": conv_w(nout, nin, 3, 3), "bn3": bn(nout),
        "w4": conv_w(nout, nin, 3, 3), "bn4": bn(nout),
        "w5": conv_w(nout, nin, 3, 3), "bn5": bn(nout),
        "wb": conv_w(nout, nout * 5, 1, 1), "bnb": bn(nout),
    }

    def fold(w_oihw, bn_params):
        gamma, beta, mean, var = bn_params
        s = gamma / jnp.sqrt(var + eps)
        return w_oihw * s[:, None, None, None], (beta - mean * s)

    w1, b1 = fold(raw["w1"], raw["bn1"])
    w2, b2 = fold(raw["w2"], raw["bn2"])
    w3, b3 = fold(raw["w3"], raw["bn3"])
    w4, b4 = fold(raw["w4"], raw["bn4"])
    w5, b5 = fold(raw["w5"], raw["bn5"])
    wb, bb = fold(raw["wb"], raw["bnb"])
    wb2d = wb[:, :, 0, 0]                                   # (Cout, 5*Cout)

    # off-centre tap order (ki, kj) -> (dh, dw) = ((ki-1)d, (kj-1)d)
    tap_order = [(0, 0), (0, 1), (0, 2), (1, 0), (1, 2), (2, 0), (2, 1), (2, 2)]

    def off_pack(w):                                        # (Cout, Cin, 3, 3)
        return jnp.stack([w[:, :, ki, kj] for ki, kj in tap_order], axis=1)

    params = {
        # hoisted pooled branch (kept f32 in the wrapper)
        "w1": w1[:, :, 0, 0],                               # (Cout, Cin)
        "b1": b1,                                           # (Cout,)
        "wb1": wb2d[:, 0:nout],                             # (Cout, Cout)
        "bb": bb,                                           # (Cout,)
        # packed centre weights: [branch2 1x1, c3, c4, c5]
        "wc": jnp.stack([w2[:, :, 0, 0], w3[:, :, 1, 1],
                         w4[:, :, 1, 1], w5[:, :, 1, 1]], axis=0),  # (4,Cout,Cin)
        # off-centre taps packed along K per dilated branch
        "woff": jnp.stack([off_pack(w3), off_pack(w4), off_pack(w5)],
                          axis=0),                          # (3, Cout, 8, Cin)
        # folded-BN biases for branches 2..5
        "bconv": jnp.stack([b2, b3, b4, b5], axis=0),       # (4, Cout)
        # bottleneck weight blocks applied to feat2..feat5 (K-packed)
        "wbt": wb2d[:, nout:].reshape(nout, 4, nout),       # (Cout, 4, Cout)
    }
    return raw, params


# -----------------------------------------------------------------------------
# Pure-JAX reference (NCHW, lax.conv) for a correctness check.
# -----------------------------------------------------------------------------
def aspp_reference(x, raw, dilations=(4, 8, 12), eps=1e-5):
    def bn_relu(y, bn_params):
        gamma, beta, mean, var = bn_params
        s = gamma / jnp.sqrt(var + eps)
        y = y * s[None, :, None, None] + (beta - mean * s)[None, :, None, None]
        return jnp.maximum(y, 0.0)

    def conv(inp, w, d=1, pad=0):
        return lax.conv_general_dilated(
            inp, w, window_strides=(1, 1),
            padding=[(pad, pad), (pad, pad)],
            rhs_dilation=(d, d),
            dimension_numbers=("NCHW", "OIHW", "NCHW"))

    N, _, H, W = x.shape
    pooled = jnp.mean(x, axis=2, keepdims=True)                      # (N,Cin,1,W)
    f1 = bn_relu(conv(pooled, raw["w1"]), raw["bn1"])                # (N,Cout,1,W)
    feat1 = jnp.broadcast_to(f1, (N, f1.shape[1], H, W))             # bilinear from H=1
    feat2 = bn_relu(conv(x, raw["w2"]), raw["bn2"])
    feat3 = bn_relu(conv(x, raw["w3"], dilations[0], dilations[0]), raw["bn3"])
    feat4 = bn_relu(conv(x, raw["w4"], dilations[1], dilations[1]), raw["bn4"])
    feat5 = bn_relu(conv(x, raw["w5"], dilations[2], dilations[2]), raw["bn5"])
    cat = jnp.concatenate([feat1, feat2, feat3, feat4, feat5], axis=1)
    return bn_relu(conv(cat, raw["wb"]), raw["bnb"])


if __name__ == "__main__":
    N, NIN, NOUT, H, W = 2, 4, 8, 16, 16
    dilations = (4, 8, 12)

    key = jax.random.PRNGKey(0)
    k_x, k_p = jax.random.split(key)
    x = jax.random.normal(k_x, (N, NIN, H, W), jnp.float32)

    raw, params = build_params(k_p, NIN, NOUT)
    ref = jax.block_until_ready(aspp_reference(x, raw, dilations))

    # f32 compute path: tight numerical check of the kernel logic.
    out_f32 = jax.block_until_ready(
        aspp_forward(x, params, dilations, compute_dtype=jnp.float32))
    assert out_f32.shape == (N, NOUT, H, W), out_f32.shape
    assert jnp.allclose(out_f32, ref, rtol=1e-3, atol=1e-3), (
        float(jnp.max(jnp.abs(out_f32 - ref))))

    # bf16 matmul operands + bf16 store (default): looser check.
    out_bf16 = jax.block_until_ready(aspp_forward(x, params, dilations))
    assert out_bf16.shape == (N, NOUT, H, W), out_bf16.shape
    assert jnp.allclose(out_bf16, ref, rtol=4e-2, atol=4e-2), (
        float(jnp.max(jnp.abs(out_bf16 - ref))))

    print("KERNEL_OK")
</pallas_src>

<mosaic_0001>
module attributes {stable_mosaic.version = 11 : i64} {
  func.func @_aspp_kernel(%arg0: i32, %arg1: i32, %arg2: memref<1x16x3072xf32, #tpu.memory_space<vmem>>, %arg3: memref<1x16x3072xf32, #tpu.memory_space<vmem>>, %arg4: memref<1x16x128xf32, #tpu.memory_space<vmem>>, %arg5: memref<64x16xf32, #tpu.memory_space<vmem>>, %arg6: memref<3x16x128xf32, #tpu.memory_space<vmem>>, %arg7: memref<64x1xf32, #tpu.memory_space<vmem>>, %arg8: memref<16x64xf32, #tpu.memory_space<vmem>>, %arg9: memref<1x16x3072xf32, #tpu.memory_space<vmem>>) attributes {dimension_semantics = [#tpu.dimension_semantics<parallel>, #tpu.dimension_semantics<parallel>], iteration_bounds = array<i64: 2, 1>, scalar_prefetch = 0 : i64, scratch_operands = 0 : i64, tpu.core_type = #tpu.core_type<tc>, window_params = [{transform_indices = @transform_0, window_bounds = array<i64: 1, 16, 3072>}, {transform_indices = @transform_1, window_bounds = array<i64: 1, 16, 3072>}, {transform_indices = @transform_2, window_bounds = array<i64: 1, 16, 128>}, {pipeline_mode = #tpu.pipeline_mode<synchronous>, transform_indices = @transform_3, window_bounds = array<i64: 64, 16>}, {pipeline_mode = #tpu.pipeline_mode<synchronous>, transform_indices = @transform_4, window_bounds = array<i64: 3, 16, 128>}, {pipeline_mode = #tpu.pipeline_mode<synchronous>, transform_indices = @transform_5, window_bounds = array<i64: 64, 1>}, {pipeline_mode = #tpu.pipeline_mode<synchronous>, transform_indices = @transform_6, window_bounds = array<i64: 16, 64>}, {transform_indices = @transform_7, window_bounds = array<i64: 1, 16, 3072>}]} {
    %c0 = arith.constant 0 : index
    %c0_0 = arith.constant 0 : index
    %c0_1 = arith.constant 0 : index
    %0 = vector.load %arg2[%c0, %c0_0, %c0_1] : memref<1x16x3072xf32, #tpu.memory_space<vmem>>, vector<1x16x3072xf32>
    %1 = vector.shape_cast %0 : vector<1x16x3072xf32> to vector<16x3072xf32>
    %c0_2 = arith.constant 0 : index
    %c0_3 = arith.constant 0 : index
    %c0_4 = arith.constant 0 : index
    %2 = vector.load %arg3[%c0_2, %c0_3, %c0_4] : memref<1x16x3072xf32, #tpu.memory_space<vmem>>, vector<1x16x3072xf32>
    %3 = vector.shape_cast %2 : vector<1x16x3072xf32> to vector<16x3072xf32>
    %4 = tpu.concatenate %1, %3 in 1 : vector<16x3072xf32>, vector<16x3072xf32> -> vector<16x6144xf32>
    %c0_5 = arith.constant 0 : index
    %c0_6 = arith.constant 0 : index
    %5 = vector.load %arg5[%c0_5, %c0_6] : memref<64x16xf32, #tpu.memory_space<vmem>>, vector<64x16xf32>
    %6 = vector.extract_strided_slice %4 {offsets = [0, 1536], sizes = [16, 3072], strides = [1, 1]} : vector<16x6144xf32> to vector<16x3072xf32>
    %cst = arith.constant dense<0.000000e+00> : vector<64x3072xf32>
    %7 = tpu.matmul %5, %6, %cst {dimension_numbers = #tpu.dot_dimension_numbers<[1], [0], [0], [1], [0, 0, 1, 1], [], []>} : vector<64x16xf32>, vector<16x3072xf32>, vector<64x3072xf32> -> vector<64x3072xf32>
    %c0_7 = arith.constant 0 : index
    %c0_8 = arith.constant 0 : index
    %8 = vector.load %arg7[%c0_7, %c0_8] : memref<64x1xf32, #tpu.memory_space<vmem>>, vector<64x1xf32>
    %9 = vector.broadcast %8 : vector<64x1xf32> to vector<64x3072xf32>
    %10 = arith.addf %7, %9 : vector<64x3072xf32>
    %11 = vector.extract_strided_slice %10 {offsets = [0, 0], sizes = [16, 3072], strides = [1, 1]} : vector<64x3072xf32> to vector<16x3072xf32>
    %cst_9 = arith.constant 0.000000e+00 : f32
    %12 = vector.broadcast %cst_9 : f32 to vector<16x3072xf32>
    %13 = arith.maximumf %11, %12 : vector<16x3072xf32>
    %c4_i32 = arith.constant 4 : i32
    %14 = tpu.dynamic_rotate %4 by %c4_i32 dim 1 : vector<16x6144xf32>, i32 -> vector<16x6144xf32>
    %15 = vector.extract_strided_slice %14 {offsets = [0, 1024], sizes = [16, 3072], strides = [1, 1]} : vector<16x6144xf32> to vector<16x3072xf32>
    %16 = vector.extract_strided_slice %4 {offsets = [0, 1024], sizes = [16, 3072], strides = [1, 1]} : vector<16x6144xf32> to vector<16x3072xf32>
    %c6140_i32 = arith.constant 6140 : i32
    %17 = tpu.dynamic_rotate %4 by %c6140_i32 dim 1 : vector<16x6144xf32>, i32 -> vector<16x6144xf32>
    %18 = vector.extract_strided_slice %17 {offsets = [0, 1024], sizes = [16, 3072], strides = [1, 1]} : vector<16x6144xf32> to vector<16x3072xf32>
    %19 = vector.extract_strided_slice %14 {offsets = [0, 1536], sizes = [16, 3072], strides = [1, 1]} : vector<16x6144xf32> to vector<16x3072xf32>
    %20 = vector.extract_strided_slice %17 {offsets = [0, 1536], sizes = [16, 3072], strides = [1, 1]} : vector<16x6144xf32> to vector<16x3072xf32>
    %21 = vector.extract_strided_slice %14 {offsets = [0, 2048], sizes = [16, 3072], strides = [1, 1]} : vector<16x6144xf32> to vector<16x3072xf32>
    %22 = vector.extract_strided_slice %4 {offsets = [0, 2048], sizes = [16, 3072], strides = [1, 1]} : vector<16x6144xf32> to vector<16x3072xf32>
    %23 = vector.extract_strided_slice %17 {offsets = [0, 2048], sizes = [16, 3072], strides = [1, 1]} : vector<16x6144xf32> to vector<16x3072xf32>
    %24 = tpu.concatenate %15, %16, %18, %19, %20, %21, %22, %23 in 0 : vector<16x3072xf32>, vector<16x3072xf32>, vector<16x3072xf32>, vector<16x3072xf32>, vector<16x3072xf32>, vector<16x3072xf32>, vector<16x3072xf32>, vector<16x3072xf32> -> vector<128x3072xf32>
    %c0_10 = arith.constant 0 : index
    %c0_11 = arith.constant 0 : index
    %c0_12 = arith.constant 0 : index
    %25 = vector.load %arg6[%c0_10, %c0_11, %c0_12] : memref<3x16x128xf32, #tpu.memory_space<vmem>>, vector<1x16x128xf32>
    %26 = vector.shape_cast %25 : vector<1x16x128xf32> to vector<16x128xf32>
    %cst_13 = arith.constant dense<0.000000e+00> : vector<16x3072xf32>
    %27 = tpu.matmul %26, %24, %cst_13 {dimension_numbers = #tpu.dot_dimension_numbers<[1], [0], [0], [1], [0, 0, 1, 1], [], []>} : vector<16x128xf32>, vector<128x3072xf32>, vector<16x3072xf32> -> vector<16x3072xf32>
    %28 = vector.extract_strided_slice %10 {offsets = [16, 0], sizes = [16, 3072], strides = [1, 1]} : vector<64x3072xf32> to vector<16x3072xf32>
    %29 = arith.addf %28, %27 : vector<16x3072xf32>
    %cst_14 = arith.constant 0.000000e+00 : f32
    %30 = vector.broadcast %cst_14 : f32 to vector<16x3072xf32>
    %31 = arith.maximumf %29, %30 : vector<16x3072xf32>
    %c8_i32 = arith.constant 8 : i32
    %32 = tpu.dynamic_rotate %4 by %c8_i32 dim 1 : vector<16x6144xf32>, i32 -> vector<16x6144xf32>
    %33 = vector.extract_strided_slice %32 {offsets = [0, 512], sizes = [16, 3072], strides = [1, 1]} : vector<16x6144xf32> to vector<16x3072xf32>
    %34 = vector.extract_strided_slice %4 {offsets = [0, 512], sizes = [16, 3072], strides = [1, 1]} : vector<16x6144xf32> to vector<16x3072xf32>
    %c6136_i32 = arith.constant 6136 : i32
    %35 = tpu.dynamic_rotate %4 by %c6136_i32 dim 1 : vector<16x6144xf32>, i32 -> vector<16x6144xf32>
    %36 = vector.extract_strided_slice %35 {offsets = [0, 512], sizes = [16, 3072], strides = [1, 1]} : vector<16x6144xf32> to vector<16x3072xf32>
    %37 = vector.extract_strided_slice %32 {offsets = [0, 1536], sizes = [16, 3072], strides = [1, 1]} : vector<16x6144xf32> to vector<16x3072xf32>
    %38 = vector.extract_strided_slice %35 {offsets = [0, 1536], sizes = [16, 3072], strides = [1, 1]} : vector<16x6144xf32> to vector<16x3072xf32>
    %39 = vector.extract_strided_slice %32 {offsets = [0, 2560], sizes = [16, 3072], strides = [1, 1]} : vector<16x6144xf32> to vector<16x3072xf32>
    %40 = vector.extract_strided_slice %4 {offsets = [0, 2560], sizes = [16, 3072], strides = [1, 1]} : vector<16x6144xf32> to vector<16x3072xf32>
    %41 = vector.extract_strided_slice %35 {offsets = [0, 2560], sizes = [16, 3072], strides = [1, 1]} : vector<16x6144xf32> to vector<16x3072xf32>
    %42 = tpu.concatenate %33, %34, %36, %37, %38, %39, %40, %41 in 0 : vector<16x3072xf32>, vector<16x3072xf32>, vector<16x3072xf32>, vector<16x3072xf32>, vector<16x3072xf32>, vector<16x3072xf32>, vector<16x3072xf32>, vector<16x3072xf32> -> vector<128x3072xf32>
    %c1 = arith.constant 1 : index
    %c0_15 = arith.constant 0 : index
    %c0_16 = arith.constant 0 : index
    %43 = vector.load %arg6[%c1, %c0_15, %c0_16] : memref<3x16x128xf32, #tpu.memory_space<vmem>>, vector<1x16x128xf32>
    %44 = vector.shape_cast %43 : vector<1x16x128xf32> to vector<16x128xf32>
    %cst_17 = arith.constant dense<0.000000e+00> : vector<16x3072xf32>
    %45 = tpu.matmul %44, %42, %cst_17 {dimension_numbers = #tpu.dot_dimension_numbers<[1], [0], [0], [1], [0, 0, 1, 1], [], []>} : vector<16x128xf32>, vector<128x3072xf32>, vector<16x3072xf32> -> vector<16x3072xf32>
    %46 = vector.extract_strided_slice %10 {offsets = [32, 0], sizes = [16, 3072], strides = [1, 1]} : vector<64x3072xf32> to vector<16x3072xf32>
    %47 = arith.addf %46, %45 : vector<16x3072xf32>
    %cst_18 = arith.constant 0.000000e+00 : f32
    %48 = vector.broadcast %cst_18 : f32 to vector<16x3072xf32>
    %49 = arith.maximumf %47, %48 : vector<16x3072xf32>
    %c12_i32 = arith.constant 12 : i32
    %50 = tpu.dynamic_rotate %4 by %c12_i32 dim 1 : vector<16x6144xf32>, i32 -> vector<16x6144xf32>
    %51 = vector.extract_strided_slice %50 {offsets = [0, 0], sizes = [16, 3072], strides = [1, 1]} : vector<16x6144xf32> to vector<16x3072xf32>
    %52 = vector.extract_strided_slice %4 {offsets = [0, 0], sizes = [16, 3072], strides = [1, 1]} : vector<16x6144xf32> to vector<16x3072xf32>
    %c6132_i32 = arith.constant 6132 : i32
    %53 = tpu.dynamic_rotate %4 by %c6132_i32 dim 1 : vector<16x6144xf32>, i32 -> vector<16x6144xf32>
    %54 = vector.extract_strided_slice %53 {offsets = [0, 0], sizes = [16, 3072], strides = [1, 1]} : vector<16x6144xf32> to vector<16x3072xf32>
    %55 = vector.extract_strided_slice %50 {offsets = [0, 1536], sizes = [16, 3072], strides = [1, 1]} : vector<16x6144xf32> to vector<16x3072xf32>
    %56 = vector.extract_strided_slice %53 {offsets = [0, 1536], sizes = [16, 3072], strides = [1, 1]} : vector<16x6144xf32> to vector<16x3072xf32>
    %57 = vector.extract_strided_slice %50 {offsets = [0, 3072], sizes = [16, 3072], strides = [1, 1]} : vector<16x6144xf32> to vector<16x3072xf32>
    %58 = vector.extract_strided_slice %4 {offsets = [0, 3072], sizes = [16, 3072], strides = [1, 1]} : vector<16x6144xf32> to vector<16x3072xf32>
    %59 = vector.extract_strided_slice %53 {offsets = [0, 3072], sizes = [16, 3072], strides = [1, 1]} : vector<16x6144xf32> to vector<16x3072xf32>
    %60 = tpu.concatenate %51, %52, %54, %55, %56, %57, %58, %59 in 0 : vector<16x3072xf32>, vector<16x3072xf32>, vector<16x3072xf32>, vector<16x3072xf32>, vector<16x3072xf32>, vector<16x3072xf32>, vector<16x3072xf32>, vector<16x3072xf32> -> vector<128x3072xf32>
    %c2 = arith.constant 2 : index
    %c0_19 = arith.constant 0 : index
    %c0_20 = arith.constant 0 : index
    %61 = vector.load %arg6[%c2, %c0_19, %c0_20] : memref<3x16x128xf32, #tpu.memory_space<vmem>>, vector<1x16x128xf32>
    %62 = vector.shape_cast %61 : vector<1x16x128xf32> to vector<16x128xf32>
    %cst_21 = arith.constant dense<0.000000e+00> : vector<16x3072xf32>
    %63 = tpu.matmul %62, %60, %cst_21 {dimension_numbers = #tpu.dot_dimension_numbers<[1], [0], [0], [1], [0, 0, 1, 1], [], []>} : vector<16x128xf32>, vector<128x3072xf32>, vector<16x3072xf32> -> vector<16x3072xf32>
    %64 = vector.extract_strided_slice %10 {offsets = [48, 0], sizes = [16, 3072], strides = [1, 1]} : vector<64x3072xf32> to vector<16x3072xf32>
    %65 = arith.addf %64, %63 : vector<16x3072xf32>
    %cst_22 = arith.constant 0.000000e+00 : f32
    %66 = vector.broadcast %cst_22 : f32 to vector<16x3072xf32>
    %67 = arith.maximumf %65, %66 : vector<16x3072xf32>
    %68 = tpu.concatenate %13, %31, %49, %67 in 0 : vector<16x3072xf32>, vector<16x3072xf32>, vector<16x3072xf32>, vector<16x3072xf32> -> vector<64x3072xf32>
    %c0_23 = arith.constant 0 : index
    %c0_24 = arith.constant 0 : index
    %69 = vector.load %arg8[%c0_23, %c0_24] : memref<16x64xf32, #tpu.memory_space<vmem>>, vector<16x64xf32>
    %cst_25 = arith.constant dense<0.000000e+00> : vector<16x3072xf32>
    %70 = tpu.matmul %69, %68, %cst_25 {dimension_numbers = #tpu.dot_dimension_numbers<[1], [0], [0], [1], [0, 0, 1, 1], [], []>} : vector<16x64xf32>, vector<64x3072xf32>, vector<16x3072xf32> -> vector<16x3072xf32>
    %c0_26 = arith.constant 0 : index
    %c0_27 = arith.constant 0 : index
    %c0_28 = arith.constant 0 : index
    %71 = vector.load %arg4[%c0_26, %c0_27, %c0_28] : memref<1x16x128xf32, #tpu.memory_space<vmem>>, vector<1x16x128xf32>
    %72 = vector.shape_cast %71 : vector<1x16x128xf32> to vector<16x128xf32>
    %73 = tpu.concatenate %72, %72 in 1 : vector<16x128xf32>, vector<16x128xf32> -> vector<16x256xf32>
    %74 = tpu.concatenate %73, %73 in 1 : vector<16x256xf32>, vector<16x256xf32> -> vector<16x512xf32>
    %75 = tpu.concatenate %74, %74 in 1 : vector<16x512xf32>, vector<16x512xf32> -> vector<16x1024xf32>
    %76 = tpu.concatenate %75, %75 in 1 : vector<16x1024xf32>, vector<16x1024xf32> -> vector<16x2048xf32>
    %77 = tpu.concatenate %76, %76 in 1 : vector<16x2048xf32>, vector<16x2048xf32> -> vector<16x4096xf32>
    %78 = vector.extract_strided_slice %77 {offsets = [0, 0], sizes = [16, 3072], strides = [1, 1]} : vector<16x4096xf32> to vector<16x3072xf32>
    %79 = arith.addf %70, %78 : vector<16x3072xf32>
    %cst_29 = arith.constant 0.000000e+00 : f32
    %80 = vector.broadcast %cst_29 : f32 to vector<16x3072xf32>
    %81 = arith.maximumf %79, %80 : vector<16x3072xf32>
    %c0_30 = arith.constant 0 : index
    %c0_31 = arith.constant 0 : index
    %c0_32 = arith.constant 0 : index
    %82 = vector.load %arg9[%c0_30, %c0_31, %c0_32] : memref<1x16x3072xf32, #tpu.memory_space<vmem>>, vector<1x16x3072xf32>
    %83 = vector.shape_cast %82 : vector<1x16x3072xf32> to vector<16x3072xf32>
    %84 = vector.shape_cast %81 : vector<16x3072xf32> to vector<1x16x3072xf32>
    tpu.vector_store %arg9[%c0_30, %c0_31, %c0_32], %84 {strides = array<i32>} : memref<1x16x3072xf32, #tpu.memory_space<vmem>>, vector<1x16x3072xf32>,
    return
  }
  func.func @transform_0(%arg0: i32, %arg1: i32) -> (i32, i32, i32) {
    %c0_i32 = arith.constant 0 : i32
    %c0_i32_0 = arith.constant 0 : i32
    return %arg0, %c0_i32, %arg1 : i32, i32, i32
  }
  func.func @transform_1(%arg0: i32, %arg1: i32) -> (i32, i32, i32) {
    %c1_i32 = arith.constant 1 : i32
    %0 = arith.addi %arg1, %c1_i32 : i32
    %c1_i32_0 = arith.constant 1 : i32
    %1 = arith.muli %0, %c1_i32_0 : i32
    %c0_i32 = arith.constant 0 : i32
    %c0_i32_1 = arith.constant 0 : i32
    return %arg0, %c0_i32, %1 : i32, i32, i32
  }
  func.func @transform_2(%arg0: i32, %arg1: i32) -> (i32, i32, i32) {
    %c0_i32 = arith.constant 0 : i32
    %c0_i32_0 = arith.constant 0 : i32
    %c0_i32_1 = arith.constant 0 : i32
    return %arg0, %c0_i32, %c0_i32_0 : i32, i32, i32
  }
  func.func @transform_3(%arg0: i32, %arg1: i32) -> (i32, i32) {
    %c0_i32 = arith.constant 0 : i32
    %c0_i32_0 = arith.constant 0 : i32
    %c0_i32_1 = arith.constant 0 : i32
    return %c0_i32, %c0_i32_0 : i32, i32
  }
  func.func @transform_4(%arg0: i32, %arg1: i32) -> (i32, i32, i32) {
    %c0_i32 = arith.constant 0 : i32
    %c0_i32_0 = arith.constant 0 : i32
    %c0_i32_1 = arith.constant 0 : i32
    %c0_i32_2 = arith.constant 0 : i32
    return %c0_i32, %c0_i32_0, %c0_i32_1 : i32, i32, i32
  }
  func.func @transform_5(%arg0: i32, %arg1: i32) -> (i32, i32) {
    %c0_i32 = arith.constant 0 : i32
    %c0_i32_0 = arith.constant 0 : i32
    %c0_i32_1 = arith.constant 0 : i32
    return %c0_i32, %c0_i32_0 : i32, i32
  }
  func.func @transform_6(%arg0: i32, %arg1: i32) -> (i32, i32) {
    %c0_i32 = arith.constant 0 : i32
    %c0_i32_0 = arith.constant 0 : i32
    %c0_i32_1 = arith.constant 0 : i32
    return %c0_i32, %c0_i32_0 : i32, i32
  }
  func.func @transform_7(%arg0: i32, %arg1: i32) -> (i32, i32, i32) {
    %c0_i32 = arith.constant 0 : i32
    %c0_i32_0 = arith.constant 0 : i32
    return %arg0, %c0_i32, %arg1 : i32, i32, i32
  }
}

</mosaic_0001>

<bundles_post_ra>
// kernel: tpu_custom_call.1
= control target key start
LH: loop header
LB: loop body
LE: loop exit
PB: predicated region body
PF: predicated region fallthrough
CT: control target
= control target key end

     0   :  { %s15866_s0 = inlined_call_operand.hbm [shape: f32[2,16,6144], index: 0, kind: input, shape index: {}]   ;;  %s15867_s1 = inlined_call_operand.hbm [shape: f32[2,16,6144], index: 1, kind: input, shape index: {}]   ;;  %s15868_s2 = inlined_call_operand.vmem [shape: f32[2,16,128], index: 2, kind: input, shape index: {}]   ;;  %s15869_s3 = inlined_call_operand.vmem [shape: f32[64,16], index: 3, kind: input, shape index: {}]   ;;  %s15870_s4 = inlined_call_operand.vmem [shape: f32[3,16,128], index: 4, kind: input, shape index: {}]   ;;  %s15871_s5 = inlined_call_operand.vmem [shape: f32[64,1], index: 5, kind: input, shape index: {}]   ;;  %s15872_s6 = inlined_call_operand.vmem [shape: f32[16,64], index: 6, kind: input, shape index: {}]   ;;  %s15873_s7 = inlined_call_operand.hbm [shape: f32[2,16,3072], index: 7, kind: output, shape index: {}]  }
   0x1   :  { %16339 = sst [smem:[#allocation351_spill]] %s15866_s0 }
   0x2   :  { %12 = vsyncpa [#allocation3], 0 }
   0x3   :  { %14 = vsyncpa [#allocation3 + $0x1], 0 }
   0x4   :  { %15 = vsyncpa [#allocation6], 0 }
   0x5   :  { %17 = vsyncpa [#allocation6 + $0x1], 0 }
   0x6   :  { %18 = vsyncpa [#allocation4], 0 }
   0x7   :  { %20 = vsyncpa [#allocation4 + $0x1], 0  ;;  %s7909_s24 = smov 0   ;;  %s7911_s25 = smov 0  }
   0x8   :  { %s7913_s26 = smov 0   ;;  %s7915_s27 = smov 0  }
   0x9   :  { %s7917_s28 = smov 0   ;;  %s7919_s29 = smov 0  }
   0xa LB: > { %16340 = sst [smem:[#allocation11_spill]] %s7843_s26  ;;  %s5818_s30 = sadd.s32 4294967295, %s7855_s29   ;;  %s7855_s29 = sphi %s7919_s29, %s26_s29   ;;  %s7851_s28 = sphi %s7917_s28, %s18144_s28   ;;  %s7847_s27 = sphi %s7915_s27, %s18143_s27   ;;  %s7843_s26 = sphi %s7913_s26, %s18142_s26   ;;  %s7839_s25 = sphi %s7911_s25, %s18146_s25   ;;  %s7835_s24 = sphi %s7909_s24, %s18145_s24  }
   0xb   : > { %16341 = sst [smem:[#allocation12_spill]] %s7851_s28  ;;  %s5819_s8 = sadd.s32 4294967294, %s7855_s29  }
   0xc   : > { %s38_s9 = sadd.s32 1, %s7851_s28  ;;  %s47_s10 = sadd.s32 1, %s7843_s26 }
   0xd   : > { %p40_p0 = scmp.ge.s32.totalorder %s38_s9, 2  ;;  %p54_p1 = scmp.ne.s32.totalorder %s7843_s26, %s7839_s25 }
   0xe   : > { %p55_p2 = scmp.eq.s32.totalorder %s7855_s29, 0  ;;  %p60_p3 = scmp.ne.s32.totalorder %s7839_s25, %s7835_s24 }
   0xf   : > { %s18148_s9 = smov (%p40_p0, %s38_s9), 0  ;;  %p61_p5 = scmp.eq.s32.totalorder %s5818_s30, 0 }
  0x10   : > { %16342 = sst [smem:[#allocation13_spill]] %s18148_s9  ;;  %p7950_p4 = por %p55_p2, %p54_p1 }
  0x11   : > { %s42_s12 = ssub.s32 %s7851_s28, %s18148_s9  ;;  %p226_p6 = scmp.eq.s32.totalorder %s5818_s30, 1 }
  0x12   : > { %p45_p7 = scmp.eq.s32.totalorder %s42_s12, 0  ;;  %p7956_p8 = por %p61_p5, %p60_p3 }
  0x13   : > { %p7960_p9 = por %p226_p6, %p54_p1  ;;  %p232_p10 = scmp.eq.s32.totalorder %s5819_s8, 1 }
  0x14   : > { %s7965_s15 = scalar_select %p45_p7, %s7843_s26, %s47_s10  }
  0x15   : > { %p7967_p11 = por %p232_p10, %p60_p3  ;;  %p5821_p12 = scmp.ge.s32.totalorder %s7855_s29, 2 }
  0x16   : > { %16346 = sst [smem:[#allocation14_spill]] %s7965_s15  ;;  %p6097_p13 = scmp.lt.s32.totalorder %s7855_s29, 2 }
  0x17   : > { %s16347_s16 = scalar_select %p7967_p11, 1, 0 }
  0x18   : > { %s7974_s17 = sand.u32 1, %s7843_s26   ;;  %s6076_s19 = smul.u32 768, %s7851_s28 }
  0x19   : > { %16348 = sst [smem:[#allocation15_spill]] %s16347_s16  ;;  %s6075_s18 = smul.u32 384, %s7974_s17 }
  0x1a   : > { %p7980_p0 = pnand %p6097_p13, %p7950_p4  ;;  %s16350_s0 = sld [smem:[#allocation351_spill]] }
  0x1b   : > { %s268_s30 = scalar_lea.vmem [#allocation2], %s6075_s18  ;;  %s265_s12 = scalar_lea.sflag [#allocation3], %s7974_s17 }
  0x1c   : > { %s278_s8 = sshll.u32 %s268_s30, 4  ;;  %s7857_s9 = smov 6144   ;;  %s279_s8 = int_to_ptr.vmem [resolvable:$true] %s278_s8 }
  0x1d   : > { %s7858_s28 = smov 3072   ;;  %s7859_s11 = smov 192  }
  0x1e   : > { %p5824_p1 = scmp.ge.s32.totalorder %s7855_s29, 1  ;;  %p319_p2 = scmp.lt.s32.totalorder %s7855_s29, 3 }
  0x1f   : > { %s5737_s22 = scalar_lea.hbm %s15867_s1, %s6076_s19  ;;  %s292_s30 = scalar_lea.vmem [#allocation5], %s6075_s18 }
  0x20   : > { %s275_s23 = scalar_lea.hbm %s16350_s0, %s6076_s19  ;;  %p320_p3 = pnand %p5824_p1, %p319_p2 }
  0x21   : > { %s276_s10 = sshll.u32 %s275_s23, 4  ;;  %s5738_s0 = scalar_lea.hbm %s5737_s22, 192  ;;  %s277_s10 = int_to_ptr.hbm [resolvable:$true] %s276_s10 }
  0x22   : > { %6089 = dma.hbm_to_vmem [thread:$0]  (!%p7980_p0), %s277_s10, 6144, %s279_s8, %s265_s12, %s7857_s9, %s7858_s28, %s7859_s11  }
  0x23   : > { %s303_s23 = sshll.u32 %s292_s30, 4  ;;  %s301_s26 = sshll.u32 %s5738_s0, 4  ;;  %s304_s23 = int_to_ptr.vmem [resolvable:$true] %s303_s23  ;;  %s302_s26 = int_to_ptr.hbm [resolvable:$true] %s301_s26 }
  0x24   : > { %s289_s16 = scalar_lea.sflag [#allocation6], %s7974_s17  ;;  %323 = sbr.rel (%p320_p3) target bundleno = 1476 (0x5c4), region = 48 }
  0x25   : > { %6092 = dma.hbm_to_vmem [thread:$0]  (!%p7980_p0), %s302_s26, 6144, %s304_s23, %s289_s16, %s7857_s9, %s7858_s28, %s7859_s11  }
  0x29   : > { %s7999_s8 = sand.u32 1, %s7839_s25  }
  0x2a   : > { %s8002_s10 = smul.u32 384, %s7999_s8  ;;  %s326_s15 = scalar_lea.sflag [#allocation3], %s7999_s8 }
  0x2c   : > { %s8006_s19 = scalar_lea.vmem [#allocation2], %s8002_s10 }
  0x2d   : > { %7822 = dma.done.wait (%p7956_p8), %s326_s15, 6144  }
  0x2e   : > { %7824 = vsyncadd (%p7956_p8), %s326_s15, 4294961152  ;;  %s336_s0 = scalar_lea.sflag [#allocation6], %s7999_s8  ;;  %s8014_s26 = scalar_lea.vmem [#allocation5], %s8002_s10 }
  0x2f   : > { %7826 = dma.done.wait (%p7956_p8), %s336_s0, 6144  }
  0x30   : > { %7828 = vsyncadd (%p7956_p8), %s336_s0, 4294961152  ;;  %v7860_v0 = vmov 0   ;;  %v498_v1 = vld [vmem:[%s15871_s5 + $0x20] sm:$0xff]  ;;  %v496_v2 = vld [vmem:[%s15871_s5 + $0x10] sm:$0xff]  ;;  %vm542_vm0 = vcmask 130048   ;;  %s7861_s18 = smov 4  }
  0x31   : > { %6161 = vset.pattern.permute.xlu2 %v7860_v0  ;;  %6160 = vset.pattern.permute.xlu1 %v7860_v0  ;;  %v494_v3 = vld [vmem:[%s15871_s5] sm:$0xff]  ;;  %v8033_v5 = vld [vmem:[%s8006_s19 + $0x128] sm:$0xff]  ;;  %v8036_v6 = vld [vmem:[%s8006_s19 + $0x130] sm:$0xff]  ;;  %s7862_s17 = smov 124   ;;  %s7863_s13 = smov 8   ;;  %vm5019_vm7 = vcmask 523264  }
  0x32   : > { %6159 = vset.pattern.permute.xlu0 %v7860_v0  ;;  %524 = vperm.xlu2 %6161, %v498_v1   ;;  %v8030_v4 = vld [vmem:[%s8006_s19 + $0x120] sm:$0xff]  ;;  %v8040_v7 = vld [vmem:[%s8006_s19 + $0x138] sm:$0xff]  ;;  %v8046_v9 = vld [vmem:[%s8006_s19 + $0x68] sm:$0xff]  ;;  %s7864_s16 = smov 120   ;;  %s7865_s30 = smov 12  }
  0x33   : > { %514 = vperm.xlu1 %6160, %v496_v2   ;;  %504 = vperm.xlu0 %6159, %v494_v3   ;;  %v8043_v8 = vld [vmem:[%s8006_s19 + $0x60] sm:$0xff]  ;;  %v8051_v10 = vld [vmem:[%s8006_s19 + $0x70] sm:$0xff]  ;;  %v8054_v11 = vld [vmem:[%s8006_s19 + $0x78] sm:$0xff]  ;;  %v8181_v50 = vpack.i.bf16 %v8033_v5, %v8046_v9  ;;  %s7866_s23 = smov 116   ;;  %p384_p4 = scmp.lt.s32.totalorder %s7847_s27, 1 }
  0x34   : > { %581 = vmatpush.msra.mxu0 %v8030_v4  ;;  %622 = vmatpush.msra.mxu1 %v8033_v5  ;;  %v8059_v12 = vld [vmem:[%s15869_s3] sm:$0xff]  ;;  %v499_v13 = vld [vmem:[%s15871_s5 + $0x28] sm:$0xff]  ;;  %v497_v14 = vld [vmem:[%s15871_s5 + $0x18] sm:$0xff]  ;;  %v8177_v49 = vpack.i.bf16 %v8030_v4, %v8043_v8  ;;  %v8208_v55 = vpack.i.bf16 %v8040_v7, %v8054_v11  ;;  %v8218_v57 = vpack.i.bf16 %v8036_v6, %v8051_v10  ;;  %s15724_s15 = scalar_lea.vmem [#allocation7], %s8002_s10  ;;  %s6079_s10 = smul.u32 384, %s7847_s27 }
  0x35   : > { %663 = vmatpush.msra.mxu2 %v8036_v6  ;;  %704 = vmatpush.msra.mxu3 %v8040_v7  ;;  %v495_v15 = vld [vmem:[%s15871_s5 + $0x8] sm:$0xff]  ;;  %v397_v16 = vld [vmem:[%s8006_s19 + $0x38] sm:$0xff]  ;;  %v8086_v18 = vld [vmem:[%s8006_s19 + $0x140] sm:$0xff]  ;;  %s5689_s9 = sshll.u32 %s15724_s15, 4  ;;  %s5690_s9 = int_to_ptr.vmem [resolvable:$true] %s5689_s9 }
  0x36   : > { %582 = vmatpush.msra.mxu0 %v8043_v8  ;;  %623 = vmatpush.msra.mxu1 %v8046_v9  ;;  %v421_v17 = vld [vmem:[%s8006_s19 + $0xf8] sm:$0xff]  ;;  %v8091_v19 = vld [vmem:[%s15869_s3 + $0x8] sm:$0xff]  ;;  %v8095_v20 = vld [vmem:[%s8006_s19 + $0x80] sm:$0xff]  ;;  %s5688_s28 = scalar_lea.hbm %s15873_s7, %s6079_s10 }
  0x37   : > { %664 = vmatpush.msra.mxu2 %v8051_v10  ;;  %705 = vmatpush.msra.mxu3 %v8054_v11  ;;  %v8097_v21 = vpack.i.bf16 %v421_v17, %v397_v16  ;;  %v501_v22 = vld [vmem:[%s15871_s5 + $0x38] sm:$0xff]  ;;  %v500_v23 = vld [vmem:[%s15871_s5 + $0x30] sm:$0xff]  ;;  %v399_v24 = vld [vmem:[%s8006_s19 + $0x48] sm:$0xff]  ;;  %v8212_v56 = vpack.i.bf16 %v8086_v18, %v8095_v20 }
  0x38   : > { %5827 = vmatmul.msk.f32.vlgmr.msra.gmra.mxu0 %vm542_vm0, %v8059_v12  ;;  %5835 = vmatmul.msk.f32.vlgmr.msra.gmra.mxu1 %vm542_vm0, %v8059_v12  ;;  %v8120_v25 = vld [vmem:[%s15869_s3 + $0x10] sm:$0xff]  ;;  %v423_v26 = vld [vmem:[%s8006_s19 + $0x108] sm:$0xff]  ;;  %v8132_v31 = vld [vmem:[%s8006_s19 + $0x158] sm:$0xff] }
  0x39   : > { %5843 = vmatmul.msk.f32.vlgmr.msra.gmra.mxu2 %vm542_vm0, %v8059_v12  ;;  %5851 = vmatmul.msk.f32.vlgmr.msra.gmra.mxu3 %vm542_vm0, %v8059_v12  ;;  %v400_v27 = vld [vmem:[%s8006_s19 + $0x50] sm:$0xff]  ;;  %v8125_v28 = vld [vmem:[%s8006_s19 + $0x148] sm:$0xff]  ;;  %v398_v32 = vld [vmem:[%s8006_s19 + $0x40] sm:$0xff]  ;;  %v8142_v37 = vpack.i.bf16 %v423_v26, %v399_v24 }
  0x3a   : > { %529 = vperm.xlu2 %6161, %v499_v13   ;;  %745 = vmatpush.msrb.mxu0 %v8086_v18  ;;  %v424_v29 = vld [vmem:[%s8006_s19 + $0x110] sm:$0xff]  ;;  %v422_v33 = vld [vmem:[%s8006_s19 + $0x100] sm:$0xff]  ;;  %v407_v34 = vld [vmem:[%s8006_s19 + $0x88] sm:$0xff] }
  0x3b   : > { %519 = vperm.xlu1 %6160, %v497_v14   ;;  %509 = vperm.xlu0 %6159, %v495_v15   ;;  %v8129_v30 = vld [vmem:[%s8006_s19 + $0x150] sm:$0xff]  ;;  %v409_v36 = vld [vmem:[%s8006_s19 + $0x98] sm:$0xff]  ;;  %v8144_v38 = vpack.i.bf16 %v424_v29, %v400_v27  ;;  %v8148_v39 = vpack.i.bf16 %v422_v33, %v398_v32  ;;  %v434_v40 = vld [vmem:[%s8006_s19 + $0x160] sm:$0xff]  ;;  %v8246_v61 = vpack.i.bf16 %v8125_v28, %v407_v34 }
  0x3c   : > { %746 = vmatpush.msrb.mxu0 %v8095_v20  ;;  %786 = vmatpush.msrb.mxu1 %v8125_v28  ;;  %v408_v35 = vld [vmem:[%s8006_s19 + $0x90] sm:$0xff]  ;;  %v8166_v41 = vld [vmem:[%s15869_s3 + $0x18] sm:$0xff]  ;;  %v435_v42 = vld [vmem:[%s8006_s19 + $0x168] sm:$0xff]  ;;  %v8241_v60 = vpack.i.bf16 %v8132_v31, %v409_v36 }
  0x3d   : > { %827 = vmatpush.msrb.mxu2 %v8129_v30  ;;  %868 = vmatpush.msrb.mxu3 %v8132_v31  ;;  %v436_v43 = vld [vmem:[%s8006_s19 + $0x170] sm:$0xff]  ;;  %v401_v44 = vld [vmem:[%s8006_s19 + $0x58] sm:$0xff]  ;;  %v410_v46 = vld [vmem:[%s8006_s19 + $0xa0] sm:$0xff]  ;;  %v8238_v59 = vpack.i.bf16 %v8129_v30, %v408_v35 }
  0x3e   : > { %787 = vmatpush.msrb.mxu1 %v407_v34  ;;  %909 = vmatpush.msra.mxu0 %v434_v40  ;;  %v425_v45 = vld [vmem:[%s8006_s19 + $0x118] sm:$0xff]  ;;  %v411_v47 = vld [vmem:[%s8006_s19 + $0xa8] sm:$0xff]  ;;  %v412_v48 = vld [vmem:[%s8006_s19 + $0xb0] sm:$0xff]  ;;  %v8271_v1 = vpack.i.bf16 %v434_v40, %v410_v46 }
  0x3f   : > { %828 = vmatpush.msrb.mxu2 %v408_v35  ;;  %869 = vmatpush.msrb.mxu3 %v409_v36  ;;  %v8185_v51 = vpack.i.bf16 %v425_v45, %v401_v44  ;;  %v437_v52 = vld [vmem:[%s8006_s19 + $0x178] sm:$0xff]  ;;  %v8203_v53 = vld [vmem:[%s15869_s3 + $0x20] sm:$0xff]  ;;  %v8235_v58 = vld [vmem:[%s15869_s3 + $0x28] sm:$0xff]  ;;  %v8265_v63 = vpack.i.bf16 %v435_v42, %v411_v47  ;;  %v8267_v0 = vpack.i.bf16 %v436_v43, %v412_v48 }
  0x40   : > { %5828 = vmatmul.msk.f32.gmra.mxu0 %vm542_vm0, %v8091_v19  ;;  %5836 = vmatmul.msk.f32.gmra.mxu1 %vm542_vm0, %v8091_v19  ;;  %v413_v54 = vld [vmem:[%s8006_s19 + $0xb8] sm:$0xff]  ;;  %v8263_v62 = vld [vmem:[%s15869_s3 + $0x30] sm:$0xff]  ;;  %v438_v2 = vld [vmem:[%s8014_s26] sm:$0xff] }
  0x41   : > { %5844 = vmatmul.msk.f32.gmra.mxu2 %vm542_vm0, %v8091_v19  ;;  %5852 = vmatmul.msk.f32.gmra.mxu3 %vm542_vm0, %v8091_v19  ;;  %v462_v3 = vld [vmem:[%s8014_s26 + $0xc0] sm:$0xff]  ;;  %v439_v4 = vld [vmem:[%s8014_s26 + $0x8] sm:$0xff]  ;;  %v8292_v6 = vld [vmem:[%s15869_s3 + $0x38] sm:$0xff]  ;;  %v8300_v9 = vpack.i.bf16 %v437_v52, %v413_v54 }
  0x42   : > { %6163 = vrot.lane.b32.xlu2 %v8097_v21, %s7861_s18  ;;  %950 = vmatpush.msra.mxu1 %v435_v42  ;;  %v463_v5 = vld [vmem:[%s8014_s26 + $0xc8] sm:$0xff]  ;;  %v8294_v7 = vpack.i.bf16 %v462_v3, %v438_v2  ;;  %v441_v10 = vld [vmem:[%s8014_s26 + $0x18] sm:$0xff]  ;;  %v8317_v13 = vld [vmem:[%s8014_s26 + $0x20] sm:$0xff] }
  0x43   : > { %539 = vperm.xlu1 %6160, %v501_v22   ;;  %534 = vperm.xlu0 %6159, %v500_v23   ;;  %v8296_v8 = vpack.i.bf16 %v463_v5, %v439_v4  ;;  %v465_v11 = vld [vmem:[%s8014_s26 + $0xd8] sm:$0xff]  ;;  %v8320_v14 = vld [vmem:[%s8014_s26 + $0xe0] sm:$0xff]  ;;  %v440_v15 = vld [vmem:[%s8014_s26 + $0x10] sm:$0xff] }
  0x44   : > { %991 = vmatpush.msra.mxu2 %v436_v43  ;;  %910 = vmatpush.msra.mxu0 %v410_v46  ;;  %v464_v16 = vld [vmem:[%s8014_s26 + $0xd0] sm:$0xff]  ;;  %v8324_v17 = vpack.i.bf16 %v465_v11, %v441_v10  ;;  %v8328_v18 = vpack.i.bf16 %v8320_v14, %v8317_v13  ;;  %v8353_v24 = vld [vmem:[%s8014_s26 + $0x38] sm:$0xff]  ;;  %v8359_v27 = vld [vmem:[%s8014_s26 + $0x28] sm:$0xff] }
  0x45   : > { %951 = vmatpush.msra.mxu1 %v411_v47  ;;  %1032 = vmatpush.msra.mxu3 %v437_v52  ;;  %v8332_v20 = vpack.i.bf16 %v464_v16, %v440_v15  ;;  %v8345_v22 = vld [vmem:[%s8014_s26 + $0x30] sm:$0xff]  ;;  %v8356_v26 = vld [vmem:[%s8014_s26 + $0xf8] sm:$0xff]  ;;  %v8362_v28 = vld [vmem:[%s8014_s26 + $0xe8] sm:$0xff] }
  0x46   : > { %992 = vmatpush.msra.mxu2 %v412_v48  ;;  %v8350_v23 = vld [vmem:[%s8014_s26 + $0xf0] sm:$0xff]  ;;  %v8370_v30 = vpack.i.bf16 %v8356_v26, %v8353_v24  ;;  %v8376_v31 = vpack.i.bf16 %v8362_v28, %v8359_v27  ;;  %v8389_v32 = vld [vmem:[%s8014_s26 + $0x48] sm:$0xff]  ;;  %v8403_v36 = vld [vmem:[%s8014_s26 + $0x40] sm:$0xff] }
  0x47   : > { %1033 = vmatpush.msra.mxu3 %v413_v54  ;;  %v8366_v29 = vpack.i.bf16 %v8350_v23, %v8345_v22  ;;  %v8394_v33 = vld [vmem:[%s8014_s26 + $0x108] sm:$0xff]  ;;  %v8397_v34 = vld [vmem:[%s8014_s26 + $0x50] sm:$0xff]  ;;  %v8406_v40 = vld [vmem:[%s8014_s26 + $0x100] sm:$0xff] }
  0x48   : > { %5829 = vmatmul.msk.f32.gmra.mxu0 %vm542_vm0, %v8120_v25  ;;  %5837 = vmatmul.msk.f32.gmra.mxu1 %vm542_vm0, %v8120_v25  ;;  %v8400_v35 = vld [vmem:[%s8014_s26 + $0x110] sm:$0xff]  ;;  %v8410_v42 = vpack.i.bf16 %v8394_v33, %v8389_v32  ;;  %v8420_v44 = vpack.i.bf16 %v8406_v40, %v8403_v36  ;;  %v450_v45 = vld [vmem:[%s8014_s26 + $0x60] sm:$0xff]  ;;  %v451_v47 = vld [vmem:[%s8014_s26 + $0x68] sm:$0xff] }
  0x49   : > { %5845 = vmatmul.msk.f32.gmra.mxu2 %vm542_vm0, %v8120_v25  ;;  %5853 = vmatmul.msk.f32.gmra.mxu3 %vm542_vm0, %v8120_v25  ;;  %v8414_v43 = vpack.i.bf16 %v8400_v35, %v8397_v34  ;;  %v474_v46 = vld [vmem:[%s8014_s26 + $0x120] sm:$0xff]  ;;  %v475_v48 = vld [vmem:[%s8014_s26 + $0x128] sm:$0xff]  ;;  %v8441_v54 = vld [vmem:[%s8014_s26 + $0x58] sm:$0xff] }
  0x4a   : > { %6178 = vrot.lane.b32.xlu2 %v8144_v38, %s7861_s18  ;;  %16351 = vst [vmem:[#allocation16_spill] sm:$0xff] %v8410_v42 }
  0x4b   : > { %6173 = vrot.lane.b32.xlu1 %v8142_v37, %s7861_s18  ;;  %6168 = vrot.lane.b32.xlu0 %v8148_v39, %s7861_s18  ;;  %16352 = vst [vmem:[#allocation17_spill] sm:$0xff] %v8414_v43 }
  0x50   : > { %5830 = vmatmul.msk.f32.gmra.mxu0 %vm542_vm0, %v8166_v41  ;;  %5838 = vmatmul.msk.f32.gmra.mxu1 %vm542_vm0, %v8166_v41 }
  0x51   : > { %5846 = vmatmul.msk.f32.gmra.mxu2 %vm542_vm0, %v8166_v41  ;;  %5854 = vmatmul.msk.f32.gmra.mxu3 %vm542_vm0, %v8166_v41 }
  0x52   : > { %6193 = vrot.lane.b32.xlu2 %v8181_v50, %s7861_s18 }
  0x53   : > { %6188 = vrot.lane.b32.xlu1 %v8177_v49, %s7861_s18  ;;  %6183 = vrot.lane.b32.xlu0 %v8185_v51, %s7861_s18 }
  0x58   : > { %5831 = vmatmul.msk.f32.gmra.mxu0 %vm542_vm0, %v8203_v53  ;;  %5839 = vmatmul.msk.f32.gmra.mxu1 %vm542_vm0, %v8203_v53 }
  0x59   : > { %5847 = vmatmul.msk.f32.gmra.mxu2 %vm542_vm0, %v8203_v53  ;;  %5855 = vmatmul.msk.f32.gmra.mxu3 %vm542_vm0, %v8203_v53 }
  0x5a   : > { %6208 = vrot.lane.b32.xlu2 %v8212_v56, %s7861_s18 }
  0x5b   : > { %6203 = vrot.lane.b32.xlu1 %v8208_v55, %s7861_s18  ;;  %6198 = vrot.lane.b32.xlu0 %v8218_v57, %s7861_s18 }
  0x60   : > { %5832 = vmatmul.msk.f32.gmra.mxu0 %vm542_vm0, %v8235_v58  ;;  %5840 = vmatmul.msk.f32.gmra.mxu1 %vm542_vm0, %v8235_v58 }
  0x61   : > { %5848 = vmatmul.msk.f32.gmra.mxu2 %vm542_vm0, %v8235_v58  ;;  %5856 = vmatmul.msk.f32.gmra.mxu3 %vm542_vm0, %v8235_v58 }
  0x62   : > { %6223 = vrot.lane.b32.xlu2 %v8241_v60, %s7861_s18 }
  0x63   : > { %6218 = vrot.lane.b32.xlu1 %v8238_v59, %s7861_s18  ;;  %6213 = vrot.lane.b32.xlu0 %v8246_v61, %s7861_s18 }
  0x68   : > { %5833 = vmatmul.msk.f32.gmra.mxu0 %vm542_vm0, %v8263_v62  ;;  %5841 = vmatmul.msk.f32.gmra.mxu1 %vm542_vm0, %v8263_v62 }
  0x69   : > { %5849 = vmatmul.msk.f32.gmra.mxu2 %vm542_vm0, %v8263_v62  ;;  %5857 = vmatmul.msk.f32.gmra.mxu3 %vm542_vm0, %v8263_v62 }
  0x6a   : > { %6238 = vrot.lane.b32.xlu2 %v8267_v0, %s7861_s18 }
  0x6b   : > { %6233 = vrot.lane.b32.xlu1 %v8265_v63, %s7861_s18  ;;  %6228 = vrot.lane.b32.xlu0 %v8271_v1, %s7861_s18 }
  0x70   : > { %5834 = vmatmul.msk.f32.gmra.mxu0 %vm542_vm0, %v8292_v6  ;;  %5842 = vmatmul.msk.f32.gmra.mxu1 %vm542_vm0, %v8292_v6 }
  0x71   : > { %5850 = vmatmul.msk.f32.gmra.mxu2 %vm542_vm0, %v8292_v6  ;;  %5858 = vmatmul.msk.f32.gmra.mxu3 %vm542_vm0, %v8292_v6 }
  0x72   : > { %6253 = vrot.lane.b32.xlu2 %v8296_v8, %s7861_s18 }
  0x73   : > { %6248 = vrot.lane.b32.xlu1 %v8294_v7, %s7861_s18  ;;  %6243 = vrot.lane.b32.xlu0 %v8300_v9, %s7861_s18 }
  0x78   : > { %5859 = vmatmul.msk.f32.vlgmr.msrb.gmra.mxu0 %vm542_vm0, %v8059_v12  ;;  %5867 = vmatmul.msk.f32.vlgmr.msrb.gmra.mxu1 %vm542_vm0, %v8059_v12 }
  0x79   : > { %5875 = vmatmul.msk.f32.vlgmr.msrb.gmra.mxu2 %vm542_vm0, %v8059_v12  ;;  %5883 = vmatmul.msk.f32.vlgmr.msrb.gmra.mxu3 %vm542_vm0, %v8059_v12 }
  0x7a   : > { %1073 = vmatpush.msrb.mxu0 %v462_v3  ;;  %6268 = vrot.lane.b32.xlu2 %v8328_v18, %s7861_s18  ;;  %v8446_v3 = vpack.i.bf16 %v474_v46, %v450_v45  ;;  %v476_v45 = vld [vmem:[%s8014_s26 + $0x130] sm:$0xff] }
  0x7b   : > { %6263 = vrot.lane.b32.xlu1 %v8324_v17, %s7861_s18  ;;  %6258 = vrot.lane.b32.xlu0 %v8332_v20, %s7861_s18 }
  0x7c   : > { %1114 = vmatpush.msrb.mxu1 %v463_v5  ;;  %1155 = vmatpush.msrb.mxu2 %v464_v16  ;;  %16354 = vst [vmem:[#allocation19_spill] sm:$0xff] %v8446_v3  ;;  %v452_v16 = vld [vmem:[%s8014_s26 + $0x70] sm:$0xff] }
  0x7d   : > { %1196 = vmatpush.msrb.mxu3 %v465_v11  ;;  %1074 = vmatpush.msrb.mxu0 %v438_v2  ;;  %v8444_v2 = vld [vmem:[%s8014_s26 + $0x118] sm:$0xff] }
  0x7e   : > { %1115 = vmatpush.msrb.mxu1 %v439_v4  ;;  %1156 = vmatpush.msrb.mxu2 %v440_v15  ;;  %v8448_v4 = vpack.i.bf16 %v475_v48, %v451_v47  ;;  %v8454_v5 = vpack.i.bf16 %v8444_v2, %v8441_v54  ;;  %v477_v11 = vld [vmem:[%s8014_s26 + $0x138] sm:$0xff]  ;;  %v8478_v47 = vpack.i.bf16 %v476_v45, %v452_v16 }
  0x7f   : > { %1197 = vmatpush.msrb.mxu3 %v441_v10  ;;  %v453_v10 = vld [vmem:[%s8014_s26 + $0x78] sm:$0xff] }
  0x80   : > { %5860 = vmatmul.msk.f32.gmra.mxu0 %vm542_vm0, %v8091_v19  ;;  %5868 = vmatmul.msk.f32.gmra.mxu1 %vm542_vm0, %v8091_v19  ;;  %16355 = vst [vmem:[#allocation20_spill] sm:$0xff] %v8454_v5  ;;  %v8474_v46 = vpack.i.bf16 %v477_v11, %v453_v10 }
  0x81   : > { %5876 = vmatmul.msk.f32.gmra.mxu2 %vm542_vm0, %v8091_v19  ;;  %5884 = vmatmul.msk.f32.gmra.mxu3 %vm542_vm0, %v8091_v19 }
  0x82   : > { %6283 = vrot.lane.b32.xlu2 %v8370_v30, %s7861_s18 }
  0x83   : > { %6278 = vrot.lane.b32.xlu1 %v8366_v29, %s7861_s18  ;;  %6273 = vrot.lane.b32.xlu0 %v8376_v31, %s7861_s18 }
  0x88   : > { %5861 = vmatmul.msk.f32.gmra.mxu0 %vm542_vm0, %v8120_v25  ;;  %5869 = vmatmul.msk.f32.gmra.mxu1 %vm542_vm0, %v8120_v25 }
  0x89   : > { %5877 = vmatmul.msk.f32.gmra.mxu2 %vm542_vm0, %v8120_v25  ;;  %5885 = vmatmul.msk.f32.gmra.mxu3 %vm542_vm0, %v8120_v25 }
  0x8a   : > { %6298 = vrot.lane.b32.xlu2 %v8414_v43, %s7861_s18 }
  0x8b   : > { %6293 = vrot.lane.b32.xlu1 %v8410_v42, %s7861_s18  ;;  %6288 = vrot.lane.b32.xlu0 %v8420_v44, %s7861_s18 }
  0x8c   : > { %v8438_v52 = vpop.permute.xlu2 %524 }
  0x8d   : > { %16353 = vst [vmem:[#allocation18_spill] sm:$0xff] %v8438_v52 }
  0x90   : > { %5862 = vmatmul.msk.f32.gmra.mxu0 %vm542_vm0, %v8166_v41  ;;  %5870 = vmatmul.msk.f32.gmra.mxu1 %vm542_vm0, %v8166_v41 }
  0x91   : > { %5878 = vmatmul.msk.f32.gmra.mxu2 %vm542_vm0, %v8166_v41  ;;  %5886 = vmatmul.msk.f32.gmra.mxu3 %vm542_vm0, %v8166_v41 }
  0x92   : > { %6313 = vrot.lane.b32.xlu2 %v8448_v4, %s7861_s18 }
  0x93   : > { %6308 = vrot.lane.b32.xlu1 %v8446_v3, %s7861_s18  ;;  %6303 = vrot.lane.b32.xlu0 %v8454_v5, %s7861_s18 }
  0x94   : > { %v8470_v15 = vpop.permute.xlu2 %529 }
  0x95   : > { %16356 = vst [vmem:[#allocation21_spill] sm:$0xff] %v8470_v15 }
  0x98   : > { %5863 = vmatmul.msk.f32.gmra.mxu0 %vm542_vm0, %v8203_v53  ;;  %5871 = vmatmul.msk.f32.gmra.mxu1 %vm542_vm0, %v8203_v53 }
  0x99   : > { %5879 = vmatmul.msk.f32.gmra.mxu2 %vm542_vm0, %v8203_v53  ;;  %5887 = vmatmul.msk.f32.gmra.mxu3 %vm542_vm0, %v8203_v53 }
  0x9a   : > { %6328 = vrot.lane.b32.xlu2 %v8148_v39, %s7862_s17 }
  0x9b   : > { %6323 = vrot.lane.b32.xlu1 %v8474_v46, %s7861_s18  ;;  %6318 = vrot.lane.b32.xlu0 %v8478_v47, %s7861_s18 }
  0x9c   : > { %v8492_v48 = vpop.permute.xlu2 %6163 }
  0x9d   : > { %16357 = vst [vmem:[#allocation22_spill] sm:$0xff] %v8492_v48 }
  0xa0   : > { %5864 = vmatmul.msk.f32.gmra.mxu0 %vm542_vm0, %v8235_v58  ;;  %5872 = vmatmul.msk.f32.gmra.mxu1 %vm542_vm0, %v8235_v58 }
  0xa1   : > { %5880 = vmatmul.msk.f32.gmra.mxu2 %vm542_vm0, %v8235_v58  ;;  %5888 = vmatmul.msk.f32.gmra.mxu3 %vm542_vm0, %v8235_v58 }
  0xa2   : > { %6343 = vrot.lane.b32.xlu2 %v8185_v51, %s7862_s17 }
  0xa3   : > { %6338 = vrot.lane.b32.xlu1 %v8144_v38, %s7862_s17  ;;  %6333 = vrot.lane.b32.xlu0 %v8142_v37, %s7862_s17 }
  0xa4   : > { %v8512_v16 = vpop.permute.xlu2 %6178 }
  0xa5   : > { %v8508_v10 = vpop.permute.xlu1 %514  ;;  %v8510_v11 = vpop.permute.xlu0 %504  ;;  %16360 = vst [vmem:[#allocation25_spill] sm:$0xff] %v8512_v16 }
  0xa6   : > { %16358 = vst [vmem:[#allocation23_spill] sm:$0xff] %v8508_v10 }
  0xa7   : > { %16359 = vst [vmem:[#allocation24_spill] sm:$0xff] %v8510_v11 }
  0xa8   : > { %5865 = vmatmul.msk.f32.gmra.mxu0 %vm542_vm0, %v8263_v62  ;;  %5873 = vmatmul.msk.f32.gmra.mxu1 %vm542_vm0, %v8263_v62 }
  0xa9   : > { %5881 = vmatmul.msk.f32.gmra.mxu2 %vm542_vm0, %v8263_v62  ;;  %5889 = vmatmul.msk.f32.gmra.mxu3 %vm542_vm0, %v8263_v62 }
  0xaa   : > { %6358 = vrot.lane.b32.xlu2 %v8218_v57, %s7862_s17 }
  0xab   : > { %6353 = vrot.lane.b32.xlu1 %v8181_v50, %s7862_s17  ;;  %6348 = vrot.lane.b32.xlu0 %v8177_v49, %s7862_s17 }
  0xac   : > { %v8538_v52 = vpop.permute.xlu2 %6193 }
  0xad   : > { %v8528_v45 = vpop.permute.xlu1 %519  ;;  %v8530_v15 = vpop.permute.xlu0 %509  ;;  %16363 = vst [vmem:[#allocation28_spill] sm:$0xff] %v8538_v52 }
  0xae   : > { %16361 = vst [vmem:[#allocation26_spill] sm:$0xff] %v8528_v45 }
  0xaf   : > { %16362 = vst [vmem:[#allocation27_spill] sm:$0xff] %v8530_v15 }
  0xb0   : > { %5866 = vmatmul.msk.f32.gmra.mxu0 %vm542_vm0, %v8292_v6  ;;  %5874 = vmatmul.msk.f32.gmra.mxu1 %vm542_vm0, %v8292_v6 }
  0xb1   : > { %5882 = vmatmul.msk.f32.gmra.mxu2 %vm542_vm0, %v8292_v6  ;;  %5890 = vmatmul.msk.f32.gmra.mxu3 %vm542_vm0, %v8292_v6 }
  0xb2   : > { %6373 = vrot.lane.b32.xlu2 %v8246_v61, %s7862_s17 }
  0xb3   : > { %6368 = vrot.lane.b32.xlu1 %v8212_v56, %s7862_s17  ;;  %6363 = vrot.lane.b32.xlu0 %v8208_v55, %s7862_s17 }
  0xb5   : > { %v8548_v45 = vpop.permute.xlu1 %539  ;;  %v8550_v10 = vpop.permute.xlu0 %534 }
  0xb6   : > { %16364 = vst [vmem:[#allocation29_spill] sm:$0xff] %v8548_v45  ;;  %v8565_v45 = vpop.permute.xlu2 %6208 }
  0xb7   : > { %16365 = vst [vmem:[#allocation30_spill] sm:$0xff] %v8550_v10 }
  0xb8   : > { %5891 = vmatmul.msk.f32.vlgmr.msra.gmra.mxu0 %vm542_vm0, %v8059_v12  ;;  %5899 = vmatmul.msk.f32.vlgmr.msra.gmra.mxu1 %vm542_vm0, %v8059_v12 }
  0xb9   : > { %5907 = vmatmul.msk.f32.vlgmr.msra.gmra.mxu2 %vm542_vm0, %v8059_v12  ;;  %5915 = vmatmul.msk.f32.vlgmr.msra.gmra.mxu3 %vm542_vm0, %v8059_v12 }
  0xba   : > { %1237 = vmatpush.msra.mxu0 %v8320_v14  ;;  %6388 = vrot.lane.b32.xlu2 %v8271_v1, %s7862_s17 }
  0xbb   : > { %6383 = vrot.lane.b32.xlu1 %v8241_v60, %s7862_s17  ;;  %6378 = vrot.lane.b32.xlu0 %v8238_v59, %s7862_s17 }
  0xbc   : > { %1278 = vmatpush.msra.mxu1 %v8362_v28  ;;  %1319 = vmatpush.msra.mxu2 %v8350_v23 }
  0xbd   : > { %v8571_v10 = vpop.permute.xlu1 %6173  ;;  %1360 = vmatpush.msra.mxu3 %v8356_v26  ;;  %1238 = vmatpush.msra.mxu0 %v8317_v13  ;;  %v8575_v14 = vpop.permute.xlu0 %6168 }
  0xbe   : > { %16366 = vst [vmem:[#allocation31_spill] sm:$0xff] %v8571_v10  ;;  %1279 = vmatpush.msra.mxu1 %v8359_v27  ;;  %1320 = vmatpush.msra.mxu2 %v8345_v22  ;;  %v8594_v13 = vpop.permute.xlu2 %6223 }
  0xbf   : > { %16367 = vst [vmem:[#allocation32_spill] sm:$0xff] %v8575_v14  ;;  %1361 = vmatpush.msra.mxu3 %v8353_v24  ;;  %v8668_v14 = vpop.f32.mrf.mxu1 }
  0xc0   : > { %5892 = vmatmul.msk.f32.gmra.mxu0 %vm542_vm0, %v8091_v19  ;;  %5900 = vmatmul.msk.f32.gmra.mxu1 %vm542_vm0, %v8091_v19  ;;  %16374 = vst [vmem:[#allocation39_spill] sm:$0xff] %v8668_v14 }
  0xc1   : > { %5908 = vmatmul.msk.f32.gmra.mxu2 %vm542_vm0, %v8091_v19  ;;  %5916 = vmatmul.msk.f32.gmra.mxu3 %vm542_vm0, %v8091_v19 }
  0xc2   : > { %6403 = vrot.lane.b32.xlu2 %v8300_v9, %s7862_s17 }
  0xc3   : > { %6398 = vrot.lane.b32.xlu1 %v8267_v0, %s7862_s17  ;;  %6393 = vrot.lane.b32.xlu0 %v8265_v63, %s7862_s17 }
  0xc5   : > { %v8596_v22 = vpop.permute.xlu1 %6188  ;;  %v8598_v23 = vpop.permute.xlu0 %6183 }
  0xc6   : > { %v8618_v27 = vpop.permute.xlu2 %6238 }
  0xc7   : > { %16369 = vst [vmem:[#allocation34_spill] sm:$0xff] %v8618_v27  ;;  %v8706_v48 = vpop.f32.mrf.mxu1 }
  0xc8   : > { %5893 = vmatmul.msk.f32.gmra.mxu0 %vm542_vm0, %v8120_v25  ;;  %5901 = vmatmul.msk.f32.gmra.mxu1 %vm542_vm0, %v8120_v25  ;;  %16381 = vst [vmem:[#allocation46_spill] sm:$0xff] %v8706_v48 }
  0xc9   : > { %5909 = vmatmul.msk.f32.gmra.mxu2 %vm542_vm0, %v8120_v25  ;;  %5917 = vmatmul.msk.f32.gmra.mxu3 %vm542_vm0, %v8120_v25 }
  0xca   : > { %6418 = vrot.lane.b32.xlu2 %v8332_v20, %s7862_s17 }
  0xcb   : > { %6413 = vrot.lane.b32.xlu1 %v8296_v8, %s7862_s17  ;;  %6408 = vrot.lane.b32.xlu0 %v8294_v7, %s7862_s17 }
  0xcd   : > { %v8614_v24 = vpop.permute.xlu1 %6203  ;;  %v8616_v26 = vpop.permute.xlu0 %6198 }
  0xce   : > { %16368 = vst [vmem:[#allocation33_spill] sm:$0xff] %v8616_v26  ;;  %v8644_v11 = vpop.permute.xlu2 %6253 }
  0xcf   : > { %16370 = vst [vmem:[#allocation35_spill] sm:$0xff] %v8644_v11  ;;  %v8664_v11 = vpop.f32.mrf.mxu0 }
  0xd0   : > { %5894 = vmatmul.msk.f32.gmra.mxu0 %vm542_vm0, %v8166_v41  ;;  %5902 = vmatmul.msk.f32.gmra.mxu1 %vm542_vm0, %v8166_v41  ;;  %16373 = vst [vmem:[#allocation38_spill] sm:$0xff] %v8664_v11  ;;  %v8678_v11 = vpop.f32.mrf.mxu2 }
  0xd1   : > { %5910 = vmatmul.msk.f32.gmra.mxu2 %vm542_vm0, %v8166_v41  ;;  %5918 = vmatmul.msk.f32.gmra.mxu3 %vm542_vm0, %v8166_v41  ;;  %16376 = vst [vmem:[#allocation41_spill] sm:$0xff] %v8678_v11 }
  0xd2   : > { %6433 = vrot.lane.b32.xlu2 %v8376_v31, %s7862_s17 }
  0xd3   : > { %6428 = vrot.lane.b32.xlu1 %v8328_v18, %s7862_s17  ;;  %6423 = vrot.lane.b32.xlu0 %v8324_v17, %s7862_s17 }
  0xd5   : > { %v8634_v28 = vpop.permute.xlu1 %6218  ;;  %v8636_v15 = vpop.permute.xlu0 %6213 }
  0xd7   : > { %v8699_v11 = vpop.f32.mrf.mxu0 }
  0xd8   : > { %5895 = vmatmul.msk.f32.gmra.mxu0 %vm542_vm0, %v8203_v53  ;;  %5903 = vmatmul.msk.f32.gmra.mxu1 %vm542_vm0, %v8203_v53  ;;  %16380 = vst [vmem:[#allocation45_spill] sm:$0xff] %v8699_v11 }
  0xd9   : > { %5911 = vmatmul.msk.f32.gmra.mxu2 %vm542_vm0, %v8203_v53  ;;  %5919 = vmatmul.msk.f32.gmra.mxu3 %vm542_vm0, %v8203_v53 }
  0xda   : > { %6448 = vrot.lane.b32.xlu2 %v8420_v44, %s7862_s17 }
  0xdb   : > { %6443 = vrot.lane.b32.xlu1 %v8370_v30, %s7862_s17  ;;  %6438 = vrot.lane.b32.xlu0 %v8366_v29, %s7862_s17 }
  0xdd   : > { %v8654_v27 = vpop.permute.xlu1 %6233  ;;  %v8656_v16 = vpop.permute.xlu0 %6228 }
  0xde   : > { %16371 = vst [vmem:[#allocation36_spill] sm:$0xff] %v8654_v27  ;;  %v8680_v27 = vpop.f32.mrf.mxu3 }
  0xdf   : > { %16372 = vst [vmem:[#allocation37_spill] sm:$0xff] %v8656_v16  ;;  %v8674_v16 = vpop.permute.xlu2 %6268  ;;  %v8739_v48 = vpop.f32.mrf.mxu0 }
  0xe0   : > { %5896 = vmatmul.msk.f32.gmra.mxu0 %vm542_vm0, %v8235_v58  ;;  %5904 = vmatmul.msk.f32.gmra.mxu1 %vm542_vm0, %v8235_v58  ;;  %16375 = vst [vmem:[#allocation40_spill] sm:$0xff] %v8674_v16  ;;  %v478_v16 = vld [vmem:[%s8014_s26 + $0x140] sm:$0xff] }
  0xe1   : > { %5912 = vmatmul.msk.f32.gmra.mxu2 %vm542_vm0, %v8235_v58  ;;  %5920 = vmatmul.msk.f32.gmra.mxu3 %vm542_vm0, %v8235_v58  ;;  %16377 = vst [vmem:[#allocation42_spill] sm:$0xff] %v8680_v27  ;;  %v454_v27 = vld [vmem:[%s8014_s26 + $0x80] sm:$0xff] }
  0xe2   : > { %6463 = vrot.lane.b32.xlu2 %v8454_v5, %s7862_s17  ;;  %v8716_v11 = vpack.i.bf16 %v478_v16, %v454_v27  ;;  %v419_v16 = vld [vmem:[%s8006_s19 + $0xe8] sm:$0xff]  ;;  %v420_v27 = vld [vmem:[%s8006_s19 + $0xf0] sm:$0xff]  ;;  %16388 = vst [vmem:[#allocation53_spill] sm:$0xff] %v8739_v48 }
  0xe3   : > { %6458 = vrot.lane.b32.xlu1 %v8414_v43, %s7862_s17  ;;  %6453 = vrot.lane.b32.xlu0 %v8410_v42, %s7862_s17 }
  0xe4   : > { %16386 = vst [vmem:[#allocation51_spill] sm:$0xff] %v8716_v11 }
  0xe5   : > { %v8682_v10 = vpop.permute.xlu1 %6248  ;;  %v8684_v14 = vpop.permute.xlu0 %6243 }
  0xe6   : > { %16378 = vst [vmem:[#allocation43_spill] sm:$0xff] %v8682_v10  ;;  %v393_v10 = vld [vmem:[%s8006_s19 + $0x18] sm:$0xff]  ;;  %v8718_v42 = vpop.f32.mrf.mxu3 }
  0xe7   : > { %16379 = vst [vmem:[#allocation44_spill] sm:$0xff] %v8684_v14  ;;  %v417_v14 = vld [vmem:[%s8006_s19 + $0xd8] sm:$0xff]  ;;  %v8708_v43 = vpop.permute.xlu2 %6283 }
  0xe8   : > { %5897 = vmatmul.msk.f32.gmra.mxu0 %vm542_vm0, %v8263_v62  ;;  %5905 = vmatmul.msk.f32.gmra.mxu1 %vm542_vm0, %v8263_v62  ;;  %16382 = vst [vmem:[#allocation47_spill] sm:$0xff] %v8708_v43 }
  0xe9   : > { %5913 = vmatmul.msk.f32.gmra.mxu2 %vm542_vm0, %v8263_v62  ;;  %5921 = vmatmul.msk.f32.gmra.mxu3 %vm542_vm0, %v8263_v62  ;;  %16387 = vst [vmem:[#allocation52_spill] sm:$0xff] %v8718_v42  ;;  %v394_v42 = vld [vmem:[%s8006_s19 + $0x20] sm:$0xff] }
  0xea   : > { %6478 = vrot.lane.b32.xlu2 %v8478_v47, %s7862_s17 }
  0xeb   : > { %6473 = vrot.lane.b32.xlu1 %v8448_v4, %s7862_s17  ;;  %6468 = vrot.lane.b32.xlu0 %v8446_v3, %s7862_s17  ;;  %v8712_v4 = vpop.f32.mrf.mxu2  ;;  %v6492_v3 = vpack.i.bf16 %v417_v14, %v393_v10  ;;  %v395_v10 = vld [vmem:[%s8006_s19 + $0x28] sm:$0xff]  ;;  %v396_v14 = vld [vmem:[%s8006_s19 + $0x30] sm:$0xff] }
  0xec   : > { %16384 = vst [vmem:[#allocation49_spill] sm:$0xff] %v8712_v4  ;;  %v418_v4 = vld [vmem:[%s8006_s19 + $0xe0] sm:$0xff] }
  0xed   : > { %v8710_v5 = vpop.permute.xlu1 %6263  ;;  %v8714_v47 = vpop.permute.xlu0 %6258 }
  0xee   : > { %16383 = vst [vmem:[#allocation48_spill] sm:$0xff] %v8710_v5 }
  0xef   : > { %16385 = vst [vmem:[#allocation50_spill] sm:$0xff] %v8714_v47  ;;  %v8743_v47 = vpop.f32.mrf.mxu1  ;;  %v8751_v26 = vpop.permute.xlu2 %6298 }
  0xf0   : > { %5898 = vmatmul.msk.f32.gmra.mxu0 %vm542_vm0, %v8292_v6  ;;  %5906 = vmatmul.msk.f32.gmra.mxu1 %vm542_vm0, %v8292_v6  ;;  %16390 = vst [vmem:[#allocation55_spill] sm:$0xff] %v8743_v47  ;;  %v8763_v47 = vpop.f32.mrf.mxu3 }
  0xf1   : > { %5914 = vmatmul.msk.f32.gmra.mxu2 %vm542_vm0, %v8292_v6  ;;  %5922 = vmatmul.msk.f32.gmra.mxu3 %vm542_vm0, %v8292_v6  ;;  %16392 = vst [vmem:[#allocation57_spill] sm:$0xff] %v8751_v26 }
  0xf2   : > { %6493 = vrot.lane.b32.xlu2 %v6492_v3, %s7863_s13  ;;  %v8749_v3 = vpack.i.bf16 %v420_v27, %v396_v14  ;;  %16394 = vst [vmem:[#allocation59_spill] sm:$0xff] %v8763_v47  ;;  %v16432_v47 = vunpack.i.l.bf16 %v8614_v24 }
  0xf3   : > { %6488 = vrot.lane.b32.xlu1 %v8716_v11, %s7862_s17  ;;  %6483 = vrot.lane.b32.xlu0 %v8474_v46, %s7862_s17  ;;  %v8747_v11 = vpack.i.bf16 %v419_v16, %v395_v10  ;;  %v8755_v46 = vpack.i.bf16 %v418_v4, %v394_v42  ;;  %v8757_v52 = vpop.f32.mrf.mxu2 }
  0xf4   : > { %16393 = vst [vmem:[#allocation58_spill] sm:$0xff] %v8757_v52 }
  0xf5   : > { %v8741_v43 = vpop.permute.xlu1 %6278  ;;  %v8745_v5 = vpop.permute.xlu0 %6273 }
  0xf6   : > { %16389 = vst [vmem:[#allocation54_spill] sm:$0xff] %v8741_v43 }
  0xf7   : > { %16391 = vst [vmem:[#allocation56_spill] sm:$0xff] %v8745_v5 }
  0xf8   : > { %5923 = vmatmul.msk.f32.vlgmr.msrb.gmra.mxu0 %vm542_vm0, %v8059_v12  ;;  %5931 = vmatmul.msk.f32.vlgmr.msrb.gmra.mxu1 %vm542_vm0, %v8059_v12 }
  0xf9   : > { %5939 = vmatmul.msk.f32.vlgmr.msrb.gmra.mxu2 %vm542_vm0, %v8059_v12  ;;  %5947 = vmatmul.msk.f32.vlgmr.msrb.gmra.mxu3 %vm542_vm0, %v8059_v12 }
  0xfa   : > { %1401 = vmatpush.msrb.mxu0 %v8406_v40  ;;  %6508 = vrot.lane.b32.xlu2 %v8749_v3, %s7863_s13 }
  0xfb   : > { %6503 = vrot.lane.b32.xlu1 %v8747_v11, %s7863_s13  ;;  %6498 = vrot.lane.b32.xlu0 %v8755_v46, %s7863_s13 }
  0xfc   : > { %1442 = vmatpush.msrb.mxu1 %v8394_v33  ;;  %1483 = vmatpush.msrb.mxu2 %v8400_v35  ;;  %v8787_v33 = vpop.f32.mrf.mxu0  ;;  %v8789_v35 = vpop.f32.mrf.mxu1 }
  0xfd   : > { %v8776_v42 = vpop.permute.xlu1 %6293  ;;  %1524 = vmatpush.msrb.mxu3 %v8444_v2  ;;  %1402 = vmatpush.msrb.mxu0 %v8403_v36  ;;  %v8780_v12 = vpop.permute.xlu0 %6288  ;;  %16397 = vst [vmem:[#allocation62_spill] sm:$0xff] %v8787_v33 }
  0xfe   : > { %16395 = vst [vmem:[#allocation60_spill] sm:$0xff] %v8776_v42  ;;  %1443 = vmatpush.msrb.mxu1 %v8389_v32  ;;  %1484 = vmatpush.msrb.mxu2 %v8397_v34  ;;  %v8795_v36 = vpop.permute.xlu2 %6313  ;;  %v8799_v32 = vpop.f32.mrf.mxu2 }
  0xff   : > { %16396 = vst [vmem:[#allocation61_spill] sm:$0xff] %v8780_v12  ;;  %1525 = vmatpush.msrb.mxu3 %v8441_v54  ;;  %v8805_v34 = vpop.f32.mrf.mxu3 }
 0x100   : > { %5924 = vmatmul.msk.f32.gmra.mxu0 %vm542_vm0, %v8091_v19  ;;  %16398 = vst [vmem:[#allocation63_spill] sm:$0xff] %v8789_v35  ;;  %5932 = vmatmul.msk.f32.gmra.mxu1 %vm542_vm0, %v8091_v19 }
 0x101   : > { %5940 = vmatmul.msk.f32.gmra.mxu2 %vm542_vm0, %v8091_v19  ;;  %16399 = vst [vmem:[#allocation64_spill] sm:$0xff] %v8795_v36  ;;  %5948 = vmatmul.msk.f32.gmra.mxu3 %vm542_vm0, %v8091_v19 }
 0x102   : > { %16400 = vst [vmem:[#allocation65_spill] sm:$0xff] %v8799_v32  ;;  %6523 = vrot.lane.b32.xlu2 %v8142_v37, %s7863_s13 }
 0x103   : > { %6518 = vrot.lane.b32.xlu1 %v8148_v39, %s7863_s13  ;;  %16401 = vst [vmem:[#allocation66_spill] sm:$0xff] %v8805_v34  ;;  %6513 = vrot.lane.b32.xlu0 %v8097_v21, %s7863_s13  ;;  %v9070_v34 = vld [vmem:[%s8006_s19 + $0x80] sm:$0xff] }
 0x104   : > { %v8821_v19 = vpop.f32.mrf.mxu0  ;;  %v8823_v37 = vpop.f32.mrf.mxu1 }
 0x105   : > { %v8809_v40 = vpop.permute.xlu1 %6308  ;;  %v8811_v54 = vpop.permute.xlu0 %6303  ;;  %16404 = vst [vmem:[#allocation69_spill] sm:$0xff] %v8821_v19  ;;  %v6215_v19 = vunpack.i.l.bf16 %v8636_v15 }
 0x106   : > { %16402 = vst [vmem:[#allocation67_spill] sm:$0xff] %v8809_v40  ;;  %v8829_v21 = vpop.permute.xlu2 %6328  ;;  %v8833_v39 = vpop.f32.mrf.mxu2 }
 0x107   : > { %16403 = vst [vmem:[#allocation68_spill] sm:$0xff] %v8811_v54  ;;  %v8835_v2 = vpop.f32.mrf.mxu3  ;;  %v16448_v54 = vld [vmem:[#allocation33_spill] sm:$0xff] }
 0x108   : > { %5925 = vmatmul.msk.f32.gmra.mxu0 %vm542_vm0, %v8120_v25  ;;  %5933 = vmatmul.msk.f32.gmra.mxu1 %vm542_vm0, %v8120_v25  ;;  %16405 = vst [vmem:[#allocation70_spill] sm:$0xff] %v8823_v37  ;;  %v6220_v37 = vunpack.i.l.bf16 %v8634_v28  ;;  %v6201_v12 = vunpack.i.h.bf16 %v16448_v54 }
 0x109   : > { %5941 = vmatmul.msk.f32.gmra.mxu2 %vm542_vm0, %v8120_v25  ;;  %5949 = vmatmul.msk.f32.gmra.mxu3 %vm542_vm0, %v8120_v25  ;;  %16406 = vst [vmem:[#allocation71_spill] sm:$0xff] %v8833_v39  ;;  %v9083_v39 = vld [vmem:[%s8006_s19 + $0x90] sm:$0xff] }
 0x10a   : > { %6538 = vrot.lane.b32.xlu2 %v8177_v49, %s7863_s13  ;;  %16407 = vst [vmem:[#allocation72_spill] sm:$0xff] %v8835_v2 }
 0x10b   : > { %6533 = vrot.lane.b32.xlu1 %v8185_v51, %s7863_s13  ;;  %6528 = vrot.lane.b32.xlu0 %v8144_v38, %s7863_s13 }
 0x10c   : > { %v8855_v38 = vpop.f32.mrf.mxu0  ;;  %v8857_v49 = vpop.f32.mrf.mxu1 }
 0x10d   : > { %v8837_v25 = vpop.permute.xlu1 %6323  ;;  %v8839_v4 = vpop.permute.xlu0 %6318  ;;  %16410 = vst [vmem:[#allocation75_spill] sm:$0xff] %v8855_v38 }
 0x10e   : > { %16408 = vst [vmem:[#allocation73_spill] sm:$0xff] %v8837_v25  ;;  %v8859_v51 = vpop.permute.xlu2 %6343  ;;  %v8863_v16 = vpop.f32.mrf.mxu2 }
 0x10f   : > { %16409 = vst [vmem:[#allocation74_spill] sm:$0xff] %v8839_v4  ;;  %v8867_v14 = vpop.f32.mrf.mxu3  ;;  %v16433_v4 = vunpack.i.h.bf16 %v8594_v13  ;;  %v6346_v42 = vunpack.i.h.bf16 %v8859_v51 }
 0x110   : > { %5926 = vmatmul.msk.f32.gmra.mxu0 %vm542_vm0, %v8166_v41  ;;  %5934 = vmatmul.msk.f32.gmra.mxu1 %vm542_vm0, %v8166_v41  ;;  %16411 = vst [vmem:[#allocation76_spill] sm:$0xff] %v8857_v49 }
 0x111   : > { %5942 = vmatmul.msk.f32.gmra.mxu2 %vm542_vm0, %v8166_v41  ;;  %5950 = vmatmul.msk.f32.gmra.mxu3 %vm542_vm0, %v8166_v41  ;;  %16412 = vst [vmem:[#allocation77_spill] sm:$0xff] %v8863_v16 }
 0x112   : > { %6553 = vrot.lane.b32.xlu2 %v8208_v55, %s7863_s13  ;;  %16413 = vst [vmem:[#allocation78_spill] sm:$0xff] %v8867_v14 }
 0x113   : > { %6548 = vrot.lane.b32.xlu1 %v8218_v57, %s7863_s13  ;;  %6543 = vrot.lane.b32.xlu0 %v8181_v50, %s7863_s13 }
 0x114   : > { %v8887_v57 = vpop.f32.mrf.mxu0 }
 0x115   : > { %v8861_v10 = vpop.permute.xlu1 %6338  ;;  %v8865_v41 = vpop.permute.xlu0 %6333  ;;  %16414 = vst [vmem:[#allocation79_spill] sm:$0xff] %v8887_v57 }
 0x116   : > { %v8889_v27 = vpop.permute.xlu2 %6358  ;;  %v6341_v26 = vunpack.i.h.bf16 %v8861_v10 }
 0x117   : > { %v6360_v52 = vunpack.i.l.bf16 %v8889_v27 }
 0x118   : > { %5927 = vmatmul.msk.f32.gmra.mxu0 %vm542_vm0, %v8203_v53  ;;  %5935 = vmatmul.msk.f32.gmra.mxu1 %vm542_vm0, %v8203_v53 }
 0x119   : > { %5943 = vmatmul.msk.f32.gmra.mxu2 %vm542_vm0, %v8203_v53  ;;  %5951 = vmatmul.msk.f32.gmra.mxu3 %vm542_vm0, %v8203_v53  ;;  %v8893_v53 = vpop.f32.mrf.mxu1 }
 0x11a   : > { %6568 = vrot.lane.b32.xlu2 %v8238_v59, %s7863_s13  ;;  %16415 = vst [vmem:[#allocation80_spill] sm:$0xff] %v8893_v53 }
 0x11b   : > { %6563 = vrot.lane.b32.xlu1 %v8246_v61, %s7863_s13  ;;  %6558 = vrot.lane.b32.xlu0 %v8212_v56, %s7863_s13  ;;  %v8895_v61 = vpop.f32.mrf.mxu2  ;;  %v8901_v56 = vpop.f32.mrf.mxu3 }
 0x11c   : > { %16416 = vst [vmem:[#allocation81_spill] sm:$0xff] %v8895_v61 }
 0x11d   : > { %v8883_v50 = vpop.permute.xlu1 %6353  ;;  %v8885_v55 = vpop.permute.xlu0 %6348  ;;  %16417 = vst [vmem:[#allocation82_spill] sm:$0xff] %v8901_v56 }
 0x11e   : > { %v6355_v48 = vunpack.i.l.bf16 %v8883_v50 }
 0x120   : > { %5928 = vmatmul.msk.f32.gmra.mxu0 %vm542_vm0, %v8235_v58  ;;  %5936 = vmatmul.msk.f32.gmra.mxu1 %vm542_vm0, %v8235_v58 }
 0x121   : > { %5944 = vmatmul.msk.f32.gmra.mxu2 %vm542_vm0, %v8235_v58  ;;  %5952 = vmatmul.msk.f32.gmra.mxu3 %vm542_vm0, %v8235_v58  ;;  %v8921_v58 = vpop.f32.mrf.mxu0 }
 0x122   : > { %6583 = vrot.lane.b32.xlu2 %v8265_v63, %s7863_s13  ;;  %16418 = vst [vmem:[#allocation83_spill] sm:$0xff] %v8921_v58  ;;  %v1731_v58 = vlaneseq }
 0x123   : > { %6578 = vrot.lane.b32.xlu1 %v8271_v1, %s7863_s13  ;;  %6573 = vrot.lane.b32.xlu0 %v8241_v60, %s7863_s13  ;;  %v6374_v1 = vpop.permute.xlu2 %6373  ;;  %v8925_v60 = vpop.f32.mrf.mxu1 }
 0x124   : > { %16419 = vst [vmem:[#allocation84_spill] sm:$0xff] %v8925_v60  ;;  %v8927_v63 = vpop.f32.mrf.mxu2  ;;  %v8933_v56 = vpop.f32.mrf.mxu3 }
 0x125   : > { %v8913_v59 = vpop.permute.xlu1 %6368  ;;  %v8915_v61 = vpop.permute.xlu0 %6363  ;;  %16420 = vst [vmem:[#allocation85_spill] sm:$0xff] %v8927_v63 }
 0x126   : > { %16421 = vst [vmem:[#allocation86_spill] sm:$0xff] %v8933_v56  ;;  %v16426_v38 = vunpack.i.h.bf16 %v8913_v59  ;;  %v16445_v36 = vunpack.i.l.bf16 %v8913_v59 }
 0x128   : > { %5929 = vmatmul.msk.f32.gmra.mxu0 %vm542_vm0, %v8263_v62  ;;  %5937 = vmatmul.msk.f32.gmra.mxu1 %vm542_vm0, %v8263_v62 }
 0x129   : > { %5945 = vmatmul.msk.f32.gmra.mxu2 %vm542_vm0, %v8263_v62  ;;  %5953 = vmatmul.msk.f32.gmra.mxu3 %vm542_vm0, %v8263_v62  ;;  %v8945_v62 = vand.u32 127, %v1731_v58  ;;  %v8952_v63 = vpop.f32.mrf.mxu0 }
 0x12a   : > { %6598 = vrot.lane.b32.xlu2 %v8294_v7, %s7863_s13  ;;  %v6376_v7 = vunpack.i.h.bf16 %v6374_v1  ;;  %16422 = vst [vmem:[#allocation87_spill] sm:$0xff] %v8952_v63 }
 0x12b   : > { %6593 = vrot.lane.b32.xlu1 %v8300_v9, %s7863_s13  ;;  %6588 = vrot.lane.b32.xlu0 %v8267_v0, %s7863_s13  ;;  %v8954_v60 = vpop.permute.xlu2 %6388  ;;  %vm1930_vm1 = vcmp.lt.s32.totalorder %v8945_v62, 124  ;;  %v6375_v9 = vunpack.i.l.bf16 %v6374_v1  ;;  %v8977_v1 = vld [vmem:[%s15869_s3] sm:$0xff]  ;;  %vm1733_vm2 = vcmp.lt.s32.totalorder %v8945_v62, 4  ;;  %vm2809_vm3 = vcmp.lt.s32.totalorder %v8945_v62, 8 }
 0x12c   : > { %v8961_v58 = vpop.f32.mrf.mxu2  ;;  %v8965_v14 = vpop.f32.mrf.mxu3  ;;  %v15909_v49 = vunpack.i.l.bf16 %v8954_v60  ;;  %vm3054_vm4 = vcmp.lt.s32.totalorder %v8945_v62, 120  ;;  %vm3978_vm5 = vcmp.lt.s32.totalorder %v8945_v62, 12  ;;  %vm4267_vm6 = vcmp.lt.s32.totalorder %v8945_v62, 116 }
 0x12d   : > { %v6384_v56 = vpop.permute.xlu1 %6383  ;;  %v6379_v0 = vpop.permute.xlu0 %6378  ;;  %16424 = vst [vmem:[#allocation89_spill] sm:$0xff] %v8961_v58  ;;  %v6221_v58 = vunpack.i.h.bf16 %v8634_v28  ;;  %v9074_v28 = vld [vmem:[%s8006_s19 + $0x88] sm:$0xff] }
 0x12e   : > { %v6386_v53 = vunpack.i.h.bf16 %v6384_v56  ;;  %v6381_v57 = vunpack.i.h.bf16 %v6379_v0  ;;  %16425 = vst [vmem:[#allocation90_spill] sm:$0xff] %v8965_v14  ;;  %v6385_v63 = vunpack.i.l.bf16 %v6384_v56  ;;  %v6380_v16 = vunpack.i.l.bf16 %v6379_v0  ;;  %v9044_v14 = vld [vmem:[%s8006_s19 + $0x150] sm:$0xff] }
 0x130   : > { %5930 = vmatmul.msk.f32.gmra.mxu0 %vm542_vm0, %v8292_v6  ;;  %5938 = vmatmul.msk.f32.gmra.mxu1 %vm542_vm0, %v8292_v6  ;;  %v8983_v56 = vsel %vm1930_vm1, %v6376_v7, %v6381_v57  ;;  %v8987_v0 = vsel %vm1930_vm1, %v6381_v57, %v6386_v53  ;;  %v9010_v57 = vsel %vm1930_vm1, %v6375_v9, %v6380_v16 }
 0x131   : > { %5946 = vmatmul.msk.f32.gmra.mxu2 %vm542_vm0, %v8292_v6  ;;  %5954 = vmatmul.msk.f32.gmra.mxu3 %vm542_vm0, %v8292_v6  ;;  %v8959_v6 = vpop.f32.mrf.mxu1 }
 0x132   : > { %6613 = vrot.lane.b32.xlu2 %v8324_v17, %s7863_s13  ;;  %16423 = vst [vmem:[#allocation88_spill] sm:$0xff] %v8959_v6  ;;  %v15908_v17 = vunpack.i.l.bf16 %v8913_v59  ;;  %v6216_v6 = vunpack.i.h.bf16 %v8636_v15  ;;  %v16431_v15 = vunpack.i.h.bf16 %v8614_v24 }
 0x133   : > { %6608 = vrot.lane.b32.xlu1 %v8332_v20, %s7863_s13  ;;  %6603 = vrot.lane.b32.xlu0 %v8296_v8, %s7863_s13  ;;  %v15907_v20 = vunpack.i.h.bf16 %v8954_v60  ;;  %v8972_v8 = vsel %vm1930_vm1, %v16426_v38, %v6376_v7 }
 0x134   : > { %v9003_v7 = vsel %vm1930_vm1, %v15908_v17, %v6375_v9  ;;  %v9032_v9 = vld [vmem:[%s8006_s19 + $0x140] sm:$0xff]  ;;  %v9050_v2 = vpop.f32.mrf.mxu3  ;;  %v9111_v33 = vsel %vm1733_vm2, %v6216_v6, %v6221_v58 }
 0x135   : > { %v8997_v38 = vsel %vm1930_vm1, %v6386_v53, %v15907_v20  ;;  %v9014_v53 = vsel %vm1930_vm1, %v6380_v16, %v6385_v63  ;;  %v9022_v20 = vsel %vm1930_vm1, %v6385_v63, %v15909_v49  ;;  %v9028_v16 = vpop.f32.mrf.mxu0  ;;  %v9037_v63 = vpop.f32.mrf.mxu2  ;;  %v9040_v49 = vld [vmem:[%s8006_s19 + $0x148] sm:$0xff]  ;;  %16430 = vst [vmem:[#allocation94_spill] sm:$0xff] %v9050_v2  ;;  %v6366_v2 = vunpack.i.h.bf16 %v8915_v61 }
 0x136   : > { %16427 = vst [vmem:[#allocation91_spill] sm:$0xff] %v9028_v16  ;;  %v6211_v16 = vunpack.i.h.bf16 %v8565_v45 }
 0x137   : > { %16429 = vst [vmem:[#allocation93_spill] sm:$0xff] %v9037_v63  ;;  %v6210_v63 = vunpack.i.l.bf16 %v8565_v45  ;;  %v9087_v45 = vld [vmem:[%s8006_s19 + $0x98] sm:$0xff] }
 0x138   : > { %5955 = vmatmul.msk.f32.vlgmr.msra.gmra.mxu0 %vm542_vm0, %v8977_v1  ;;  %5963 = vmatmul.msk.f32.vlgmr.msra.gmra.mxu1 %vm542_vm0, %v8977_v1  ;;  %v9103_v32 = vsel %vm1733_vm2, %v16431_v15, %v6211_v16  ;;  %v9107_v35 = vsel %vm1733_vm2, %v6211_v16, %v6216_v6  ;;  %v9129_v6 = vsel %vm1733_vm2, %v6215_v19, %v6220_v37 }
 0x139   : > { %5971 = vmatmul.msk.f32.vlgmr.msra.gmra.mxu2 %vm542_vm0, %v8977_v1  ;;  %5979 = vmatmul.msk.f32.vlgmr.msra.gmra.mxu3 %vm542_vm0, %v8977_v1  ;;  %v9035_v17 = vpop.f32.mrf.mxu1  ;;  %v9121_v15 = vsel %vm1733_vm2, %v16432_v47, %v6210_v63  ;;  %v9125_v16 = vsel %vm1733_vm2, %v6210_v63, %v6215_v19  ;;  %v9139_v47 = vsel %vm1733_vm2, %v6221_v58, %v16433_v4  ;;  %v16434_v63 = vunpack.i.l.bf16 %v8594_v13 }
 0x13a   : > { %1997 = vmatpush.msra.mxu0 %v8972_v8  ;;  %2020 = vmatpush.msra.mxu1 %v8983_v56  ;;  %16428 = vst [vmem:[#allocation92_spill] sm:$0xff] %v9035_v17  ;;  %v9053_v17 = vld [vmem:[%s8006_s19 + $0x158] sm:$0xff] }
 0x13b   : > { %2043 = vmatpush.msra.mxu2 %v8987_v0  ;;  %2066 = vmatpush.msra.mxu3 %v8997_v38  ;;  %v9145_v19 = vsel %vm1733_vm2, %v6220_v37, %v16434_v63  ;;  %v16437_v63 = vunpack.i.h.bf16 %v8913_v59  ;;  %v6331_v59 = vunpack.i.h.bf16 %v8829_v21 }
 0x13c   : > { %1998 = vmatpush.msra.mxu0 %v9003_v7  ;;  %2021 = vmatpush.msra.mxu1 %v9010_v57 }
 0x13d   : > { %2044 = vmatpush.msra.mxu2 %v9014_v53  ;;  %2067 = vmatpush.msra.mxu3 %v9022_v20  ;;  %v9164_v58 = vpop.f32.mrf.mxu0  ;;  %v9177_v40 = vpop.f32.mrf.mxu2 }
 0x13e   : > { %1999 = vmatpush.msra.mxu0 %v9032_v9  ;;  %2022 = vmatpush.msra.mxu1 %v9040_v49  ;;  %16436 = vst [vmem:[#allocation95_spill] sm:$0xff] %v9164_v58  ;;  %v6190_v58 = vunpack.i.l.bf16 %v8596_v22 }
 0x13f   : > { %2045 = vmatpush.msra.mxu2 %v9044_v14  ;;  %2068 = vmatpush.msra.mxu3 %v9053_v17  ;;  %16439 = vst [vmem:[#allocation97_spill] sm:$0xff] %v9177_v40 }
 0x140   : > { %6623 = vrot.lane.b32.xlu1 %v8376_v31, %s7863_s13  ;;  %6618 = vrot.lane.b32.xlu0 %v8328_v18, %s7863_s13  ;;  %v6361_v18 = vunpack.i.h.bf16 %v8889_v27  ;;  %v9093_v31 = vld [vmem:[%s15869_s3 + $0x8] sm:$0xff]  ;;  %v6365_v27 = vunpack.i.l.bf16 %v8915_v61  ;;  %v6191_v61 = vunpack.i.h.bf16 %v8596_v22  ;;  %v16443_v22 = vunpack.i.l.bf16 %v8885_v55 }
 0x141   : > { %6628 = vrot.lane.b32.xlu2 %v8366_v29, %s7863_s13  ;;  %2000 = vmatpush.msra.mxu0 %v9070_v34  ;;  %v6356_v29 = vunpack.i.h.bf16 %v8883_v50  ;;  %v16435_v50 = vunpack.i.h.bf16 %v8885_v55 }
 0x142   : > { %2023 = vmatpush.msra.mxu1 %v9074_v28  ;;  %2046 = vmatpush.msra.mxu2 %v9083_v39  ;;  %v9162_v37 = vsel %vm1930_vm1, %v6361_v18, %v6366_v2 }
 0x143   : > { %2069 = vmatpush.msra.mxu3 %v9087_v45  ;;  %5956 = vmatmul.msk.f32.gmra.mxu0 %vm542_vm0, %v9093_v31  ;;  %v9154_v25 = vsel %vm1930_vm1, %v16435_v50, %v6356_v29  ;;  %v9158_v4 = vsel %vm1930_vm1, %v6356_v29, %v6361_v18  ;;  %v9173_v50 = vsel %vm1930_vm1, %v6366_v2, %v16437_v63  ;;  %v9175_v29 = vpop.f32.mrf.mxu1  ;;  %v9181_v18 = vpop.f32.mrf.mxu3 }
 0x144   : > { %5964 = vmatmul.msk.f32.gmra.mxu1 %vm542_vm0, %v9093_v31  ;;  %5972 = vmatmul.msk.f32.gmra.mxu2 %vm542_vm0, %v9093_v31  ;;  %16438 = vst [vmem:[#allocation96_spill] sm:$0xff] %v9175_v29  ;;  %v9191_v2 = vsel %vm1930_vm1, %v6355_v48, %v6360_v52  ;;  %v9195_v63 = vsel %vm1930_vm1, %v6360_v52, %v6365_v27 }
 0x145   : > { %5980 = vmatmul.msk.f32.gmra.mxu3 %vm542_vm0, %v9093_v31  ;;  %2001 = vmatpush.msra.mxu0 %v9103_v32  ;;  %16440 = vst [vmem:[#allocation98_spill] sm:$0xff] %v9181_v18  ;;  %v9207_v29 = vsel %vm1930_vm1, %v16443_v22, %v6355_v48  ;;  %v9213_v52 = vsel %vm1930_vm1, %v6365_v27, %v16445_v36  ;;  %v16447_v18 = vld [vmem:[#allocation28_spill] sm:$0xff]  ;;  %v6200_v48 = vunpack.i.l.bf16 %v16448_v54  ;;  %v9228_v36 = vld [vmem:[%s15869_s3 + $0x10] sm:$0xff]  ;;  %v6336_v27 = vunpack.i.h.bf16 %v8865_v41  ;;  %v9263_v5 = vpop.f32.mrf.mxu0 }
 0x146   : > { %2024 = vmatpush.msra.mxu1 %v9107_v35  ;;  %2047 = vmatpush.msra.mxu2 %v9111_v33  ;;  %16441 = vst [vmem:[#allocation99_spill] sm:$0xff] %v9191_v2  ;;  %v6196_v40 = vunpack.i.h.bf16 %v16447_v18  ;;  %v16450_v54 = vunpack.i.h.bf16 %v8598_v23  ;;  %v16452_v22 = vunpack.i.l.bf16 %v8598_v23 }
 0x147   : > { %2070 = vmatpush.msra.mxu3 %v9139_v47  ;;  %2002 = vmatpush.msra.mxu0 %v9121_v15  ;;  %16442 = vst [vmem:[#allocation100_spill] sm:$0xff] %v9195_v63 }
 0x148   : > { %2025 = vmatpush.msra.mxu1 %v9125_v16  ;;  %2048 = vmatpush.msra.mxu2 %v9129_v6  ;;  %16444 = vst [vmem:[#allocation101_spill] sm:$0xff] %v9207_v29  ;;  %v9257_v43 = vsel %vm1733_vm2, %v6191_v61, %v6196_v40 }
 0x149   : > { %2071 = vmatpush.msra.mxu3 %v9145_v19  ;;  %2003 = vmatpush.msra.mxu0 %v9154_v25  ;;  %16446 = vst [vmem:[#allocation102_spill] sm:$0xff] %v9213_v52 }
 0x14a   : > { %2026 = vmatpush.msra.mxu1 %v9158_v4  ;;  %2049 = vmatpush.msra.mxu2 %v9162_v37  ;;  %16456 = vst [vmem:[#allocation104_spill] sm:$0xff] %v9263_v5  ;;  %v6330_v5 = vunpack.i.l.bf16 %v8829_v21  ;;  %v6335_v21 = vunpack.i.l.bf16 %v8865_v41  ;;  %v16466_v41 = vunpack.i.h.bf16 %v8885_v55 }
 0x14b   : > { %2072 = vmatpush.msra.mxu3 %v9173_v50  ;;  %6638 = vrot.lane.b32.xlu1 %v8420_v44, %s7863_s13  ;;  %v16449_v44 = vld [vmem:[#allocation16_spill] sm:$0xff] }
 0x14c   : > { %6633 = vrot.lane.b32.xlu0 %v8370_v30, %s7863_s13  ;;  %6643 = vrot.lane.b32.xlu2 %v16449_v44, %s7863_s13  ;;  %v6195_v30 = vunpack.i.l.bf16 %v16447_v18  ;;  %v9242_v18 = vsel %vm1733_vm2, %v16450_v54, %v6191_v61  ;;  %v9248_v44 = vsel %vm1733_vm2, %v16452_v22, %v6190_v58  ;;  %16454 = vst [vmem:[#allocation16_spill] sm:$0xff] %v9257_v43  ;;  %v16457_v22 = vunpack.i.h.bf16 %v8614_v24 }
 0x14d   : > { %2004 = vmatpush.msra.mxu0 %v9207_v29  ;;  %2027 = vmatpush.msra.mxu1 %v9191_v2  ;;  %16451 = vst [vmem:[#allocation28_spill] sm:$0xff] %v9242_v18  ;;  %v9261_v54 = vsel %vm1733_vm2, %v6196_v40, %v6201_v12  ;;  %v7407_v2 = vld [vmem:[%s8014_s26 + $0x138] sm:$0xff] }
 0x14e   : > { %2050 = vmatpush.msra.mxu2 %v9195_v63  ;;  %2073 = vmatpush.msra.mxu3 %v9213_v52  ;;  %16453 = vst [vmem:[#allocation33_spill] sm:$0xff] %v9248_v44  ;;  %v9271_v52 = vsel %vm1733_vm2, %v6201_v12, %v16457_v22  ;;  %v9275_v61 = vsel %vm1733_vm2, %v6190_v58, %v6195_v30  ;;  %v16463_v12 = vunpack.i.l.bf16 %v8614_v24  ;;  %v6345_v22 = vunpack.i.l.bf16 %v8859_v51  ;;  %v16468_v51 = vld [vmem:[#allocation17_spill] sm:$0xff] }
 0x14f   : > { %5957 = vmatmul.msk.f32.gmra.mxu0 %vm542_vm0, %v9228_v36  ;;  %5965 = vmatmul.msk.f32.gmra.mxu1 %vm542_vm0, %v9228_v36  ;;  %16455 = vst [vmem:[#allocation103_spill] sm:$0xff] %v9261_v54  ;;  %v9279_v40 = vsel %vm1733_vm2, %v6195_v30, %v6200_v48  ;;  %v9295_v30 = vpop.f32.mrf.mxu3  ;;  %v1992_v24 = vsel %vm1930_vm1, %v6336_v27, %v6341_v26 }
 0x150   : > { %5973 = vmatmul.msk.f32.gmra.mxu2 %vm542_vm0, %v9228_v36  ;;  %5981 = vmatmul.msk.f32.gmra.mxu3 %vm542_vm0, %v9228_v36  ;;  %16458 = vst [vmem:[#allocation105_spill] sm:$0xff] %v9271_v52  ;;  %v9293_v58 = vsel %vm1733_vm2, %v6200_v48, %v16463_v12  ;;  %v1990_v48 = vsel %vm1930_vm1, %v6341_v26, %v6346_v42 }
 0x151   : > { %2005 = vmatpush.msra.mxu0 %v9242_v18  ;;  %2028 = vmatpush.msra.mxu1 %v9257_v43  ;;  %16459 = vst [vmem:[#allocation106_spill] sm:$0xff] %v9275_v61  ;;  %v9282_v18 = vpop.f32.mrf.mxu1  ;;  %v9284_v43 = vpop.f32.mrf.mxu2  ;;  %v1988_v12 = vsel %vm1930_vm1, %v6346_v42, %v16466_v41  ;;  %v1993_v26 = vsel %vm1930_vm1, %v6330_v5, %v6335_v21  ;;  %v9331_v5 = vld [vmem:[%s15869_s3 + $0x18] sm:$0xff] }
 0x152   : > { %2051 = vmatpush.msra.mxu2 %v9261_v54  ;;  %16460 = vst [vmem:[#allocation107_spill] sm:$0xff] %v9279_v40  ;;  %v6340_v54 = vunpack.i.l.bf16 %v8861_v10  ;;  %2074 = vmatpush.msra.mxu3 %v9271_v52  ;;  %v1994_v10 = vsel %vm1930_vm1, %v6331_v59, %v6336_v27  ;;  %v16467_v59 = vld [vmem:[#allocation20_spill] sm:$0xff] }
 0x153   : > { %16461 = vst [vmem:[#allocation108_spill] sm:$0xff] %v9282_v18  ;;  %2006 = vmatpush.msra.mxu0 %v9248_v44  ;;  %2029 = vmatpush.msra.mxu1 %v9275_v61  ;;  %v9373_v18 = vld [vmem:[%s8006_s19 + $0x40] sm:$0xff]  ;;  %v7402_v61 = vld [vmem:[%s8014_s26 + $0x68] sm:$0xff] }
 0x154   : > { %16462 = vst [vmem:[#allocation109_spill] sm:$0xff] %v9284_v43  ;;  %2052 = vmatpush.msra.mxu2 %v9279_v40  ;;  %2075 = vmatpush.msra.mxu3 %v9293_v58  ;;  %v1991_v27 = vsel %vm1930_vm1, %v6335_v21, %v6340_v54  ;;  %v1989_v42 = vsel %vm1930_vm1, %v6340_v54, %v6345_v22  ;;  %v16472_v54 = vld [vmem:[#allocation22_spill] sm:$0xff]  ;;  %v16473_v21 = vld [vmem:[#allocation31_spill] sm:$0xff]  ;;  %v7403_v44 = vld [vmem:[%s8014_s26 + $0x128] sm:$0xff] }
 0x155   : > { %16464 = vst [vmem:[#allocation110_spill] sm:$0xff] %v9293_v58  ;;  %2007 = vmatpush.msra.mxu0 %v1994_v10  ;;  %2030 = vmatpush.msra.mxu1 %v1992_v24  ;;  %v16469_v10 = vld [vmem:[#allocation19_spill] sm:$0xff]  ;;  %v16470_v24 = vunpack.i.l.bf16 %v8885_v55  ;;  %v6166_v55 = vunpack.i.h.bf16 %v16472_v54  ;;  %v6176_v41 = vunpack.i.h.bf16 %v16473_v21  ;;  %v7401_v58 = vld [vmem:[%s8014_s26 + $0x130] sm:$0xff]  ;;  %v9386_v52 = vpack.i.bf16 %v7403_v44, %v7402_v61  ;;  %v9405_v61 = vpop.permute.xlu1 %6398 }
 0x156   : > { %16465 = vst [vmem:[#allocation111_spill] sm:$0xff] %v9295_v30  ;;  %2053 = vmatpush.msra.mxu2 %v1990_v48  ;;  %2076 = vmatpush.msra.mxu3 %v1988_v12 }
 0x157   : > { %6653 = vrot.lane.b32.xlu1 %v16467_v59, %s7863_s13  ;;  %6648 = vrot.lane.b32.xlu0 %v16468_v51, %s7863_s13  ;;  %v1987_v48 = vsel %vm1930_vm1, %v6345_v22, %v16470_v24  ;;  %16471 = vst [vmem:[#allocation20_spill] sm:$0xff] %v9331_v5  ;;  %v16474_v22 = vld [vmem:[#allocation32_spill] sm:$0xff]  ;;  %v9340_v59 = vpop.f32.mrf.mxu0  ;;  %v16476_v51 = vld [vmem:[#allocation25_spill] sm:$0xff] }
 0x158   : > { %6658 = vrot.lane.b32.xlu2 %v16469_v10, %s7863_s13  ;;  %2008 = vmatpush.msra.mxu0 %v1993_v26  ;;  %v6171_v12 = vunpack.i.h.bf16 %v16474_v22  ;;  %16475 = vst [vmem:[#allocation17_spill] sm:$0xff] %v9340_v59  ;;  %v6181_v10 = vunpack.i.h.bf16 %v16476_v51  ;;  %v9356_v24 = vld [vmem:[%s8006_s19 + $0x108] sm:$0xff]  ;;  %v9360_v59 = vpop.f32.mrf.mxu3  ;;  %v6180_v30 = vunpack.i.l.bf16 %v16476_v51  ;;  %v6170_v43 = vunpack.i.l.bf16 %v16474_v22  ;;  %v9390_v51 = vld [vmem:[%s8006_s19 + $0x50] sm:$0xff] }
 0x159   : > { %2031 = vmatpush.msra.mxu1 %v1991_v27  ;;  %2054 = vmatpush.msra.mxu2 %v1989_v42  ;;  %v9347_v26 = vpop.f32.mrf.mxu1  ;;  %v9349_v27 = vpop.f32.mrf.mxu2  ;;  %v9352_v42 = vld [vmem:[%s8006_s19 + $0x100] sm:$0xff]  ;;  %16479 = vst [vmem:[#allocation31_spill] sm:$0xff] %v9360_v59  ;;  %v7400_v59 = vld [vmem:[%s8014_s26 + $0x70] sm:$0xff]  ;;  %v6175_v22 = vunpack.i.l.bf16 %v16473_v21 }
 0x15a   : > { %2077 = vmatpush.msra.mxu3 %v1987_v48  ;;  %5958 = vmatmul.msk.f32.gmra.mxu0 %vm542_vm0, %v9331_v5  ;;  %16477 = vst [vmem:[#allocation19_spill] sm:$0xff] %v9347_v26  ;;  %v6165_v48 = vunpack.i.l.bf16 %v16472_v54  ;;  %v9363_v26 = vld [vmem:[%s8006_s19 + $0x110] sm:$0xff]  ;;  %v9377_v54 = vld [vmem:[%s8006_s19 + $0x48] sm:$0xff]  ;;  %v9382_v40 = vpack.i.bf16 %v7401_v58, %v7400_v59  ;;  %v1797_v63 = vsel %vm1733_vm2, %v6166_v55, %v6171_v12  ;;  %v7406_v59 = vld [vmem:[%s8014_s26 + $0x78] sm:$0xff]  ;;  %v9407_v21 = vpop.permute.xlu0 %6393  ;;  %v16483_v55 = vunpack.i.h.bf16 %v8598_v23 }
 0x15b   : > { %5966 = vmatmul.msk.f32.gmra.mxu1 %vm542_vm0, %v9331_v5  ;;  %5974 = vmatmul.msk.f32.gmra.mxu2 %vm542_vm0, %v9331_v5  ;;  %16478 = vst [vmem:[#allocation22_spill] sm:$0xff] %v9349_v27  ;;  %v9367_v27 = vld [vmem:[%s8006_s19 + $0x118] sm:$0xff]  ;;  %v1795_v58 = vsel %vm1733_vm2, %v6171_v12, %v6176_v41  ;;  %v9403_v44 = vpack.i.bf16 %v7407_v2, %v7406_v59 }
 0x15c   : > { %5982 = vmatmul.msk.f32.gmra.mxu3 %vm542_vm0, %v9331_v5  ;;  %2009 = vmatpush.msra.mxu0 %v9352_v42  ;;  %16480 = vst [vmem:[#allocation32_spill] sm:$0xff] %v9382_v40  ;;  %v9394_v5 = vld [vmem:[%s8006_s19 + $0x58] sm:$0xff]  ;;  %v1793_v29 = vsel %vm1733_vm2, %v6176_v41, %v6181_v10  ;;  %v1791_v12 = vsel %vm1733_vm2, %v6181_v10, %v16483_v55  ;;  %v455_v41 = vld [vmem:[%s8014_s26 + $0x88] sm:$0xff]  ;;  %v480_v55 = vld [vmem:[%s8014_s26 + $0x150] sm:$0xff] }
 0x15d   : > { %2032 = vmatpush.msra.mxu1 %v9356_v24  ;;  %2055 = vmatpush.msra.mxu2 %v9363_v26  ;;  %16481 = vst [vmem:[#allocation25_spill] sm:$0xff] %v9386_v52  ;;  %v1796_v2 = vsel %vm1733_vm2, %v6165_v48, %v6170_v43  ;;  %v479_v10 = vld [vmem:[%s8014_s26 + $0x148] sm:$0xff]  ;;  %v456_v48 = vld [vmem:[%s8014_s26 + $0x90] sm:$0xff] }
 0x15e   : > { %2078 = vmatpush.msra.mxu3 %v9367_v27  ;;  %2010 = vmatpush.msra.mxu0 %v9373_v18  ;;  %16482 = vst [vmem:[#allocation112_spill] sm:$0xff] %v9403_v44 }
 0x15f   : > { %2033 = vmatpush.msra.mxu1 %v9377_v54  ;;  %2056 = vmatpush.msra.mxu2 %v9390_v51 }
 0x160   : > { %2079 = vmatpush.msra.mxu3 %v9394_v5  ;;  %2011 = vmatpush.msra.mxu0 %v1797_v63  ;;  %v1794_v63 = vsel %vm1733_vm2, %v6170_v43, %v6175_v22  ;;  %v9440_v43 = vld [vmem:[%s15869_s3 + $0x20] sm:$0xff] }
 0x161   : > { %2034 = vmatpush.msra.mxu1 %v1795_v58  ;;  %2057 = vmatpush.msra.mxu2 %v1793_v29  ;;  %v1792_v29 = vsel %vm1733_vm2, %v6175_v22, %v6180_v30  ;;  %v16484_v58 = vunpack.i.l.bf16 %v8598_v23  ;;  %v9444_v22 = vpop.f32.mrf.mxu1  ;;  %v9446_v23 = vpop.f32.mrf.mxu2 }
 0x162   : > { %2080 = vmatpush.msra.mxu3 %v1791_v12  ;;  %6668 = vrot.lane.b32.xlu1 %v9382_v40, %s7863_s13  ;;  %v9435_v12 = vpop.f32.mrf.mxu0  ;;  %16486 = vst [vmem:[#allocation114_spill] sm:$0xff] %v9444_v22  ;;  %v16537_v40 = vld [vmem:[#allocation44_spill] sm:$0xff] }
 0x163   : > { %6663 = vrot.lane.b32.xlu0 %v9386_v52, %s7863_s13  ;;  %6673 = vrot.lane.b32.xlu2 %v9403_v44, %s7863_s13  ;;  %v1790_v59 = vsel %vm1733_vm2, %v6180_v30, %v16484_v58  ;;  %16485 = vst [vmem:[#allocation113_spill] sm:$0xff] %v9435_v12  ;;  %v9452_v30 = vpack.i.bf16 %v479_v10, %v455_v41  ;;  %v9462_v58 = vpop.permute.xlu1 %6413  ;;  %v457_v41 = vld [vmem:[%s8014_s26 + $0x98] sm:$0xff] }
 0x164   : > { %2012 = vmatpush.msra.mxu0 %v1796_v2  ;;  %2035 = vmatpush.msra.mxu1 %v1794_v63  ;;  %16487 = vst [vmem:[#allocation115_spill] sm:$0xff] %v9446_v23  ;;  %v9454_v2 = vpop.permute.xlu2 %6403  ;;  %v9456_v63 = vpop.f32.mrf.mxu3  ;;  %v16492_v23 = vld [vmem:[#allocation51_spill] sm:$0xff] }
 0x165   : > { %2058 = vmatpush.msra.mxu2 %v1792_v29  ;;  %2081 = vmatpush.msra.mxu3 %v1790_v59  ;;  %16488 = vst [vmem:[#allocation116_spill] sm:$0xff] %v9452_v30  ;;  %v9460_v29 = vpack.i.bf16 %v480_v55, %v456_v48  ;;  %v9464_v59 = vpop.permute.xlu0 %6408  ;;  %v481_v10 = vld [vmem:[%s8014_s26 + $0x158] sm:$0xff]  ;;  %v9477_v48 = vld [vmem:[%s15869_s3 + $0x28] sm:$0xff] }
 0x166   : > { %5959 = vmatmul.msk.f32.gmra.mxu0 %vm542_vm0, %v9440_v43  ;;  %5967 = vmatmul.msk.f32.gmra.mxu1 %vm542_vm0, %v9440_v43  ;;  %16489 = vst [vmem:[#allocation117_spill] sm:$0xff] %v9456_v63  ;;  %v9485_v55 = vpack.i.bf16 %v481_v10, %v457_v41  ;;  %v9720_v52 = vld [vmem:[%s8006_s19 + $0xb8] sm:$0xff] }
 0x167   : > { %5975 = vmatmul.msk.f32.gmra.mxu2 %vm542_vm0, %v9440_v43  ;;  %5983 = vmatmul.msk.f32.gmra.mxu3 %vm542_vm0, %v9440_v43  ;;  %16490 = vst [vmem:[#allocation118_spill] sm:$0xff] %v9460_v29 }
 0x168   : > { %16491 = vst [vmem:[#allocation119_spill] sm:$0xff] %v9464_v59 }
 0x169   : > { %16493 = vst [vmem:[#allocation51_spill] sm:$0xff] %v9485_v55  ;;  %v9491_v63 = vpop.f32.mrf.mxu1  ;;  %v9493_v22 = vpop.f32.mrf.mxu2 }
 0x16a   : > { %6683 = vrot.lane.b32.xlu1 %v9452_v30, %s7863_s13  ;;  %16495 = vst [vmem:[#allocation121_spill] sm:$0xff] %v9491_v63  ;;  %v6717_v63 = vpack.i.bf16 %v9352_v42, %v9373_v18  ;;  %v9543_v18 = vld [vmem:[%s15869_s3 + $0x38] sm:$0xff] }
 0x16b   : > { %6678 = vrot.lane.b32.xlu0 %v16492_v23, %s7863_s13  ;;  %6688 = vrot.lane.b32.xlu2 %v9460_v29, %s7863_s13  ;;  %v9487_v23 = vpop.f32.mrf.mxu0  ;;  %16496 = vst [vmem:[#allocation122_spill] sm:$0xff] %v9493_v22  ;;  %v9505_v41 = vpop.permute.xlu1 %6428  ;;  %v9512_v22 = vld [vmem:[%s15869_s3 + $0x30] sm:$0xff] }
 0x16c   : > { %16494 = vst [vmem:[#allocation120_spill] sm:$0xff] %v9487_v23  ;;  %v9495_v12 = vpop.permute.xlu2 %6418  ;;  %v9497_v29 = vpop.f32.mrf.mxu3 }
 0x16d   : > { %16497 = vst [vmem:[#allocation123_spill] sm:$0xff] %v9497_v29  ;;  %v9507_v10 = vpop.permute.xlu0 %6423 }
 0x16e   : > { %5960 = vmatmul.msk.f32.gmra.mxu0 %vm542_vm0, %v9477_v48  ;;  %5968 = vmatmul.msk.f32.gmra.mxu1 %vm542_vm0, %v9477_v48  ;;  %16498 = vst [vmem:[#allocation124_spill] sm:$0xff] %v9505_v41  ;;  %v9705_v41 = vld [vmem:[%s8006_s19 + $0xa0] sm:$0xff] }
 0x16f   : > { %5976 = vmatmul.msk.f32.gmra.mxu2 %vm542_vm0, %v9477_v48  ;;  %5984 = vmatmul.msk.f32.gmra.mxu3 %vm542_vm0, %v9477_v48  ;;  %16499 = vst [vmem:[#allocation125_spill] sm:$0xff] %v9507_v10  ;;  %v9716_v10 = vld [vmem:[%s8006_s19 + $0xb0] sm:$0xff] }
 0x170   : > { %16540 = vst [vmem:[#allocation154_spill] sm:$0xff] %v9705_v41 }
 0x171   : > { %v9530_v30 = vpop.f32.mrf.mxu2  ;;  %16542 = vst [vmem:[#allocation156_spill] sm:$0xff] %v9716_v10 }
 0x172   : > { %6698 = vrot.lane.b32.xlu1 %v8755_v46, %s7864_s16  ;;  %v7411_v46 = vld [vmem:[%s8006_s19 + $0x38] sm:$0xff]  ;;  %16502 = vst [vmem:[#allocation128_spill] sm:$0xff] %v9530_v30  ;;  %v6406_v30 = vunpack.i.h.bf16 %v9454_v2 }
 0x173   : > { %6693 = vrot.lane.b32.xlu0 %v9485_v55, %s7863_s13  ;;  %6703 = vrot.lane.b32.xlu2 %v8747_v11, %s7864_s16  ;;  %v7412_v11 = vld [vmem:[%s8006_s19 + $0xf8] sm:$0xff]  ;;  %v9526_v23 = vpop.f32.mrf.mxu0  ;;  %v9528_v55 = vpop.f32.mrf.mxu1  ;;  %16543 = vst [vmem:[#allocation157_spill] sm:$0xff] %v9720_v52  ;;  %s15685_s13 = scalar_select %p384_p4, %s7847_s27, 1 }
 0x174   : > { %v6712_v29 = vpack.i.bf16 %v7412_v11, %v7411_v46  ;;  %16500 = vst [vmem:[#allocation126_spill] sm:$0xff] %v9526_v23  ;;  %v9535_v44 = vpop.permute.xlu2 %6433  ;;  %v9537_v46 = vpop.f32.mrf.mxu3  ;;  %v6732_v11 = vpack.i.bf16 %v9367_v27, %v9394_v5  ;;  %v6405_v27 = vunpack.i.l.bf16 %v9454_v2  ;;  %s5675_s27 = scalar_lea.sflag [#allocation4], %s7999_s8 }
 0x175   : > { %16501 = vst [vmem:[#allocation127_spill] sm:$0xff] %v9528_v55  ;;  %v9547_v42 = vpop.permute.xlu1 %6443  ;;  %s6074_s20 = sshll.u32 %s15685_s13, 4  ;;  %s7789_s13 = scalar_lea.hbm %s15873_s7, 768 }
 0x176   : > { %5961 = vmatmul.msk.f32.gmra.mxu0 %vm542_vm0, %v9512_v22  ;;  %5969 = vmatmul.msk.f32.gmra.mxu1 %vm542_vm0, %v9512_v22  ;;  %16503 = vst [vmem:[#allocation129_spill] sm:$0xff] %v9535_v44 }
 0x177   : > { %5977 = vmatmul.msk.f32.gmra.mxu2 %vm542_vm0, %v9512_v22  ;;  %5985 = vmatmul.msk.f32.gmra.mxu3 %vm542_vm0, %v9512_v22  ;;  %16504 = vst [vmem:[#allocation130_spill] sm:$0xff] %v9537_v46  ;;  %v6396_v46 = vunpack.i.h.bf16 %v9407_v21 }
 0x178   : > { %16505 = vst [vmem:[#allocation131_spill] sm:$0xff] %v9547_v42  ;;  %v9671_v42 = vld [vmem:[%s8006_s19 + $0x160] sm:$0xff] }
 0x179   : > { %16527 = vst [vmem:[#allocation149_spill] sm:$0xff] %v9671_v42 }
 0x17a   : > { %6713 = vrot.lane.b32.xlu1 %v6712_v29, %s7864_s16  ;;  %v9549_v29 = vpop.permute.xlu0 %6438 }
 0x17b   : > { %6708 = vrot.lane.b32.xlu0 %v8749_v3, %s7864_s16  ;;  %6718 = vrot.lane.b32.xlu2 %v6717_v63, %s7864_s16  ;;  %16506 = vst [vmem:[#allocation132_spill] sm:$0xff] %v9549_v29  ;;  %v6727_v3 = vpack.i.bf16 %v9363_v26, %v9390_v51  ;;  %v6722_v63 = vpack.i.bf16 %v9356_v24, %v9377_v54  ;;  %v9567_v55 = vpop.f32.mrf.mxu0  ;;  %v6401_v26 = vunpack.i.h.bf16 %v9405_v61  ;;  %v9571_v24 = vpop.f32.mrf.mxu1  ;;  %v6395_v54 = vunpack.i.l.bf16 %v9407_v21 }
 0x17c   : > { %16507 = vst [vmem:[#allocation133_spill] sm:$0xff] %v9567_v55  ;;  %v9574_v51 = vpop.f32.mrf.mxu2  ;;  %v9581_v23 = vpop.f32.mrf.mxu3  ;;  %v16512_v21 = vunpack.i.h.bf16 %v8954_v60  ;;  %v9655_v55 = vld [vmem:[%s8006_s19 + $0x60] sm:$0xff] }
 0x17d   : > { %16508 = vst [vmem:[#allocation134_spill] sm:$0xff] %v9571_v24  ;;  %v9601_v2 = vsel %vm1930_vm1, %v6396_v46, %v6401_v26  ;;  %v9607_v5 = vpop.permute.xlu1 %6458  ;;  %v9652_v24 = vld [vmem:[%s8006_s19 + $0x120] sm:$0xff] }
 0x17e   : > { %5962 = vmatmul.msk.f32.gmra.mxu0 %vm542_vm0, %v9543_v18  ;;  %5970 = vmatmul.msk.f32.gmra.mxu1 %vm542_vm0, %v9543_v18  ;;  %16509 = vst [vmem:[#allocation135_spill] sm:$0xff] %v9574_v51 }
 0x17f   : > { %5978 = vmatmul.msk.f32.gmra.mxu2 %vm542_vm0, %v9543_v18  ;;  %5986 = vmatmul.msk.f32.gmra.mxu3 %vm542_vm0, %v9543_v18  ;;  %16511 = vst [vmem:[#allocation137_spill] sm:$0xff] %v9581_v23 }
 0x180   : > { %16514 = vst [vmem:[#allocation139_spill] sm:$0xff] %v9601_v2 }
 0x181   : > { %16516 = vst [vmem:[#allocation141_spill] sm:$0xff] %v9607_v5  ;;  %v6737_v5 = vpack.i.bf16 %v9652_v24, %v9655_v55 }
 0x182   : > { %6728 = vrot.lane.b32.xlu1 %v6727_v3, %s7864_s16  ;;  %v6400_v3 = vunpack.i.l.bf16 %v9405_v61  ;;  %v9594_v61 = vsel %vm1930_vm1, %v16512_v21, %v6396_v46  ;;  %v9609_v23 = vpop.permute.xlu0 %6453 }
 0x183   : > { %6723 = vrot.lane.b32.xlu0 %v6722_v63, %s7864_s16  ;;  %6733 = vrot.lane.b32.xlu2 %v6732_v11, %s7864_s16  ;;  %v9579_v63 = vpop.permute.xlu2 %6448  ;;  %16513 = vst [vmem:[#allocation138_spill] sm:$0xff] %v9594_v61  ;;  %v9605_v11 = vsel %vm1930_vm1, %v6401_v26, %v6406_v30  ;;  %v16520_v26 = vunpack.i.l.bf16 %v8954_v60  ;;  %v9636_v60 = vld [vmem:[%s8006_s19 + $0x128] sm:$0xff]  ;;  %v9682_v44 = vpop.f32.mrf.mxu0 }
 0x184   : > { %16510 = vst [vmem:[#allocation136_spill] sm:$0xff] %v9579_v63  ;;  %v9629_v51 = vsel %vm1930_vm1, %v6395_v54, %v6400_v3  ;;  %v9663_v63 = vld [vmem:[%s8006_s19 + $0x70] sm:$0xff] }
 0x185   : > { %16515 = vst [vmem:[#allocation140_spill] sm:$0xff] %v9605_v11  ;;  %v9623_v21 = vsel %vm1930_vm1, %v16520_v26, %v6395_v54  ;;  %v16524_v54 = vunpack.i.l.bf16 %v9464_v59 }
 0x186   : > { %5987 = vmatmul.msk.f32.vlgmr.msrb.gmra.mxu0 %vm542_vm0, %v8977_v1  ;;  %5995 = vmatmul.msk.f32.vlgmr.msrb.gmra.mxu1 %vm542_vm0, %v8977_v1  ;;  %16517 = vst [vmem:[#allocation142_spill] sm:$0xff] %v9609_v23  ;;  %v9660_v23 = vld [vmem:[%s8006_s19 + $0x130] sm:$0xff] }
 0x187   : > { %6003 = vmatmul.msk.f32.vlgmr.msrb.gmra.mxu2 %vm542_vm0, %v8977_v1  ;;  %6011 = vmatmul.msk.f32.vlgmr.msrb.gmra.mxu3 %vm542_vm0, %v8977_v1  ;;  %v16518_v1 = vunpack.i.h.bf16 %v9464_v59  ;;  %16521 = vst [vmem:[#allocation144_spill] sm:$0xff] %v9623_v21  ;;  %v9667_v29 = vpack.i.bf16 %v9660_v23, %v9663_v63  ;;  %v9702_v59 = vpop.f32.mrf.mxu3 }
 0x188   : > { %2089 = vmatpush.msrb.mxu0 %v9594_v61  ;;  %2112 = vmatpush.msrb.mxu1 %v9601_v2  ;;  %16522 = vst [vmem:[#allocation145_spill] sm:$0xff] %v9629_v51  ;;  %v9693_v2 = vpop.f32.mrf.mxu2 }
 0x189   : > { %2135 = vmatpush.msrb.mxu2 %v9605_v11  ;;  %v9617_v46 = vsel %vm1930_vm1, %v6406_v30, %v16518_v1  ;;  %v9633_v30 = vsel %vm1930_vm1, %v6400_v3, %v6405_v27  ;;  %v9639_v1 = vld [vmem:[%s8006_s19 + $0x68] sm:$0xff]  ;;  %v9649_v3 = vsel %vm1930_vm1, %v6405_v27, %v16524_v54  ;;  %16526 = vst [vmem:[#allocation148_spill] sm:$0xff] %v9667_v29  ;;  %v9679_v54 = vld [vmem:[%s8006_s19 + $0x170] sm:$0xff]  ;;  %v9691_v11 = vpop.f32.mrf.mxu1 }
 0x18a   : > { %16519 = vst [vmem:[#allocation143_spill] sm:$0xff] %v9617_v46  ;;  %2158 = vmatpush.msrb.mxu3 %v9617_v46  ;;  %2090 = vmatpush.msrb.mxu0 %v9623_v21  ;;  %v6742_v26 = vpack.i.bf16 %v9636_v60, %v9639_v1  ;;  %v9675_v27 = vld [vmem:[%s8006_s19 + $0x168] sm:$0xff] }
 0x18b   : > { %16523 = vst [vmem:[#allocation146_spill] sm:$0xff] %v9633_v30  ;;  %2113 = vmatpush.msrb.mxu1 %v9629_v51  ;;  %2136 = vmatpush.msrb.mxu2 %v9633_v30  ;;  %v9685_v30 = vld [vmem:[%s8006_s19 + $0x178] sm:$0xff]  ;;  %v16533_v21 = vld [vmem:[#allocation37_spill] sm:$0xff] }
 0x18c   : > { %16525 = vst [vmem:[#allocation147_spill] sm:$0xff] %v9649_v3  ;;  %2159 = vmatpush.msrb.mxu3 %v9649_v3  ;;  %2091 = vmatpush.msrb.mxu0 %v9671_v42  ;;  %v16532_v3 = vld [vmem:[#allocation36_spill] sm:$0xff]  ;;  %v6231_v46 = vunpack.i.h.bf16 %v16533_v21 }
 0x18d   : > { %16528 = vst [vmem:[#allocation150_spill] sm:$0xff] %v9675_v27  ;;  %2114 = vmatpush.msrb.mxu1 %v9675_v27  ;;  %2137 = vmatpush.msrb.mxu2 %v9679_v54  ;;  %v6236_v51 = vunpack.i.h.bf16 %v16532_v3 }
 0x18e   : > { %16529 = vst [vmem:[#allocation151_spill] sm:$0xff] %v9679_v54  ;;  %2160 = vmatpush.msrb.mxu3 %v9685_v30  ;;  %6743 = vrot.lane.b32.xlu1 %v6742_v26, %s7864_s16  ;;  %v9700_v26 = vpop.permute.xlu2 %6463 }
 0x18f   : > { %16530 = vst [vmem:[#allocation152_spill] sm:$0xff] %v9682_v44  ;;  %6738 = vrot.lane.b32.xlu0 %v6737_v5, %s7864_s16  ;;  %6748 = vrot.lane.b32.xlu2 %v9667_v29, %s7864_s16  ;;  %v16536_v44 = vld [vmem:[#allocation34_spill] sm:$0xff]  ;;  %v6230_v29 = vunpack.i.l.bf16 %v16533_v21  ;;  %v16546_v21 = vunpack.i.h.bf16 %v8594_v13 }
 0x190   : > { %16531 = vst [vmem:[#allocation153_spill] sm:$0xff] %v9685_v30  ;;  %v6241_v61 = vunpack.i.h.bf16 %v16536_v44  ;;  %2092 = vmatpush.msrb.mxu0 %v9705_v41  ;;  %v6240_v5 = vunpack.i.l.bf16 %v16536_v44  ;;  %2138 = vmatpush.msrb.mxu2 %v9716_v10  ;;  %v9728_v44 = vpop.permute.xlu1 %6473 }
 0x191   : > { %16534 = vst [vmem:[#allocation36_spill] sm:$0xff] %v9691_v11  ;;  %v9709_v11 = vld [vmem:[%s8006_s19 + $0xa8] sm:$0xff]  ;;  %2161 = vmatpush.msrb.mxu3 %v9720_v52  ;;  %5988 = vmatmul.msk.f32.gmra.mxu0 %vm542_vm0, %v9093_v31 }
 0x192   : > { %16535 = vst [vmem:[#allocation37_spill] sm:$0xff] %v9693_v2  ;;  %2115 = vmatpush.msrb.mxu1 %v9709_v11  ;;  %v6235_v2 = vunpack.i.l.bf16 %v16532_v3  ;;  %v9730_v3 = vpop.permute.xlu0 %6468  ;;  %6004 = vmatmul.msk.f32.gmra.mxu2 %vm542_vm0, %v9093_v31 }
 0x193   : > { %16538 = vst [vmem:[#allocation34_spill] sm:$0xff] %v9700_v26  ;;  %5996 = vmatmul.msk.f32.gmra.mxu1 %vm542_vm0, %v9093_v31  ;;  %6012 = vmatmul.msk.f32.gmra.mxu3 %vm542_vm0, %v9093_v31  ;;  %v9744_v26 = vsel %vm1733_vm2, %v6231_v46, %v6236_v51  ;;  %v16548_v31 = vunpack.i.h.bf16 %v16537_v40 }
 0x194   : > { %16539 = vst [vmem:[#allocation44_spill] sm:$0xff] %v9702_v59  ;;  %v9740_v59 = vsel %vm1733_vm2, %v16546_v21, %v6231_v46  ;;  %2116 = vmatpush.msrb.mxu1 %v9744_v26  ;;  %v16549_v46 = vunpack.i.l.bf16 %v8594_v13 }
 0x195   : > { %16541 = vst [vmem:[#allocation155_spill] sm:$0xff] %v9709_v11  ;;  %2093 = vmatpush.msrb.mxu0 %v9740_v59 }
 0x196   : > { %16544 = vst [vmem:[#allocation158_spill] sm:$0xff] %v9728_v44  ;;  %v9750_v44 = vsel %vm1733_vm2, %v6236_v51, %v6241_v61  ;;  %v9764_v21 = vsel %vm1733_vm2, %v16549_v46, %v6230_v29  ;;  %v9768_v51 = vsel %vm1733_vm2, %v6230_v29, %v6235_v2  ;;  %v9785_v46 = vld [vmem:[%s8006_s19 + $0x138] sm:$0xff] }
 0x197   : > { %16545 = vst [vmem:[#allocation159_spill] sm:$0xff] %v9730_v3  ;;  %v9756_v3 = vsel %vm1733_vm2, %v6241_v61, %v16548_v31  ;;  %2139 = vmatpush.msrb.mxu2 %v9750_v44  ;;  %2094 = vmatpush.msrb.mxu0 %v9764_v21  ;;  %v16553_v61 = vunpack.i.l.bf16 %v16537_v40  ;;  %v6757_v31 = vpack.i.bf16 %v9032_v9, %v9070_v34  ;;  %v9788_v29 = vld [vmem:[%s8006_s19 + $0x78] sm:$0xff]  ;;  %v9800_v34 = vpop.f32.mrf.mxu1  ;;  %v9802_v9 = vpop.f32.mrf.mxu2 }
 0x198   : > { %16547 = vst [vmem:[#allocation160_spill] sm:$0xff] %v9744_v26  ;;  %2162 = vmatpush.msrb.mxu3 %v9756_v3  ;;  %v9772_v26 = vsel %vm1733_vm2, %v6235_v2, %v6240_v5  ;;  %2117 = vmatpush.msrb.mxu1 %v9768_v51  ;;  %v6752_v2 = vpack.i.bf16 %v9785_v46, %v9788_v29 }
 0x199   : > { %16550 = vst [vmem:[#allocation161_spill] sm:$0xff] %v9764_v21  ;;  %v9780_v13 = vsel %vm1733_vm2, %v6240_v5, %v16553_v61  ;;  %2140 = vmatpush.msrb.mxu2 %v9772_v26  ;;  %v9796_v21 = vpop.f32.mrf.mxu0  ;;  %2095 = vmatpush.msrb.mxu0 %v8972_v8  ;;  %v9806_v5 = vpop.permute.xlu2 %6478 }
 0x19a   : > { %16551 = vst [vmem:[#allocation162_spill] sm:$0xff] %v9768_v51  ;;  %2163 = vmatpush.msrb.mxu3 %v9780_v13  ;;  %v6762_v51 = vpack.i.bf16 %v9040_v49, %v9074_v28  ;;  %2118 = vmatpush.msrb.mxu1 %v8983_v56  ;;  %v9808_v61 = vpop.f32.mrf.mxu3  ;;  %v9816_v49 = vpop.permute.xlu1 %6488 }
 0x19b   : > { %16552 = vst [vmem:[#allocation163_spill] sm:$0xff] %v9772_v26  ;;  %2141 = vmatpush.msrb.mxu2 %v8987_v0  ;;  %6758 = vrot.lane.b32.xlu1 %v6757_v31, %s7864_s16  ;;  %v9818_v28 = vpop.permute.xlu0 %6483 }
 0x19c   : > { %16554 = vst [vmem:[#allocation164_spill] sm:$0xff] %v9780_v13  ;;  %2164 = vmatpush.msrb.mxu3 %v8997_v38  ;;  %6753 = vrot.lane.b32.xlu0 %v6752_v2, %s7864_s16  ;;  %v6777_v2 = vpack.i.bf16 %v9671_v42, %v9705_v41 }
 0x19d   : > { %16555 = vst [vmem:[#allocation165_spill] sm:$0xff] %v9796_v21  ;;  %6763 = vrot.lane.b32.xlu2 %v6762_v51, %s7864_s16  ;;  %2096 = vmatpush.msrb.mxu0 %v9003_v7  ;;  %v6772_v51 = vpack.i.bf16 %v9053_v17, %v9087_v45 }
 0x19e   : > { %16556 = vst [vmem:[#allocation166_spill] sm:$0xff] %v9800_v34  ;;  %2119 = vmatpush.msrb.mxu1 %v9010_v57  ;;  %2142 = vmatpush.msrb.mxu2 %v9014_v53 }
 0x19f   : > { %16557 = vst [vmem:[#allocation167_spill] sm:$0xff] %v9802_v9  ;;  %2165 = vmatpush.msrb.mxu3 %v9022_v20  ;;  %5989 = vmatmul.msk.f32.gmra.mxu0 %vm542_vm0, %v9228_v36  ;;  %v9846_v9 = vpop.f32.mrf.mxu2 }
 0x1a0   : > { %16558 = vst [vmem:[#allocation168_spill] sm:$0xff] %v9806_v5  ;;  %5997 = vmatmul.msk.f32.gmra.mxu1 %vm542_vm0, %v9228_v36  ;;  %6005 = vmatmul.msk.f32.gmra.mxu2 %vm542_vm0, %v9228_v36  ;;  %v6416_v5 = vunpack.i.h.bf16 %v9462_v58 }
 0x1a1   : > { %16559 = vst [vmem:[#allocation169_spill] sm:$0xff] %v9808_v61  ;;  %6013 = vmatmul.msk.f32.gmra.mxu3 %vm542_vm0, %v9228_v36  ;;  %2097 = vmatpush.msrb.mxu0 %v9103_v32  ;;  %v9836_v31 = vpop.f32.mrf.mxu0  ;;  %v6767_v36 = vpack.i.bf16 %v9044_v14, %v9083_v39  ;;  %v9844_v61 = vpop.f32.mrf.mxu1 }
 0x1a2   : > { %16560 = vst [vmem:[#allocation170_spill] sm:$0xff] %v9816_v49  ;;  %2120 = vmatpush.msrb.mxu1 %v9107_v35  ;;  %2143 = vmatpush.msrb.mxu2 %v9111_v33  ;;  %v9850_v17 = vpop.permute.xlu2 %6493  ;;  %v9852_v45 = vpop.f32.mrf.mxu3 }
 0x1a3   : > { %16561 = vst [vmem:[#allocation171_spill] sm:$0xff] %v9818_v28  ;;  %2166 = vmatpush.msrb.mxu3 %v9139_v47  ;;  %2098 = vmatpush.msrb.mxu0 %v9121_v15  ;;  %v9860_v39 = vpop.permute.xlu1 %6503  ;;  %v9862_v14 = vpop.permute.xlu0 %6498 }
 0x1a4   : > { %16562 = vst [vmem:[#allocation172_spill] sm:$0xff] %v9836_v31  ;;  %2121 = vmatpush.msrb.mxu1 %v9125_v16  ;;  %2144 = vmatpush.msrb.mxu2 %v9129_v6  ;;  %v9992_v31 = vld [vmem:[%s8014_s26 + $0xe8] sm:$0xff] }
 0x1a5   : > { %16563 = vst [vmem:[#allocation173_spill] sm:$0xff] %v9844_v61  ;;  %2167 = vmatpush.msrb.mxu3 %v9145_v19  ;;  %2099 = vmatpush.msrb.mxu0 %v9154_v25  ;;  %v16569_v25 = vld [vmem:[#allocation101_spill] sm:$0xff] }
 0x1a6   : > { %16564 = vst [vmem:[#allocation174_spill] sm:$0xff] %v9846_v9  ;;  %2122 = vmatpush.msrb.mxu1 %v9158_v4  ;;  %2145 = vmatpush.msrb.mxu2 %v9162_v37  ;;  %v16570_v9 = vld [vmem:[#allocation99_spill] sm:$0xff]  ;;  %v16572_v4 = vld [vmem:[#allocation102_spill] sm:$0xff]  ;;  %v16573_v37 = vld [vmem:[#allocation20_spill] sm:$0xff] }
 0x1a7   : > { %16565 = vst [vmem:[#allocation175_spill] sm:$0xff] %v9850_v17  ;;  %2168 = vmatpush.msrb.mxu3 %v9173_v50  ;;  %6773 = vrot.lane.b32.xlu1 %v6772_v51, %s7864_s16  ;;  %v9884_v51 = vpop.f32.mrf.mxu2  ;;  %v9989_v61 = vld [vmem:[%s8014_s26 + $0x28] sm:$0xff] }
 0x1a8   : > { %16566 = vst [vmem:[#allocation176_spill] sm:$0xff] %v9852_v45  ;;  %6768 = vrot.lane.b32.xlu0 %v6767_v36, %s7864_s16  ;;  %6778 = vrot.lane.b32.xlu2 %v6777_v2, %s7864_s16  ;;  %v16571_v45 = vld [vmem:[#allocation100_spill] sm:$0xff]  ;;  %v6787_v36 = vpack.i.bf16 %v9679_v54, %v9716_v10  ;;  %v6822_v34 = vpack.i.bf16 %v9992_v31, %v9989_v61 }
 0x1a9   : > { %16567 = vst [vmem:[#allocation177_spill] sm:$0xff] %v9860_v39  ;;  %2100 = vmatpush.msrb.mxu0 %v16569_v25  ;;  %2123 = vmatpush.msrb.mxu1 %v16570_v9  ;;  %v9878_v50 = vpop.f32.mrf.mxu0  ;;  %v9882_v9 = vpop.f32.mrf.mxu1 }
 0x1aa   : > { %16568 = vst [vmem:[#allocation178_spill] sm:$0xff] %v9862_v14  ;;  %2146 = vmatpush.msrb.mxu2 %v16571_v45  ;;  %2169 = vmatpush.msrb.mxu3 %v16572_v4  ;;  %v9894_v2 = vpop.f32.mrf.mxu3  ;;  %v16582_v45 = vld [vmem:[#allocation105_spill] sm:$0xff]  ;;  %v16586_v4 = vld [vmem:[#allocation106_spill] sm:$0xff]  ;;  %v10041_v14 = vld [vmem:[%s8014_s26 + $0x100] sm:$0xff] }
 0x1ab   : > { %5990 = vmatmul.msk.f32.gmra.mxu0 %vm542_vm0, %v16573_v37  ;;  %5998 = vmatmul.msk.f32.gmra.mxu1 %vm542_vm0, %v16573_v37  ;;  %16574 = vst [vmem:[#allocation101_spill] sm:$0xff] %v9878_v50  ;;  %v9904_v25 = vpop.permute.xlu1 %6518 }
 0x1ac   : > { %6006 = vmatmul.msk.f32.gmra.mxu2 %vm542_vm0, %v16573_v37  ;;  %6014 = vmatmul.msk.f32.gmra.mxu3 %vm542_vm0, %v16573_v37  ;;  %16575 = vst [vmem:[#allocation99_spill] sm:$0xff] %v9882_v9  ;;  %v16587_v37 = vld [vmem:[#allocation107_spill] sm:$0xff] }
 0x1ad   : > { %2101 = vmatpush.msrb.mxu0 %v9652_v24  ;;  %2124 = vmatpush.msrb.mxu1 %v9636_v60  ;;  %16576 = vst [vmem:[#allocation100_spill] sm:$0xff] %v9884_v51  ;;  %v6782_v24 = vpack.i.bf16 %v9675_v27, %v9709_v11  ;;  %v9892_v60 = vpop.permute.xlu2 %6508 }
 0x1ae   : > { %2147 = vmatpush.msrb.mxu2 %v9660_v23  ;;  %2170 = vmatpush.msrb.mxu3 %v9785_v46  ;;  %16577 = vst [vmem:[#allocation102_spill] sm:$0xff] %v9892_v60  ;;  %v6792_v23 = vpack.i.bf16 %v9685_v30, %v9720_v52  ;;  %v16581_v46 = vld [vmem:[#allocation103_spill] sm:$0xff]  ;;  %v10038_v60 = vld [vmem:[%s8014_s26 + $0x40] sm:$0xff]  ;;  %v16666_v30 = vld [vmem:[#allocation146_spill] sm:$0xff] }
 0x1af   : > { %2102 = vmatpush.msrb.mxu0 %v9655_v55  ;;  %2125 = vmatpush.msrb.mxu1 %v9639_v1  ;;  %16578 = vst [vmem:[#allocation20_spill] sm:$0xff] %v9894_v2  ;;  %v16579_v55 = vld [vmem:[#allocation28_spill] sm:$0xff]  ;;  %v9951_v51 = vpop.f32.mrf.mxu2  ;;  %v6837_v39 = vpack.i.bf16 %v10041_v14, %v10038_v60 }
 0x1b0   : > { %2148 = vmatpush.msrb.mxu2 %v9663_v63  ;;  %2171 = vmatpush.msrb.mxu3 %v9788_v29  ;;  %v16580_v1 = vld [vmem:[#allocation16_spill] sm:$0xff]  ;;  %16583 = vst [vmem:[#allocation28_spill] sm:$0xff] %v9904_v25  ;;  %v9906_v63 = vpop.permute.xlu0 %6513  ;;  %v16585_v29 = vld [vmem:[#allocation33_spill] sm:$0xff] }
 0x1b1   : > { %2103 = vmatpush.msrb.mxu0 %v16579_v55  ;;  %2126 = vmatpush.msrb.mxu1 %v16580_v1  ;;  %16584 = vst [vmem:[#allocation16_spill] sm:$0xff] %v9906_v63  ;;  %v16588_v55 = vld [vmem:[#allocation110_spill] sm:$0xff]  ;;  %v9930_v1 = vld [vmem:[%s8014_s26] sm:$0xff]  ;;  %v9949_v2 = vpop.f32.mrf.mxu1 }
 0x1b2   : > { %2149 = vmatpush.msrb.mxu2 %v16581_v46  ;;  %2172 = vmatpush.msrb.mxu3 %v16582_v45  ;;  %v9933_v46 = vld [vmem:[%s8014_s26 + $0xc0] sm:$0xff]  ;;  %16591 = vst [vmem:[#allocation33_spill] sm:$0xff] %v9949_v2 }
 0x1b3   : > { %6788 = vrot.lane.b32.xlu1 %v6787_v36, %s7864_s16  ;;  %6783 = vrot.lane.b32.xlu0 %v6782_v24, %s7864_s16  ;;  %v9922_v36 = vld [vmem:[%s8014_s26 + $0x8] sm:$0xff]  ;;  %v6797_v45 = vpack.i.bf16 %v9933_v46, %v9930_v1  ;;  %16592 = vst [vmem:[#allocation106_spill] sm:$0xff] %v9951_v51  ;;  %v9982_v51 = vld [vmem:[%s8014_s26 + $0xd8] sm:$0xff] }
 0x1b4   : > { %6793 = vrot.lane.b32.xlu2 %v6792_v23, %s7864_s16  ;;  %2104 = vmatpush.msrb.mxu0 %v16585_v29  ;;  %v9925_v24 = vld [vmem:[%s8014_s26 + $0xc8] sm:$0xff]  ;;  %v9937_v29 = vpop.f32.mrf.mxu0  ;;  %16605 = vst [vmem:[#allocation189_spill] sm:$0xff] %v10038_v60 }
 0x1b5   : > { %2127 = vmatpush.msrb.mxu1 %v16586_v4  ;;  %2150 = vmatpush.msrb.mxu2 %v16587_v37  ;;  %16589 = vst [vmem:[#allocation103_spill] sm:$0xff] %v9925_v24  ;;  %v6802_v23 = vpack.i.bf16 %v9925_v24, %v9922_v36  ;;  %v9942_v4 = vld [vmem:[%s8014_s26 + $0x10] sm:$0xff]  ;;  %v9953_v9 = vpop.permute.xlu2 %6523 }
 0x1b6   : > { %2173 = vmatpush.msrb.mxu3 %v16588_v55  ;;  %5991 = vmatmul.msk.f32.gmra.mxu0 %vm542_vm0, %v9440_v43  ;;  %16590 = vst [vmem:[#allocation105_spill] sm:$0xff] %v9937_v29  ;;  %v9945_v37 = vld [vmem:[%s8014_s26 + $0xd0] sm:$0xff]  ;;  %v9955_v29 = vpop.f32.mrf.mxu3 }
 0x1b7   : > { %5999 = vmatmul.msk.f32.gmra.mxu1 %vm542_vm0, %v9440_v43  ;;  %6007 = vmatmul.msk.f32.gmra.mxu2 %vm542_vm0, %v9440_v43  ;;  %v6807_v55 = vpack.i.bf16 %v9945_v37, %v9942_v4  ;;  %16593 = vst [vmem:[#allocation107_spill] sm:$0xff] %v9953_v9  ;;  %v10000_v9 = vpop.f32.mrf.mxu2 }
 0x1b8   : > { %6015 = vmatmul.msk.f32.gmra.mxu3 %vm542_vm0, %v9440_v43  ;;  %16594 = vst [vmem:[#allocation110_spill] sm:$0xff] %v9955_v29  ;;  %v9960_v43 = vpop.permute.xlu1 %6533  ;;  %v9962_v50 = vpop.permute.xlu0 %6528  ;;  %v9971_v29 = vld [vmem:[%s8014_s26 + $0x20] sm:$0xff] }
 0x1b9   : > { %16595 = vst [vmem:[#allocation179_spill] sm:$0xff] %v9960_v43 }
 0x1ba   : > { %16596 = vst [vmem:[#allocation180_spill] sm:$0xff] %v9962_v50  ;;  %v9998_v50 = vpop.f32.mrf.mxu1 }
 0x1bb   : > { %6803 = vrot.lane.b32.xlu1 %v6802_v23, %s7864_s16  ;;  %6798 = vrot.lane.b32.xlu0 %v6797_v45, %s7864_s16  ;;  %v9974_v23 = vld [vmem:[%s8014_s26 + $0xe0] sm:$0xff]  ;;  %16599 = vst [vmem:[#allocation183_spill] sm:$0xff] %v9998_v50 }
 0x1bc   : > { %6808 = vrot.lane.b32.xlu2 %v6807_v55, %s7864_s16  ;;  %v6817_v45 = vpack.i.bf16 %v9974_v23, %v9971_v29  ;;  %v9979_v55 = vld [vmem:[%s8014_s26 + $0x18] sm:$0xff]  ;;  %v9996_v21 = vpop.f32.mrf.mxu0  ;;  %16600 = vst [vmem:[#allocation184_spill] sm:$0xff] %v10000_v9  ;;  %v10031_v9 = vld [vmem:[%s8014_s26 + $0xf0] sm:$0xff] }
 0x1bd   : > { %16597 = vst [vmem:[#allocation181_spill] sm:$0xff] %v9979_v55  ;;  %v6812_v2 = vpack.i.bf16 %v9982_v51, %v9979_v55 }
 0x1be   : > { %5992 = vmatmul.msk.f32.gmra.mxu0 %vm542_vm0, %v9477_v48  ;;  %16598 = vst [vmem:[#allocation182_spill] sm:$0xff] %v9996_v21  ;;  %v10006_v25 = vpop.f32.mrf.mxu3 }
 0x1bf   : > { %6000 = vmatmul.msk.f32.gmra.mxu1 %vm542_vm0, %v9477_v48  ;;  %6008 = vmatmul.msk.f32.gmra.mxu2 %vm542_vm0, %v9477_v48  ;;  %16602 = vst [vmem:[#allocation186_spill] sm:$0xff] %v10006_v25  ;;  %v10028_v25 = vld [vmem:[%s8014_s26 + $0x30] sm:$0xff]  ;;  %v10052_v43 = vpop.f32.mrf.mxu2 }
 0x1c0   : > { %6016 = vmatmul.msk.f32.gmra.mxu3 %vm542_vm0, %v9477_v48  ;;  %v10004_v48 = vpop.permute.xlu2 %6538  ;;  %v10011_v21 = vpop.permute.xlu1 %6548  ;;  %v6827_v63 = vpack.i.bf16 %v10031_v9, %v10028_v25  ;;  %16606 = vst [vmem:[#allocation190_spill] sm:$0xff] %v10041_v14 }
 0x1c1   : > { %16601 = vst [vmem:[#allocation185_spill] sm:$0xff] %v10004_v48  ;;  %v10013_v50 = vpop.permute.xlu0 %6543 }
 0x1c2   : > { %16603 = vst [vmem:[#allocation187_spill] sm:$0xff] %v10011_v21 }
 0x1c3   : > { %6818 = vrot.lane.b32.xlu1 %v6817_v45, %s7864_s16  ;;  %6813 = vrot.lane.b32.xlu0 %v6812_v2, %s7864_s16  ;;  %16604 = vst [vmem:[#allocation188_spill] sm:$0xff] %v10013_v50  ;;  %v10020_v2 = vld [vmem:[%s8014_s26 + $0x38] sm:$0xff] }
 0x1c4   : > { %6823 = vrot.lane.b32.xlu2 %v6822_v34, %s7864_s16  ;;  %v10023_v45 = vld [vmem:[%s8014_s26 + $0xf8] sm:$0xff]  ;;  %v10047_v17 = vpop.f32.mrf.mxu0  ;;  %16609 = vst [vmem:[#allocation193_spill] sm:$0xff] %v10052_v43  ;;  %v10073_v43 = vld [vmem:[%s8014_s26 + $0x48] sm:$0xff] }
 0x1c5   : > { %v6832_v34 = vpack.i.bf16 %v10023_v45, %v10020_v2  ;;  %16607 = vst [vmem:[#allocation191_spill] sm:$0xff] %v10047_v17  ;;  %v10083_v17 = vld [vmem:[%s8014_s26 + $0x58] sm:$0xff] }
 0x1c6   : > { %5993 = vmatmul.msk.f32.gmra.mxu0 %vm542_vm0, %v9512_v22  ;;  %v10056_v50 = vpop.f32.mrf.mxu3  ;;  %16614 = vst [vmem:[#allocation198_spill] sm:$0xff] %v10073_v43 }
 0x1c7   : > { %6001 = vmatmul.msk.f32.gmra.mxu1 %vm542_vm0, %v9512_v22  ;;  %6009 = vmatmul.msk.f32.gmra.mxu2 %vm542_vm0, %v9512_v22  ;;  %16611 = vst [vmem:[#allocation195_spill] sm:$0xff] %v10056_v50  ;;  %v10115_v14 = vpop.f32.mrf.mxu2 }
 0x1c8   : > { %6017 = vmatmul.msk.f32.gmra.mxu3 %vm542_vm0, %v9512_v22  ;;  %v10050_v22 = vpop.f32.mrf.mxu1  ;;  %v10054_v21 = vpop.permute.xlu2 %6553  ;;  %16616 = vst [vmem:[#allocation200_spill] sm:$0xff] %v10083_v17 }
 0x1c9   : > { %16608 = vst [vmem:[#allocation192_spill] sm:$0xff] %v10050_v22  ;;  %v10076_v22 = vld [vmem:[%s8014_s26 + $0x108] sm:$0xff]  ;;  %v10090_v28 = vpop.permute.xlu1 %6563  ;;  %v10092_v49 = vpop.permute.xlu0 %6558 }
 0x1ca   : > { %16610 = vst [vmem:[#allocation194_spill] sm:$0xff] %v10054_v21  ;;  %v6842_v50 = vpack.i.bf16 %v10076_v22, %v10073_v43  ;;  %v10086_v21 = vld [vmem:[%s8014_s26 + $0x118] sm:$0xff]  ;;  %v16620_v43 = vld [vmem:[#allocation125_spill] sm:$0xff] }
 0x1cb   : > { %6833 = vrot.lane.b32.xlu1 %v6832_v34, %s7864_s16  ;;  %6828 = vrot.lane.b32.xlu0 %v6827_v63, %s7864_s16  ;;  %v10065_v63 = vld [vmem:[%s8014_s26 + $0x50] sm:$0xff]  ;;  %16615 = vst [vmem:[#allocation199_spill] sm:$0xff] %v10076_v22  ;;  %v6852_v48 = vpack.i.bf16 %v10086_v21, %v10083_v17  ;;  %v6426_v60 = vunpack.i.h.bf16 %v16620_v43 }
 0x1cc   : > { %6838 = vrot.lane.b32.xlu2 %v6837_v39, %s7864_s16  ;;  %16612 = vst [vmem:[#allocation196_spill] sm:$0xff] %v10065_v63  ;;  %v10068_v39 = vld [vmem:[%s8014_s26 + $0x110] sm:$0xff] }
 0x1cd   : > { %16613 = vst [vmem:[#allocation197_spill] sm:$0xff] %v10068_v39  ;;  %v6847_v34 = vpack.i.bf16 %v10068_v39, %v10065_v63  ;;  %v6421_v63 = vunpack.i.h.bf16 %v9495_v12 }
 0x1ce   : > { %5994 = vmatmul.msk.f32.gmra.mxu0 %vm542_vm0, %v9543_v18  ;;  %16617 = vst [vmem:[#allocation201_spill] sm:$0xff] %v10086_v21  ;;  %v6420_v21 = vunpack.i.l.bf16 %v9495_v12  ;;  %v10127_v17 = vpop.f32.mrf.mxu3 }
 0x1cf   : > { %6002 = vmatmul.msk.f32.gmra.mxu1 %vm542_vm0, %v9543_v18  ;;  %6010 = vmatmul.msk.f32.gmra.mxu2 %vm542_vm0, %v9543_v18  ;;  %16618 = vst [vmem:[#allocation202_spill] sm:$0xff] %v10090_v28  ;;  %v6415_v28 = vunpack.i.l.bf16 %v9462_v58  ;;  %v16625_v58 = vld [vmem:[#allocation119_spill] sm:$0xff]  ;;  %v10133_v39 = vsel %vm1930_vm1, %v6416_v5, %v6421_v63 }
 0x1d0   : > { %6018 = vmatmul.msk.f32.gmra.mxu3 %vm542_vm0, %v9543_v18  ;;  %16619 = vst [vmem:[#allocation203_spill] sm:$0xff] %v10092_v49  ;;  %v10100_v18 = vld [vmem:[%s15870_s4] sm:$0xff]  ;;  %v10113_v22 = vpop.f32.mrf.mxu1 }
 0x1d1   : > { %v16621_v49 = vld [vmem:[#allocation124_spill] sm:$0xff]  ;;  %16624 = vst [vmem:[#allocation204_spill] sm:$0xff] %v10115_v14  ;;  %v10137_v14 = vsel %vm1930_vm1, %v6421_v63, %v6426_v60  ;;  %v10157_v63 = vsel %vm1930_vm1, %v6415_v28, %v6420_v21 }
 0x1d2   : > { %16623 = vst [vmem:[#allocation124_spill] sm:$0xff] %v10113_v22  ;;  %v16630_v22 = vunpack.i.l.bf16 %v16625_v58 }
 0x1d3   : > { %6848 = vrot.lane.b32.xlu1 %v6847_v34, %s7864_s16  ;;  %6843 = vrot.lane.b32.xlu0 %v6842_v50, %s7864_s16  ;;  %v6425_v34 = vunpack.i.l.bf16 %v16620_v43  ;;  %v10109_v50 = vpop.f32.mrf.mxu0  ;;  %v10125_v43 = vpop.permute.xlu2 %6568  ;;  %16628 = vst [vmem:[#allocation205_spill] sm:$0xff] %v10127_v17 }
 0x1d4   : > { %6853 = vrot.lane.b32.xlu2 %v6852_v48, %s7864_s16  ;;  %16622 = vst [vmem:[#allocation125_spill] sm:$0xff] %v10109_v50  ;;  %v16626_v48 = vunpack.i.h.bf16 %v16625_v58 }
 0x1d5   : > { %16627 = vst [vmem:[#allocation119_spill] sm:$0xff] %v10125_v43  ;;  %v10161_v50 = vsel %vm1930_vm1, %v6420_v21, %v6425_v34  ;;  %v7455_v43 = vld [vmem:[%s8014_s26 + $0x120] sm:$0xff]  ;;  %v16634_v21 = vld [vmem:[#allocation25_spill] sm:$0xff] }
 0x1d6   : > { %2013 = vmatmul.f32.vlgmr.msra.gmra.mxu0 %v10100_v18  ;;  %v10123_v12 = vsel %vm1930_vm1, %v16626_v48, %v6416_v5  ;;  %v16629_v48 = vunpack.i.h.bf16 %v16621_v49  ;;  %v10151_v5 = vsel %vm1930_vm1, %v16630_v22, %v6415_v28  ;;  %v16633_v22 = vunpack.i.l.bf16 %v16621_v49  ;;  %v7454_v28 = vld [vmem:[%s8014_s26 + $0x60] sm:$0xff] }
 0x1d7   : > { %2036 = vmatmul.f32.vlgmr.msra.gmra.mxu1 %v10100_v18  ;;  %2059 = vmatmul.f32.vlgmr.msra.gmra.mxu2 %v10100_v18  ;;  %v6857_v52 = vpack.i.bf16 %v7455_v43, %v7454_v28  ;;  %v16637_v43 = vld [vmem:[#allocation32_spill] sm:$0xff] }
 0x1d8   : > { %2082 = vmatmul.f32.vlgmr.msra.gmra.mxu3 %v10100_v18  ;;  %2181 = vmatpush.msra.mxu0 %v10123_v12  ;;  %v10145_v17 = vsel %vm1930_vm1, %v6426_v60, %v16629_v48  ;;  %v10163_v60 = vpop.permute.xlu1 %6578  ;;  %v10165_v48 = vpop.permute.xlu0 %6573  ;;  %v10173_v58 = vsel %vm1930_vm1, %v6425_v34, %v16633_v22  ;;  %v16636_v34 = vld [vmem:[#allocation43_spill] sm:$0xff] }
 0x1d9   : > { %2204 = vmatpush.msra.mxu1 %v10133_v39  ;;  %2227 = vmatpush.msra.mxu2 %v10137_v14  ;;  %16631 = vst [vmem:[#allocation206_spill] sm:$0xff] %v10163_v60  ;;  %v6251_v22 = vunpack.i.h.bf16 %v16636_v34  ;;  %v10206_v11 = vpop.f32.mrf.mxu1 }
 0x1da   : > { %2250 = vmatpush.msra.mxu3 %v10145_v17  ;;  %2182 = vmatpush.msra.mxu0 %v10151_v5  ;;  %16632 = vst [vmem:[#allocation207_spill] sm:$0xff] %v10165_v48  ;;  %v16635_v48 = vld [vmem:[#allocation35_spill] sm:$0xff] }
 0x1db   : > { %2205 = vmatpush.msra.mxu1 %v10157_v63  ;;  %2228 = vmatpush.msra.mxu2 %v10161_v50  ;;  %v6256_v60 = vunpack.i.h.bf16 %v16635_v48  ;;  %16641 = vst [vmem:[#allocation35_spill] sm:$0xff] %v10206_v11  ;;  %v10208_v41 = vpop.permute.xlu2 %6583 }
 0x1dc   : > { %2251 = vmatpush.msra.mxu3 %v10173_v58  ;;  %2183 = vmatpush.msra.mxu0 %v9933_v46  ;;  %v10192_v46 = vld [vmem:[%s15870_s4 + $0x8] sm:$0xff]  ;;  %16642 = vst [vmem:[#allocation43_spill] sm:$0xff] %v10208_v41  ;;  %v16660_v41 = vld [vmem:[#allocation143_spill] sm:$0xff] }
 0x1dd   : > { %2206 = vmatpush.msra.mxu1 %v9925_v24  ;;  %2229 = vmatpush.msra.mxu2 %v9945_v37  ;;  %v16638_v37 = vld [vmem:[#allocation48_spill] sm:$0xff] }
 0x1de   : > { %2252 = vmatpush.msra.mxu3 %v9982_v51  ;;  %6863 = vrot.lane.b32.xlu1 %v16634_v21, %s7864_s16  ;;  %v16639_v51 = vld [vmem:[#allocation50_spill] sm:$0xff]  ;;  %v6255_v21 = vunpack.i.l.bf16 %v16635_v48  ;;  %v16647_v28 = vunpack.i.h.bf16 %v16638_v37 }
 0x1df   : > { %6858 = vrot.lane.b32.xlu0 %v6857_v52, %s7864_s16  ;;  %6868 = vrot.lane.b32.xlu2 %v16637_v43, %s7864_s16  ;;  %v6261_v24 = vunpack.i.h.bf16 %v16639_v51  ;;  %v6250_v52 = vunpack.i.l.bf16 %v16636_v34  ;;  %v6260_v10 = vunpack.i.l.bf16 %v16639_v51  ;;  %v10201_v43 = vpop.f32.mrf.mxu0  ;;  %v10226_v34 = vsel %vm1733_vm2, %v6251_v22, %v6256_v60 }
 0x1e0   : > { %2184 = vmatpush.msra.mxu0 %v9930_v1  ;;  %2207 = vmatpush.msra.mxu1 %v9922_v36  ;;  %16640 = vst [vmem:[#allocation25_spill] sm:$0xff] %v10201_v43  ;;  %v10212_v36 = vpop.f32.mrf.mxu2  ;;  %v10214_v1 = vpop.f32.mrf.mxu3  ;;  %v7457_v43 = vld [vmem:[%s8014_s26 + $0x140] sm:$0xff] }
 0x1e1   : > { %2230 = vmatpush.msra.mxu2 %v9942_v4  ;;  %2253 = vmatpush.msra.mxu3 %v9979_v55  ;;  %16643 = vst [vmem:[#allocation32_spill] sm:$0xff] %v10212_v36  ;;  %v16645_v4 = vunpack.i.h.bf16 %v16537_v40  ;;  %v10232_v51 = vsel %vm1733_vm2, %v6256_v60, %v6261_v24  ;;  %v10242_v36 = vpop.permute.xlu0 %6588  ;;  %v10254_v11 = vsel %vm1733_vm2, %v6250_v52, %v6255_v21  ;;  %v16665_v55 = vld [vmem:[#allocation145_spill] sm:$0xff]  ;;  %v10286_v54 = vpop.f32.mrf.mxu1 }
 0x1e2   : > { %2016 = vmatmul.f32.gmra.mxu0 %v10192_v46  ;;  %2039 = vmatmul.f32.gmra.mxu1 %v10192_v46  ;;  %16644 = vst [vmem:[#allocation48_spill] sm:$0xff] %v10214_v1  ;;  %v10240_v1 = vpop.permute.xlu1 %6593 }
 0x1e3   : > { %2062 = vmatmul.f32.gmra.mxu2 %v10192_v46  ;;  %2085 = vmatmul.f32.gmra.mxu3 %v10192_v46  ;;  %v10222_v48 = vsel %vm1733_vm2, %v16645_v4, %v6251_v22  ;;  %16646 = vst [vmem:[#allocation50_spill] sm:$0xff] %v10232_v51  ;;  %v10238_v4 = vsel %vm1733_vm2, %v6261_v24, %v16647_v28  ;;  %v16651_v22 = vunpack.i.l.bf16 %v16537_v40  ;;  %v16655_v28 = vunpack.i.l.bf16 %v16638_v37  ;;  %v10288_v27 = vpop.permute.xlu2 %6598 }
 0x1e4   : > { %2185 = vmatpush.msra.mxu0 %v10222_v48  ;;  %2208 = vmatpush.msra.mxu1 %v10226_v34  ;;  %16648 = vst [vmem:[#allocation208_spill] sm:$0xff] %v10238_v4  ;;  %v10258_v24 = vsel %vm1733_vm2, %v6255_v21, %v6260_v10  ;;  %v16658_v21 = vld [vmem:[#allocation139_spill] sm:$0xff] }
 0x1e5   : > { %16649 = vst [vmem:[#allocation209_spill] sm:$0xff] %v10240_v1  ;;  %2231 = vmatpush.msra.mxu2 %v10232_v51  ;;  %2254 = vmatpush.msra.mxu3 %v10238_v4  ;;  %v10250_v60 = vsel %vm1733_vm2, %v16651_v22, %v6250_v52  ;;  %v10266_v40 = vsel %vm1733_vm2, %v6260_v10, %v16655_v28  ;;  %v7456_v22 = vld [vmem:[%s8014_s26 + $0x80] sm:$0xff]  ;;  %v16657_v52 = vld [vmem:[#allocation138_spill] sm:$0xff] }
 0x1e6   : > { %16650 = vst [vmem:[#allocation210_spill] sm:$0xff] %v10242_v36  ;;  %2186 = vmatpush.msra.mxu0 %v10250_v60  ;;  %2209 = vmatpush.msra.mxu1 %v10254_v11  ;;  %v6877_v1 = vpack.i.bf16 %v7457_v43, %v7456_v22  ;;  %v16659_v36 = vld [vmem:[#allocation140_spill] sm:$0xff] }
 0x1e7   : > { %16652 = vst [vmem:[#allocation211_spill] sm:$0xff] %v10250_v60  ;;  %2232 = vmatpush.msra.mxu2 %v10258_v24  ;;  %2255 = vmatpush.msra.mxu3 %v10266_v40  ;;  %v16661_v10 = vld [vmem:[#allocation112_spill] sm:$0xff]  ;;  %v10282_v22 = vpop.f32.mrf.mxu0 }
 0x1e8   : > { %16653 = vst [vmem:[#allocation212_spill] sm:$0xff] %v10254_v11  ;;  %2187 = vmatpush.msra.mxu0 %v16657_v52  ;;  %2210 = vmatpush.msra.mxu1 %v16658_v21  ;;  %v16662_v28 = vld [vmem:[#allocation116_spill] sm:$0xff] }
 0x1e9   : > { %16654 = vst [vmem:[#allocation213_spill] sm:$0xff] %v10258_v24  ;;  %2233 = vmatpush.msra.mxu2 %v16659_v36  ;;  %2256 = vmatpush.msra.mxu3 %v16660_v41  ;;  %v16663_v43 = vld [vmem:[#allocation144_spill] sm:$0xff]  ;;  %v10300_v42 = vpop.permute.xlu0 %6603 }
 0x1ea   : > { %16656 = vst [vmem:[#allocation214_spill] sm:$0xff] %v10266_v40  ;;  %6878 = vrot.lane.b32.xlu1 %v6877_v1, %s7864_s16  ;;  %6873 = vrot.lane.b32.xlu0 %v16661_v10, %s7864_s16  ;;  %v16669_v1 = vld [vmem:[#allocation147_spill] sm:$0xff]  ;;  %v10292_v10 = vpop.f32.mrf.mxu2 }
 0x1eb   : > { %6883 = vrot.lane.b32.xlu2 %v16662_v28, %s7864_s16  ;;  %2188 = vmatpush.msra.mxu0 %v16663_v43  ;;  %16664 = vst [vmem:[#allocation138_spill] sm:$0xff] %v10282_v22  ;;  %v10294_v28 = vpop.f32.mrf.mxu3  ;;  %v10298_v22 = vpop.permute.xlu1 %6608 }
 0x1ec   : > { %2211 = vmatpush.msra.mxu1 %v16665_v55  ;;  %2234 = vmatpush.msra.mxu2 %v16666_v30  ;;  %16667 = vst [vmem:[#allocation139_spill] sm:$0xff] %v10286_v54  ;;  %v458_v54 = vld [vmem:[%s8014_s26 + $0xa0] sm:$0xff] }
 0x1ed   : > { %16668 = vst [vmem:[#allocation140_spill] sm:$0xff] %v10288_v27  ;;  %2257 = vmatpush.msra.mxu3 %v16669_v1  ;;  %2105 = vmatmul.f32.vlgmr.msrb.gmra.mxu0 %v10100_v18  ;;  %v482_v27 = vld [vmem:[%s8014_s26 + $0x160] sm:$0xff] }
 0x1ee   : > { %16670 = vst [vmem:[#allocation143_spill] sm:$0xff] %v10292_v10  ;;  %2128 = vmatmul.f32.vlgmr.msrb.gmra.mxu1 %v10100_v18  ;;  %2151 = vmatmul.f32.vlgmr.msrb.gmra.mxu2 %v10100_v18  ;;  %v16674_v1 = vld [vmem:[#allocation160_spill] sm:$0xff]  ;;  %v16676_v10 = vld [vmem:[#allocation162_spill] sm:$0xff] }
 0x1ef   : > { %16671 = vst [vmem:[#allocation112_spill] sm:$0xff] %v10294_v28  ;;  %2174 = vmatmul.f32.vlgmr.msrb.gmra.mxu3 %v10100_v18  ;;  %2189 = vmatpush.msra.mxu0 %v9740_v59  ;;  %v16675_v28 = vld [vmem:[#allocation161_spill] sm:$0xff] }
 0x1f0   : > { %16672 = vst [vmem:[#allocation116_spill] sm:$0xff] %v10298_v22  ;;  %2212 = vmatpush.msra.mxu1 %v16674_v1  ;;  %2235 = vmatpush.msra.mxu2 %v9750_v44  ;;  %v6897_v22 = vpack.i.bf16 %v482_v27, %v458_v54  ;;  %v10322_v27 = vpop.permute.xlu2 %6613  ;;  %v415_v54 = vld [vmem:[%s8006_s19 + $0xc8] sm:$0xff] }
 0x1f1   : > { %16673 = vst [vmem:[#allocation144_spill] sm:$0xff] %v10300_v42  ;;  %2258 = vmatpush.msra.mxu3 %v9756_v3  ;;  %2190 = vmatpush.msra.mxu0 %v16675_v28  ;;  %v16677_v42 = vld [vmem:[#allocation51_spill] sm:$0xff]  ;;  %v16678_v28 = vld [vmem:[#allocation118_spill] sm:$0xff] }
 0x1f2   : > { %2213 = vmatpush.msra.mxu1 %v16676_v10  ;;  %2236 = vmatpush.msra.mxu2 %v9772_v26  ;;  %16679 = vst [vmem:[#allocation145_spill] sm:$0xff] %v10322_v27 }
 0x1f3   : > { %2259 = vmatpush.msra.mxu3 %v9780_v13  ;;  %2191 = vmatpush.msra.mxu0 %v8972_v8  ;;  %v10326_v8 = vpop.f32.mrf.mxu0  ;;  %v10379_v13 = vld [vmem:[%s8006_s19 + $0x98] sm:$0xff] }
 0x1f4   : > { %2214 = vmatpush.msra.mxu1 %v8983_v56  ;;  %2237 = vmatpush.msra.mxu2 %v8987_v0  ;;  %16680 = vst [vmem:[#allocation146_spill] sm:$0xff] %v10326_v8  ;;  %v10328_v56 = vpop.f32.mrf.mxu1  ;;  %v10332_v0 = vpop.permute.xlu1 %6623  ;;  %v10363_v8 = vld [vmem:[%s8006_s19 + $0x158] sm:$0xff] }
 0x1f5   : > { %2260 = vmatpush.msra.mxu3 %v8997_v38  ;;  %6893 = vrot.lane.b32.xlu1 %v16677_v42, %s7864_s16  ;;  %16681 = vst [vmem:[#allocation160_spill] sm:$0xff] %v10328_v56  ;;  %v10334_v38 = vpop.permute.xlu0 %6618  ;;  %v10341_v42 = vpop.f32.mrf.mxu3  ;;  %v10359_v56 = vld [vmem:[%s8006_s19 + $0x150] sm:$0xff] }
 0x1f6   : > { %6888 = vrot.lane.b32.xlu0 %v16678_v28, %s7864_s16  ;;  %6898 = vrot.lane.b32.xlu2 %v6897_v22, %s7864_s16  ;;  %16682 = vst [vmem:[#allocation51_spill] sm:$0xff] %v10332_v0  ;;  %v10349_v22 = vld [vmem:[%s8006_s19 + $0x140] sm:$0xff]  ;;  %v10353_v28 = vld [vmem:[%s8006_s19 + $0x148] sm:$0xff]  ;;  %s5691_s16 = sshll.u32 %s5688_s28, 4  ;;  %s5692_s16 = int_to_ptr.hbm [resolvable:$true] %s5691_s16 }
 0x1f7   : > { %2192 = vmatpush.msra.mxu0 %v9003_v7  ;;  %2215 = vmatpush.msra.mxu1 %v9010_v57  ;;  %16683 = vst [vmem:[#allocation118_spill] sm:$0xff] %v10334_v38  ;;  %v392_v7 = vld [vmem:[%s8006_s19 + $0x10] sm:$0xff]  ;;  %v10339_v57 = vpop.f32.mrf.mxu2  ;;  %v10367_v38 = vld [vmem:[%s8006_s19 + $0x80] sm:$0xff]  ;;  %v10371_v0 = vld [vmem:[%s8006_s19 + $0x88] sm:$0xff] }
 0x1f8   : > { %2238 = vmatpush.msra.mxu2 %v9014_v53  ;;  %2261 = vmatpush.msra.mxu3 %v9022_v20  ;;  %16684 = vst [vmem:[#allocation215_spill] sm:$0xff] %v10339_v57  ;;  %v416_v20 = vld [vmem:[%s8006_s19 + $0xd0] sm:$0xff]  ;;  %v391_v53 = vld [vmem:[%s8006_s19 + $0x8] sm:$0xff]  ;;  %v414_v57 = vld [vmem:[%s8006_s19 + $0xc0] sm:$0xff] }
 0x1f9   : > { %2108 = vmatmul.f32.gmra.mxu0 %v10192_v46  ;;  %2131 = vmatmul.f32.gmra.mxu1 %v10192_v46  ;;  %16685 = vst [vmem:[#allocation216_spill] sm:$0xff] %v10341_v42  ;;  %v390_v42 = vld [vmem:[%s8006_s19] sm:$0xff]  ;;  %v6912_v27 = vpack.i.bf16 %v416_v20, %v392_v7 }
 0x1fa   : > { %2154 = vmatmul.f32.gmra.mxu2 %v10192_v46  ;;  %2177 = vmatmul.f32.gmra.mxu3 %v10192_v46  ;;  %16686 = vst [vmem:[#allocation217_spill] sm:$0xff] %v10349_v22  ;;  %v16695_v20 = vld [vmem:[#allocation136_spill] sm:$0xff] }
 0x1fb   : > { %2193 = vmatpush.msra.mxu0 %v10349_v22  ;;  %16687 = vst [vmem:[#allocation218_spill] sm:$0xff] %v10353_v28  ;;  %2216 = vmatpush.msra.mxu1 %v10353_v28  ;;  %v6907_v22 = vpack.i.bf16 %v415_v54, %v391_v53  ;;  %v10375_v28 = vld [vmem:[%s8006_s19 + $0x90] sm:$0xff]  ;;  %v16034_v53 = vunpack.i.h.bf16 %v16695_v20  ;;  %v10390_v54 = vpop.permute.xlu2 %6628 }
 0x1fc   : > { %16688 = vst [vmem:[#allocation219_spill] sm:$0xff] %v10359_v56  ;;  %2239 = vmatpush.msra.mxu2 %v10359_v56  ;;  %2262 = vmatpush.msra.mxu3 %v10363_v8  ;;  %v6902_v56 = vpack.i.bf16 %v414_v57, %v390_v42  ;;  %v16703_v57 = vunpack.i.l.bf16 %v16621_v49 }
 0x1fd   : > { %16689 = vst [vmem:[#allocation220_spill] sm:$0xff] %v10363_v8  ;;  %2194 = vmatpush.msra.mxu0 %v10367_v38  ;;  %2217 = vmatpush.msra.mxu1 %v10371_v0  ;;  %v16692_v8 = vld [vmem:[#allocation129_spill] sm:$0xff]  ;;  %v10446_v42 = vpop.f32.mrf.mxu3 }
 0x1fe   : > { %16690 = vst [vmem:[#allocation221_spill] sm:$0xff] %v10367_v38  ;;  %2240 = vmatpush.msra.mxu2 %v10375_v28  ;;  %2263 = vmatpush.msra.mxu3 %v10379_v13  ;;  %v6436_v26 = vunpack.i.h.bf16 %v16692_v8  ;;  %v16693_v38 = vld [vmem:[#allocation131_spill] sm:$0xff] }
 0x1ff   : > { %16691 = vst [vmem:[#allocation222_spill] sm:$0xff] %v10371_v0  ;;  %2195 = vmatpush.msra.mxu0 %v9103_v32  ;;  %2218 = vmatpush.msra.mxu1 %v9107_v35  ;;  %v6446_v10 = vunpack.i.h.bf16 %v16693_v38  ;;  %v16694_v0 = vld [vmem:[#allocation132_spill] sm:$0xff]  ;;  %v6435_v35 = vunpack.i.l.bf16 %v16692_v8  ;;  %v10397_v32 = vpop.permute.xlu1 %6638 }
 0x200   : > { %v6441_v7 = vunpack.i.h.bf16 %v16694_v0  ;;  %2241 = vmatpush.msra.mxu2 %v9111_v33  ;;  %2264 = vmatpush.msra.mxu3 %v9139_v47  ;;  %16696 = vst [vmem:[#allocation129_spill] sm:$0xff] %v10390_v54  ;;  %v10399_v33 = vpop.permute.xlu0 %6633  ;;  %v16699_v47 = vunpack.i.h.bf16 %v16621_v49  ;;  %v16712_v54 = vld [vmem:[#allocation54_spill] sm:$0xff] }
 0x201   : > { %6913 = vrot.lane.b32.xlu2 %v6912_v27, %s7865_s30  ;;  %6908 = vrot.lane.b32.xlu1 %v6907_v22, %s7865_s30  ;;  %16697 = vst [vmem:[#allocation131_spill] sm:$0xff] %v10397_v32  ;;  %v7470_v32 = vld [vmem:[%s8006_s19 + $0x18] sm:$0xff] }
 0x202   : > { %6903 = vrot.lane.b32.xlu0 %v6902_v56, %s7865_s30  ;;  %2196 = vmatpush.msra.mxu0 %v9121_v15  ;;  %16698 = vst [vmem:[#allocation132_spill] sm:$0xff] %v10399_v33  ;;  %v10407_v27 = vsel %vm1930_vm1, %v16699_v47, %v6436_v26  ;;  %v6445_v56 = vunpack.i.l.bf16 %v16693_v38  ;;  %v6440_v15 = vunpack.i.l.bf16 %v16694_v0  ;;  %v10415_v8 = vsel %vm1930_vm1, %v6436_v26, %v6441_v7  ;;  %v10430_v0 = vpop.f32.mrf.mxu0  ;;  %v10434_v26 = vpop.f32.mrf.mxu1  ;;  %v7467_v47 = vld [vmem:[%s8006_s19 + $0xe8] sm:$0xff] }
 0x203   : > { %2219 = vmatpush.msra.mxu1 %v9125_v16  ;;  %2242 = vmatpush.msra.mxu2 %v9129_v6  ;;  %v10419_v16 = vsel %vm1930_vm1, %v6441_v7, %v6446_v10  ;;  %v16035_v6 = vunpack.i.l.bf16 %v16695_v20  ;;  %16700 = vst [vmem:[#allocation136_spill] sm:$0xff] %v10430_v0  ;;  %v10436_v38 = vpop.f32.mrf.mxu2  ;;  %v7468_v0 = vld [vmem:[%s8006_s19 + $0x20] sm:$0xff] }
 0x204   : > { %2265 = vmatpush.msra.mxu3 %v9145_v19  ;;  %2273 = vmatpush.msrb.mxu0 %v10407_v27  ;;  %v10428_v19 = vsel %vm1930_vm1, %v6446_v10, %v16034_v53  ;;  %16701 = vst [vmem:[#allocation223_spill] sm:$0xff] %v10434_v26  ;;  %v10444_v10 = vsel %vm1930_vm1, %v16703_v57, %v6435_v35  ;;  %v16706_v57 = vld [vmem:[#allocation40_spill] sm:$0xff]  ;;  %v10472_v26 = vpop.permute.xlu2 %6643 }
 0x205   : > { %2296 = vmatpush.msrb.mxu1 %v10415_v8  ;;  %2319 = vmatpush.msrb.mxu2 %v10419_v16  ;;  %16702 = vst [vmem:[#allocation224_spill] sm:$0xff] %v10436_v38  ;;  %v10452_v22 = vsel %vm1930_vm1, %v6435_v35, %v6440_v15  ;;  %v10456_v7 = vsel %vm1930_vm1, %v6440_v15, %v6445_v56  ;;  %v7466_v35 = vld [vmem:[%s8006_s19 + $0x28] sm:$0xff]  ;;  %v6271_v53 = vunpack.i.h.bf16 %v16706_v57 }
 0x206   : > { %2342 = vmatpush.msrb.mxu3 %v10428_v19  ;;  %2197 = vmatmul.f32.vlgmr.msra.gmra.mxu0 %v10100_v18  ;;  %16704 = vst [vmem:[#allocation225_spill] sm:$0xff] %v10446_v42  ;;  %v10464_v49 = vsel %vm1930_vm1, %v6445_v56, %v16035_v6  ;;  %v6927_v15 = vpack.i.bf16 %v7467_v47, %v7466_v35  ;;  %v16707_v42 = vld [vmem:[#allocation56_spill] sm:$0xff]  ;;  %v16711_v47 = vld [vmem:[#allocation47_spill] sm:$0xff] }
 0x207   : > { %2220 = vmatmul.f32.vlgmr.msra.gmra.mxu1 %v10100_v18  ;;  %2243 = vmatmul.f32.vlgmr.msra.gmra.mxu2 %v10100_v18  ;;  %16705 = vst [vmem:[#allocation226_spill] sm:$0xff] %v10464_v49  ;;  %v6276_v38 = vunpack.i.h.bf16 %v16707_v42  ;;  %v10478_v56 = vld [vmem:[%s8006_s19 + $0xe0] sm:$0xff] }
 0x208   : > { %2266 = vmatmul.f32.vlgmr.msra.gmra.mxu3 %v10100_v18  ;;  %2274 = vmatpush.msrb.mxu0 %v10444_v10  ;;  %16708 = vst [vmem:[#allocation40_spill] sm:$0xff] %v10472_v26  ;;  %v6922_v6 = vpack.i.bf16 %v10478_v56, %v7468_v0  ;;  %v6275_v0 = vunpack.i.l.bf16 %v16707_v42  ;;  %v16715_v42 = vunpack.i.h.bf16 %v16711_v47  ;;  %v7476_v26 = vld [vmem:[%s8006_s19 + $0x30] sm:$0xff] }
 0x209   : > { %2297 = vmatpush.msrb.mxu1 %v10452_v22  ;;  %2320 = vmatpush.msrb.mxu2 %v10456_v7  ;;  %16709 = vst [vmem:[#allocation56_spill] sm:$0xff] %v10478_v56 }
 0x20a   : > { %2343 = vmatpush.msrb.mxu3 %v10464_v49  ;;  %2275 = vmatpush.msrb.mxu0 %v9974_v23  ;;  %v10483_v23 = vld [vmem:[%s8006_s19 + $0xd8] sm:$0xff]  ;;  %v6281_v49 = vunpack.i.h.bf16 %v16712_v54 }
 0x20b   : > { %2298 = vmatpush.msrb.mxu1 %v9992_v31  ;;  %2321 = vmatpush.msrb.mxu2 %v10031_v9  ;;  %16710 = vst [vmem:[#allocation227_spill] sm:$0xff] %v10483_v23  ;;  %v6917_v35 = vpack.i.bf16 %v10483_v23, %v7470_v32  ;;  %v10490_v31 = vpop.permute.xlu1 %6653  ;;  %v10492_v9 = vpop.permute.xlu0 %6648  ;;  %v6270_v32 = vunpack.i.l.bf16 %v16706_v57  ;;  %v7477_v23 = vld [vmem:[%s8006_s19 + $0xf0] sm:$0xff] }
 0x20c   : > { %2344 = vmatpush.msrb.mxu3 %v10023_v45  ;;  %2276 = vmatpush.msrb.mxu0 %v9971_v29  ;;  %16713 = vst [vmem:[#allocation47_spill] sm:$0xff] %v10492_v9  ;;  %v16714_v45 = vunpack.i.h.bf16 %v16638_v37  ;;  %v10536_v57 = vpop.f32.mrf.mxu3  ;;  %v6932_v56 = vpack.i.bf16 %v7477_v23, %v7476_v26  ;;  %v7479_v23 = vld [vmem:[%s8006_s19 + $0x118] sm:$0xff] }
 0x20d   : > { %2299 = vmatpush.msrb.mxu1 %v9989_v61  ;;  %2322 = vmatpush.msrb.mxu2 %v10028_v25  ;;  %v10510_v61 = vsel %vm1733_vm2, %v6271_v53, %v6276_v38  ;;  %v16041_v25 = vunpack.i.l.bf16 %v16711_v47  ;;  %16719 = vst [vmem:[#allocation230_spill] sm:$0xff] %v10536_v57 }
 0x20e   : > { %2345 = vmatpush.msrb.mxu3 %v10020_v2  ;;  %6928 = vrot.lane.b32.xlu2 %v6927_v15, %s7865_s30  ;;  %v10506_v33 = vsel %vm1733_vm2, %v16714_v45, %v6271_v53  ;;  %v6280_v2 = vunpack.i.l.bf16 %v16712_v54  ;;  %v10524_v15 = vsel %vm1733_vm2, %v6281_v49, %v16715_v42  ;;  %v10528_v53 = vpop.f32.mrf.mxu0  ;;  %v10530_v54 = vpop.f32.mrf.mxu1  ;;  %v10548_v45 = vsel %vm1733_vm2, %v6270_v32, %v6275_v0 }
 0x20f   : > { %6923 = vrot.lane.b32.xlu1 %v6922_v6, %s7865_s30  ;;  %6918 = vrot.lane.b32.xlu0 %v6917_v35, %s7865_s30  ;;  %v10518_v6 = vsel %vm1733_vm2, %v6276_v38, %v6281_v49  ;;  %16716 = vst [vmem:[#allocation54_spill] sm:$0xff] %v10528_v53  ;;  %v10534_v38 = vpop.f32.mrf.mxu2  ;;  %v16720_v49 = vunpack.i.l.bf16 %v16638_v37 }
 0x210   : > { %2277 = vmatpush.msrb.mxu0 %v10506_v33  ;;  %2300 = vmatpush.msrb.mxu1 %v10510_v61  ;;  %16717 = vst [vmem:[#allocation228_spill] sm:$0xff] %v10530_v54  ;;  %v10554_v42 = vsel %vm1733_vm2, %v6275_v0, %v6280_v2  ;;  %v10560_v37 = vsel %vm1733_vm2, %v6280_v2, %v16041_v25  ;;  %v7473_v0 = vld [vmem:[%s8006_s19 + $0x100] sm:$0xff]  ;;  %v7475_v54 = vld [vmem:[%s8006_s19 + $0xf8] sm:$0xff] }
 0x211   : > { %2323 = vmatpush.msrb.mxu2 %v10518_v6  ;;  %2346 = vmatpush.msrb.mxu3 %v10524_v15  ;;  %16718 = vst [vmem:[#allocation229_spill] sm:$0xff] %v10534_v38  ;;  %v10544_v35 = vsel %vm1733_vm2, %v16720_v49, %v6270_v32  ;;  %v10562_v49 = vpop.permute.xlu2 %6658  ;;  %v7472_v32 = vld [vmem:[%s8006_s19 + $0x40] sm:$0xff]  ;;  %v7474_v38 = vld [vmem:[%s8006_s19 + $0x38] sm:$0xff] }
 0x212   : > { %2200 = vmatmul.f32.gmra.mxu0 %v10192_v46  ;;  %2223 = vmatmul.f32.gmra.mxu1 %v10192_v46  ;;  %v6942_v57 = vpack.i.bf16 %v7473_v0, %v7472_v32  ;;  %v6937_v53 = vpack.i.bf16 %v7475_v54, %v7474_v38  ;;  %v7480_v54 = vld [vmem:[%s8006_s19 + $0x50] sm:$0xff]  ;;  %v7482_v32 = vld [vmem:[%s8006_s19 + $0x48] sm:$0xff] }
 0x213   : > { %2246 = vmatmul.f32.gmra.mxu2 %v10192_v46  ;;  %2269 = vmatmul.f32.gmra.mxu3 %v10192_v46  ;;  %v10572_v2 = vpop.permute.xlu1 %6668  ;;  %v10574_v25 = vpop.permute.xlu0 %6663  ;;  %v7481_v38 = vld [vmem:[%s8006_s19 + $0x110] sm:$0xff]  ;;  %v7483_v0 = vld [vmem:[%s8006_s19 + $0x108] sm:$0xff] }
 0x214   : > { %2278 = vmatpush.msrb.mxu0 %v10544_v35  ;;  %2301 = vmatpush.msrb.mxu1 %v10548_v45 }
 0x215   : > { %2324 = vmatpush.msrb.mxu2 %v10554_v42  ;;  %2347 = vmatpush.msrb.mxu3 %v10560_v37 }
 0x216   : > { %2279 = vmatpush.msrb.mxu0 %v10123_v12  ;;  %2302 = vmatpush.msrb.mxu1 %v10133_v39 }
 0x217   : > { %2325 = vmatpush.msrb.mxu2 %v10137_v14  ;;  %2348 = vmatpush.msrb.mxu3 %v10145_v17 }
 0x218   : > { %2280 = vmatpush.msrb.mxu0 %v10151_v5  ;;  %2303 = vmatpush.msrb.mxu1 %v10157_v63 }
 0x219   : > { %2326 = vmatpush.msrb.mxu2 %v10161_v50  ;;  %2349 = vmatpush.msrb.mxu3 %v10173_v58  ;;  %v10594_v26 = vpop.permute.xlu2 %6673 }
 0x21a   : > { %6943 = vrot.lane.b32.xlu2 %v6942_v57, %s7865_s30  ;;  %6938 = vrot.lane.b32.xlu1 %v6937_v53, %s7865_s30  ;;  %v6952_v57 = vpack.i.bf16 %v7481_v38, %v7480_v54  ;;  %v10634_v54 = vld [vmem:[%s8006_s19 + $0x68] sm:$0xff] }
 0x21b   : > { %6933 = vrot.lane.b32.xlu0 %v6932_v56, %s7865_s30  ;;  %2281 = vmatpush.msrb.mxu0 %v10222_v48  ;;  %v7478_v56 = vld [vmem:[%s8006_s19 + $0x58] sm:$0xff] }
 0x21c   : > { %2304 = vmatpush.msrb.mxu1 %v10226_v34  ;;  %2327 = vmatpush.msrb.mxu2 %v10232_v51  ;;  %v6957_v53 = vpack.i.bf16 %v7479_v23, %v7478_v56  ;;  %v16730_v56 = vld [vmem:[#allocation156_spill] sm:$0xff]  ;;  %v16731_v23 = vld [vmem:[#allocation157_spill] sm:$0xff] }
 0x21d   : > { %2350 = vmatpush.msrb.mxu3 %v10238_v4  ;;  %2282 = vmatpush.msrb.mxu0 %v10250_v60  ;;  %v10608_v60 = vpop.permute.xlu0 %6678  ;;  %v16073_v4 = vunpack.i.l.bf16 %v10490_v31  ;;  %v16779_v51 = vld [vmem:[#allocation200_spill] sm:$0xff] }
 0x21e   : > { %2305 = vmatpush.msrb.mxu1 %v10254_v11  ;;  %2328 = vmatpush.msrb.mxu2 %v10258_v24  ;;  %v6947_v11 = vpack.i.bf16 %v7483_v0, %v7482_v32  ;;  %v10606_v24 = vpop.permute.xlu1 %6683  ;;  %16722 = vst [vmem:[#allocation232_spill] sm:$0xff] %v10608_v60  ;;  %v10644_v32 = vld [vmem:[%s8006_s19 + $0x60] sm:$0xff]  ;;  %v16737_v0 = vld [vmem:[#allocation142_spill] sm:$0xff] }
 0x21f   : > { %2351 = vmatpush.msrb.mxu3 %v10266_v40  ;;  %2283 = vmatpush.msrb.mxu0 %v16657_v52  ;;  %16721 = vst [vmem:[#allocation231_spill] sm:$0xff] %v10606_v24  ;;  %v16723_v52 = vld [vmem:[#allocation147_spill] sm:$0xff]  ;;  %v16776_v24 = vld [vmem:[#allocation198_spill] sm:$0xff]  ;;  %v16777_v60 = vld [vmem:[#allocation196_spill] sm:$0xff] }
 0x220   : > { %2306 = vmatpush.msrb.mxu1 %v16658_v21  ;;  %2329 = vmatpush.msrb.mxu2 %v16659_v36  ;;  %v16724_v36 = vld [vmem:[#allocation149_spill] sm:$0xff]  ;;  %v16725_v21 = vld [vmem:[#allocation150_spill] sm:$0xff] }
 0x221   : > { %2352 = vmatpush.msrb.mxu3 %v16660_v41  ;;  %2284 = vmatpush.msrb.mxu0 %v16663_v43  ;;  %v16726_v41 = vld [vmem:[#allocation151_spill] sm:$0xff]  ;;  %16734 = vst [vmem:[#allocation150_spill] sm:$0xff] %v10634_v54 }
 0x222   : > { %2307 = vmatpush.msrb.mxu1 %v16665_v55  ;;  %2330 = vmatpush.msrb.mxu2 %v16666_v30  ;;  %v16727_v55 = vld [vmem:[#allocation153_spill] sm:$0xff]  ;;  %v16728_v30 = vld [vmem:[#allocation154_spill] sm:$0xff]  ;;  %v16729_v43 = vld [vmem:[#allocation155_spill] sm:$0xff] }
 0x223   : > { %2353 = vmatpush.msrb.mxu3 %v16723_v52  ;;  %6958 = vrot.lane.b32.xlu2 %v6957_v53, %s7865_s30  ;;  %v10626_v53 = vpop.permute.xlu2 %6688  ;;  %16736 = vst [vmem:[#allocation153_spill] sm:$0xff] %v10644_v32 }
 0x224   : > { %6953 = vrot.lane.b32.xlu1 %v6952_v57, %s7865_s30  ;;  %6948 = vrot.lane.b32.xlu0 %v6947_v11, %s7865_s30  ;;  %16732 = vst [vmem:[#allocation147_spill] sm:$0xff] %v10626_v53  ;;  %v10631_v11 = vld [vmem:[%s8006_s19 + $0x128] sm:$0xff]  ;;  %v10641_v57 = vld [vmem:[%s8006_s19 + $0x120] sm:$0xff] }
 0x225   : > { %2285 = vmatpush.msrb.mxu0 %v16724_v36  ;;  %2308 = vmatpush.msrb.mxu1 %v16725_v21  ;;  %16733 = vst [vmem:[#allocation149_spill] sm:$0xff] %v10631_v11  ;;  %v6967_v38 = vpack.i.bf16 %v10631_v11, %v10634_v54  ;;  %v10651_v36 = vpop.permute.xlu0 %6693  ;;  %v16739_v21 = vld [vmem:[#allocation161_spill] sm:$0xff]  ;;  %v16745_v54 = vld [vmem:[#allocation159_spill] sm:$0xff]  ;;  %v16746_v11 = vld [vmem:[#allocation148_spill] sm:$0xff] }
 0x226   : > { %2331 = vmatpush.msrb.mxu2 %v16726_v41  ;;  %2354 = vmatpush.msrb.mxu3 %v16727_v55  ;;  %16735 = vst [vmem:[#allocation151_spill] sm:$0xff] %v10641_v57  ;;  %v10649_v52 = vpop.permute.xlu1 %6698  ;;  %v16740_v41 = vld [vmem:[#allocation162_spill] sm:$0xff] }
 0x227   : > { %2286 = vmatpush.msrb.mxu0 %v16728_v30  ;;  %2309 = vmatpush.msrb.mxu1 %v16729_v43  ;;  %16738 = vst [vmem:[#allocation154_spill] sm:$0xff] %v10651_v36  ;;  %v16743_v43 = vld [vmem:[#allocation163_spill] sm:$0xff]  ;;  %v16071_v36 = vunpack.i.l.bf16 %v10492_v9 }
 0x228   : > { %2332 = vmatpush.msrb.mxu2 %v16730_v56  ;;  %2355 = vmatpush.msrb.mxu3 %v16731_v23  ;;  %v16744_v56 = vld [vmem:[#allocation164_spill] sm:$0xff]  ;;  %v6455_v23 = vunpack.i.l.bf16 %v16737_v0 }
 0x229   : > { %2287 = vmatpush.msrb.mxu0 %v9740_v59  ;;  %2310 = vmatpush.msrb.mxu1 %v16674_v1  ;;  %v6962_v59 = vpack.i.bf16 %v10641_v57, %v10644_v32  ;;  %v6456_v1 = vunpack.i.h.bf16 %v16737_v0  ;;  %v16052_v32 = vunpack.i.h.bf16 %v16745_v54  ;;  %v10666_v57 = vpop.f32.mrf.mxu0  ;;  %v10671_v0 = vpop.f32.mrf.mxu1 }
 0x22a   : > { %2333 = vmatpush.msrb.mxu2 %v9750_v44  ;;  %2356 = vmatpush.msrb.mxu3 %v9756_v3  ;;  %v16741_v44 = vld [vmem:[#allocation34_spill] sm:$0xff]  ;;  %v16742_v3 = vld [vmem:[#allocation141_spill] sm:$0xff]  ;;  %16747 = vst [vmem:[#allocation155_spill] sm:$0xff] %v10666_v57 }
 0x22b   : > { %2288 = vmatpush.msrb.mxu0 %v16739_v21  ;;  %2311 = vmatpush.msrb.mxu1 %v16740_v41  ;;  %v6466_v55 = vunpack.i.h.bf16 %v16741_v44  ;;  %v6461_v30 = vunpack.i.h.bf16 %v16742_v3  ;;  %v6465_v21 = vunpack.i.l.bf16 %v16741_v44  ;;  %v6460_v41 = vunpack.i.l.bf16 %v16742_v3  ;;  %16748 = vst [vmem:[#allocation156_spill] sm:$0xff] %v10671_v0  ;;  %v10683_v44 = vpop.f32.mrf.mxu3 }
 0x22c   : > { %2334 = vmatpush.msrb.mxu2 %v16743_v43  ;;  %2357 = vmatpush.msrb.mxu3 %v16744_v56  ;;  %v10673_v56 = vpop.f32.mrf.mxu2  ;;  %16752 = vst [vmem:[#allocation161_spill] sm:$0xff] %v10683_v44  ;;  %v16761_v44 = vld [vmem:[#allocation60_spill] sm:$0xff]  ;;  %v16762_v0 = vunpack.i.l.bf16 %v16745_v54  ;;  %v16774_v54 = vld [vmem:[#allocation201_spill] sm:$0xff] }
 0x22d   : > { %6973 = vrot.lane.b32.xlu2 %v16746_v11, %s7865_s30  ;;  %6968 = vrot.lane.b32.xlu1 %v6967_v38, %s7865_s30  ;;  %16749 = vst [vmem:[#allocation157_spill] sm:$0xff] %v10673_v56  ;;  %v16750_v11 = vunpack.i.h.bf16 %v16695_v20  ;;  %v10693_v3 = vsel %vm1930_vm1, %v6461_v30, %v6466_v55  ;;  %v10717_v43 = vsel %vm1930_vm1, %v6460_v41, %v6465_v21  ;;  %v16765_v56 = vld [vmem:[#allocation190_spill] sm:$0xff] }
 0x22e   : > { %6963 = vrot.lane.b32.xlu0 %v6962_v59, %s7865_s30  ;;  %2289 = vmatmul.f32.vlgmr.msrb.gmra.mxu0 %v10100_v18  ;;  %v10689_v59 = vsel %vm1930_vm1, %v6456_v1, %v6461_v30  ;;  %16754 = vst [vmem:[#allocation34_spill] sm:$0xff] %v10693_v3  ;;  %v10713_v30 = vsel %vm1930_vm1, %v6455_v23, %v6460_v41  ;;  %v16764_v41 = vld [vmem:[#allocation61_spill] sm:$0xff] }
 0x22f   : > { %2312 = vmatmul.f32.vlgmr.msrb.gmra.mxu1 %v10100_v18  ;;  %2335 = vmatmul.f32.vlgmr.msrb.gmra.mxu2 %v10100_v18  ;;  %v10681_v38 = vsel %vm1930_vm1, %v16750_v11, %v6456_v1  ;;  %16753 = vst [vmem:[#allocation162_spill] sm:$0xff] %v10689_v59  ;;  %v10701_v11 = vsel %vm1930_vm1, %v6466_v55, %v16052_v32  ;;  %v16760_v55 = vld [vmem:[#allocation57_spill] sm:$0xff]  ;;  %v6291_v57 = vunpack.i.h.bf16 %v16764_v41 }
 0x230   : > { %16751 = vst [vmem:[#allocation142_spill] sm:$0xff] %v10681_v38  ;;  %2358 = vmatmul.f32.vlgmr.msrb.gmra.mxu3 %v10100_v18  ;;  %2365 = vmatpush.msra.mxu0 %v10681_v38  ;;  %v16756_v18 = vunpack.i.l.bf16 %v16695_v20  ;;  %v16770_v32 = vld [vmem:[#allocation221_spill] sm:$0xff]  ;;  %v6701_v38 = vunpack.i.h.bf16 %v10649_v52 }
 0x231   : > { %2388 = vmatpush.msra.mxu1 %v10689_v59  ;;  %2411 = vmatpush.msra.mxu2 %v10693_v3  ;;  %16755 = vst [vmem:[#allocation141_spill] sm:$0xff] %v10701_v11  ;;  %v16769_v3 = vld [vmem:[#allocation197_spill] sm:$0xff] }
 0x232   : > { %v10707_v1 = vsel %vm1930_vm1, %v16756_v18, %v6455_v23  ;;  %2434 = vmatpush.msra.mxu3 %v10701_v11  ;;  %16758 = vst [vmem:[#allocation164_spill] sm:$0xff] %v10713_v30  ;;  %v6704_v18 = vpop.permute.xlu2 %6703  ;;  %v10728_v23 = vsel %vm1930_vm1, %v6465_v21, %v16762_v0  ;;  %v10739_v11 = vpop.permute.xlu1 %6713  ;;  %v16768_v0 = vld [vmem:[#allocation199_spill] sm:$0xff]  ;;  %v16771_v20 = vld [vmem:[#allocation217_spill] sm:$0xff] }
 0x233   : > { %16757 = vst [vmem:[#allocation163_spill] sm:$0xff] %v10707_v1  ;;  %2366 = vmatpush.msra.mxu0 %v10707_v1  ;;  %2389 = vmatpush.msra.mxu1 %v10713_v30  ;;  %v16766_v30 = vld [vmem:[#allocation222_spill] sm:$0xff]  ;;  %v6709_v21 = vpop.permute.xlu0 %6708  ;;  %v6982_v59 = vpack.i.bf16 %v16771_v20, %v16770_v32  ;;  %v6700_v32 = vunpack.i.l.bf16 %v10649_v52  ;;  %v6715_v20 = vunpack.i.l.bf16 %v10739_v11  ;;  %v16781_v52 = vunpack.i.h.bf16 %v10492_v9  ;;  %v10955_v9 = vld [vmem:[%s8014_s26 + $0xe0] sm:$0xff] }
 0x234   : > { %16759 = vst [vmem:[#allocation148_spill] sm:$0xff] %v10717_v43  ;;  %2412 = vmatpush.msra.mxu2 %v10717_v43  ;;  %2435 = vmatpush.msra.mxu3 %v10728_v23  ;;  %v16767_v1 = vld [vmem:[#allocation218_spill] sm:$0xff]  ;;  %v6711_v53 = vunpack.i.h.bf16 %v6709_v21  ;;  %v6710_v40 = vunpack.i.l.bf16 %v6709_v21  ;;  %v16784_v21 = vunpack.i.h.bf16 %v16761_v44 }
 0x235   : > { %16763 = vst [vmem:[#allocation57_spill] sm:$0xff] %v10728_v23  ;;  %2367 = vmatpush.msra.mxu0 %v16765_v56  ;;  %v6987_v43 = vpack.i.bf16 %v16767_v1, %v16766_v30  ;;  %2390 = vmatpush.msra.mxu1 %v16768_v0  ;;  %v10746_v23 = vld [vmem:[%s8006_s19 + $0x138] sm:$0xff]  ;;  %v6706_v30 = vunpack.i.h.bf16 %v6704_v18  ;;  %v16775_v0 = vld [vmem:[#allocation189_spill] sm:$0xff] }
 0x236   : > { %2413 = vmatpush.msra.mxu2 %v16769_v3  ;;  %16772 = vst [vmem:[#allocation60_spill] sm:$0xff] %v10746_v23  ;;  %v10749_v56 = vld [vmem:[%s8006_s19 + $0x78] sm:$0xff]  ;;  %2436 = vmatpush.msra.mxu3 %v16774_v54  ;;  %v6705_v3 = vunpack.i.l.bf16 %v6704_v18  ;;  %v16780_v54 = vunpack.i.h.bf16 %v10490_v31 }
 0x237   : > { %16773 = vst [vmem:[#allocation61_spill] sm:$0xff] %v10749_v56  ;;  %v6977_v1 = vpack.i.bf16 %v10746_v23, %v10749_v56  ;;  %2368 = vmatpush.msra.mxu0 %v16775_v0  ;;  %2391 = vmatpush.msra.mxu1 %v16776_v24  ;;  %v16778_v56 = vld [vmem:[#allocation68_spill] sm:$0xff]  ;;  %v6290_v24 = vunpack.i.l.bf16 %v16764_v41  ;;  %v10788_v0 = vsel %vm1733_vm2, %v6291_v57, %v16784_v21  ;;  %v10793_v41 = vpop.f32.mrf.mxu1  ;;  %v10811_v21 = vpop.f32.mrf.mxu2 }
 0x238   : > { %2414 = vmatpush.msra.mxu2 %v16777_v60  ;;  %v16072_v23 = vunpack.i.h.bf16 %v16778_v56  ;;  %2437 = vmatpush.msra.mxu3 %v16779_v51  ;;  %v10772_v18 = vsel %vm2809_vm3, %v16781_v52, %v16780_v54  ;;  %v6295_v60 = vunpack.i.l.bf16 %v16761_v44  ;;  %v16783_v51 = vunpack.i.h.bf16 %v16711_v47  ;;  %v10791_v52 = vpop.f32.mrf.mxu0  ;;  %16786 = vst [vmem:[#allocation218_spill] sm:$0xff] %v10793_v41  ;;  %v10813_v54 = vpop.f32.mrf.mxu3 }
 0x239   : > { %6988 = vrot.lane.b32.xlu2 %v6987_v43, %s7865_s30  ;;  %16782 = vst [vmem:[#allocation190_spill] sm:$0xff] %v10772_v18  ;;  %6983 = vrot.lane.b32.xlu1 %v6982_v59, %s7865_s30  ;;  %v10799_v59 = vsel %vm3054_vm4, %v6701_v38, %v6706_v30  ;;  %v10819_v38 = vsel %vm3054_vm4, %v6700_v32, %v6705_v3  ;;  %v16814_v18 = vunpack.i.h.bf16 %v10490_v31 }
 0x23a   : > { %6978 = vrot.lane.b32.xlu0 %v6977_v1, %s7865_s30  ;;  %v10782_v43 = vsel %vm1733_vm2, %v16783_v51, %v6291_v57  ;;  %16785 = vst [vmem:[#allocation222_spill] sm:$0xff] %v10791_v52  ;;  %2292 = vmatmul.f32.gmra.mxu0 %v10192_v46  ;;  %v10803_v1 = vsel %vm3054_vm4, %v6706_v30, %v6711_v53  ;;  %v16789_v57 = vunpack.i.h.bf16 %v10739_v11  ;;  %v16808_v52 = vunpack.i.h.bf16 %v10739_v11 }
 0x23b   : > { %2315 = vmatmul.f32.gmra.mxu1 %v10192_v46  ;;  %16787 = vst [vmem:[#allocation199_spill] sm:$0xff] %v10799_v59  ;;  %2338 = vmatmul.f32.gmra.mxu2 %v10192_v46  ;;  %v10823_v30 = vsel %vm3054_vm4, %v6705_v3, %v6710_v40  ;;  %v6661_v11 = vunpack.i.h.bf16 %v10562_v49 }
 0x23c   : > { %16788 = vst [vmem:[#allocation197_spill] sm:$0xff] %v10803_v1  ;;  %v10809_v51 = vsel %vm3054_vm4, %v6711_v53, %v16789_v57  ;;  %2361 = vmatmul.f32.gmra.mxu3 %v10192_v46  ;;  %v10827_v53 = vsel %vm3054_vm4, %v6710_v40, %v6715_v20  ;;  %2369 = vmatpush.msra.mxu0 %v10782_v43  ;;  %v16796_v57 = vunpack.i.h.bf16 %v16760_v55  ;;  %v16797_v46 = vunpack.i.h.bf16 %v16761_v44  ;;  %v10855_v44 = vpop.permute.xlu2 %6718 }
 0x23d   : > { %16790 = vst [vmem:[#allocation201_spill] sm:$0xff] %v10809_v51  ;;  %2392 = vmatpush.msra.mxu1 %v10788_v0  ;;  %v16807_v41 = vunpack.i.h.bf16 %v10855_v44 }
 0x23e   : > { %16791 = vst [vmem:[#allocation189_spill] sm:$0xff] %v10811_v21  ;;  %v10837_v32 = vsel %vm1733_vm2, %v16797_v46, %v16796_v57  ;;  %v16798_v3 = vmov %v16796_v57  ;;  %v16800_v57 = vunpack.i.l.bf16 %v16711_v47 }
 0x23f   : > { %16792 = vst [vmem:[#allocation198_spill] sm:$0xff] %v10813_v54  ;;  %v10845_v40 = vsel %vm1733_vm2, %v16798_v3, %v16072_v23  ;;  %v10853_v54 = vsel %vm2809_vm3, %v16071_v36, %v16073_v4  ;;  %2415 = vmatpush.msra.mxu2 %v10837_v32  ;;  %v10867_v3 = vsel %vm1733_vm2, %v6290_v24, %v6295_v60  ;;  %v16801_v4 = vunpack.i.l.bf16 %v16760_v55  ;;  %v10892_v23 = vld [vmem:[%s8006_s19 + $0xa0] sm:$0xff] }
 0x240   : > { %16793 = vst [vmem:[#allocation196_spill] sm:$0xff] %v10819_v38  ;;  %2438 = vmatpush.msra.mxu3 %v10845_v40  ;;  %v10863_v46 = vsel %vm1733_vm2, %v16800_v57, %v6290_v24  ;;  %2393 = vmatpush.msra.mxu1 %v10867_v3  ;;  %v16802_v57 = vunpack.i.l.bf16 %v16778_v56  ;;  %v16805_v36 = vld [vmem:[#allocation220_spill] sm:$0xff] }
 0x241   : > { %16794 = vst [vmem:[#allocation68_spill] sm:$0xff] %v10823_v30  ;;  %2370 = vmatpush.msra.mxu0 %v10863_v46  ;;  %v10877_v47 = vsel %vm1733_vm2, %v6295_v60, %v16801_v4  ;;  %v16803_v21 = vmov %v16801_v4  ;;  %v16804_v4 = vld [vmem:[#allocation103_spill] sm:$0xff]  ;;  %v6997_v55 = vpack.i.bf16 %v16805_v36, %v10379_v13  ;;  %v16810_v13 = vunpack.i.l.bf16 %v10855_v44 }
 0x242   : > { %16795 = vst [vmem:[#allocation200_spill] sm:$0xff] %v10827_v53  ;;  %v10885_v24 = vsel %vm1733_vm2, %v16803_v21, %v16802_v57  ;;  %2416 = vmatpush.msra.mxu2 %v10877_v47  ;;  %2394 = vmatpush.msra.mxu1 %v10415_v8  ;;  %v7002_v60 = vpack.i.bf16 %v16804_v4, %v10892_v23  ;;  %v16806_v21 = vld [vmem:[#allocation219_spill] sm:$0xff] }
 0x243   : > { %16799 = vst [vmem:[#allocation233_spill] sm:$0xff] %v10853_v54  ;;  %2439 = vmatpush.msra.mxu3 %v10885_v24  ;;  %2371 = vmatpush.msra.mxu0 %v10407_v27  ;;  %v6992_v57 = vpack.i.bf16 %v16806_v21, %v10375_v28  ;;  %v10910_v4 = vsel %vm3054_vm4, %v16808_v52, %v16807_v41  ;;  %v10918_v54 = vpop.permute.xlu1 %6728  ;;  %v6724_v28 = vpop.permute.xlu0 %6723  ;;  %v16812_v21 = vld [vmem:[#allocation226_spill] sm:$0xff]  ;;  %v6666_v52 = vunpack.i.h.bf16 %v10574_v25  ;;  %v6671_v41 = vunpack.i.h.bf16 %v10572_v2  ;;  %v16853_v30 = vld [vmem:[#allocation231_spill] sm:$0xff] }
 0x244   : > { %2417 = vmatpush.msra.mxu2 %v10419_v16  ;;  %2395 = vmatpush.msra.mxu1 %v10452_v22  ;;  %16809 = vst [vmem:[#allocation103_spill] sm:$0xff] %v10910_v4  ;;  %v10916_v36 = vsel %vm3054_vm4, %v6715_v20, %v16810_v13  ;;  %v6660_v20 = vunpack.i.l.bf16 %v10562_v49  ;;  %v16813_v49 = vld [vmem:[#allocation181_spill] sm:$0xff]  ;;  %v10985_v53 = vpop.permute.xlu2 %6733  ;;  %v16855_v4 = vld [vmem:[#allocation214_spill] sm:$0xff] }
 0x245   : > { %2440 = vmatpush.msra.mxu3 %v10428_v19  ;;  %2372 = vmatpush.msra.mxu0 %v10444_v10  ;;  %16811 = vst [vmem:[#allocation220_spill] sm:$0xff] %v10916_v36  ;;  %v7017_v13 = vpack.i.bf16 %v9971_v29, %v16813_v49  ;;  %v10963_v49 = vld [vmem:[%s8014_s26 + $0xd8] sm:$0xff]  ;;  %v10966_v36 = vld [vmem:[%s8014_s26 + $0xd0] sm:$0xff]  ;;  %v16856_v51 = vunpack.i.l.bf16 %v10985_v53 }
 0x246   : > { %2418 = vmatpush.msra.mxu2 %v10456_v7  ;;  %7003 = vrot.lane.b32.xlu2 %v7002_v60, %s7865_s30  ;;  %v6665_v60 = vunpack.i.l.bf16 %v10574_v25  ;;  %v10946_v25 = vsel %vm2809_vm3, %v16814_v18, %v6661_v11  ;;  %16818 = vst [vmem:[#allocation234_spill] sm:$0xff] %v10963_v49  ;;  %v10970_v18 = vpack.i.bf16 %v10963_v49, %v10966_v36 }
 0x247   : > { %2441 = vmatpush.msra.mxu3 %v16812_v21  ;;  %6998 = vrot.lane.b32.xlu1 %v6997_v55, %s7865_s30  ;;  %16815 = vst [vmem:[#allocation219_spill] sm:$0xff] %v10946_v25  ;;  %v10950_v55 = vsel %vm2809_vm3, %v6661_v11, %v6666_v52  ;;  %v16078_v11 = vunpack.i.l.bf16 %v10918_v54 }
 0x248   : > { %6993 = vrot.lane.b32.xlu0 %v6992_v57, %s7865_s30  ;;  %2373 = vmatpush.msra.mxu0 %v10506_v33  ;;  %v6726_v57 = vunpack.i.h.bf16 %v6724_v28  ;;  %16816 = vst [vmem:[#allocation226_spill] sm:$0xff] %v10950_v55  ;;  %v16821_v55 = vunpack.i.l.bf16 %v10490_v31  ;;  %v16826_v31 = vunpack.i.h.bf16 %v10855_v44 }
 0x249   : > { %2396 = vmatpush.msra.mxu1 %v10510_v61  ;;  %2419 = vmatpush.msra.mxu2 %v10518_v6  ;;  %16819 = vst [vmem:[#allocation235_spill] sm:$0xff] %v10966_v36 }
 0x24a   : > { %2442 = vmatpush.msra.mxu3 %v10524_v15  ;;  %2374 = vmatpush.msra.mxu0 %v10544_v35  ;;  %v10983_v25 = vsel %vm2809_vm3, %v16821_v55, %v6660_v20  ;;  %16823 = vst [vmem:[#allocation238_spill] sm:$0xff] %v10985_v53  ;;  %v11041_v55 = vld [vmem:[%s8014_s26] sm:$0xff] }
 0x24b   : > { %2397 = vmatpush.msra.mxu1 %v10548_v45  ;;  %2420 = vmatpush.msra.mxu2 %v10554_v42  ;;  %16822 = vst [vmem:[#allocation237_spill] sm:$0xff] %v10983_v25  ;;  %v16839_v25 = vld [vmem:[#allocation168_spill] sm:$0xff] }
 0x24c   : > { %2443 = vmatpush.msra.mxu3 %v10560_v37  ;;  %2375 = vmatpush.msra.mxu0 %v10123_v12  ;;  %v10958_v12 = vld [vmem:[%s8014_s26 + $0x10] sm:$0xff] }
 0x24d   : > { %2398 = vmatpush.msra.mxu1 %v10133_v39  ;;  %2421 = vmatpush.msra.mxu2 %v10137_v14  ;;  %16817 = vst [vmem:[#allocation181_spill] sm:$0xff] %v10958_v12  ;;  %v7012_v29 = vpack.i.bf16 %v10958_v12, %v10955_v9  ;;  %v6725_v39 = vunpack.i.l.bf16 %v6724_v28  ;;  %v10977_v14 = vsel %vm2809_vm3, %v6666_v52, %v6671_v41  ;;  %v10995_v28 = vpop.permute.xlu0 %6738 }
 0x24e   : > { %2444 = vmatpush.msra.mxu3 %v10145_v17  ;;  %2376 = vmatpush.msra.mxu0 %v10151_v5  ;;  %16820 = vst [vmem:[#allocation236_spill] sm:$0xff] %v10977_v14  ;;  %v10991_v17 = vsel %vm2809_vm3, %v6660_v20, %v6665_v60  ;;  %v10993_v5 = vpop.permute.xlu1 %6743  ;;  %v16079_v20 = vunpack.i.h.bf16 %v10594_v26  ;;  %v6481_v14 = vunpack.i.h.bf16 %v16839_v25 }
 0x24f   : > { %2399 = vmatpush.msra.mxu1 %v10157_v63  ;;  %2422 = vmatpush.msra.mxu2 %v10161_v50  ;;  %16824 = vst [vmem:[#allocation239_spill] sm:$0xff] %v10991_v17  ;;  %v11003_v63 = vsel %vm3054_vm4, %v16826_v31, %v6726_v57  ;;  %v16828_v50 = vunpack.i.h.bf16 %v10918_v54  ;;  %v11022_v31 = vld [vmem:[%s8014_s26 + $0xc8] sm:$0xff] }
 0x250   : > { %16825 = vst [vmem:[#allocation240_spill] sm:$0xff] %v10995_v28  ;;  %2445 = vmatpush.msra.mxu3 %v10173_v58  ;;  %7018 = vrot.lane.b32.xlu2 %v7017_v13, %s7866_s23  ;;  %v6670_v58 = vunpack.i.l.bf16 %v10572_v2  ;;  %v11018_v13 = vld [vmem:[%s8014_s26 + $0xc0] sm:$0xff] }
 0x251   : > { %16827 = vst [vmem:[#allocation241_spill] sm:$0xff] %v11003_v63  ;;  %v11009_v52 = vsel %vm3054_vm4, %v6726_v57, %v16828_v50  ;;  %7013 = vrot.lane.b32.xlu1 %v7012_v29, %s7866_s23  ;;  %7008 = vrot.lane.b32.xlu0 %v10970_v18, %s7866_s23  ;;  %v16831_v57 = vunpack.i.l.bf16 %v10855_v44  ;;  %v11035_v29 = vsel %vm3054_vm4, %v6725_v39, %v16078_v11  ;;  %v11045_v44 = vld [vmem:[%s8014_s26 + $0x8] sm:$0xff] }
 0x252   : > { %16829 = vst [vmem:[#allocation242_spill] sm:$0xff] %v11009_v52  ;;  %2377 = vmatpush.msra.mxu0 %v11018_v13  ;;  %2400 = vmatpush.msra.mxu1 %v11022_v31  ;;  %v11058_v11 = vsel %vm2809_vm3, %v6671_v41, %v16079_v20  ;;  %v11062_v50 = vsel %vm2809_vm3, %v6665_v60, %v6670_v58  ;;  %v16841_v41 = vld [vmem:[#allocation50_spill] sm:$0xff]  ;;  %v16842_v20 = vld [vmem:[#allocation208_spill] sm:$0xff]  ;;  %v11078_v52 = vpop.f32.mrf.mxu0 }
 0x253   : > { %16830 = vst [vmem:[#allocation243_spill] sm:$0xff] %v11022_v31  ;;  %v11029_v2 = vsel %vm3054_vm4, %v16831_v57, %v6725_v39  ;;  %2423 = vmatpush.msra.mxu2 %v10966_v36  ;;  %2446 = vmatpush.msra.mxu3 %v10963_v49  ;;  %v11051_v39 = vld [vmem:[%s8014_s26 + $0x18] sm:$0xff]  ;;  %v16837_v57 = vunpack.i.l.bf16 %v10594_v26  ;;  %v16843_v60 = vld [vmem:[#allocation170_spill] sm:$0xff] }
 0x254   : > { %16832 = vst [vmem:[#allocation244_spill] sm:$0xff] %v11029_v2  ;;  %2378 = vmatpush.msra.mxu0 %v11041_v55  ;;  %2401 = vmatpush.msra.mxu1 %v11045_v44  ;;  %v16847_v49 = vld [vmem:[#allocation211_spill] sm:$0xff] }
 0x255   : > { %16833 = vst [vmem:[#allocation245_spill] sm:$0xff] %v11035_v29  ;;  %2424 = vmatpush.msra.mxu2 %v10958_v12  ;;  %2447 = vmatpush.msra.mxu3 %v11051_v39  ;;  %v11070_v17 = vsel %vm2809_vm3, %v6670_v58, %v16837_v57  ;;  %v16840_v29 = vld [vmem:[#allocation158_spill] sm:$0xff]  ;;  %v16848_v58 = vld [vmem:[#allocation212_spill] sm:$0xff]  ;;  %v16849_v57 = vunpack.i.h.bf16 %v10985_v53  ;;  %v11112_v38 = vpop.permute.xlu0 %6753 }
 0x256   : > { %16834 = vst [vmem:[#allocation246_spill] sm:$0xff] %v11051_v39  ;;  %2379 = vmatpush.msra.mxu0 %v10222_v48  ;;  %2402 = vmatpush.msra.mxu1 %v10226_v34  ;;  %v6476_v2 = vunpack.i.h.bf16 %v16840_v29  ;;  %v16846_v34 = vld [vmem:[#allocation232_spill] sm:$0xff]  ;;  %v6475_v36 = vunpack.i.l.bf16 %v16840_v29 }
 0x257   : > { %16835 = vst [vmem:[#allocation247_spill] sm:$0xff] %v11058_v11  ;;  %2425 = vmatpush.msra.mxu2 %v16841_v41  ;;  %2448 = vmatpush.msra.mxu3 %v16842_v20  ;;  %v16844_v11 = vld [vmem:[#allocation171_spill] sm:$0xff]  ;;  %v6681_v63 = vunpack.i.h.bf16 %v16846_v34  ;;  %v6480_v20 = vunpack.i.l.bf16 %v16839_v25  ;;  %v6680_v29 = vunpack.i.l.bf16 %v16846_v34  ;;  %v7027_v34 = vpack.i.bf16 %v10958_v12, %v11045_v44  ;;  %v11131_v25 = vpop.f32.mrf.mxu3 }
 0x258   : > { %16836 = vst [vmem:[#allocation248_spill] sm:$0xff] %v11062_v50  ;;  %v6491_v50 = vunpack.i.h.bf16 %v16843_v60  ;;  %v6486_v48 = vunpack.i.h.bf16 %v16844_v11  ;;  %2380 = vmatpush.msra.mxu0 %v16847_v49  ;;  %2403 = vmatpush.msra.mxu1 %v16848_v58  ;;  %v11096_v49 = vpop.permute.xlu2 %6748  ;;  %v16854_v58 = vld [vmem:[#allocation213_spill] sm:$0xff]  ;;  %v6490_v12 = vunpack.i.l.bf16 %v16843_v60 }
 0x259   : > { %16838 = vst [vmem:[#allocation249_spill] sm:$0xff] %v11070_v17  ;;  %v16850_v17 = vunpack.i.h.bf16 %v10918_v54  ;;  %2426 = vmatpush.msra.mxu2 %v16854_v58  ;;  %2449 = vmatpush.msra.mxu3 %v16855_v4  ;;  %v11117_v4 = vld [vmem:[%s15870_s4] sm:$0xff]  ;;  %v6485_v58 = vunpack.i.l.bf16 %v16844_v11 }
 0x25a   : > { %16845 = vst [vmem:[#allocation168_spill] sm:$0xff] %v11078_v52  ;;  %v11093_v52 = vpop.f32.mrf.mxu1  ;;  %2381 = vmatmul.f32.vlgmr.msra.gmra.mxu0 %v11117_v4  ;;  %2404 = vmatmul.f32.vlgmr.msra.gmra.mxu1 %v11117_v4  ;;  %v1934_v11 = vsel %vm1930_vm1, %v6481_v14, %v6486_v48 }
 0x25b   : > { %v11089_v41 = vsel %vm3054_vm4, %v16850_v17, %v16849_v57  ;;  %16852 = vst [vmem:[#allocation50_spill] sm:$0xff] %v11093_v52  ;;  %v16857_v17 = vunpack.i.l.bf16 %v10918_v54  ;;  %v11110_v52 = vpop.permute.xlu1 %6758  ;;  %v11122_v54 = vld [vmem:[%s8006_s19 + $0x178] sm:$0xff]  ;;  %2450 = vmatmul.f32.vlgmr.msra.gmra.mxu3 %v11117_v4  ;;  %2503 = vmatpush.msrb.mxu2 %v1934_v11  ;;  %v11188_v11 = vld [vmem:[%s8014_s26 + $0x120] sm:$0xff] }
 0x25c   : > { %16851 = vst [vmem:[#allocation158_spill] sm:$0xff] %v11089_v41  ;;  %7028 = vrot.lane.b32.xlu1 %v7027_v34, %s7865_s30  ;;  %7023 = vrot.lane.b32.xlu0 %v10970_v18, %s7865_s30  ;;  %v7507_v18 = vld [vmem:[%s8014_s26 + $0x68] sm:$0xff] }
 0x25d   : > { %v11106_v57 = vsel %vm3054_vm4, %v16857_v17, %v16856_v51  ;;  %16859 = vst [vmem:[#allocation170_spill] sm:$0xff] %v11110_v52  ;;  %v7032_v51 = vpack.i.bf16 %v11122_v54, %v11051_v39  ;;  %v11129_v17 = vpop.f32.mrf.mxu2  ;;  %2427 = vmatmul.f32.vlgmr.msra.gmra.mxu2 %v11117_v4  ;;  %v1936_v39 = vsel %vm1930_vm1, %v6476_v2, %v6481_v14  ;;  %v16889_v52 = vld [vmem:[#allocation60_spill] sm:$0xff] }
 0x25e   : > { %16858 = vst [vmem:[#allocation208_spill] sm:$0xff] %v11106_v57  ;;  %v16863_v57 = vld [vmem:[#allocation159_spill] sm:$0xff]  ;;  %2480 = vmatpush.msrb.mxu1 %v1936_v39  ;;  %v16870_v39 = vunpack.i.l.bf16 %v10594_v26 }
 0x25f   : > { %16860 = vst [vmem:[#allocation171_spill] sm:$0xff] %v11112_v38  ;;  %v16864_v53 = vunpack.i.h.bf16 %v16863_v57  ;;  %7033 = vrot.lane.b32.xlu2 %v7032_v51, %s7865_s30  ;;  %v16869_v14 = vunpack.i.l.bf16 %v16863_v57  ;;  %v16874_v57 = vld [vmem:[#allocation64_spill] sm:$0xff]  ;;  %v16875_v51 = vld [vmem:[#allocation67_spill] sm:$0xff]  ;;  %v7512_v38 = vld [vmem:[%s8006_s19 + $0x130] sm:$0xff] }
 0x260   : > { %16861 = vst [vmem:[#allocation232_spill] sm:$0xff] %v11129_v17  ;;  %v16865_v17 = vunpack.i.h.bf16 %v10594_v26  ;;  %v11168_v60 = vsel %vm2809_vm3, %v16870_v39, %v6680_v29  ;;  %v1933_v26 = vsel %vm1930_vm1, %v6480_v20, %v6485_v58  ;;  %v6311_v34 = vunpack.i.h.bf16 %v16875_v51  ;;  %v16879_v39 = vld [vmem:[#allocation74_spill] sm:$0xff] }
 0x261   : > { %16862 = vst [vmem:[#allocation211_spill] sm:$0xff] %v11131_v25  ;;  %v1938_v41 = vsel %vm1930_vm1, %v16864_v53, %v6476_v2  ;;  %v1932_v25 = vsel %vm1930_vm1, %v6486_v48, %v6491_v50  ;;  %v16867_v53 = vunpack.i.h.bf16 %v16853_v30  ;;  %v1937_v50 = vsel %vm1930_vm1, %v16869_v14, %v6475_v36  ;;  %2504 = vmatpush.msrb.mxu2 %v1933_v26  ;;  %v7504_v14 = vld [vmem:[%s8014_s26 + $0x130] sm:$0xff]  ;;  %v11199_v26 = vpop.permute.xlu2 %6763 }
 0x262   : > { %2457 = vmatpush.msrb.mxu0 %v1938_v41  ;;  %v11150_v1 = vsel %vm2809_vm3, %v16865_v17, %v6681_v63  ;;  %2526 = vmatpush.msrb.mxu3 %v1932_v25  ;;  %16871 = vst [vmem:[#allocation213_spill] sm:$0xff] %v11168_v60  ;;  %v16872_v48 = vunpack.i.l.bf16 %v16853_v30  ;;  %v1935_v41 = vsel %vm1930_vm1, %v6475_v36, %v6480_v20  ;;  %v6316_v25 = vunpack.i.h.bf16 %v16874_v57  ;;  %v16876_v17 = vld [vmem:[#allocation147_spill] sm:$0xff] }
 0x263   : > { %16866 = vst [vmem:[#allocation212_spill] sm:$0xff] %v11150_v1  ;;  %v11156_v2 = vsel %vm2809_vm3, %v6681_v63, %v16867_v53  ;;  %2481 = vmatpush.msrb.mxu1 %v1935_v41  ;;  %v6315_v36 = vunpack.i.l.bf16 %v16874_v57  ;;  %v6310_v20 = vunpack.i.l.bf16 %v16875_v51  ;;  %v7503_v53 = vld [vmem:[%s8014_s26 + $0x128] sm:$0xff]  ;;  %2505 = vmatpush.msrb.mxu2 %v7504_v14  ;;  %v6320_v41 = vunpack.i.l.bf16 %v16879_v39  ;;  %v11203_v57 = vld [vmem:[%s8014_s26 + $0x60] sm:$0xff]  ;;  %v11208_v14 = vpop.permute.xlu1 %6773  ;;  %v7509_v1 = vld [vmem:[%s8014_s26 + $0x78] sm:$0xff] }
 0x264   : > { %16868 = vst [vmem:[#allocation231_spill] sm:$0xff] %v11156_v2  ;;  %v11174_v63 = vsel %vm2809_vm3, %v6680_v29, %v16872_v48  ;;  %2458 = vmatpush.msrb.mxu0 %v1937_v50  ;;  %v1931_v29 = vsel %vm1930_vm1, %v6485_v58, %v6490_v12  ;;  %v16878_v50 = vld [vmem:[#allocation73_spill] sm:$0xff]  ;;  %v6321_v48 = vunpack.i.h.bf16 %v16879_v39  ;;  %v7508_v39 = vld [vmem:[%s8014_s26 + $0x70] sm:$0xff]  ;;  %v1739_v60 = vsel %vm1733_vm2, %v6311_v34, %v6316_v25  ;;  %v11218_v2 = vpop.f32.mrf.mxu0 }
 0x265   : > { %16873 = vst [vmem:[#allocation214_spill] sm:$0xff] %v11174_v63  ;;  %2527 = vmatpush.msrb.mxu3 %v1931_v29  ;;  %2482 = vmatpush.msrb.mxu1 %v7503_v53  ;;  %v6326_v12 = vunpack.i.h.bf16 %v16878_v50  ;;  %v6325_v58 = vunpack.i.l.bf16 %v16878_v50  ;;  %v7505_v29 = vld [vmem:[%s8014_s26 + $0x138] sm:$0xff]  ;;  %v6769_v50 = vpop.permute.xlu0 %6768  ;;  %v16881_v63 = vunpack.i.h.bf16 %v16778_v56  ;;  %v7037_v28 = vpack.i.bf16 %v16889_v52, %v7512_v38 }
 0x266   : > { %16877 = vst [vmem:[#allocation159_spill] sm:$0xff] %v11188_v11  ;;  %2459 = vmatpush.msrb.mxu0 %v11188_v11  ;;  %2506 = vmatpush.msrb.mxu2 %v7508_v39  ;;  %v6771_v51 = vunpack.i.h.bf16 %v6769_v50  ;;  %v7511_v39 = vld [vmem:[%s8006_s19 + $0x70] sm:$0xff]  ;;  %v11238_v11 = vpop.f32.mrf.mxu1  ;;  %v6770_v59 = vunpack.i.l.bf16 %v6769_v50  ;;  %v1737_v50 = vsel %vm1733_vm2, %v6316_v25, %v6321_v48  ;;  %v16892_v38 = vunpack.i.l.bf16 %v16778_v56 }
 0x267   : > { %2528 = vmatpush.msrb.mxu3 %v7505_v29  ;;  %16880 = vst [vmem:[#allocation64_spill] sm:$0xff] %v11203_v57  ;;  %2483 = vmatpush.msrb.mxu1 %v7507_v18  ;;  %v1741_v29 = vsel %vm1733_vm2, %v16881_v63, %v6311_v34  ;;  %v11225_v18 = vld [vmem:[%s15870_s4 + $0x8] sm:$0xff]  ;;  %v7047_v63 = vpack.i.bf16 %v7511_v39, %v11022_v31  ;;  %v16883_v34 = vunpack.i.h.bf16 %v16876_v17  ;;  %v16895_v56 = vunpack.i.h.bf16 %v11208_v14 }
 0x268   : > { %2460 = vmatpush.msrb.mxu0 %v11203_v57  ;;  %16882 = vst [vmem:[#allocation67_spill] sm:$0xff] %v11218_v2  ;;  %v16884_v2 = vunpack.i.h.bf16 %v16853_v30  ;;  %2407 = vmatmul.f32.gmra.mxu1 %v11225_v18  ;;  %v16888_v39 = vld [vmem:[#allocation217_spill] sm:$0xff]  ;;  %v1740_v52 = vsel %vm1733_vm2, %v16892_v38, %v6310_v20  ;;  %v1738_v57 = vsel %vm1733_vm2, %v6310_v20, %v6315_v36  ;;  %v7514_v38 = vld [vmem:[%s8014_s26 + $0xf8] sm:$0xff] }
 0x269   : > { %2529 = vmatpush.msrb.mxu3 %v7509_v1  ;;  %2384 = vmatmul.f32.gmra.mxu0 %v11225_v18  ;;  %16886 = vst [vmem:[#allocation73_spill] sm:$0xff] %v11238_v11  ;;  %v11240_v1 = vpop.f32.mrf.mxu2  ;;  %v7042_v31 = vpack.i.bf16 %v11018_v13, %v16888_v39  ;;  %v16891_v11 = vld [vmem:[#allocation154_spill] sm:$0xff]  ;;  %v1735_v39 = vsel %vm1733_vm2, %v6321_v48, %v6326_v12 }
 0x26a   : > { %v11236_v53 = vsel %vm2809_vm3, %v16884_v2, %v16883_v34  ;;  %16887 = vst [vmem:[#allocation74_spill] sm:$0xff] %v11240_v1  ;;  %2430 = vmatmul.f32.gmra.mxu2 %v11225_v18  ;;  %v6690_v2 = vunpack.i.l.bf16 %v16876_v17  ;;  %v11250_v34 = vpop.f32.mrf.mxu3  ;;  %v6695_v1 = vunpack.i.l.bf16 %v16891_v11  ;;  %2453 = vmatmul.f32.gmra.mxu3 %v11225_v18  ;;  %v11278_v12 = vsel %vm3054_vm4, %v6771_v51, %v16895_v56  ;;  %v16914_v56 = vld [vmem:[#allocation221_spill] sm:$0xff] }
 0x26b   : > { %16885 = vst [vmem:[#allocation147_spill] sm:$0xff] %v11236_v53  ;;  %v6696_v53 = vunpack.i.h.bf16 %v16891_v11  ;;  %2461 = vmatpush.msrb.mxu0 %v1741_v29  ;;  %2484 = vmatpush.msrb.mxu1 %v1739_v60  ;;  %v1736_v11 = vsel %vm1733_vm2, %v6315_v36, %v6320_v41  ;;  %v16893_v60 = vunpack.i.h.bf16 %v11199_v26  ;;  %v1734_v20 = vsel %vm1733_vm2, %v6320_v41, %v6325_v58 }
 0x26c   : > { %16890 = vst [vmem:[#allocation217_spill] sm:$0xff] %v11250_v34  ;;  %2507 = vmatpush.msrb.mxu2 %v1737_v50  ;;  %2530 = vmatpush.msrb.mxu3 %v1735_v39  ;;  %v16896_v36 = vunpack.i.l.bf16 %v11199_v26  ;;  %v16898_v29 = vunpack.i.l.bf16 %v11208_v14  ;;  %v16902_v58 = vunpack.i.l.bf16 %v16853_v30  ;;  %v16909_v50 = vld [vmem:[#allocation163_spill] sm:$0xff]  ;;  %v16910_v30 = vld [vmem:[#allocation164_spill] sm:$0xff]  ;;  %v7513_v39 = vld [vmem:[%s8014_s26 + $0xf0] sm:$0xff] }
 0x26d   : > { %7048 = vrot.lane.b32.xlu2 %v7047_v63, %s7866_s23  ;;  %v11272_v25 = vsel %vm3054_vm4, %v16893_v60, %v6771_v51  ;;  %7043 = vrot.lane.b32.xlu1 %v7042_v31, %s7866_s23  ;;  %v11310_v63 = vsel %vm2809_vm3, %v6690_v2, %v6695_v1  ;;  %v7057_v1 = vpack.i.bf16 %v11045_v44, %v11041_v55  ;;  %v16913_v60 = vld [vmem:[#allocation61_spill] sm:$0xff] }
 0x26e   : > { %16894 = vst [vmem:[#allocation60_spill] sm:$0xff] %v11272_v25  ;;  %7038 = vrot.lane.b32.xlu0 %v7037_v28, %s7866_s23  ;;  %v11288_v48 = vsel %vm3054_vm4, %v16896_v36, %v6770_v59  ;;  %v11294_v51 = vsel %vm3054_vm4, %v6770_v59, %v16898_v29  ;;  %2462 = vmatpush.msrb.mxu0 %v1740_v52  ;;  %v16900_v28 = vunpack.i.h.bf16 %v16876_v17  ;;  %v16905_v59 = vld [vmem:[#allocation142_spill] sm:$0xff]  ;;  %v11328_v36 = vpop.permute.xlu2 %6778  ;;  %v11332_v29 = vpop.permute.xlu0 %6783 }
 0x26f   : > { %16897 = vst [vmem:[#allocation154_spill] sm:$0xff] %v11288_v48  ;;  %2485 = vmatpush.msrb.mxu1 %v1738_v57  ;;  %v11306_v41 = vsel %vm2809_vm3, %v16902_v58, %v6690_v2  ;;  %2508 = vmatpush.msrb.mxu2 %v1736_v11  ;;  %v16906_v57 = vld [vmem:[#allocation162_spill] sm:$0xff]  ;;  %v11320_v52 = vpack.i.bf16 %v7514_v38, %v7513_v39  ;;  %v16911_v2 = vld [vmem:[#allocation148_spill] sm:$0xff]  ;;  %v16912_v11 = vld [vmem:[#allocation57_spill] sm:$0xff]  ;;  %v16093_v58 = vunpack.i.h.bf16 %v11328_v36 }
 0x270   : > { %16899 = vst [vmem:[#allocation250_spill] sm:$0xff] %v11294_v51  ;;  %v11300_v31 = vsel %vm2809_vm3, %v16900_v28, %v6696_v53  ;;  %2531 = vmatpush.msrb.mxu3 %v1734_v20  ;;  %2463 = vmatpush.msrb.mxu0 %v16905_v59  ;;  %v16907_v17 = vld [vmem:[#allocation34_spill] sm:$0xff]  ;;  %v16908_v53 = vld [vmem:[#allocation141_spill] sm:$0xff]  ;;  %v7052_v20 = vpack.i.bf16 %v16914_v56, %v16913_v60  ;;  %v16924_v56 = vld [vmem:[#allocation227_spill] sm:$0xff] }
 0x271   : > { %16901 = vst [vmem:[#allocation251_spill] sm:$0xff] %v11300_v31  ;;  %2486 = vmatpush.msrb.mxu1 %v16906_v57  ;;  %2509 = vmatpush.msrb.mxu2 %v16907_v17  ;;  %v6786_v57 = vunpack.i.h.bf16 %v11332_v29  ;;  %v11404_v17 = vpop.f32.mrf.mxu0  ;;  %v7524_v60 = vld [vmem:[%s8006_s19 + $0xd0] sm:$0xff] }
 0x272   : > { %16903 = vst [vmem:[#allocation252_spill] sm:$0xff] %v11306_v41  ;;  %2532 = vmatpush.msrb.mxu3 %v16908_v53  ;;  %2464 = vmatpush.msrb.mxu0 %v16909_v50  ;;  %v7523_v53 = vld [vmem:[%s8006_s19 + $0x10] sm:$0xff]  ;;  %v16920_v50 = vld [vmem:[#allocation56_spill] sm:$0xff]  ;;  %v16949_v41 = vld [vmem:[#allocation171_spill] sm:$0xff] }
 0x273   : > { %16904 = vst [vmem:[#allocation253_spill] sm:$0xff] %v11310_v63  ;;  %2487 = vmatpush.msrb.mxu1 %v16910_v30  ;;  %2510 = vmatpush.msrb.mxu2 %v16911_v2  ;;  %v7087_v30 = vpack.i.bf16 %v7523_v53, %v16920_v50  ;;  %v11442_v2 = vsel %vm3054_vm4, %v16093_v58, %v6786_v57  ;;  %v16932_v50 = vld [vmem:[#allocation210_spill] sm:$0xff]  ;;  %v6756_v31 = vunpack.i.h.bf16 %v16949_v41  ;;  %v16953_v63 = vld [vmem:[#allocation185_spill] sm:$0xff] }
 0x274   : > { %2533 = vmatpush.msrb.mxu3 %v16912_v11  ;;  %2465 = vmatpush.msrb.mxu0 %v10782_v43  ;;  %v11341_v43 = vpop.permute.xlu1 %6788  ;;  %16915 = vst [vmem:[#allocation142_spill] sm:$0xff] %v11404_v17  ;;  %v16945_v17 = vld [vmem:[#allocation240_spill] sm:$0xff] }
 0x275   : > { %2488 = vmatpush.msrb.mxu1 %v10788_v0  ;;  %2511 = vmatpush.msrb.mxu2 %v10837_v32  ;;  %v11352_v0 = vld [vmem:[%s8006_s19 + $0xb8] sm:$0xff]  ;;  %v6791_v59 = vunpack.i.h.bf16 %v11341_v43  ;;  %16922 = vst [vmem:[#allocation148_spill] sm:$0xff] %v11442_v2 }
 0x276   : > { %2534 = vmatpush.msrb.mxu3 %v10845_v40  ;;  %7063 = vrot.lane.b32.xlu2 %v11320_v52, %s7866_s23  ;;  %v7077_v32 = vpack.i.bf16 %v11352_v0, %v11018_v13  ;;  %v11359_v40 = vld [vmem:[%s8014_s26 + $0x38] sm:$0xff] }
 0x277   : > { %7058 = vrot.lane.b32.xlu1 %v7057_v1, %s7866_s23  ;;  %7053 = vrot.lane.b32.xlu0 %v7052_v20, %s7866_s23  ;;  %v6790_v1 = vunpack.i.l.bf16 %v11341_v43  ;;  %v11446_v11 = vsel %vm3054_vm4, %v6786_v57, %v6791_v59  ;;  %v7082_v20 = vpack.i.bf16 %v16924_v56, %v7524_v60  ;;  %v16937_v60 = vld [vmem:[#allocation151_spill] sm:$0xff]  ;;  %v16938_v57 = vld [vmem:[#allocation149_spill] sm:$0xff] }
 0x278   : > { %2466 = vmatpush.msrb.mxu0 %v10863_v46  ;;  %2489 = vmatpush.msrb.mxu1 %v10867_v3  ;;  %v11370_v46 = vpop.permute.xlu2 %6793  ;;  %v11382_v3 = vld [vmem:[%s8014_s26 + $0x20] sm:$0xff]  ;;  %16923 = vst [vmem:[#allocation57_spill] sm:$0xff] %v11446_v11  ;;  %v7107_v34 = vpack.i.bf16 %v16938_v57, %v16937_v60  ;;  %v6590_v60 = vunpack.i.l.bf16 %v16932_v50 }
 0x279   : > { %2512 = vmatpush.msrb.mxu2 %v10877_v47  ;;  %2535 = vmatpush.msrb.mxu3 %v10885_v24  ;;  %v11386_v47 = vld [vmem:[%s8014_s26 + $0x28] sm:$0xff]  ;;  %v6796_v24 = vunpack.i.h.bf16 %v11370_v46  ;;  %v11505_v56 = vpop.f32.mrf.mxu0 }
 0x27a   : > { %2467 = vmatpush.msrb.mxu0 %v10407_v27  ;;  %2490 = vmatpush.msrb.mxu1 %v10415_v8  ;;  %v7517_v27 = vld [vmem:[%s8014_s26 + $0x40] sm:$0xff] }
 0x27b   : > { %2513 = vmatpush.msrb.mxu2 %v10419_v16  ;;  %2536 = vmatpush.msrb.mxu3 %v10428_v19  ;;  %v7072_v8 = vpack.i.bf16 %v7517_v27, %v11359_v40  ;;  %v11364_v16 = vld [vmem:[%s8014_s26 + $0x30] sm:$0xff]  ;;  %v7519_v19 = vld [vmem:[%s8014_s26 + $0x100] sm:$0xff] }
 0x27c   : > { %2468 = vmatpush.msrb.mxu0 %v10444_v10  ;;  %2491 = vmatpush.msrb.mxu1 %v10452_v22  ;;  %v7067_v10 = vpack.i.bf16 %v11364_v16, %v7519_v19  ;;  %v11373_v22 = vld [vmem:[%s8014_s26 + $0xe8] sm:$0xff] }
 0x27d   : > { %2514 = vmatpush.msrb.mxu2 %v10456_v7  ;;  %2537 = vmatpush.msrb.mxu3 %v16812_v21  ;;  %v11376_v7 = vpop.permute.xlu0 %6798  ;;  %v11390_v21 = vpop.permute.xlu1 %6803 }
 0x27e   : > { %2469 = vmatpush.msrb.mxu0 %v10955_v9  ;;  %2492 = vmatpush.msrb.mxu1 %v11373_v22  ;;  %v16095_v28 = vunpack.i.h.bf16 %v11376_v7 }
 0x27f   : > { %2515 = vmatpush.msrb.mxu2 %v7513_v39  ;;  %2538 = vmatpush.msrb.mxu3 %v7514_v38  ;;  %v11431_v39 = vpop.f32.mrf.mxu3 }
 0x280   : > { %7078 = vrot.lane.b32.xlu2 %v7077_v32, %s7865_s30  ;;  %7073 = vrot.lane.b32.xlu1 %v7072_v8, %s7866_s23  ;;  %16921 = vst [vmem:[#allocation164_spill] sm:$0xff] %v11431_v39  ;;  %v11433_v38 = vpop.permute.xlu2 %6808 }
 0x281   : > { %7068 = vrot.lane.b32.xlu0 %v7067_v10, %s7866_s23  ;;  %2470 = vmatpush.msrb.mxu0 %v11382_v3  ;;  %v11487_v10 = vld [vmem:[%s8006_s19 + $0x160] sm:$0xff] }
 0x282   : > { %2493 = vmatpush.msrb.mxu1 %v11386_v47  ;;  %2516 = vmatpush.msrb.mxu2 %v11364_v16 }
 0x283   : > { %2539 = vmatpush.msrb.mxu3 %v11359_v40  ;;  %2471 = vmatpush.msrb.mxu0 %v10506_v33  ;;  %v16092_v33 = vunpack.i.l.bf16 %v11328_v36 }
 0x284   : > { %2494 = vmatpush.msrb.mxu1 %v10510_v61  ;;  %2517 = vmatpush.msrb.mxu2 %v10518_v6  ;;  %v6795_v61 = vunpack.i.l.bf16 %v11370_v46  ;;  %v11412_v6 = vsel %vm3054_vm4, %v6791_v59, %v6796_v24  ;;  %v16929_v46 = vld [vmem:[#allocation206_spill] sm:$0xff]  ;;  %v16930_v59 = vld [vmem:[#allocation207_spill] sm:$0xff] }
 0x285   : > { %2540 = vmatpush.msrb.mxu3 %v10524_v15  ;;  %2472 = vmatpush.msrb.mxu0 %v10544_v35  ;;  %16916 = vst [vmem:[#allocation162_spill] sm:$0xff] %v11412_v6  ;;  %v11414_v15 = vpop.f32.mrf.mxu1  ;;  %v11416_v35 = vpop.f32.mrf.mxu2  ;;  %v6580_v58 = vunpack.i.l.bf16 %v16929_v46 }
 0x286   : > { %2495 = vmatpush.msrb.mxu1 %v10548_v45  ;;  %2518 = vmatpush.msrb.mxu2 %v10554_v42  ;;  %16917 = vst [vmem:[#allocation34_spill] sm:$0xff] %v11414_v15  ;;  %v6785_v45 = vunpack.i.l.bf16 %v11332_v29  ;;  %v11425_v42 = vsel %vm3054_vm4, %v6796_v24, %v16095_v28  ;;  %v16094_v29 = vunpack.i.l.bf16 %v11376_v7  ;;  %v11451_v43 = vpop.permute.xlu0 %6813  ;;  %v11465_v32 = vpop.permute.xlu1 %6818  ;;  %v11475_v8 = vsel %vm3054_vm4, %v6790_v1, %v6795_v61 }
 0x287   : > { %2541 = vmatpush.msrb.mxu3 %v10560_v37  ;;  %16918 = vst [vmem:[#allocation141_spill] sm:$0xff] %v11416_v35  ;;  %2473 = vmatmul.f32.vlgmr.msrb.gmra.mxu0 %v11117_v4  ;;  %v7092_v37 = vpack.i.bf16 %v11373_v22, %v11041_v55  ;;  %v6581_v24 = vunpack.i.h.bf16 %v16929_v46  ;;  %v16940_v46 = vunpack.i.h.bf16 %v16930_v59 }
 0x288   : > { %2496 = vmatmul.f32.vlgmr.msrb.gmra.mxu1 %v11117_v4  ;;  %16919 = vst [vmem:[#allocation163_spill] sm:$0xff] %v11425_v42  ;;  %2519 = vmatmul.f32.vlgmr.msrb.gmra.mxu2 %v11117_v4  ;;  %v11471_v27 = vsel %vm3054_vm4, %v6785_v45, %v6790_v1  ;;  %v11483_v19 = vsel %vm3054_vm4, %v6795_v61, %v16094_v29  ;;  %v16931_v61 = vld [vmem:[#allocation43_spill] sm:$0xff]  ;;  %v16933_v1 = vld [vmem:[#allocation209_spill] sm:$0xff]  ;;  %v11519_v28 = vpop.permute.xlu2 %6823 }
 0x289   : > { %2542 = vmatmul.f32.vlgmr.msrb.gmra.mxu3 %v11117_v4  ;;  %3138 = vmatpush.msra.mxu0 %v11442_v2  ;;  %v11463_v4 = vsel %vm3054_vm4, %v16092_v33, %v6785_v45  ;;  %16926 = vst [vmem:[#allocation221_spill] sm:$0xff] %v11471_v27  ;;  %v11493_v45 = vld [vmem:[%s8006_s19 + $0x168] sm:$0xff]  ;;  %v6586_v53 = vunpack.i.h.bf16 %v16931_v61  ;;  %v11512_v33 = vld [vmem:[%s8006_s19 + $0xb0] sm:$0xff]  ;;  %v6585_v39 = vunpack.i.l.bf16 %v16931_v61  ;;  %v6746_v61 = vunpack.i.h.bf16 %v10993_v5 }
 0x28a   : > { %3161 = vmatpush.msra.mxu1 %v11446_v11  ;;  %3184 = vmatpush.msra.mxu2 %v11412_v6  ;;  %16925 = vst [vmem:[#allocation61_spill] sm:$0xff] %v11463_v4 }
 0x28b   : > { %3207 = vmatpush.msra.mxu3 %v11425_v42  ;;  %7093 = vrot.lane.b32.xlu2 %v7092_v37, %s7865_s30  ;;  %16927 = vst [vmem:[#allocation56_spill] sm:$0xff] %v11475_v8  ;;  %v11497_v37 = vld [vmem:[%s8006_s19 + $0x170] sm:$0xff]  ;;  %v11551_v15 = vsel %vm2809_vm3, %v6581_v24, %v6586_v53 }
 0x28c   : > { %7088 = vrot.lane.b32.xlu1 %v7087_v30, %s7866_s23  ;;  %7083 = vrot.lane.b32.xlu0 %v7082_v20, %s7866_s23  ;;  %16928 = vst [vmem:[#allocation227_spill] sm:$0xff] %v11483_v19  ;;  %v6591_v30 = vunpack.i.h.bf16 %v16932_v50  ;;  %v11508_v20 = vld [vmem:[%s8006_s19 + $0xa8] sm:$0xff]  ;;  %v16950_v50 = vunpack.i.l.bf16 %v16930_v59 }
 0x28d   : > { %3139 = vmatpush.msra.mxu0 %v11463_v4  ;;  %3162 = vmatpush.msra.mxu1 %v11471_v27  ;;  %16934 = vst [vmem:[#allocation206_spill] sm:$0xff] %v11505_v56  ;;  %v11517_v29 = vpop.f32.mrf.mxu1  ;;  %v11526_v35 = vpop.f32.mrf.mxu2  ;;  %v7550_v27 = vld [vmem:[%s8006_s19] sm:$0xff]  ;;  %v17055_v4 = vld [vmem:[#allocation159_spill] sm:$0xff] }
 0x28e   : > { %3185 = vmatpush.msra.mxu2 %v11475_v8  ;;  %3208 = vmatpush.msra.mxu3 %v11483_v19  ;;  %16935 = vst [vmem:[#allocation207_spill] sm:$0xff] %v11508_v20  ;;  %v11528_v56 = vpop.permute.xlu0 %6828  ;;  %v6816_v19 = vunpack.i.h.bf16 %v11451_v43  ;;  %v7157_v42 = vpack.i.bf16 %v7550_v27, %v17055_v4 }
 0x28f   : > { %3140 = vmatpush.msra.mxu0 %v11487_v10  ;;  %3163 = vmatpush.msra.mxu1 %v11493_v45  ;;  %16936 = vst [vmem:[#allocation43_spill] sm:$0xff] %v11517_v29  ;;  %v11540_v29 = vld [vmem:[%s8006_s19 + $0x20] sm:$0xff] }
 0x290   : > { %3186 = vmatpush.msra.mxu2 %v11497_v37  ;;  %3209 = vmatpush.msra.mxu3 %v11122_v54  ;;  %16939 = vst [vmem:[#allocation210_spill] sm:$0xff] %v11526_v35  ;;  %v7530_v54 = vld [vmem:[%s8006_s19 + $0x18] sm:$0xff]  ;;  %v11545_v35 = vpop.f32.mrf.mxu3 }
 0x291   : > { %3141 = vmatpush.msra.mxu0 %v10892_v23  ;;  %3164 = vmatpush.msra.mxu1 %v11508_v20  ;;  %v7097_v57 = vpack.i.bf16 %v11540_v29, %v7530_v54  ;;  %16942 = vst [vmem:[#allocation151_spill] sm:$0xff] %v11545_v35  ;;  %v6751_v54 = vunpack.i.h.bf16 %v11096_v49  ;;  %v6750_v35 = vunpack.i.l.bf16 %v11096_v49  ;;  %v11571_v20 = vpop.permute.xlu1 %6833 }
 0x292   : > { %3187 = vmatpush.msra.mxu2 %v11512_v33  ;;  %3210 = vmatpush.msra.mxu3 %v11352_v0  ;;  %v11536_v0 = vsel %vm2809_vm3, %v16940_v46, %v6581_v24  ;;  %16943 = vst [vmem:[#allocation149_spill] sm:$0xff] %v11551_v15  ;;  %v11555_v46 = vsel %vm2809_vm3, %v6586_v53, %v6591_v30  ;;  %v16948_v53 = vld [vmem:[#allocation170_spill] sm:$0xff] }
 0x293   : > { %2476 = vmatmul.f32.gmra.mxu0 %v11225_v18  ;;  %2499 = vmatmul.f32.gmra.mxu1 %v11225_v18  ;;  %16941 = vst [vmem:[#allocation209_spill] sm:$0xff] %v11536_v0 }
 0x294   : > { %2522 = vmatmul.f32.gmra.mxu2 %v11225_v18  ;;  %2545 = vmatmul.f32.gmra.mxu3 %v11225_v18  ;;  %16944 = vst [vmem:[#allocation254_spill] sm:$0xff] %v11555_v46  ;;  %v16946_v18 = vunpack.i.h.bf16 %v16933_v1 }
 0x295   : > { %3142 = vmatpush.msra.mxu0 %v11536_v0  ;;  %3165 = vmatpush.msra.mxu1 %v11551_v15  ;;  %v11651_v15 = vpop.permute.xlu2 %6838 }
 0x296   : > { %3188 = vmatpush.msra.mxu2 %v11555_v46  ;;  %v11566_v24 = vsel %vm2809_vm3, %v6591_v30, %v16946_v18  ;;  %7108 = vrot.lane.b32.xlu2 %v7107_v34, %s7866_s23  ;;  %v11579_v46 = vsel %vm2809_vm3, %v16950_v50, %v6580_v58  ;;  %v6745_v30 = vunpack.i.l.bf16 %v10993_v5  ;;  %v6755_v18 = vunpack.i.l.bf16 %v16949_v41  ;;  %v11666_v0 = vpop.permute.xlu0 %6843 }
 0x297   : > { %16947 = vst [vmem:[#allocation240_spill] sm:$0xff] %v11566_v24  ;;  %3211 = vmatpush.msra.mxu3 %v11566_v24  ;;  %7103 = vrot.lane.b32.xlu1 %v11320_v52, %s7865_s30  ;;  %v11589_v34 = vsel %vm2809_vm3, %v6580_v58, %v6585_v39  ;;  %v6541_v24 = vunpack.i.h.bf16 %v16953_v63  ;;  %v11597_v5 = vsel %vm2809_vm3, %v6585_v39, %v6590_v60  ;;  %v16955_v41 = vunpack.i.l.bf16 %v16933_v1 }
 0x298   : > { %16951 = vst [vmem:[#allocation170_spill] sm:$0xff] %v11579_v46  ;;  %7098 = vrot.lane.b32.xlu0 %v7097_v57, %s7866_s23  ;;  %3143 = vmatpush.msra.mxu0 %v11579_v46  ;;  %v6540_v58 = vunpack.i.l.bf16 %v16953_v63  ;;  %v16957_v57 = vld [vmem:[#allocation188_spill] sm:$0xff]  ;;  %v16958_v50 = vunpack.i.h.bf16 %v16945_v17  ;;  %v16962_v46 = vld [vmem:[#allocation187_spill] sm:$0xff] }
 0x299   : > { %16952 = vst [vmem:[#allocation171_spill] sm:$0xff] %v11589_v34  ;;  %3166 = vmatpush.msra.mxu1 %v11589_v34  ;;  %v11603_v52 = vsel %vm2809_vm3, %v6590_v60, %v16955_v41  ;;  %v6546_v49 = vunpack.i.h.bf16 %v16957_v57  ;;  %3189 = vmatpush.msra.mxu2 %v11597_v5  ;;  %v11617_v34 = vsel %vm3054_vm4, %v6746_v61, %v6751_v54  ;;  %v16961_v60 = vld [vmem:[#allocation194_spill] sm:$0xff]  ;;  %v6551_v63 = vunpack.i.h.bf16 %v16962_v46 }
 0x29a   : > { %16954 = vst [vmem:[#allocation185_spill] sm:$0xff] %v11597_v5  ;;  %3212 = vmatpush.msra.mxu3 %v11603_v52  ;;  %v11613_v39 = vsel %vm3054_vm4, %v16958_v50, %v6746_v61  ;;  %v16964_v5 = vunpack.i.h.bf16 %v16948_v53  ;;  %v16966_v61 = vld [vmem:[#allocation179_spill] sm:$0xff]  ;;  %v16967_v41 = vunpack.i.l.bf16 %v16945_v17 }
 0x29b   : > { %16956 = vst [vmem:[#allocation255_spill] sm:$0xff] %v11603_v52  ;;  %3144 = vmatpush.msra.mxu0 %v11613_v39  ;;  %3167 = vmatpush.msra.mxu1 %v11617_v34  ;;  %v11625_v52 = vsel %vm3054_vm4, %v6751_v54, %v6756_v31  ;;  %v11644_v54 = vsel %vm3054_vm4, %v6745_v30, %v6750_v35 }
 0x29c   : > { %16959 = vst [vmem:[#allocation188_spill] sm:$0xff] %v11613_v39  ;;  %v11631_v50 = vsel %vm3054_vm4, %v6756_v31, %v16964_v5  ;;  %3190 = vmatpush.msra.mxu2 %v11625_v52  ;;  %v11648_v31 = vsel %vm3054_vm4, %v6750_v35, %v6755_v18  ;;  %v6550_v5 = vunpack.i.l.bf16 %v16962_v46  ;;  %v7117_v35 = vpack.i.bf16 %v10955_v9, %v11359_v40 }
 0x29d   : > { %16960 = vst [vmem:[#allocation256_spill] sm:$0xff] %v11617_v34  ;;  %3213 = vmatpush.msra.mxu3 %v11631_v50  ;;  %v11640_v34 = vsel %vm3054_vm4, %v16967_v41, %v6745_v30  ;;  %3168 = vmatpush.msra.mxu1 %v11644_v54  ;;  %v16973_v30 = vld [vmem:[#allocation153_spill] sm:$0xff]  ;;  %v6545_v46 = vunpack.i.l.bf16 %v16957_v57  ;;  %v7112_v9 = vpack.i.bf16 %v11364_v16, %v11386_v47  ;;  %v11698_v57 = vpop.permute.xlu1 %6848 }
 0x29e   : > { %16963 = vst [vmem:[#allocation194_spill] sm:$0xff] %v11625_v52  ;;  %3145 = vmatpush.msra.mxu0 %v11640_v34  ;;  %v16974_v52 = vld [vmem:[#allocation150_spill] sm:$0xff]  ;;  %3191 = vmatpush.msra.mxu2 %v11648_v31 }
 0x29f   : > { %16965 = vst [vmem:[#allocation187_spill] sm:$0xff] %v11631_v50  ;;  %v16971_v50 = vunpack.i.l.bf16 %v16948_v53  ;;  %v7122_v39 = vpack.i.bf16 %v16974_v52, %v16973_v30  ;;  %v11678_v52 = vsel %vm2809_vm3, %v6541_v24, %v6546_v49  ;;  %v11688_v30 = vsel %vm2809_vm3, %v6546_v49, %v6551_v63  ;;  %7118 = vrot.lane.b32.xlu1 %v7117_v35, %s7865_s30 }
 0x2a0   : > { %16968 = vst [vmem:[#allocation179_spill] sm:$0xff] %v11640_v34  ;;  %3169 = vmatpush.msra.mxu1 %v11678_v52  ;;  %3192 = vmatpush.msra.mxu2 %v11688_v30  ;;  %v16986_v35 = vunpack.i.l.bf16 %v16961_v60 }
 0x2a1   : > { %16969 = vst [vmem:[#allocation257_spill] sm:$0xff] %v11644_v54  ;;  %v11659_v41 = vsel %vm3054_vm4, %v6755_v18, %v16971_v50  ;;  %v16976_v54 = vunpack.i.h.bf16 %v16966_v61  ;;  %v16118_v50 = vunpack.i.l.bf16 %v16966_v61  ;;  %7123 = vrot.lane.b32.xlu2 %v7122_v39, %s7866_s23  ;;  %7113 = vrot.lane.b32.xlu0 %v7112_v9, %s7865_s30  ;;  %v11716_v39 = vsel %vm2809_vm3, %v6545_v46, %v6550_v5 }
 0x2a2   : > { %16970 = vst [vmem:[#allocation258_spill] sm:$0xff] %v11648_v31  ;;  %3214 = vmatpush.msra.mxu3 %v11659_v41  ;;  %3193 = vmatpush.msra.mxu2 %v11716_v39  ;;  %v11724_v9 = vsel %vm2809_vm3, %v6550_v5, %v16986_v35  ;;  %v16994_v5 = vld [vmem:[#allocation68_spill] sm:$0xff] }
 0x2a3   : > { %16972 = vst [vmem:[#allocation259_spill] sm:$0xff] %v11659_v41  ;;  %v11674_v18 = vsel %vm2809_vm3, %v16976_v54, %v6541_v24  ;;  %v16980_v54 = vunpack.i.h.bf16 %v16961_v60  ;;  %v11706_v49 = vsel %vm2809_vm3, %v16118_v50, %v6540_v58  ;;  %v16991_v50 = vld [vmem:[#allocation103_spill] sm:$0xff]  ;;  %v16995_v35 = vld [vmem:[#allocation200_spill] sm:$0xff] }
 0x2a4   : > { %16975 = vst [vmem:[#allocation153_spill] sm:$0xff] %v11666_v0  ;;  %3146 = vmatpush.msra.mxu0 %v11674_v18  ;;  %v11762_v41 = vld [vmem:[%s8006_s19 + $0xf8] sm:$0xff] }
 0x2a5   : > { %16977 = vst [vmem:[#allocation150_spill] sm:$0xff] %v11674_v18  ;;  %v11694_v24 = vsel %vm2809_vm3, %v6551_v63, %v16980_v54  ;;  %v11712_v63 = vsel %vm2809_vm3, %v6540_v58, %v6545_v46  ;;  %v16988_v58 = vld [vmem:[#allocation199_spill] sm:$0xff]  ;;  %v16989_v54 = vld [vmem:[#allocation197_spill] sm:$0xff]  ;;  %v11767_v34 = vpop.permute.xlu1 %6863 }
 0x2a6   : > { %16978 = vst [vmem:[#allocation260_spill] sm:$0xff] %v11678_v52  ;;  %3215 = vmatpush.msra.mxu3 %v11694_v24  ;;  %3147 = vmatpush.msra.mxu0 %v11706_v49  ;;  %v16990_v46 = vld [vmem:[#allocation201_spill] sm:$0xff] }
 0x2a7   : > { %16979 = vst [vmem:[#allocation261_spill] sm:$0xff] %v11688_v30  ;;  %3170 = vmatpush.msra.mxu1 %v11712_v63  ;;  %3194 = vmatpush.msra.mxu2 %v16990_v46  ;;  %v11734_v30 = vpop.permute.xlu2 %6853  ;;  %v7535_v46 = vld [vmem:[%s8006_s19 + $0x158] sm:$0xff]  ;;  %v16999_v52 = vld [vmem:[#allocation177_spill] sm:$0xff] }
 0x2a8   : > { %16981 = vst [vmem:[#allocation262_spill] sm:$0xff] %v11694_v24  ;;  %3216 = vmatpush.msra.mxu3 %v11724_v9  ;;  %3148 = vmatpush.msra.mxu0 %v16988_v58  ;;  %v7132_v58 = vpack.i.bf16 %v11373_v22, %v11487_v10  ;;  %v6506_v18 = vunpack.i.h.bf16 %v16999_v52  ;;  %v11754_v10 = vld [vmem:[%s8006_s19 + $0xf0] sm:$0xff]  ;;  %v6505_v31 = vunpack.i.l.bf16 %v16999_v52  ;;  %v11783_v52 = vld [vmem:[%s8006_s19 + $0x38] sm:$0xff] }
 0x2a9   : > { %16982 = vst [vmem:[#allocation263_spill] sm:$0xff] %v11698_v57  ;;  %3171 = vmatpush.msra.mxu1 %v16989_v54  ;;  %3195 = vmatpush.msra.mxu2 %v16995_v35  ;;  %v7534_v54 = vld [vmem:[%s8006_s19 + $0x150] sm:$0xff]  ;;  %v7536_v57 = vld [vmem:[%s8006_s19 + $0xe0] sm:$0xff]  ;;  %v11750_v35 = vld [vmem:[%s8006_s19 + $0xe8] sm:$0xff] }
 0x2aa   : > { %16983 = vst [vmem:[#allocation264_spill] sm:$0xff] %v11706_v49  ;;  %3217 = vmatpush.msra.mxu3 %v16991_v50  ;;  %v7533_v49 = vld [vmem:[%s8006_s19 + $0x98] sm:$0xff]  ;;  %v11742_v50 = vpop.permute.xlu0 %6858  ;;  %7133 = vrot.lane.b32.xlu1 %v7132_v58, %s7866_s23 }
 0x2ab   : > { %16984 = vst [vmem:[#allocation265_spill] sm:$0xff] %v11712_v63  ;;  %v16992_v63 = vld [vmem:[#allocation196_spill] sm:$0xff]  ;;  %3172 = vmatpush.msra.mxu1 %v16994_v5  ;;  %v17000_v5 = vld [vmem:[#allocation178_spill] sm:$0xff]  ;;  %3196 = vmatpush.msra.mxu2 %v11754_v10 }
 0x2ac   : > { %16985 = vst [vmem:[#allocation266_spill] sm:$0xff] %v11716_v39  ;;  %3149 = vmatpush.msra.mxu0 %v16992_v63  ;;  %v7532_v39 = vld [vmem:[%s8006_s19 + $0x90] sm:$0xff]  ;;  %v16997_v63 = vld [vmem:[#allocation220_spill] sm:$0xff]  ;;  %v6501_v0 = vunpack.i.h.bf16 %v17000_v5 }
 0x2ad   : > { %16987 = vst [vmem:[#allocation267_spill] sm:$0xff] %v11724_v9  ;;  %v7137_v24 = vpack.i.bf16 %v7533_v49, %v7532_v39  ;;  %v7127_v9 = vpack.i.bf16 %v7535_v46, %v7534_v54  ;;  %3218 = vmatpush.msra.mxu3 %v16997_v63  ;;  %v16998_v49 = vld [vmem:[#allocation175_spill] sm:$0xff]  ;;  %3173 = vmatpush.msra.mxu1 %v11750_v35  ;;  %v17002_v46 = vld [vmem:[#allocation102_spill] sm:$0xff]  ;;  %v6500_v63 = vunpack.i.l.bf16 %v17000_v5 }
 0x2ae   : > { %16993 = vst [vmem:[#allocation199_spill] sm:$0xff] %v11734_v30  ;;  %3150 = vmatpush.msra.mxu0 %v7536_v57  ;;  %v6496_v39 = vunpack.i.h.bf16 %v16998_v49  ;;  %v6495_v54 = vunpack.i.l.bf16 %v16998_v49  ;;  %v6511_v57 = vunpack.i.h.bf16 %v17002_v46  ;;  %v6510_v49 = vunpack.i.l.bf16 %v17002_v46  ;;  %v11775_v30 = vld [vmem:[%s8006_s19 + $0x28] sm:$0xff] }
 0x2af   : > { %16996 = vst [vmem:[#allocation197_spill] sm:$0xff] %v11742_v50  ;;  %v17003_v50 = vld [vmem:[#allocation16_spill] sm:$0xff]  ;;  %3219 = vmatpush.msra.mxu3 %v11762_v41  ;;  %7138 = vrot.lane.b32.xlu2 %v7137_v24, %s7866_s23 }
 0x2b0   : > { %17001 = vst [vmem:[#allocation201_spill] sm:$0xff] %v11750_v35  ;;  %7128 = vrot.lane.b32.xlu0 %v7127_v9, %s7866_s23  ;;  %3151 = vmatpush.msra.mxu0 %v11540_v29  ;;  %v11779_v35 = vld [vmem:[%s8006_s19 + $0x30] sm:$0xff]  ;;  %v2889_v24 = vsel %vm2809_vm3, %v6496_v39, %v6501_v0  ;;  %v2887_v9 = vsel %vm2809_vm3, %v6501_v0, %v6506_v18  ;;  %v17006_v58 = vunpack.i.h.bf16 %v17003_v50  ;;  %v6806_v39 = vunpack.i.h.bf16 %v11390_v21 }
 0x2b1   : > { %17004 = vst [vmem:[#allocation103_spill] sm:$0xff] %v11767_v34  ;;  %3174 = vmatpush.msra.mxu1 %v11775_v30  ;;  %3197 = vmatpush.msra.mxu2 %v11779_v35  ;;  %v2885_v29 = vsel %vm2809_vm3, %v6506_v18, %v6511_v57  ;;  %v2888_v5 = vsel %vm2809_vm3, %v6495_v54, %v6500_v63  ;;  %v11806_v18 = vld [vmem:[%s15870_s4 + $0x10] sm:$0xff] }
 0x2b2   : > { %17005 = vst [vmem:[#allocation196_spill] sm:$0xff] %v11775_v30  ;;  %3220 = vmatpush.msra.mxu3 %v11783_v52  ;;  %3152 = vmatpush.msra.mxu0 %v2889_v24  ;;  %v2883_v46 = vsel %vm2809_vm3, %v6511_v57, %v17006_v58  ;;  %v6811_v30 = vunpack.i.h.bf16 %v11433_v38  ;;  %v2886_v0 = vsel %vm2809_vm3, %v6500_v63, %v6505_v31  ;;  %v17007_v24 = vunpack.i.l.bf16 %v17003_v50  ;;  %v11825_v57 = vpop.permute.xlu0 %6873 }
 0x2b3   : > { %3175 = vmatpush.msra.mxu1 %v2887_v9  ;;  %3198 = vmatpush.msra.mxu2 %v2885_v29  ;;  %v2884_v54 = vsel %vm2809_vm3, %v6505_v31, %v6510_v49  ;;  %v11815_v29 = vpop.f32.mrf.mxu0  ;;  %v6810_v63 = vunpack.i.l.bf16 %v11433_v38  ;;  %v6805_v58 = vunpack.i.l.bf16 %v11390_v21  ;;  %17011 = vst [vmem:[#allocation175_spill] sm:$0xff] %v11825_v57  ;;  %v11829_v21 = vpop.f32.mrf.mxu2 }
 0x2b4   : > { %3221 = vmatpush.msra.mxu3 %v2883_v46  ;;  %3153 = vmatpush.msra.mxu0 %v2888_v5  ;;  %v2882_v9 = vsel %vm2809_vm3, %v6510_v49, %v17007_v24  ;;  %17008 = vst [vmem:[#allocation68_spill] sm:$0xff] %v11815_v29  ;;  %v11819_v46 = vpop.permute.xlu2 %6868  ;;  %v11821_v5 = vpop.f32.mrf.mxu1  ;;  %v17014_v49 = vunpack.i.h.bf16 %v11376_v7  ;;  %v11847_v24 = vsel %vm3054_vm4, %v6811_v30, %v6816_v19 }
 0x2b5   : > { %3176 = vmatpush.msra.mxu1 %v2886_v0  ;;  %17009 = vst [vmem:[#allocation200_spill] sm:$0xff] %v11819_v46  ;;  %3199 = vmatpush.msra.mxu2 %v2884_v54  ;;  %v6815_v0 = vunpack.i.l.bf16 %v11451_v43  ;;  %v11831_v38 = vpop.f32.mrf.mxu3  ;;  %v11843_v54 = vsel %vm3054_vm4, %v6806_v39, %v6811_v30  ;;  %v7545_v30 = vld [vmem:[%s8006_s19 + $0xc8] sm:$0xff]  ;;  %v11869_v29 = vpop.permute.xlu1 %6878  ;;  %v11881_v57 = vsel %vm3054_vm4, %v6805_v58, %v6810_v63  ;;  %v17060_v27 = vunpack.i.l.bf16 %v11819_v46 }
 0x2b6   : > { %3222 = vmatpush.msra.mxu3 %v2882_v9  ;;  %17010 = vst [vmem:[#allocation220_spill] sm:$0xff] %v11821_v5  ;;  %3154 = vmatmul.f32.vlgmr.msra.gmra.mxu0 %v11806_v18  ;;  %v11839_v43 = vsel %vm3054_vm4, %v17014_v49, %v6806_v39  ;;  %v17018_v9 = vunpack.i.h.bf16 %v11465_v32  ;;  %v11858_v49 = vld [vmem:[%s8014_s26 + $0x110] sm:$0xff] }
 0x2b7   : > { %3177 = vmatmul.f32.vlgmr.msra.gmra.mxu1 %v11806_v18  ;;  %17012 = vst [vmem:[#allocation177_spill] sm:$0xff] %v11829_v21  ;;  %3200 = vmatmul.f32.vlgmr.msra.gmra.mxu2 %v11806_v18  ;;  %v7546_v21 = vld [vmem:[%s8006_s19 + $0xc0] sm:$0xff] }
 0x2b8   : > { %17013 = vst [vmem:[#allocation178_spill] sm:$0xff] %v11831_v38  ;;  %3223 = vmatmul.f32.vlgmr.msra.gmra.mxu3 %v11806_v18  ;;  %3230 = vmatpush.msrb.mxu0 %v11839_v43  ;;  %v11855_v31 = vsel %vm3054_vm4, %v6816_v19, %v17018_v9  ;;  %v11861_v38 = vld [vmem:[%s8014_s26 + $0x118] sm:$0xff]  ;;  %v7147_v5 = vpack.i.bf16 %v7545_v30, %v7546_v21  ;;  %v17023_v19 = vunpack.i.l.bf16 %v11376_v7  ;;  %v17027_v7 = vunpack.i.l.bf16 %v11465_v32 }
 0x2b9   : > { %17015 = vst [vmem:[#allocation102_spill] sm:$0xff] %v11839_v43  ;;  %3253 = vmatpush.msrb.mxu1 %v11843_v54  ;;  %v11865_v39 = vpack.i.bf16 %v11861_v38, %v11858_v49  ;;  %3276 = vmatpush.msrb.mxu2 %v11847_v24  ;;  %v11889_v21 = vsel %vm3054_vm4, %v6810_v63, %v6815_v0  ;;  %v17030_v63 = vld [vmem:[#allocation116_spill] sm:$0xff]  ;;  %v17037_v43 = vld [vmem:[#allocation181_spill] sm:$0xff] }
 0x2ba   : > { %17016 = vst [vmem:[#allocation16_spill] sm:$0xff] %v11843_v54  ;;  %3299 = vmatpush.msrb.mxu3 %v11855_v31  ;;  %v11877_v9 = vsel %vm3054_vm4, %v17023_v19, %v6805_v58  ;;  %v7142_v54 = vpack.i.bf16 %v11386_v47, %v10892_v23  ;;  %v11895_v30 = vsel %vm3054_vm4, %v6815_v0, %v17027_v7  ;;  %v17029_v23 = vld [vmem:[#allocation140_spill] sm:$0xff]  ;;  %v6611_v19 = vunpack.i.h.bf16 %v17030_v63  ;;  %v17032_v7 = vld [vmem:[#allocation243_spill] sm:$0xff] }
 0x2bb   : > { %17017 = vst [vmem:[#allocation268_spill] sm:$0xff] %v11847_v24  ;;  %3231 = vmatpush.msrb.mxu0 %v11877_v9  ;;  %3254 = vmatpush.msrb.mxu1 %v11881_v57  ;;  %v6601_v58 = vunpack.i.h.bf16 %v17029_v23 }
 0x2bc   : > { %17019 = vst [vmem:[#allocation269_spill] sm:$0xff] %v11855_v31  ;;  %3277 = vmatpush.msrb.mxu2 %v11889_v21  ;;  %3300 = vmatpush.msrb.mxu3 %v11895_v30  ;;  %v17035_v31 = vld [vmem:[#allocation234_spill] sm:$0xff] }
 0x2bd   : > { %17020 = vst [vmem:[#allocation270_spill] sm:$0xff] %v11858_v49  ;;  %7153 = vrot.lane.b32.xlu2 %v11865_v39, %s7866_s23  ;;  %7148 = vrot.lane.b32.xlu1 %v7147_v5, %s7866_s23  ;;  %v6600_v5 = vunpack.i.l.bf16 %v17029_v23  ;;  %v11929_v49 = vpop.f32.mrf.mxu0  ;;  %v11955_v23 = vpop.f32.mrf.mxu3 }
 0x2be   : > { %17021 = vst [vmem:[#allocation271_spill] sm:$0xff] %v11861_v38  ;;  %7143 = vrot.lane.b32.xlu0 %v7142_v54, %s7866_s23  ;;  %3232 = vmatpush.msrb.mxu0 %v11018_v13  ;;  %v11916_v54 = vpop.permute.xlu2 %6883  ;;  %v17039_v13 = vld [vmem:[#allocation246_spill] sm:$0xff] }
 0x2bf   : > { %17022 = vst [vmem:[#allocation272_spill] sm:$0xff] %v11869_v29  ;;  %3255 = vmatpush.msrb.mxu1 %v17032_v7  ;;  %3301 = vmatpush.msrb.mxu3 %v17035_v31  ;;  %v17036_v7 = vld [vmem:[#allocation145_spill] sm:$0xff]  ;;  %v11939_v31 = vpop.f32.mrf.mxu1 }
 0x2c0   : > { %17024 = vst [vmem:[#allocation273_spill] sm:$0xff] %v11877_v9  ;;  %3233 = vmatpush.msrb.mxu0 %v11041_v55  ;;  %v6610_v9 = vunpack.i.l.bf16 %v17030_v63  ;;  %v17040_v55 = vunpack.i.h.bf16 %v16933_v1  ;;  %v11957_v63 = vpop.permute.xlu1 %6893 }
 0x2c1   : > { %17025 = vst [vmem:[#allocation274_spill] sm:$0xff] %v11881_v57  ;;  %v17031_v57 = vld [vmem:[#allocation144_spill] sm:$0xff]  ;;  %3256 = vmatpush.msrb.mxu1 %v11045_v44  ;;  %3302 = vmatpush.msrb.mxu3 %v17039_v13 }
 0x2c2   : > { %17026 = vst [vmem:[#allocation275_spill] sm:$0xff] %v11889_v21  ;;  %v6606_v0 = vunpack.i.h.bf16 %v17031_v57  ;;  %v17033_v21 = vld [vmem:[#allocation235_spill] sm:$0xff]  ;;  %v6605_v38 = vunpack.i.l.bf16 %v17031_v57  ;;  %v11937_v44 = vsel %vm2809_vm3, %v17040_v55, %v6601_v58  ;;  %v17047_v57 = vunpack.i.l.bf16 %v16933_v1 }
 0x2c3   : > { %17028 = vst [vmem:[#allocation276_spill] sm:$0xff] %v11895_v30  ;;  %3278 = vmatpush.msrb.mxu2 %v17033_v21  ;;  %v11912_v30 = vld [vmem:[%s15870_s4 + $0x18] sm:$0xff]  ;;  %v11922_v21 = vpop.permute.xlu0 %6888  ;;  %3234 = vmatpush.msrb.mxu0 %v11937_v44  ;;  %v17053_v1 = vunpack.i.h.bf16 %v17036_v7 }
 0x2c4   : > { %17034 = vst [vmem:[#allocation140_spill] sm:$0xff] %v11916_v54  ;;  %3157 = vmatmul.f32.gmra.mxu0 %v11912_v30  ;;  %3180 = vmatmul.f32.gmra.mxu1 %v11912_v30  ;;  %v11949_v13 = vsel %vm2809_vm3, %v6601_v58, %v6606_v0  ;;  %v11953_v55 = vsel %vm2809_vm3, %v6606_v0, %v6611_v19  ;;  %v11968_v58 = vld [vmem:[%s8014_s26 + $0x58] sm:$0xff] }
 0x2c5   : > { %3279 = vmatpush.msrb.mxu2 %v17037_v43  ;;  %17038 = vst [vmem:[#allocation116_spill] sm:$0xff] %v11929_v49  ;;  %v11941_v43 = vpop.f32.mrf.mxu2  ;;  %3226 = vmatmul.f32.gmra.mxu3 %v11912_v30  ;;  %v11965_v24 = vsel %vm2809_vm3, %v17047_v57, %v6600_v5  ;;  %v11986_v57 = vsel %vm2809_vm3, %v6611_v19, %v17053_v1  ;;  %v17061_v1 = vunpack.i.l.bf16 %v11767_v34 }
 0x2c6   : > { %17041 = vst [vmem:[#allocation144_spill] sm:$0xff] %v11937_v44  ;;  %3203 = vmatmul.f32.gmra.mxu2 %v11912_v30  ;;  %3257 = vmatpush.msrb.mxu1 %v11949_v13  ;;  %v11989_v44 = vld [vmem:[%s8014_s26 + $0x50] sm:$0xff]  ;;  %v12003_v19 = vsel %vm2809_vm3, %v6605_v38, %v6610_v9 }
 0x2c7   : > { %17042 = vst [vmem:[#allocation243_spill] sm:$0xff] %v11939_v31  ;;  %v17050_v31 = vunpack.i.h.bf16 %v11819_v46  ;;  %3280 = vmatpush.msrb.mxu2 %v11953_v55  ;;  %3303 = vmatpush.msrb.mxu3 %v11986_v57 }
 0x2c8   : > { %17043 = vst [vmem:[#allocation235_spill] sm:$0xff] %v11941_v43  ;;  %v17049_v43 = vld [vmem:[#allocation64_spill] sm:$0xff]  ;;  %3235 = vmatpush.msrb.mxu0 %v11965_v24  ;;  %7158 = vrot.lane.b32.xlu0 %v7157_v42, %s7866_s23 }
 0x2c9   : > { %17044 = vst [vmem:[#allocation234_spill] sm:$0xff] %v11949_v13  ;;  %v7167_v0 = vpack.i.bf16 %v17049_v43, %v11968_v58  ;;  %v7549_v43 = vld [vmem:[%s8006_s19 + $0x8] sm:$0xff]  ;;  %3281 = vmatpush.msrb.mxu2 %v12003_v19 }
 0x2ca   : > { %17045 = vst [vmem:[#allocation145_spill] sm:$0xff] %v11953_v55  ;;  %v7162_v8 = vpack.i.bf16 %v11989_v44, %v7549_v43 }
 0x2cb   : > { %17046 = vst [vmem:[#allocation181_spill] sm:$0xff] %v11955_v23  ;;  %v17051_v23 = vunpack.i.h.bf16 %v11767_v34  ;;  %7168 = vrot.lane.b32.xlu2 %v7167_v0, %s7866_s23  ;;  %v17068_v0 = vunpack.i.h.bf16 %v11328_v36  ;;  %3282 = vmatpush.msrb.mxu2 %v11278_v12  ;;  %v17072_v34 = vunpack.i.l.bf16 %v16948_v53 }
 0x2cc   : > { %17048 = vst [vmem:[#allocation246_spill] sm:$0xff] %v11965_v24  ;;  %7163 = vrot.lane.b32.xlu1 %v7162_v8, %s7866_s23  ;;  %v17069_v8 = vunpack.i.h.bf16 %v11208_v14 }
 0x2cd   : > { %v11978_v49 = vsel %vm3054_vm4, %v17051_v23, %v17050_v31  ;;  %17054 = vst [vmem:[#allocation277_spill] sm:$0xff] %v11986_v57  ;;  %v11999_v23 = vsel %vm2809_vm3, %v6600_v5, %v6605_v38  ;;  %v17058_v31 = vunpack.i.l.bf16 %v17036_v7  ;;  %v12019_v5 = vsel %vm3054_vm4, %v17061_v1, %v17060_v27  ;;  %v17063_v38 = vld [vmem:[#allocation119_spill] sm:$0xff]  ;;  %v12036_v1 = vpop.permute.xlu2 %6898  ;;  %3283 = vmatpush.msrb.mxu2 %v11294_v51 }
 0x2ce   : > { %17052 = vst [vmem:[#allocation64_spill] sm:$0xff] %v11978_v49  ;;  %3258 = vmatpush.msrb.mxu1 %v11999_v23  ;;  %v6571_v43 = vunpack.i.h.bf16 %v17063_v38  ;;  %v17064_v49 = vld [vmem:[#allocation202_spill] sm:$0xff]  ;;  %v12046_v42 = vsel %vm3054_vm4, %v17069_v8, %v17068_v0  ;;  %v17075_v0 = vunpack.i.l.bf16 %v11208_v14  ;;  %v17081_v8 = vunpack.i.h.bf16 %v16930_v59  ;;  %v12205_v51 = vld [vmem:[%s8006_s19 + $0x118] sm:$0xff] }
 0x2cf   : > { %17056 = vst [vmem:[#allocation159_spill] sm:$0xff] %v11999_v23  ;;  %v12011_v4 = vsel %vm2809_vm3, %v6610_v9, %v17058_v31  ;;  %v17065_v23 = vld [vmem:[#allocation203_spill] sm:$0xff]  ;;  %v17066_v9 = vunpack.i.h.bf16 %v11199_v26  ;;  %v17067_v31 = vunpack.i.h.bf16 %v16948_v53  ;;  %v17077_v53 = vunpack.i.h.bf16 %v16961_v60 }
 0x2d0   : > { %17057 = vst [vmem:[#allocation278_spill] sm:$0xff] %v12003_v19  ;;  %3304 = vmatpush.msrb.mxu3 %v12011_v4  ;;  %v6566_v19 = vunpack.i.h.bf16 %v17064_v49  ;;  %v6561_v24 = vunpack.i.h.bf16 %v17065_v23  ;;  %3259 = vmatpush.msrb.mxu1 %v11272_v25  ;;  %v6560_v46 = vunpack.i.l.bf16 %v17065_v23  ;;  %v17074_v23 = vunpack.i.l.bf16 %v11328_v36  ;;  %v12089_v36 = vpop.permute.xlu1 %6908 }
 0x2d1   : > { %17059 = vst [vmem:[#allocation279_spill] sm:$0xff] %v12011_v4  ;;  %v12034_v27 = vsel %vm3054_vm4, %v17067_v31, %v17066_v9  ;;  %v12050_v9 = vpop.permute.xlu0 %6903  ;;  %v17071_v31 = vunpack.i.l.bf16 %v11199_v26 }
 0x2d2   : > { %17062 = vst [vmem:[#allocation280_spill] sm:$0xff] %v12019_v5  ;;  %3236 = vmatpush.msrb.mxu0 %v12034_v27  ;;  %v6565_v5 = vunpack.i.l.bf16 %v17064_v49  ;;  %3305 = vmatpush.msrb.mxu3 %v12046_v42  ;;  %v6570_v49 = vunpack.i.l.bf16 %v17063_v38  ;;  %v12071_v26 = vsel %vm3054_vm4, %v17075_v0, %v17074_v23  ;;  %v12083_v38 = vsel %vm2809_vm3, %v6561_v24, %v6566_v19  ;;  %v12100_v23 = vld [vmem:[%s8014_s26 + $0x108] sm:$0xff]  ;;  %v7552_v0 = vld [vmem:[%s8006_s19 + $0x100] sm:$0xff] }
 0x2d3   : > { %17070 = vst [vmem:[#allocation119_spill] sm:$0xff] %v12050_v9  ;;  %v12060_v25 = vsel %vm3054_vm4, %v17072_v34, %v17071_v31  ;;  %3260 = vmatpush.msrb.mxu1 %v11288_v48  ;;  %v12079_v34 = vsel %vm2809_vm3, %v17077_v53, %v6561_v24  ;;  %v12087_v14 = vsel %vm2809_vm3, %v6566_v19, %v6571_v43  ;;  %v17083_v53 = vunpack.i.l.bf16 %v16961_v60 }
 0x2d4   : > { %17073 = vst [vmem:[#allocation202_spill] sm:$0xff] %v12060_v25  ;;  %3237 = vmatpush.msrb.mxu0 %v12060_v25  ;;  %3306 = vmatpush.msrb.mxu3 %v12071_v26  ;;  %v12097_v31 = vsel %vm2809_vm3, %v6571_v43, %v17081_v8  ;;  %v7182_v24 = vpack.i.bf16 %v12100_v23, %v11382_v3  ;;  %v17087_v60 = vunpack.i.l.bf16 %v16930_v59  ;;  %v6831_v25 = vunpack.i.h.bf16 %v11528_v56 }
 0x2d5   : > { %17076 = vst [vmem:[#allocation203_spill] sm:$0xff] %v12071_v26  ;;  %3261 = vmatpush.msrb.mxu1 %v12083_v38  ;;  %v7177_v19 = vpack.i.bf16 %v11779_v35, %v7552_v0  ;;  %3284 = vmatpush.msrb.mxu2 %v12087_v14  ;;  %v12116_v43 = vsel %vm2809_vm3, %v6560_v46, %v6565_v5  ;;  %v12140_v59 = vpop.permute.xlu2 %6913 }
 0x2d6   : > { %17078 = vst [vmem:[#allocation281_spill] sm:$0xff] %v12079_v34  ;;  %3238 = vmatpush.msrb.mxu0 %v12079_v34  ;;  %3307 = vmatpush.msrb.mxu3 %v12097_v31  ;;  %v7172_v8 = vpack.i.bf16 %v11762_v41, %v11754_v10  ;;  %v12124_v35 = vsel %vm2809_vm3, %v6565_v5, %v6570_v49  ;;  %v6885_v41 = vunpack.i.l.bf16 %v11916_v54  ;;  %v17096_v5 = vld [vmem:[#allocation244_spill] sm:$0xff] }
 0x2d7   : > { %17079 = vst [vmem:[#allocation282_spill] sm:$0xff] %v12083_v38  ;;  %v12112_v38 = vsel %vm2809_vm3, %v17083_v53, %v6560_v46  ;;  %3262 = vmatpush.msrb.mxu1 %v12116_v43  ;;  %v12130_v53 = vsel %vm2809_vm3, %v6570_v49, %v17087_v60  ;;  %3285 = vmatpush.msrb.mxu2 %v12124_v35  ;;  %v17089_v46 = vld [vmem:[#allocation241_spill] sm:$0xff]  ;;  %v17090_v49 = vld [vmem:[#allocation242_spill] sm:$0xff] }
 0x2d8   : > { %17080 = vst [vmem:[#allocation283_spill] sm:$0xff] %v12087_v14  ;;  %3239 = vmatpush.msrb.mxu0 %v12112_v38  ;;  %3308 = vmatpush.msrb.mxu3 %v12130_v53  ;;  %v17091_v60 = vld [vmem:[#allocation158_spill] sm:$0xff] }
 0x2d9   : > { %17082 = vst [vmem:[#allocation284_spill] sm:$0xff] %v12097_v31  ;;  %7183 = vrot.lane.b32.xlu2 %v7182_v24, %s7865_s30  ;;  %7178 = vrot.lane.b32.xlu1 %v7177_v19, %s7866_s23  ;;  %v17092_v24 = vunpack.i.h.bf16 %v16945_v17  ;;  %v17099_v31 = vld [vmem:[#allocation208_spill] sm:$0xff] }
 0x2da   : > { %17084 = vst [vmem:[#allocation285_spill] sm:$0xff] %v12112_v38  ;;  %7173 = vrot.lane.b32.xlu0 %v7172_v8, %s7866_s23  ;;  %3240 = vmatpush.msrb.mxu0 %v17089_v46  ;;  %v12155_v46 = vpop.permute.xlu0 %6918  ;;  %v17098_v38 = vld [vmem:[#allocation245_spill] sm:$0xff]  ;;  %v17102_v8 = vld [vmem:[#allocation107_spill] sm:$0xff] }
 0x2db   : > { %17085 = vst [vmem:[#allocation286_spill] sm:$0xff] %v12116_v43  ;;  %3263 = vmatpush.msrb.mxu1 %v17090_v49  ;;  %3286 = vmatpush.msrb.mxu2 %v17091_v60  ;;  %v17097_v49 = vld [vmem:[#allocation28_spill] sm:$0xff]  ;;  %v6526_v14 = vunpack.i.h.bf16 %v17102_v8  ;;  %v12171_v43 = vld [vmem:[%s8014_s26 + $0x48] sm:$0xff]  ;;  %v6525_v34 = vunpack.i.l.bf16 %v17102_v8  ;;  %v12220_v8 = vld [vmem:[%s8006_s19 + $0x50] sm:$0xff] }
 0x2dc   : > { %17086 = vst [vmem:[#allocation287_spill] sm:$0xff] %v12124_v35  ;;  %v12152_v35 = vld [vmem:[%s8014_s26 + $0x178] sm:$0xff]  ;;  %3241 = vmatpush.msrb.mxu0 %v17096_v5  ;;  %v6521_v60 = vunpack.i.h.bf16 %v17097_v49  ;;  %v6520_v5 = vunpack.i.l.bf16 %v17097_v49  ;;  %v12185_v49 = vld [vmem:[%s8006_s19 + $0x108] sm:$0xff] }
 0x2dd   : > { %17088 = vst [vmem:[#allocation288_spill] sm:$0xff] %v12130_v53  ;;  %v17093_v53 = vld [vmem:[#allocation238_spill] sm:$0xff]  ;;  %3264 = vmatpush.msrb.mxu1 %v17098_v38  ;;  %3287 = vmatpush.msrb.mxu2 %v17099_v31  ;;  %v7197_v38 = vpack.i.bf16 %v12171_v43, %v12152_v35  ;;  %v17103_v31 = vunpack.i.l.bf16 %v11869_v29 }
 0x2de   : > { %v17094_v19 = vunpack.i.h.bf16 %v17093_v53  ;;  %17095 = vst [vmem:[#allocation241_spill] sm:$0xff] %v12152_v35  ;;  %3242 = vmatpush.msrb.mxu0 %v7552_v0  ;;  %v12189_v0 = vld [vmem:[%s8006_s19 + $0x110] sm:$0xff] }
 0x2df   : > { %3265 = vmatpush.msrb.mxu1 %v12185_v49  ;;  %3288 = vmatpush.msrb.mxu2 %v12189_v0 }
 0x2e0   : > { %v3120_v10 = vsel %vm3054_vm4, %v17094_v19, %v17092_v24  ;;  %v17100_v24 = vunpack.i.l.bf16 %v16945_v17  ;;  %v17101_v19 = vunpack.i.l.bf16 %v17093_v53  ;;  %v12179_v17 = vsel %vm3054_vm4, %v17103_v31, %v6885_v41  ;;  %v17105_v53 = vld [vmem:[#allocation180_spill] sm:$0xff] }
 0x2e1   : > { %3309 = vmatpush.msrb.mxu3 %v3120_v10  ;;  %17104 = vst [vmem:[#allocation242_spill] sm:$0xff] %v12179_v17  ;;  %v17106_v31 = vunpack.i.h.bf16 %v11922_v21  ;;  %v17107_v17 = vunpack.i.h.bf16 %v11916_v54  ;;  %v6530_v26 = vunpack.i.l.bf16 %v17105_v53  ;;  %v6896_v54 = vunpack.i.h.bf16 %v11957_v63  ;;  %3289 = vmatpush.msrb.mxu2 %v12220_v8 }
 0x2e2   : > { %v3119_v10 = vsel %vm3054_vm4, %v17101_v19, %v17100_v24  ;;  %v6531_v24 = vunpack.i.h.bf16 %v17105_v53  ;;  %v12182_v19 = vpop.permute.xlu1 %6923  ;;  %v17112_v53 = vunpack.i.h.bf16 %v17003_v50  ;;  %7198 = vrot.lane.b32.xlu2 %v7197_v38, %s7865_s30  ;;  %7193 = vrot.lane.b32.xlu1 %v11865_v39, %s7865_s30  ;;  %v17115_v39 = vunpack.i.l.bf16 %v16966_v61 }
 0x2e3   : > { %3310 = vmatpush.msrb.mxu3 %v3119_v10  ;;  %v7556_v10 = vld [vmem:[%s8006_s19 + $0x40] sm:$0xff]  ;;  %v12200_v29 = vsel %vm3054_vm4, %v17107_v17, %v17106_v31  ;;  %v12216_v17 = vld [vmem:[%s8006_s19 + $0x48] sm:$0xff]  ;;  %v6901_v31 = vunpack.i.h.bf16 %v12036_v1 }
 0x2e4   : > { %v7187_v35 = vpack.i.bf16 %v7556_v10, %v11783_v52  ;;  %17108 = vst [vmem:[#allocation158_spill] sm:$0xff] %v12200_v29  ;;  %3243 = vmatpush.msrb.mxu0 %v7556_v10  ;;  %v17109_v52 = vunpack.i.l.bf16 %v11922_v21  ;;  %3266 = vmatpush.msrb.mxu1 %v12216_v17  ;;  %v2881_v10 = vsel %vm2809_vm3, %v17112_v53, %v6521_v60  ;;  %v17113_v29 = vunpack.i.l.bf16 %v17003_v50 }
 0x2e5   : > { %3311 = vmatpush.msrb.mxu3 %v12205_v51  ;;  %17111 = vst [vmem:[#allocation244_spill] sm:$0xff] %v12216_v17  ;;  %v17114_v53 = vunpack.i.h.bf16 %v16966_v61  ;;  %v2878_v50 = vsel %vm2809_vm3, %v6520_v5, %v6525_v34  ;;  %v16195_v61 = vunpack.i.h.bf16 %v11651_v15 }
 0x2e6   : > { %v12212_v48 = vsel %vm3054_vm4, %v6885_v41, %v17109_v52  ;;  %v6900_v41 = vunpack.i.l.bf16 %v12036_v1  ;;  %v6895_v52 = vunpack.i.l.bf16 %v11957_v63  ;;  %v2880_v17 = vsel %vm2809_vm3, %v17113_v29, %v6520_v5  ;;  %7188 = vrot.lane.b32.xlu0 %v7187_v35, %s7866_s23  ;;  %3244 = vmatpush.msrb.mxu0 %v2881_v10 }
 0x2e7   : > { %17110 = vst [vmem:[#allocation238_spill] sm:$0xff] %v12212_v48  ;;  %v12231_v48 = vld [vmem:[%s8006_s19 + $0x58] sm:$0xff]  ;;  %v2879_v1 = vsel %vm2809_vm3, %v6521_v60, %v6526_v14  ;;  %v2877_v63 = vsel %vm2809_vm3, %v6526_v14, %v6531_v24  ;;  %v2875_v38 = vsel %vm2809_vm3, %v6531_v24, %v17114_v53  ;;  %v2876_v29 = vsel %vm2809_vm3, %v6525_v34, %v6530_v26  ;;  %v12261_v24 = vpop.permute.xlu2 %6928 }
 0x2e8   : > { %3312 = vmatpush.msrb.mxu3 %v12231_v48  ;;  %3267 = vmatpush.msrb.mxu1 %v2879_v1  ;;  %v2874_v35 = vsel %vm2809_vm3, %v6530_v26, %v17115_v39  ;;  %v6826_v14 = vunpack.i.h.bf16 %v11519_v28  ;;  %v6836_v60 = vunpack.i.h.bf16 %v11571_v20  ;;  %v17116_v5 = vunpack.i.h.bf16 %v11922_v21  ;;  %v12270_v26 = vpop.permute.xlu0 %6933 }
 0x2e9   : > { %3290 = vmatpush.msrb.mxu2 %v2877_v63  ;;  %3245 = vmatpush.msrb.mxu0 %v2880_v17  ;;  %v12274_v10 = vsel %vm3054_vm4, %v6896_v54, %v6901_v31  ;;  %v17119_v1 = vunpack.i.l.bf16 %v11922_v21  ;;  %v12284_v53 = vsel %vm3054_vm4, %v6895_v52, %v6900_v41  ;;  %v6825_v39 = vunpack.i.l.bf16 %v11519_v28  ;;  %v12293_v31 = vpop.f32.mrf.mxu1  ;;  %v12295_v21 = vpop.f32.mrf.mxu2 }
 0x2ea   : > { %3313 = vmatpush.msrb.mxu3 %v2875_v38  ;;  %v12267_v34 = vsel %vm3054_vm4, %v17116_v5, %v6896_v54  ;;  %3268 = vmatpush.msrb.mxu1 %v2878_v50  ;;  %17118 = vst [vmem:[#allocation245_spill] sm:$0xff] %v12274_v10  ;;  %v12286_v38 = vpop.f32.mrf.mxu0  ;;  %v6830_v17 = vunpack.i.l.bf16 %v11528_v56  ;;  %v12291_v54 = vld [vmem:[%s8014_s26 + $0xb8] sm:$0xff]  ;;  %v6835_v5 = vunpack.i.l.bf16 %v11571_v20  ;;  %v12301_v41 = vpop.f32.mrf.mxu3  ;;  %v17127_v56 = vunpack.i.h.bf16 %v11465_v32 }
 0x2eb   : > { %17117 = vst [vmem:[#allocation28_spill] sm:$0xff] %v12267_v34  ;;  %v12280_v63 = vsel %vm3054_vm4, %v17119_v1, %v6895_v52  ;;  %3291 = vmatpush.msrb.mxu2 %v2876_v29  ;;  %3246 = vmatmul.f32.vlgmr.msrb.gmra.mxu0 %v11806_v18  ;;  %v12303_v28 = vpop.permute.xlu1 %6938  ;;  %v12315_v20 = vsel %vm3054_vm4, %v6826_v14, %v6831_v25  ;;  %v17137_v34 = vld [vmem:[#allocation132_spill] sm:$0xff] }
 0x2ec   : > { %17120 = vst [vmem:[#allocation208_spill] sm:$0xff] %v12280_v63  ;;  %3314 = vmatpush.msrb.mxu3 %v2874_v35  ;;  %3269 = vmatmul.f32.vlgmr.msrb.gmra.mxu1 %v11806_v18  ;;  %v12311_v52 = vsel %vm3054_vm4, %v17127_v56, %v6826_v14  ;;  %v12319_v29 = vsel %vm3054_vm4, %v6831_v25, %v6836_v60  ;;  %v17128_v25 = vunpack.i.l.bf16 %v11465_v32 }
 0x2ed   : > { %17121 = vst [vmem:[#allocation107_spill] sm:$0xff] %v12284_v53  ;;  %3292 = vmatmul.f32.vlgmr.msrb.gmra.mxu2 %v11806_v18  ;;  %3315 = vmatmul.f32.vlgmr.msrb.gmra.mxu3 %v11806_v18  ;;  %v12327_v35 = vsel %vm3054_vm4, %v6836_v60, %v16195_v61  ;;  %v7212_v1 = vpack.i.bf16 %v11493_v45, %v12291_v54  ;;  %v12346_v61 = vld [vmem:[%s8006_s19 + $0x148] sm:$0xff] }
 0x2ee   : > { %17122 = vst [vmem:[#allocation180_spill] sm:$0xff] %v12286_v38  ;;  %3322 = vmatpush.msra.mxu0 %v12311_v52  ;;  %3345 = vmatpush.msra.mxu1 %v12315_v20  ;;  %v7207_v14 = vpack.i.bf16 %v11968_v58, %v11989_v44  ;;  %v12339_v56 = vsel %vm3054_vm4, %v17128_v25, %v6825_v39  ;;  %v12349_v45 = vld [vmem:[%s8006_s19 + $0x88] sm:$0xff]  ;;  %v17132_v25 = vunpack.i.l.bf16 %v11651_v15 }
 0x2ef   : > { %17123 = vst [vmem:[#allocation289_spill] sm:$0xff] %v12291_v54  ;;  %3368 = vmatpush.msra.mxu2 %v12319_v29  ;;  %3391 = vmatpush.msra.mxu3 %v12327_v35  ;;  %v12343_v60 = vsel %vm3054_vm4, %v6825_v39, %v6830_v17  ;;  %v7202_v50 = vpack.i.bf16 %v12349_v45, %v12346_v61  ;;  %v12372_v53 = vpop.permute.xlu2 %6943 }
 0x2f0   : > { %17124 = vst [vmem:[#allocation290_spill] sm:$0xff] %v12293_v31  ;;  %3323 = vmatpush.msra.mxu0 %v12339_v56  ;;  %3346 = vmatpush.msra.mxu1 %v12343_v60  ;;  %v12357_v32 = vsel %vm3054_vm4, %v6830_v17, %v6835_v5  ;;  %v12363_v39 = vsel %vm3054_vm4, %v6835_v5, %v17132_v25  ;;  %v17135_v31 = vld [vmem:[#allocation118_spill] sm:$0xff]  ;;  %v7563_v5 = vld [vmem:[%s8014_s26 + $0xe0] sm:$0xff]  ;;  %v17136_v25 = vld [vmem:[#allocation129_spill] sm:$0xff] }
 0x2f1   : > { %17125 = vst [vmem:[#allocation291_spill] sm:$0xff] %v12295_v21  ;;  %3369 = vmatpush.msra.mxu2 %v12357_v32  ;;  %3392 = vmatpush.msra.mxu3 %v12363_v39  ;;  %v6621_v38 = vunpack.i.h.bf16 %v17135_v31  ;;  %v6620_v17 = vunpack.i.l.bf16 %v17135_v31  ;;  %v6631_v63 = vunpack.i.h.bf16 %v17136_v25  ;;  %v6630_v31 = vunpack.i.l.bf16 %v17136_v25  ;;  %v12417_v54 = vpop.f32.mrf.mxu1 }
 0x2f2   : > { %17126 = vst [vmem:[#allocation292_spill] sm:$0xff] %v12301_v41  ;;  %v17134_v41 = vld [vmem:[#allocation51_spill] sm:$0xff]  ;;  %7213 = vrot.lane.b32.xlu2 %v7212_v1, %s7865_s30  ;;  %7208 = vrot.lane.b32.xlu1 %v7207_v14, %s7865_s30  ;;  %v7564_v1 = vld [vmem:[%s8014_s26 + $0xf0] sm:$0xff] }
 0x2f3   : > { %17129 = vst [vmem:[#allocation293_spill] sm:$0xff] %v12339_v56  ;;  %v6626_v21 = vunpack.i.h.bf16 %v17134_v41  ;;  %7203 = vrot.lane.b32.xlu0 %v7202_v50, %s7866_s23  ;;  %3324 = vmatpush.msra.mxu0 %v7563_v5  ;;  %v6625_v10 = vunpack.i.l.bf16 %v17134_v41  ;;  %v7565_v14 = vld [vmem:[%s8014_s26 + $0xf8] sm:$0xff]  ;;  %v6911_v50 = vunpack.i.h.bf16 %v12089_v36  ;;  %v12406_v41 = vpop.permute.xlu1 %6953  ;;  %v17222_v56 = vunpack.i.l.bf16 %v12303_v28 }
 0x2f4   : > { %17130 = vst [vmem:[#allocation294_spill] sm:$0xff] %v12343_v60  ;;  %3347 = vmatpush.msra.mxu1 %v11373_v22  ;;  %3370 = vmatpush.msra.mxu2 %v7564_v1  ;;  %v17138_v22 = vunpack.i.h.bf16 %v17036_v7  ;;  %v12401_v1 = vpop.f32.mrf.mxu0  ;;  %v17211_v60 = vld [vmem:[#allocation265_spill] sm:$0xff] }
 0x2f5   : > { %17131 = vst [vmem:[#allocation295_spill] sm:$0xff] %v12357_v32  ;;  %3393 = vmatpush.msra.mxu3 %v7565_v14  ;;  %3325 = vmatpush.msra.mxu0 %v11382_v3  ;;  %v12399_v25 = vsel %vm2809_vm3, %v6621_v38, %v6626_v21  ;;  %v6916_v3 = vunpack.i.h.bf16 %v12140_v59  ;;  %v6910_v14 = vunpack.i.l.bf16 %v12089_v36  ;;  %v12419_v36 = vpop.f32.mrf.mxu2  ;;  %v17210_v32 = vld [vmem:[#allocation264_spill] sm:$0xff] }
 0x2f6   : > { %17133 = vst [vmem:[#allocation296_spill] sm:$0xff] %v12363_v39  ;;  %v12379_v39 = vpop.permute.xlu0 %6948  ;;  %3348 = vmatpush.msra.mxu1 %v11386_v47  ;;  %3371 = vmatpush.msra.mxu2 %v11364_v16  ;;  %v12395_v5 = vsel %vm2809_vm3, %v17138_v22, %v6621_v38  ;;  %v17142_v16 = vunpack.i.l.bf16 %v17036_v7  ;;  %v17147_v7 = vunpack.i.h.bf16 %v17137_v34  ;;  %v12435_v22 = vsel %vm2809_vm3, %v6620_v17, %v6625_v10  ;;  %v12437_v47 = vpop.f32.mrf.mxu3 }
 0x2f7   : > { %17139 = vst [vmem:[#allocation51_spill] sm:$0xff] %v12395_v5  ;;  %3394 = vmatpush.msra.mxu3 %v11359_v40  ;;  %3249 = vmatmul.f32.gmra.mxu0 %v11912_v30  ;;  %v12425_v40 = vsel %vm2809_vm3, %v6626_v21, %v6631_v63  ;;  %v12445_v21 = vld [vmem:[%s8006_s19 + $0xb8] sm:$0xff] }
 0x2f8   : > { %17140 = vst [vmem:[#allocation118_spill] sm:$0xff] %v12399_v25  ;;  %v12414_v38 = vsel %vm2809_vm3, %v17142_v16, %v6620_v17  ;;  %3272 = vmatmul.f32.gmra.mxu1 %v11912_v30  ;;  %3295 = vmatmul.f32.gmra.mxu2 %v11912_v30  ;;  %v12431_v16 = vsel %vm2809_vm3, %v6631_v63, %v17147_v7  ;;  %v12454_v17 = vld [vmem:[%s8006_s19 + $0x178] sm:$0xff] }
 0x2f9   : > { %17141 = vst [vmem:[#allocation129_spill] sm:$0xff] %v12401_v1  ;;  %3318 = vmatmul.f32.gmra.mxu3 %v11912_v30  ;;  %3326 = vmatpush.msra.mxu0 %v12395_v5  ;;  %v7227_v63 = vpack.i.bf16 %v12171_v43, %v12445_v21  ;;  %v7217_v7 = vpack.i.bf16 %v12454_v17, %v11497_v37  ;;  %v17153_v1 = vunpack.i.h.bf16 %v12050_v9  ;;  %v17207_v5 = vld [vmem:[#allocation261_spill] sm:$0xff] }
 0x2fa   : > { %17143 = vst [vmem:[#allocation132_spill] sm:$0xff] %v12414_v38  ;;  %3349 = vmatpush.msra.mxu1 %v12399_v25  ;;  %3372 = vmatpush.msra.mxu2 %v12425_v40  ;;  %v17206_v25 = vld [vmem:[#allocation263_spill] sm:$0xff] }
 0x2fb   : > { %17144 = vst [vmem:[#allocation297_spill] sm:$0xff] %v12417_v54  ;;  %v6921_v54 = vunpack.i.h.bf16 %v12155_v46  ;;  %3395 = vmatpush.msra.mxu3 %v12431_v16  ;;  %3327 = vmatpush.msra.mxu0 %v12414_v38  ;;  %v6945_v38 = vunpack.i.l.bf16 %v12372_v53 }
 0x2fc   : > { %17145 = vst [vmem:[#allocation298_spill] sm:$0xff] %v12419_v36  ;;  %v6915_v36 = vunpack.i.l.bf16 %v12140_v59  ;;  %v7222_v59 = vpack.i.bf16 %v11512_v33, %v12100_v23  ;;  %v12472_v33 = vsel %vm3978_vm5, %v6911_v50, %v6916_v3  ;;  %3350 = vmatpush.msra.mxu1 %v12435_v22  ;;  %7228 = vrot.lane.b32.xlu2 %v7227_v63, %s7866_s23  ;;  %v17168_v63 = vld [vmem:[#allocation56_spill] sm:$0xff] }
 0x2fd   : > { %17146 = vst [vmem:[#allocation299_spill] sm:$0xff] %v12425_v40  ;;  %7218 = vrot.lane.b32.xlu0 %v7217_v7, %s7866_s23  ;;  %3328 = vmatpush.msra.mxu0 %v11442_v2  ;;  %v6926_v7 = vunpack.i.h.bf16 %v12182_v19  ;;  %v6925_v2 = vunpack.i.l.bf16 %v12182_v19 }
 0x2fe   : > { %17148 = vst [vmem:[#allocation300_spill] sm:$0xff] %v12431_v16  ;;  %7223 = vrot.lane.b32.xlu1 %v7222_v59, %s7866_s23  ;;  %3351 = vmatpush.msra.mxu1 %v11446_v11  ;;  %v17169_v59 = vld [vmem:[#allocation227_spill] sm:$0xff]  ;;  %v6930_v11 = vunpack.i.l.bf16 %v12261_v24 }
 0x2ff   : > { %17149 = vst [vmem:[#allocation301_spill] sm:$0xff] %v12435_v22  ;;  %v17179_v22 = vld [vmem:[#allocation185_spill] sm:$0xff] }
 0x300   : > { %17150 = vst [vmem:[#allocation302_spill] sm:$0xff] %v12437_v47  ;;  %v12462_v47 = vsel %vm3978_vm5, %v17153_v1, %v6911_v50  ;;  %v17159_v1 = vunpack.i.l.bf16 %v17137_v34  ;;  %v12494_v50 = vsel %vm3978_vm5, %v6916_v3, %v6921_v54  ;;  %v17165_v3 = vld [vmem:[#allocation163_spill] sm:$0xff] }
 0x301   : > { %17151 = vst [vmem:[#allocation303_spill] sm:$0xff] %v12445_v21  ;;  %v12468_v21 = vsel %vm2809_vm3, %v6625_v10, %v6630_v31 }
 0x302   : > { %17152 = vst [vmem:[#allocation304_spill] sm:$0xff] %v12454_v17  ;;  %v17157_v17 = vunpack.i.l.bf16 %v12050_v9  ;;  %3373 = vmatpush.msra.mxu2 %v12468_v21  ;;  %v12486_v10 = vsel %vm2809_vm3, %v6630_v31, %v17159_v1  ;;  %v12506_v1 = vpop.permute.xlu0 %6963 }
 0x303   : > { %17154 = vst [vmem:[#allocation305_spill] sm:$0xff] %v12462_v47  ;;  %v12488_v47 = vpop.permute.xlu2 %6958  ;;  %3396 = vmatpush.msra.mxu3 %v12486_v10 }
 0x304   : > { %17155 = vst [vmem:[#allocation306_spill] sm:$0xff] %v12468_v21  ;;  %v12478_v40 = vsel %vm3978_vm5, %v17157_v17, %v6910_v14  ;;  %v12498_v17 = vsel %vm3978_vm5, %v6910_v14, %v6915_v36  ;;  %3374 = vmatpush.msra.mxu2 %v11412_v6  ;;  %v12514_v14 = vpop.permute.xlu1 %6968  ;;  %v17175_v6 = vld [vmem:[#allocation240_spill] sm:$0xff]  ;;  %v17178_v21 = vld [vmem:[#allocation171_spill] sm:$0xff] }
 0x305   : > { %17156 = vst [vmem:[#allocation307_spill] sm:$0xff] %v12472_v33  ;;  %3397 = vmatpush.msra.mxu3 %v17165_v3  ;;  %v12527_v33 = vld [vmem:[%s8014_s26 + $0x140] sm:$0xff]  ;;  %v17174_v3 = vld [vmem:[#allocation254_spill] sm:$0xff] }
 0x306   : > { %17158 = vst [vmem:[#allocation308_spill] sm:$0xff] %v12478_v40  ;;  %v17163_v40 = vunpack.i.l.bf16 %v12155_v46  ;;  %3375 = vmatpush.msra.mxu2 %v17168_v63 }
 0x307   : > { %17160 = vst [vmem:[#allocation309_spill] sm:$0xff] %v12486_v10  ;;  %3398 = vmatpush.msra.mxu3 %v17169_v59  ;;  %v6931_v59 = vunpack.i.h.bf16 %v12261_v24  ;;  %v17177_v10 = vld [vmem:[#allocation170_spill] sm:$0xff]  ;;  %v17182_v24 = vld [vmem:[#allocation188_spill] sm:$0xff] }
 0x308   : > { %17161 = vst [vmem:[#allocation310_spill] sm:$0xff] %v12494_v50  ;;  %v12504_v31 = vsel %vm3978_vm5, %v6915_v36, %v17163_v40  ;;  %v17166_v36 = vld [vmem:[#allocation61_spill] sm:$0xff]  ;;  %v12524_v50 = vld [vmem:[%s8014_s26 + $0x138] sm:$0xff]  ;;  %3376 = vmatpush.msra.mxu2 %v17174_v3 }
 0x309   : > { %17162 = vst [vmem:[#allocation311_spill] sm:$0xff] %v12498_v17  ;;  %3329 = vmatpush.msra.mxu0 %v17166_v36  ;;  %v17167_v40 = vld [vmem:[#allocation221_spill] sm:$0xff]  ;;  %v7242_v9 = vpack.i.bf16 %v12527_v33, %v12524_v50  ;;  %v12532_v36 = vld [vmem:[%s8014_s26 + $0x130] sm:$0xff]  ;;  %3399 = vmatpush.msra.mxu3 %v17175_v6  ;;  %v17180_v3 = vld [vmem:[#allocation255_spill] sm:$0xff] }
 0x30a   : > { %17164 = vst [vmem:[#allocation312_spill] sm:$0xff] %v12504_v31  ;;  %3352 = vmatpush.msra.mxu1 %v17167_v40  ;;  %v17170_v31 = vld [vmem:[#allocation209_spill] sm:$0xff]  ;;  %3377 = vmatpush.msra.mxu2 %v17179_v22  ;;  %v12557_v19 = vpop.permute.xlu0 %6978  ;;  %v7580_v22 = vld [vmem:[%s8006_s19 + $0x60] sm:$0xff] }
 0x30b   : > { %3330 = vmatpush.msra.mxu0 %v17170_v31  ;;  %v17171_v17 = vld [vmem:[#allocation149_spill] sm:$0xff]  ;;  %17172 = vst [vmem:[#allocation313_spill] sm:$0xff] %v12527_v33  ;;  %v6936_v33 = vunpack.i.h.bf16 %v12270_v26  ;;  %3400 = vmatpush.msra.mxu3 %v17180_v3  ;;  %v12549_v6 = vpop.permute.xlu2 %6973  ;;  %v7579_v3 = vld [vmem:[%s8006_s19 + $0x138] sm:$0xff] }
 0x30c   : > { %3353 = vmatpush.msra.mxu1 %v17171_v17  ;;  %v17173_v40 = vld [vmem:[#allocation201_spill] sm:$0xff]  ;;  %v17176_v17 = vld [vmem:[#allocation207_spill] sm:$0xff]  ;;  %7243 = vrot.lane.b32.xlu2 %v7242_v9, %s7866_s23  ;;  %v17185_v9 = vld [vmem:[#allocation194_spill] sm:$0xff] }
 0x30d   : > { %v7237_v63 = vpack.i.bf16 %v12532_v36, %v17173_v40  ;;  %v7232_v31 = vpack.i.bf16 %v17176_v17, %v11497_v37  ;;  %3331 = vmatpush.msra.mxu0 %v17177_v10  ;;  %v6935_v40 = vunpack.i.l.bf16 %v12270_v26  ;;  %v12555_v37 = vsel %vm3978_vm5, %v6921_v54, %v6926_v7  ;;  %v17184_v17 = vld [vmem:[#allocation256_spill] sm:$0xff]  ;;  %3378 = vmatpush.msra.mxu2 %v17185_v9 }
 0x30e   : > { %3354 = vmatpush.msra.mxu1 %v17178_v21  ;;  %17181 = vst [vmem:[#allocation201_spill] sm:$0xff] %v12555_v37  ;;  %v12563_v26 = vsel %vm3978_vm5, %v6926_v7, %v6931_v59  ;;  %v12569_v54 = vsel %vm3978_vm5, %v6931_v59, %v6936_v33  ;;  %v12579_v7 = vsel %vm3978_vm5, %v6925_v2, %v6930_v11 }
 0x30f   : > { %7238 = vrot.lane.b32.xlu1 %v7237_v63, %s7866_s23  ;;  %7233 = vrot.lane.b32.xlu0 %v7232_v31, %s7865_s30  ;;  %17183 = vst [vmem:[#allocation207_spill] sm:$0xff] %v12563_v26  ;;  %v17187_v63 = vunpack.i.l.bf16 %v12155_v46  ;;  %v12585_v59 = vsel %vm3978_vm5, %v6930_v11, %v6935_v40  ;;  %v6941_v46 = vunpack.i.h.bf16 %v12303_v28  ;;  %v12596_v11 = vld [vmem:[%s8014_s26 + $0x78] sm:$0xff]  ;;  %v12611_v26 = vld [vmem:[%s8006_s19 + $0xb0] sm:$0xff] }
 0x310   : > { %3332 = vmatpush.msra.mxu0 %v17182_v24  ;;  %3355 = vmatpush.msra.mxu1 %v17184_v17  ;;  %17186 = vst [vmem:[#allocation188_spill] sm:$0xff] %v12569_v54  ;;  %v17190_v24 = vld [vmem:[#allocation187_spill] sm:$0xff]  ;;  %v17197_v54 = vld [vmem:[#allocation196_spill] sm:$0xff] }
 0x311   : > { %v12575_v31 = vsel %vm3978_vm5, %v17187_v63, %v6925_v2  ;;  %17189 = vst [vmem:[#allocation194_spill] sm:$0xff] %v12579_v7  ;;  %3401 = vmatpush.msra.mxu3 %v17190_v24  ;;  %v17191_v17 = vld [vmem:[#allocation179_spill] sm:$0xff]  ;;  %v12589_v63 = vpop.permute.xlu1 %6983  ;;  %v17194_v2 = vld [vmem:[#allocation258_spill] sm:$0xff]  ;;  %v7574_v7 = vld [vmem:[%s8006_s19 + $0x128] sm:$0xff]  ;;  %v12624_v21 = vsel %vm3978_vm5, %v6936_v33, %v6941_v46 }
 0x312   : > { %17188 = vst [vmem:[#allocation256_spill] sm:$0xff] %v12575_v31  ;;  %3333 = vmatpush.msra.mxu0 %v17191_v17  ;;  %v17193_v31 = vld [vmem:[#allocation257_spill] sm:$0xff]  ;;  %3379 = vmatpush.msra.mxu2 %v17194_v2  ;;  %v17195_v24 = vld [vmem:[#allocation259_spill] sm:$0xff]  ;;  %v7571_v17 = vld [vmem:[%s8006_s19 + $0x120] sm:$0xff] }
 0x313   : > { %17192 = vst [vmem:[#allocation187_spill] sm:$0xff] %v12585_v59  ;;  %3356 = vmatpush.msra.mxu1 %v17193_v31  ;;  %3402 = vmatpush.msra.mxu3 %v17195_v24  ;;  %v12599_v59 = vld [vmem:[%s8014_s26 + $0x80] sm:$0xff]  ;;  %v7575_v31 = vld [vmem:[%s8006_s19 + $0x130] sm:$0xff]  ;;  %v17203_v33 = vld [vmem:[#allocation153_spill] sm:$0xff]  ;;  %v12640_v16 = vpop.permute.xlu2 %6988 }
 0x314   : > { %3334 = vmatpush.msra.mxu0 %v7571_v17  ;;  %17196 = vst [vmem:[#allocation179_spill] sm:$0xff] %v12599_v59  ;;  %v7257_v9 = vpack.i.bf16 %v12599_v59, %v12596_v11  ;;  %3380 = vmatpush.msra.mxu2 %v7575_v31  ;;  %v12606_v2 = vld [vmem:[%s8014_s26 + $0x70] sm:$0xff]  ;;  %v12614_v17 = vld [vmem:[%s8014_s26 + $0x100] sm:$0xff]  ;;  %v7583_v59 = vld [vmem:[%s8006_s19 + $0x78] sm:$0xff] }
 0x315   : > { %3357 = vmatpush.msra.mxu1 %v7574_v7  ;;  %v7252_v24 = vpack.i.bf16 %v12606_v2, %v17197_v54  ;;  %17198 = vst [vmem:[#allocation257_spill] sm:$0xff] %v12611_v26  ;;  %v7247_v37 = vpack.i.bf16 %v12614_v17, %v12611_v26  ;;  %3403 = vmatpush.msra.mxu3 %v7579_v3  ;;  %v7581_v7 = vld [vmem:[%s8006_s19 + $0x68] sm:$0xff]  ;;  %v7582_v31 = vld [vmem:[%s8006_s19 + $0x70] sm:$0xff]  ;;  %v17200_v54 = vunpack.i.l.bf16 %v12303_v28  ;;  %v6946_v26 = vunpack.i.h.bf16 %v12372_v53 }
 0x316   : > { %3335 = vmatpush.msra.mxu0 %v7580_v22  ;;  %3381 = vmatpush.msra.mxu2 %v7582_v31  ;;  %17199 = vst [vmem:[#allocation258_spill] sm:$0xff] %v12624_v21  ;;  %v6846_v21 = vunpack.i.h.bf16 %v17203_v33  ;;  %v12648_v22 = vpop.permute.xlu0 %6993  ;;  %v17204_v3 = vld [vmem:[#allocation150_spill] sm:$0xff]  ;;  %v17227_v28 = vunpack.i.h.bf16 %v12379_v39 }
 0x317   : > { %3358 = vmatpush.msra.mxu1 %v7581_v7  ;;  %v12630_v10 = vsel %vm3978_vm5, %v6935_v40, %v17200_v54  ;;  %3404 = vmatpush.msra.mxu3 %v7583_v59  ;;  %v17202_v7 = vld [vmem:[#allocation199_spill] sm:$0xff]  ;;  %v6845_v40 = vunpack.i.l.bf16 %v17203_v33  ;;  %v17208_v54 = vld [vmem:[#allocation262_spill] sm:$0xff]  ;;  %v17209_v59 = vld [vmem:[#allocation197_spill] sm:$0xff] }
 0x318   : > { %17201 = vst [vmem:[#allocation259_spill] sm:$0xff] %v12630_v10  ;;  %7258 = vrot.lane.b32.xlu2 %v7257_v9, %s7866_s23  ;;  %v6856_v31 = vunpack.i.h.bf16 %v17202_v7  ;;  %7253 = vrot.lane.b32.xlu1 %v7252_v24, %s7866_s23  ;;  %v17205_v10 = vld [vmem:[#allocation260_spill] sm:$0xff]  ;;  %v6855_v53 = vunpack.i.l.bf16 %v17202_v7  ;;  %v6851_v24 = vunpack.i.h.bf16 %v17206_v25  ;;  %v6975_v9 = vunpack.i.l.bf16 %v12549_v6 }
 0x319   : > { %7248 = vrot.lane.b32.xlu0 %v7247_v37, %s7865_s30  ;;  %3336 = vmatpush.msra.mxu0 %v17204_v3  ;;  %v6850_v37 = vunpack.i.l.bf16 %v17206_v25  ;;  %v17213_v3 = vunpack.i.h.bf16 %v12488_v47  ;;  %v17215_v25 = vunpack.i.l.bf16 %v12506_v1 }
 0x31a   : > { %3359 = vmatpush.msra.mxu1 %v17205_v10  ;;  %3382 = vmatpush.msra.mxu2 %v17207_v5  ;;  %v17212_v10 = vunpack.i.h.bf16 %v12506_v1  ;;  %v17216_v5 = vunpack.i.l.bf16 %v12488_v47 }
 0x31b   : > { %3405 = vmatpush.msra.mxu3 %v17208_v54  ;;  %3337 = vmatpush.msra.mxu0 %v17210_v32  ;;  %v12679_v32 = vsel %vm3978_vm5, %v6941_v46, %v6946_v26  ;;  %v6976_v54 = vunpack.i.h.bf16 %v12549_v6  ;;  %v12694_v46 = vpop.f32.mrf.mxu0  ;;  %v17226_v6 = vunpack.i.h.bf16 %v11651_v15 }
 0x31c   : > { %3360 = vmatpush.msra.mxu1 %v17211_v60  ;;  %v12667_v7 = vsel %vm3978_vm5, %v17213_v3, %v17212_v10  ;;  %v12675_v33 = vsel %vm3978_vm5, %v17216_v5, %v17215_v25  ;;  %17218 = vst [vmem:[#allocation153_spill] sm:$0xff] %v12679_v32  ;;  %v12684_v10 = vpop.permute.xlu1 %6998  ;;  %v17220_v3 = vld [vmem:[#allocation266_spill] sm:$0xff]  ;;  %v12692_v25 = vsel %vm3978_vm5, %v17222_v56, %v6945_v38  ;;  %v12696_v5 = vpop.f32.mrf.mxu1  ;;  %v6971_v60 = vunpack.i.h.bf16 %v12514_v14 }
 0x31d   : > { %17214 = vst [vmem:[#allocation196_spill] sm:$0xff] %v12667_v7  ;;  %3383 = vmatpush.msra.mxu2 %v17220_v3  ;;  %v17221_v7 = vld [vmem:[#allocation267_spill] sm:$0xff]  ;;  %3338 = vmatmul.f32.vlgmr.msra.gmra.mxu0 %v11806_v18  ;;  %v12711_v56 = vsel %vm3978_vm5, %v6946_v26, %v17227_v28  ;;  %v17229_v3 = vunpack.i.l.bf16 %v12379_v39  ;;  %v6956_v32 = vunpack.i.h.bf16 %v12406_v41  ;;  %v12729_v26 = vsel %vm3054_vm4, %v6846_v21, %v6851_v24 }
 0x31e   : > { %17217 = vst [vmem:[#allocation199_spill] sm:$0xff] %v12675_v33  ;;  %3406 = vmatpush.msra.mxu3 %v17221_v7  ;;  %3361 = vmatmul.f32.vlgmr.msra.gmra.mxu1 %v11806_v18  ;;  %v12705_v7 = vsel %vm3054_vm4, %v17226_v6, %v6846_v21  ;;  %v6970_v6 = vunpack.i.l.bf16 %v12514_v14  ;;  %v17233_v28 = vunpack.i.l.bf16 %v11651_v15  ;;  %v17234_v15 = vunpack.i.h.bf16 %v17209_v59 }
 0x31f   : > { %17219 = vst [vmem:[#allocation150_spill] sm:$0xff] %v12684_v10  ;;  %3414 = vmatpush.msrb.mxu0 %v12705_v7  ;;  %3437 = vmatpush.msrb.mxu1 %v12729_v26  ;;  %v12756_v14 = vsel %vm3054_vm4, %v6845_v40, %v6850_v37 }
 0x320   : > { %17223 = vst [vmem:[#allocation260_spill] sm:$0xff] %v12692_v25  ;;  %v12721_v25 = vpop.f32.mrf.mxu3  ;;  %3407 = vmatmul.f32.vlgmr.msra.gmra.mxu3 %v11806_v18  ;;  %v12749_v21 = vsel %vm3054_vm4, %v6856_v31, %v17234_v15  ;;  %v7584_v15 = vld [vmem:[%s8014_s26 + $0x40] sm:$0xff] }
 0x321   : > { %17224 = vst [vmem:[#allocation263_spill] sm:$0xff] %v12694_v46  ;;  %v12719_v46 = vpop.f32.mrf.mxu2  ;;  %3384 = vmatmul.f32.vlgmr.msra.gmra.mxu2 %v11806_v18  ;;  %v12743_v18 = vsel %vm3054_vm4, %v6851_v24, %v6856_v31  ;;  %3483 = vmatpush.msrb.mxu3 %v12749_v21  ;;  %v12760_v24 = vsel %vm3054_vm4, %v6850_v37, %v6855_v53  ;;  %v17236_v37 = vunpack.i.h.bf16 %v12506_v1 }
 0x322   : > { %17225 = vst [vmem:[#allocation261_spill] sm:$0xff] %v12696_v5  ;;  %v12717_v5 = vsel %vm3978_vm5, %v6945_v38, %v17229_v3  ;;  %v12735_v38 = vsel %vm3054_vm4, %v17233_v28, %v6845_v40  ;;  %v6955_v28 = vunpack.i.l.bf16 %v12406_v41  ;;  %3460 = vmatpush.msrb.mxu2 %v12743_v18  ;;  %v17235_v3 = vunpack.i.l.bf16 %v17209_v59  ;;  %3438 = vmatpush.msrb.mxu1 %v12756_v14  ;;  %v12774_v40 = vld [vmem:[%s8014_s26 + $0x128] sm:$0xff] }
 0x323   : > { %17228 = vst [vmem:[#allocation262_spill] sm:$0xff] %v12711_v56  ;;  %3415 = vmatpush.msrb.mxu0 %v12735_v38  ;;  %v7272_v41 = vpack.i.bf16 %v12231_v48, %v12220_v8  ;;  %v7262_v48 = vpack.i.bf16 %v12205_v51, %v12189_v0  ;;  %v12791_v8 = vsel %vm3978_vm5, %v6971_v60, %v6976_v54  ;;  %v17243_v56 = vunpack.i.h.bf16 %v12557_v19 }
 0x324   : > { %17230 = vst [vmem:[#allocation197_spill] sm:$0xff] %v12717_v5  ;;  %v12766_v31 = vsel %vm3054_vm4, %v6855_v53, %v17235_v3  ;;  %v12783_v53 = vpop.permute.xlu2 %7003  ;;  %3461 = vmatpush.msrb.mxu2 %v12760_v24  ;;  %v17240_v3 = vunpack.i.l.bf16 %v12506_v1  ;;  %3439 = vmatpush.msrb.mxu1 %v12100_v23  ;;  %v12811_v0 = vsel %vm3978_vm5, %v6970_v6, %v6975_v9  ;;  %v17246_v1 = vunpack.i.l.bf16 %v12557_v19 }
 0x325   : > { %17231 = vst [vmem:[#allocation264_spill] sm:$0xff] %v12719_v46  ;;  %v12781_v46 = vsel %vm3978_vm5, %v17236_v37, %v6971_v60  ;;  %3484 = vmatpush.msrb.mxu3 %v12766_v31  ;;  %v12799_v37 = vpop.permute.xlu0 %7008  ;;  %3416 = vmatpush.msrb.mxu0 %v12614_v17  ;;  %v12807_v51 = vsel %vm3978_vm5, %v6976_v54, %v17243_v56  ;;  %v17249_v17 = vld [vmem:[#allocation271_spill] sm:$0xff]  ;;  %v17250_v23 = vunpack.i.h.bf16 %v12379_v39  ;;  %v17252_v56 = vunpack.i.h.bf16 %v12488_v47 }
 0x326   : > { %17232 = vst [vmem:[#allocation265_spill] sm:$0xff] %v12721_v25  ;;  %v7267_v25 = vpack.i.bf16 %v12774_v40, %v7584_v15  ;;  %v12797_v5 = vsel %vm3978_vm5, %v17240_v3, %v6970_v6  ;;  %v12817_v60 = vsel %vm3978_vm5, %v6975_v9, %v17246_v1  ;;  %v17248_v3 = vld [vmem:[#allocation270_spill] sm:$0xff]  ;;  %v17256_v1 = vld [vmem:[#allocation131_spill] sm:$0xff]  ;;  %7273 = vrot.lane.b32.xlu2 %v7272_v41, %s7866_s23  ;;  %v17264_v41 = vunpack.i.h.bf16 %v17137_v34 }
 0x327   : > { %17237 = vst [vmem:[#allocation266_spill] sm:$0xff] %v12781_v46  ;;  %3462 = vmatpush.msrb.mxu2 %v17248_v3  ;;  %3485 = vmatpush.msrb.mxu3 %v17249_v17  ;;  %v12825_v54 = vsel %vm3978_vm5, %v17250_v23, %v6956_v32  ;;  %v12831_v6 = vsel %vm3978_vm5, %v6956_v32, %v17252_v56  ;;  %v6641_v3 = vunpack.i.h.bf16 %v17256_v1  ;;  %v17257_v17 = vunpack.i.l.bf16 %v12488_v47  ;;  %v17259_v32 = vld [vmem:[#allocation40_spill] sm:$0xff]  ;;  %v12856_v47 = vpop.f32.mrf.mxu0 }
 0x328   : > { %17238 = vst [vmem:[#allocation267_spill] sm:$0xff] %v12783_v53  ;;  %7268 = vrot.lane.b32.xlu1 %v7267_v25, %s7865_s30  ;;  %v6646_v56 = vunpack.i.h.bf16 %v17259_v32  ;;  %7263 = vrot.lane.b32.xlu0 %v7262_v48, %s7866_s23  ;;  %v12860_v25 = vpop.f32.mrf.mxu1  ;;  %v17279_v46 = vld [vmem:[#allocation268_spill] sm:$0xff] }
 0x329   : > { %17239 = vst [vmem:[#allocation314_spill] sm:$0xff] %v12791_v8  ;;  %v12846_v23 = vsel %vm3978_vm5, %v6955_v28, %v17257_v17  ;;  %3417 = vmatpush.msrb.mxu0 %v7584_v15  ;;  %3440 = vmatpush.msrb.mxu1 %v12171_v43  ;;  %v12870_v43 = vsel %vm2809_vm3, %v17264_v41, %v6641_v3  ;;  %v6986_v15 = vunpack.i.h.bf16 %v12589_v63  ;;  %v6990_v41 = vunpack.i.l.bf16 %v12640_v16  ;;  %v17278_v8 = vld [vmem:[#allocation16_spill] sm:$0xff] }
 0x32a   : > { %17241 = vst [vmem:[#allocation315_spill] sm:$0xff] %v12797_v5  ;;  %3463 = vmatpush.msrb.mxu2 %v11989_v44  ;;  %3486 = vmatpush.msrb.mxu3 %v11968_v58  ;;  %v12872_v44 = vpop.f32.mrf.mxu3  ;;  %v6991_v58 = vunpack.i.h.bf16 %v12640_v16  ;;  %v12880_v48 = vsel %vm2809_vm3, %v6641_v3, %v6646_v56  ;;  %v6996_v16 = vunpack.i.h.bf16 %v12648_v22  ;;  %v17275_v5 = vunpack.i.h.bf16 %v12557_v19 }
 0x32b   : > { %17242 = vst [vmem:[#allocation316_spill] sm:$0xff] %v12799_v37  ;;  %3341 = vmatmul.f32.gmra.mxu0 %v11912_v30  ;;  %3364 = vmatmul.f32.gmra.mxu1 %v11912_v30 }
 0x32c   : > { %17244 = vst [vmem:[#allocation317_spill] sm:$0xff] %v12807_v51  ;;  %3410 = vmatmul.f32.gmra.mxu3 %v11912_v30  ;;  %3418 = vmatpush.msrb.mxu0 %v12870_v43  ;;  %v12941_v33 = vsel %vm3978_vm5, %v17275_v5, %v6986_v15  ;;  %v12945_v51 = vsel %vm3978_vm5, %v6986_v15, %v6991_v58 }
 0x32d   : > { %17245 = vst [vmem:[#allocation318_spill] sm:$0xff] %v12811_v0  ;;  %v17254_v0 = vunpack.i.l.bf16 %v12379_v39  ;;  %v6645_v39 = vunpack.i.l.bf16 %v17259_v32  ;;  %3441 = vmatpush.msrb.mxu1 %v12880_v48  ;;  %v12965_v15 = vsel %vm3978_vm5, %v6991_v58, %v6996_v16 }
 0x32e   : > { %17247 = vst [vmem:[#allocation319_spill] sm:$0xff] %v12817_v60  ;;  %v17274_v60 = vld [vmem:[#allocation102_spill] sm:$0xff] }
 0x32f   : > { %17251 = vst [vmem:[#allocation270_spill] sm:$0xff] %v12825_v54  ;;  %v12837_v9 = vsel %vm3978_vm5, %v17254_v0, %v6955_v28  ;;  %v6640_v0 = vunpack.i.l.bf16 %v17256_v1  ;;  %v12862_v28 = vpop.f32.mrf.mxu2  ;;  %3387 = vmatmul.f32.gmra.mxu2 %v11912_v30  ;;  %v17266_v1 = vld [vmem:[#allocation47_spill] sm:$0xff]  ;;  %v17268_v30 = vunpack.i.l.bf16 %v17137_v34  ;;  %v17273_v54 = vld [vmem:[#allocation233_spill] sm:$0xff] }
 0x330   : > { %17253 = vst [vmem:[#allocation271_spill] sm:$0xff] %v12831_v6  ;;  %v12849_v6 = vpop.permute.xlu1 %7013  ;;  %v17267_v17 = vunpack.i.h.bf16 %v17266_v1  ;;  %v17271_v34 = vunpack.i.l.bf16 %v17266_v1 }
 0x331   : > { %17255 = vst [vmem:[#allocation320_spill] sm:$0xff] %v12837_v9  ;;  %v12896_v3 = vsel %vm2809_vm3, %v17268_v30, %v6640_v0 }
 0x332   : > { %17258 = vst [vmem:[#allocation131_spill] sm:$0xff] %v12846_v23  ;;  %v12886_v32 = vsel %vm2809_vm3, %v6646_v56, %v17267_v17  ;;  %v12900_v56 = vsel %vm2809_vm3, %v6640_v0, %v6645_v39  ;;  %v12902_v17 = vpop.permute.xlu2 %7018  ;;  %3419 = vmatpush.msrb.mxu0 %v12896_v3  ;;  %v12912_v30 = vsel %vm2809_vm3, %v6645_v39, %v17271_v34  ;;  %v12927_v23 = vld [vmem:[%s8006_s19 + $0xa8] sm:$0xff]  ;;  %v17280_v34 = vunpack.i.l.bf16 %v12557_v19 }
 0x333   : > { %17260 = vst [vmem:[#allocation40_spill] sm:$0xff] %v12849_v6  ;;  %3464 = vmatpush.msrb.mxu2 %v12886_v32  ;;  %3442 = vmatpush.msrb.mxu1 %v12900_v56  ;;  %v7277_v39 = vpack.i.bf16 %v12524_v50, %v12532_v36 }
 0x334   : > { %17261 = vst [vmem:[#allocation321_spill] sm:$0xff] %v12856_v47  ;;  %v12919_v47 = vpop.permute.xlu0 %7023  ;;  %3420 = vmatpush.msrb.mxu0 %v17274_v60 }
 0x335   : > { %17262 = vst [vmem:[#allocation322_spill] sm:$0xff] %v12860_v25  ;;  %v12915_v25 = vld [vmem:[%s8014_s26 + $0x68] sm:$0xff]  ;;  %3465 = vmatpush.msrb.mxu2 %v12912_v30  ;;  %3443 = vmatpush.msrb.mxu1 %v17278_v8  ;;  %v17289_v58 = vunpack.i.l.bf16 %v12919_v47 }
 0x336   : > { %17263 = vst [vmem:[#allocation323_spill] sm:$0xff] %v12862_v28  ;;  %v17270_v28 = vld [vmem:[#allocation190_spill] sm:$0xff]  ;;  %v7287_v0 = vpack.i.bf16 %v12606_v2, %v12915_v25  ;;  %7278 = vrot.lane.b32.xlu0 %v7277_v39, %s7865_s30 }
 0x337   : > { %17265 = vst [vmem:[#allocation324_spill] sm:$0xff] %v12872_v44  ;;  %v6985_v44 = vunpack.i.l.bf16 %v12589_v63  ;;  %v6995_v63 = vunpack.i.l.bf16 %v12648_v22  ;;  %3487 = vmatpush.msrb.mxu3 %v17270_v28  ;;  %v12924_v22 = vld [vmem:[%s8006_s19 + $0x168] sm:$0xff]  ;;  %3466 = vmatpush.msrb.mxu2 %v17279_v46  ;;  %v17296_v39 = vld [vmem:[#allocation246_spill] sm:$0xff] }
 0x338   : > { %17269 = vst [vmem:[#allocation47_spill] sm:$0xff] %v12902_v17  ;;  %v7282_v1 = vpack.i.bf16 %v12927_v23, %v12924_v22  ;;  %v12959_v5 = vpop.permute.xlu1 %7028  ;;  %7288 = vrot.lane.b32.xlu2 %v7287_v0, %s7865_s30  ;;  %v17288_v0 = vld [vmem:[#allocation274_spill] sm:$0xff] }
 0x339   : > { %17272 = vst [vmem:[#allocation190_spill] sm:$0xff] %v12919_v47  ;;  %3488 = vmatpush.msrb.mxu3 %v17273_v54  ;;  %v12953_v9 = vsel %vm3978_vm5, %v17280_v34, %v6985_v44  ;;  %v12957_v37 = vsel %vm3978_vm5, %v6985_v44, %v6990_v41  ;;  %v12969_v19 = vsel %vm3978_vm5, %v6990_v41, %v6995_v63  ;;  %v7000_v34 = vunpack.i.l.bf16 %v12684_v10  ;;  %v17297_v44 = vld [vmem:[#allocation159_spill] sm:$0xff] }
 0x33a   : > { %17276 = vst [vmem:[#allocation233_spill] sm:$0xff] %v12941_v33  ;;  %v17284_v33 = vld [vmem:[#allocation269_spill] sm:$0xff]  ;;  %7283 = vrot.lane.b32.xlu1 %v7282_v1, %s7866_s23  ;;  %3444 = vmatpush.msrb.mxu1 %v17288_v0  ;;  %v17292_v1 = vld [vmem:[#allocation275_spill] sm:$0xff]  ;;  %v17298_v47 = vunpack.i.h.bf16 %v12684_v10 }
 0x33b   : > { %17277 = vst [vmem:[#allocation102_spill] sm:$0xff] %v12945_v51  ;;  %3489 = vmatpush.msrb.mxu3 %v17284_v33  ;;  %3467 = vmatpush.msrb.mxu2 %v17292_v1  ;;  %v12999_v51 = vpop.permute.xlu2 %7033 }
 0x33c   : > { %17281 = vst [vmem:[#allocation16_spill] sm:$0xff] %v12953_v9  ;;  %v17290_v9 = vunpack.i.h.bf16 %v12783_v53  ;;  %3445 = vmatpush.msrb.mxu1 %v11949_v13  ;;  %v17301_v13 = vld [vmem:[#allocation278_spill] sm:$0xff] }
 0x33d   : > { %17282 = vst [vmem:[#allocation268_spill] sm:$0xff] %v12957_v37  ;;  %v17287_v37 = vld [vmem:[#allocation273_spill] sm:$0xff]  ;;  %3468 = vmatpush.msrb.mxu2 %v11953_v55  ;;  %v13009_v55 = vsel %vm3978_vm5, %v6996_v16, %v17298_v47  ;;  %v17302_v47 = vld [vmem:[#allocation60_spill] sm:$0xff]  ;;  %v17303_v16 = vunpack.i.l.bf16 %v12902_v17  ;;  %v17324_v17 = vunpack.i.l.bf16 %v12999_v51 }
 0x33e   : > { %17283 = vst [vmem:[#allocation325_spill] sm:$0xff] %v12959_v5  ;;  %3421 = vmatpush.msrb.mxu0 %v17287_v37  ;;  %v12983_v41 = vsel %vm3978_vm5, %v17290_v9, %v17289_v58  ;;  %v12995_v9 = vld [vmem:[%s8014_s26 + $0x150] sm:$0xff]  ;;  %3446 = vmatpush.msrb.mxu1 %v17297_v44  ;;  %v13019_v44 = vld [vmem:[%s8006_s19 + $0x160] sm:$0xff] }
 0x33f   : > { %17285 = vst [vmem:[#allocation269_spill] sm:$0xff] %v12965_v15  ;;  %v17294_v15 = vld [vmem:[#allocation144_spill] sm:$0xff]  ;;  %v7302_v58 = vpack.i.bf16 %v12995_v9, %v12185_v49  ;;  %3469 = vmatpush.msrb.mxu2 %v17301_v13  ;;  %v7292_v10 = vpack.i.bf16 %v13019_v44, %v12596_v11 }
 0x340   : > { %17286 = vst [vmem:[#allocation326_spill] sm:$0xff] %v12969_v19  ;;  %v17293_v19 = vld [vmem:[#allocation276_spill] sm:$0xff]  ;;  %3422 = vmatpush.msrb.mxu0 %v17294_v15  ;;  %3447 = vmatpush.msrb.mxu1 %v17302_v47  ;;  %v17307_v47 = vunpack.i.l.bf16 %v12783_v53  ;;  %v7601_v53 = vld [vmem:[%s8006_s19 + $0x98] sm:$0xff] }
 0x341   : > { %17291 = vst [vmem:[#allocation273_spill] sm:$0xff] %v12983_v41  ;;  %3490 = vmatpush.msrb.mxu3 %v17293_v19  ;;  %v7297_v41 = vpack.i.bf16 %v12915_v25, %v12774_v40  ;;  %3470 = vmatpush.msrb.mxu2 %v11278_v12  ;;  %v17309_v12 = vld [vmem:[#allocation154_spill] sm:$0xff] }
 0x342   : > { %17295 = vst [vmem:[#allocation274_spill] sm:$0xff] %v12999_v51  ;;  %3423 = vmatpush.msrb.mxu0 %v17296_v39  ;;  %7303 = vrot.lane.b32.xlu2 %v7302_v58, %s7866_s23  ;;  %v17311_v58 = vld [vmem:[#allocation203_spill] sm:$0xff] }
 0x343   : > { %3491 = vmatpush.msrb.mxu3 %v11986_v57  ;;  %17299 = vst [vmem:[#allocation275_spill] sm:$0xff] %v13009_v55  ;;  %v13013_v57 = vsel %vm3978_vm5, %v6995_v63, %v7000_v34  ;;  %v17304_v63 = vunpack.i.h.bf16 %v12849_v6  ;;  %7298 = vrot.lane.b32.xlu1 %v7297_v41, %s7866_s23  ;;  %v7591_v41 = vld [vmem:[%s8006_s19 + $0x140] sm:$0xff]  ;;  %v17332_v51 = vld [vmem:[#allocation287_spill] sm:$0xff] }
 0x344   : > { %17300 = vst [vmem:[#allocation276_spill] sm:$0xff] %v13013_v57  ;;  %3424 = vmatpush.msrb.mxu0 %v12034_v27  ;;  %v13035_v57 = vpop.permute.xlu1 %7043  ;;  %7293 = vrot.lane.b32.xlu0 %v7292_v10, %s7865_s30  ;;  %v17306_v27 = vld [vmem:[#allocation202_spill] sm:$0xff]  ;;  %v13051_v10 = vpop.permute.xlu0 %7038  ;;  %v13084_v55 = vld [vmem:[%s8014_s26 + $0x160] sm:$0xff] }
 0x345   : > { %3492 = vmatpush.msrb.mxu3 %v12011_v4  ;;  %v13031_v49 = vsel %vm4267_vm6, %v17304_v63, %v17303_v16  ;;  %v13045_v16 = vsel %vm3978_vm5, %v7000_v34, %v17307_v47  ;;  %3448 = vmatpush.msrb.mxu1 %v17309_v12  ;;  %17312 = vst [vmem:[#allocation60_spill] sm:$0xff] %v13051_v10  ;;  %v7592_v63 = vld [vmem:[%s8006_s19 + $0x150] sm:$0xff]  ;;  %v13055_v34 = vpop.f32.mrf.mxu0  ;;  %v7593_v12 = vld [vmem:[%s8006_s19 + $0x158] sm:$0xff]  ;;  %v13090_v10 = vpop.f32.mrf.mxu2 }
 0x346   : > { %17305 = vst [vmem:[#allocation144_spill] sm:$0xff] %v13031_v49  ;;  %3425 = vmatpush.msrb.mxu0 %v17306_v27  ;;  %v7597_v47 = vld [vmem:[%s8006_s19 + $0x90] sm:$0xff]  ;;  %v17322_v49 = vld [vmem:[#allocation283_spill] sm:$0xff] }
 0x347   : > { %3493 = vmatpush.msrb.mxu3 %v12046_v42  ;;  %17308 = vst [vmem:[#allocation246_spill] sm:$0xff] %v13045_v16  ;;  %v17310_v42 = vld [vmem:[#allocation250_spill] sm:$0xff]  ;;  %3449 = vmatpush.msrb.mxu1 %v12346_v61  ;;  %v13065_v61 = vld [vmem:[%s8014_s26 + $0xa0] sm:$0xff]  ;;  %v13081_v16 = vld [vmem:[%s8014_s26 + $0x158] sm:$0xff] }
 0x348   : > { %3471 = vmatpush.msrb.mxu2 %v17310_v42  ;;  %3426 = vmatpush.msrb.mxu0 %v7591_v41  ;;  %17313 = vst [vmem:[#allocation202_spill] sm:$0xff] %v13055_v34  ;;  %v7594_v42 = vld [vmem:[%s8006_s19 + $0x80] sm:$0xff]  ;;  %v13071_v34 = vpop.permute.xlu2 %7048  ;;  %v13076_v27 = vld [vmem:[%s8014_s26 + $0x90] sm:$0xff] }
 0x349   : > { %3494 = vmatpush.msrb.mxu3 %v17311_v58  ;;  %v13062_v58 = vld [vmem:[%s8014_s26 + $0x98] sm:$0xff]  ;;  %17314 = vst [vmem:[#allocation154_spill] sm:$0xff] %v13065_v61  ;;  %3450 = vmatpush.msrb.mxu1 %v12349_v45  ;;  %v13092_v45 = vpop.f32.mrf.mxu3 }
 0x34a   : > { %3472 = vmatpush.msrb.mxu2 %v7592_v63  ;;  %3427 = vmatpush.msrb.mxu0 %v7594_v42  ;;  %v7317_v41 = vpack.i.bf16 %v13065_v61, %v13062_v58  ;;  %v13069_v63 = vpop.f32.mrf.mxu1  ;;  %17317 = vst [vmem:[#allocation203_spill] sm:$0xff] %v13084_v55  ;;  %v7307_v61 = vpack.i.bf16 %v13084_v55, %v13081_v16  ;;  %v17325_v55 = vunpack.i.h.bf16 %v12959_v5 }
 0x34b   : > { %3495 = vmatpush.msrb.mxu3 %v7593_v12  ;;  %17315 = vst [vmem:[#allocation250_spill] sm:$0xff] %v13069_v63  ;;  %v17316_v12 = vld [vmem:[#allocation244_spill] sm:$0xff]  ;;  %v17318_v63 = vld [vmem:[#allocation281_spill] sm:$0xff] }
 0x34c   : > { %3473 = vmatpush.msrb.mxu2 %v7597_v47  ;;  %v7312_v42 = vpack.i.bf16 %v13076_v27, %v17316_v12  ;;  %3428 = vmatpush.msrb.mxu0 %v17318_v63  ;;  %17319 = vst [vmem:[#allocation244_spill] sm:$0xff] %v13090_v10  ;;  %v17321_v47 = vld [vmem:[#allocation282_spill] sm:$0xff]  ;;  %v17323_v12 = vld [vmem:[#allocation284_spill] sm:$0xff]  ;;  %v13106_v63 = vpop.permute.xlu1 %7058  ;;  %v17330_v10 = vld [vmem:[#allocation285_spill] sm:$0xff] }
 0x34d   : > { %3496 = vmatpush.msrb.mxu3 %v7601_v53  ;;  %17320 = vst [vmem:[#allocation281_spill] sm:$0xff] %v13092_v45  ;;  %3451 = vmatpush.msrb.mxu1 %v17321_v47  ;;  %v13104_v53 = vsel %vm3978_vm5, %v17325_v55, %v17324_v17  ;;  %v17328_v47 = vld [vmem:[#allocation272_spill] sm:$0xff]  ;;  %v17329_v45 = vld [vmem:[#allocation175_spill] sm:$0xff]  ;;  %v13120_v17 = vld [vmem:[%s15870_s4 + $0x10] sm:$0xff] }
 0x34e   : > { %3474 = vmatpush.msrb.mxu2 %v17322_v49  ;;  %7318 = vrot.lane.b32.xlu2 %v7317_v41, %s7866_s23  ;;  %17326 = vst [vmem:[#allocation282_spill] sm:$0xff] %v13104_v53  ;;  %v17331_v41 = vld [vmem:[#allocation286_spill] sm:$0xff]  ;;  %v6875_v5 = vunpack.i.l.bf16 %v17329_v45  ;;  %v17333_v55 = vld [vmem:[#allocation288_spill] sm:$0xff]  ;;  %v17342_v4 = vunpack.i.h.bf16 %v17328_v47 }
 0x34f   : > { %3497 = vmatpush.msrb.mxu3 %v17323_v12  ;;  %17327 = vst [vmem:[#allocation283_spill] sm:$0xff] %v13106_v63  ;;  %7313 = vrot.lane.b32.xlu1 %v7312_v42, %s7866_s23  ;;  %v6876_v12 = vunpack.i.h.bf16 %v17329_v45  ;;  %v17340_v49 = vld [vmem:[#allocation200_spill] sm:$0xff] }
 0x350   : > { %7308 = vrot.lane.b32.xlu0 %v7307_v61, %s7866_s23  ;;  %3429 = vmatpush.msrb.mxu0 %v17330_v10  ;;  %v13124_v61 = vpop.permute.xlu0 %7053  ;;  %v17335_v10 = vld [vmem:[#allocation103_spill] sm:$0xff]  ;;  %v17341_v53 = vunpack.i.h.bf16 %v17340_v49  ;;  %v13147_v6 = vpop.permute.xlu2 %7063 }
 0x351   : > { %3452 = vmatpush.msrb.mxu1 %v17331_v41  ;;  %3475 = vmatpush.msrb.mxu2 %v17332_v51  ;;  %17334 = vst [vmem:[#allocation284_spill] sm:$0xff] %v13124_v61  ;;  %v17336_v42 = vunpack.i.h.bf16 %v17335_v10  ;;  %v17337_v51 = vunpack.i.h.bf16 %v17209_v59  ;;  %v13134_v41 = vpop.f32.mrf.mxu0  ;;  %v3064_v13 = vsel %vm3054_vm4, %v6876_v12, %v17342_v4 }
 0x352   : > { %3498 = vmatpush.msrb.mxu3 %v17333_v55  ;;  %3430 = vmatmul.f32.vlgmr.msrb.gmra.mxu0 %v13120_v17  ;;  %17338 = vst [vmem:[#allocation272_spill] sm:$0xff] %v13134_v41  ;;  %v17339_v55 = vld [vmem:[#allocation64_spill] sm:$0xff]  ;;  %v3066_v61 = vsel %vm3054_vm4, %v17341_v53, %v6876_v12  ;;  %v13145_v63 = vpop.f32.mrf.mxu1 }
 0x353   : > { %3453 = vmatmul.f32.vlgmr.msrb.gmra.mxu1 %v13120_v17  ;;  %3476 = vmatmul.f32.vlgmr.msrb.gmra.mxu2 %v13120_v17  ;;  %v3070_v45 = vsel %vm3054_vm4, %v17337_v51, %v17336_v42  ;;  %17343 = vst [vmem:[#allocation175_spill] sm:$0xff] %v13145_v63  ;;  %v17344_v42 = vunpack.i.l.bf16 %v17335_v10  ;;  %v17345_v51 = vunpack.i.l.bf16 %v17209_v59  ;;  %v17347_v12 = vld [vmem:[#allocation280_spill] sm:$0xff]  ;;  %v13170_v10 = vld [vmem:[%s8014_s26 + $0x148] sm:$0xff] }
 0x354   : > { %3499 = vmatmul.f32.vlgmr.msrb.gmra.mxu3 %v13120_v17  ;;  %3506 = vmatpush.msra.mxu0 %v3070_v45  ;;  %v17346_v45 = vunpack.i.l.bf16 %v17340_v49  ;;  %v7327_v49 = vpack.i.bf16 %v12995_v9, %v13170_v10  ;;  %v17382_v63 = vld [vmem:[#allocation301_spill] sm:$0xff] }
 0x355   : > { %3529 = vmatpush.msra.mxu1 %v17339_v55  ;;  %3552 = vmatpush.msra.mxu2 %v3066_v61  ;;  %v3069_v53 = vsel %vm3054_vm4, %v17345_v51, %v17344_v42  ;;  %v17348_v55 = vunpack.i.l.bf16 %v17328_v47  ;;  %v13165_v61 = vld [vmem:[%s8014_s26 + $0x88] sm:$0xff]  ;;  %v13174_v42 = vpop.f32.mrf.mxu2  ;;  %v13176_v51 = vpop.f32.mrf.mxu3 }
 0x356   : > { %3575 = vmatpush.msra.mxu3 %v3064_v13  ;;  %v3065_v4 = vsel %vm3054_vm4, %v17346_v45, %v6875_v5  ;;  %3507 = vmatpush.msra.mxu0 %v3069_v53  ;;  %v7332_v59 = vpack.i.bf16 %v13165_v61, %v13081_v16  ;;  %17349 = vst [vmem:[#allocation285_spill] sm:$0xff] %v13174_v42  ;;  %v7605_v53 = vld [vmem:[%s8014_s26 + $0x60] sm:$0xff]  ;;  %v17362_v42 = vld [vmem:[#allocation239_spill] sm:$0xff] }
 0x357   : > { %3530 = vmatpush.msra.mxu1 %v17347_v12  ;;  %v3063_v13 = vsel %vm3054_vm4, %v6875_v5, %v17348_v55  ;;  %17350 = vst [vmem:[#allocation286_spill] sm:$0xff] %v13176_v51  ;;  %3553 = vmatpush.msra.mxu2 %v3065_v4  ;;  %v7606_v45 = vld [vmem:[%s8014_s26 + $0x120] sm:$0xff]  ;;  %v13181_v5 = vpop.permute.xlu1 %7073  ;;  %v17361_v55 = vld [vmem:[#allocation241_spill] sm:$0xff] }
 0x358   : > { %3576 = vmatpush.msra.mxu3 %v3063_v13  ;;  %v7322_v12 = vpack.i.bf16 %v7605_v53, %v7606_v45  ;;  %3508 = vmatpush.msra.mxu0 %v7606_v45  ;;  %v13190_v4 = vpop.permute.xlu0 %7068  ;;  %v17354_v13 = vld [vmem:[#allocation219_spill] sm:$0xff] }
 0x359   : > { %3531 = vmatpush.msra.mxu1 %v12774_v40  ;;  %3554 = vmatpush.msra.mxu2 %v12532_v36  ;;  %17351 = vst [vmem:[#allocation287_spill] sm:$0xff] %v13190_v4  ;;  %v13199_v36 = vpop.f32.mrf.mxu0  ;;  %v17360_v40 = vld [vmem:[#allocation237_spill] sm:$0xff] }
 0x35a   : > { %3577 = vmatpush.msra.mxu3 %v12524_v50  ;;  %7333 = vrot.lane.b32.xlu2 %v7332_v59, %s7865_s30  ;;  %v13196_v50 = vld [vmem:[%s15870_s4 + $0x18] sm:$0xff]  ;;  %17352 = vst [vmem:[#allocation288_spill] sm:$0xff] %v13199_v36  ;;  %v17355_v59 = vld [vmem:[#allocation226_spill] sm:$0xff] }
 0x35b   : > { %7328 = vrot.lane.b32.xlu1 %v7327_v49, %s7865_s30  ;;  %7323 = vrot.lane.b32.xlu0 %v7322_v12, %s7865_s30  ;;  %v17356_v49 = vld [vmem:[#allocation236_spill] sm:$0xff]  ;;  %v17359_v12 = vld [vmem:[#allocation247_spill] sm:$0xff] }
 0x35c   : > { %3509 = vmatpush.msra.mxu0 %v7605_v53  ;;  %3532 = vmatpush.msra.mxu1 %v12915_v25  ;;  %v13206_v25 = vpop.f32.mrf.mxu1 }
 0x35d   : > { %3555 = vmatpush.msra.mxu2 %v12606_v2  ;;  %3578 = vmatpush.msra.mxu3 %v12596_v11  ;;  %v484_v2 = vld [vmem:[%s8014_s26 + $0x170] sm:$0xff]  ;;  %17353 = vst [vmem:[#allocation103_spill] sm:$0xff] %v13206_v25  ;;  %v13208_v11 = vpop.permute.xlu2 %7078  ;;  %v13214_v53 = vpop.f32.mrf.mxu2  ;;  %v17363_v25 = vld [vmem:[#allocation248_spill] sm:$0xff] }
 0x35e   : > { %3433 = vmatmul.f32.gmra.mxu0 %v13196_v50  ;;  %3456 = vmatmul.f32.gmra.mxu1 %v13196_v50  ;;  %17357 = vst [vmem:[#allocation64_spill] sm:$0xff] %v13214_v53  ;;  %v13216_v45 = vpop.f32.mrf.mxu3  ;;  %v7347_v51 = vpack.i.bf16 %v17361_v55, %v484_v2  ;;  %v17376_v53 = vld [vmem:[#allocation118_spill] sm:$0xff] }
 0x35f   : > { %3479 = vmatmul.f32.gmra.mxu2 %v13196_v50  ;;  %3502 = vmatmul.f32.gmra.mxu3 %v13196_v50  ;;  %17358 = vst [vmem:[#allocation200_spill] sm:$0xff] %v13216_v45  ;;  %v17365_v45 = vunpack.i.h.bf16 %v13147_v6  ;;  %v13237_v55 = vpop.permute.xlu1 %7088 }
 0x360   : > { %3510 = vmatpush.msra.mxu0 %v17354_v13  ;;  %3533 = vmatpush.msra.mxu1 %v17355_v59  ;;  %v7342_v13 = vpack.i.bf16 %v13165_v61, %v13170_v10  ;;  %v7337_v59 = vpack.i.bf16 %v13062_v58, %v13076_v27 }
 0x361   : > { %3556 = vmatpush.msra.mxu2 %v17356_v49  ;;  %3579 = vmatpush.msra.mxu3 %v17359_v12  ;;  %v17364_v49 = vunpack.i.l.bf16 %v13190_v4 }
 0x362   : > { %3511 = vmatpush.msra.mxu0 %v17360_v40  ;;  %3534 = vmatpush.msra.mxu1 %v17362_v42  ;;  %v16264_v40 = vunpack.i.l.bf16 %v13181_v5  ;;  %v16265_v42 = vunpack.i.h.bf16 %v13190_v4 }
 0x363   : > { %3557 = vmatpush.msra.mxu2 %v17363_v25  ;;  %v13233_v12 = vsel %vm4267_vm6, %v17365_v45, %v17364_v49  ;;  %v17367_v25 = vld [vmem:[#allocation249_spill] sm:$0xff]  ;;  %7348 = vrot.lane.b32.xlu2 %v7347_v51, %s7866_s23  ;;  %v17369_v49 = vld [vmem:[#allocation294_spill] sm:$0xff]  ;;  %v17373_v51 = vld [vmem:[#allocation296_spill] sm:$0xff] }
 0x364   : > { %17366 = vst [vmem:[#allocation280_spill] sm:$0xff] %v13233_v12  ;;  %3580 = vmatpush.msra.mxu3 %v17367_v25  ;;  %3512 = vmatpush.msra.mxu0 %v12311_v52  ;;  %v17368_v45 = vld [vmem:[#allocation293_spill] sm:$0xff]  ;;  %v13255_v52 = vsel %vm4267_vm6, %v16265_v42, %v16264_v40  ;;  %v13267_v25 = vpop.f32.mrf.mxu1  ;;  %v17377_v40 = vld [vmem:[#allocation299_spill] sm:$0xff]  ;;  %v17378_v42 = vld [vmem:[#allocation300_spill] sm:$0xff] }
 0x365   : > { %3535 = vmatpush.msra.mxu1 %v12315_v20  ;;  %3558 = vmatpush.msra.mxu2 %v12319_v29  ;;  %17370 = vst [vmem:[#allocation219_spill] sm:$0xff] %v13255_v52  ;;  %v13257_v20 = vpop.f32.mrf.mxu0  ;;  %v13259_v29 = vpop.permute.xlu0 %7083  ;;  %v17384_v52 = vld [vmem:[#allocation306_spill] sm:$0xff] }
 0x366   : > { %3581 = vmatpush.msra.mxu3 %v12327_v35  ;;  %7343 = vrot.lane.b32.xlu1 %v7342_v13, %s7866_s23  ;;  %17371 = vst [vmem:[#allocation226_spill] sm:$0xff] %v13257_v20  ;;  %v17372_v35 = vld [vmem:[#allocation295_spill] sm:$0xff]  ;;  %v13264_v13 = vld [vmem:[%s8014_s26 + $0x168] sm:$0xff]  ;;  %v13275_v36 = vpop.f32.mrf.mxu2 }
 0x367   : > { %7338 = vrot.lane.b32.xlu0 %v7337_v59, %s7865_s30  ;;  %3513 = vmatpush.msra.mxu0 %v17368_v45  ;;  %v460_v59 = vld [vmem:[%s8014_s26 + $0xb0] sm:$0xff]  ;;  %17374 = vst [vmem:[#allocation236_spill] sm:$0xff] %v13267_v25  ;;  %v13269_v45 = vpop.permute.xlu2 %7093  ;;  %v7362_v41 = vpack.i.bf16 %v484_v2, %v13264_v13  ;;  %v17383_v25 = vld [vmem:[#allocation289_spill] sm:$0xff]  ;;  %v17390_v2 = vld [vmem:[#allocation163_spill] sm:$0xff] }
 0x368   : > { %3536 = vmatpush.msra.mxu1 %v17369_v49  ;;  %3559 = vmatpush.msra.mxu2 %v17372_v35  ;;  %v17375_v49 = vld [vmem:[#allocation51_spill] sm:$0xff]  ;;  %17379 = vst [vmem:[#allocation247_spill] sm:$0xff] %v13275_v36  ;;  %v13277_v35 = vpop.f32.mrf.mxu3  ;;  %v7352_v20 = vpack.i.bf16 %v17383_v25, %v460_v59  ;;  %v17392_v25 = vld [vmem:[#allocation221_spill] sm:$0xff]  ;;  %v7608_v36 = vld [vmem:[%s8006_s19 + $0x170] sm:$0xff] }
 0x369   : > { %3582 = vmatpush.msra.mxu3 %v17373_v51  ;;  %3514 = vmatpush.msra.mxu0 %v17375_v49  ;;  %17380 = vst [vmem:[#allocation237_spill] sm:$0xff] %v13277_v35  ;;  %v17381_v51 = vld [vmem:[#allocation132_spill] sm:$0xff]  ;;  %v17388_v49 = vld [vmem:[#allocation57_spill] sm:$0xff] }
 0x36a   : > { %3537 = vmatpush.msra.mxu1 %v17376_v53  ;;  %3560 = vmatpush.msra.mxu2 %v17377_v40  ;;  %v17385_v53 = vld [vmem:[#allocation309_spill] sm:$0xff]  ;;  %v13285_v40 = vpop.permute.xlu1 %7103 }
 0x36b   : > { %3583 = vmatpush.msra.mxu3 %v17378_v42  ;;  %3515 = vmatpush.msra.mxu0 %v17381_v51  ;;  %17386 = vst [vmem:[#allocation241_spill] sm:$0xff] %v13285_v40  ;;  %v17387_v42 = vld [vmem:[#allocation148_spill] sm:$0xff]  ;;  %v16271_v51 = vunpack.i.l.bf16 %v13285_v40 }
 0x36c   : > { %3538 = vmatpush.msra.mxu1 %v17382_v63  ;;  %3561 = vmatpush.msra.mxu2 %v17384_v52  ;;  %v17389_v63 = vld [vmem:[#allocation162_spill] sm:$0xff]  ;;  %v17391_v52 = vld [vmem:[#allocation61_spill] sm:$0xff] }
 0x36d   : > { %3584 = vmatpush.msra.mxu3 %v17385_v53  ;;  %3516 = vmatpush.msra.mxu0 %v17387_v42  ;;  %v17393_v53 = vld [vmem:[#allocation56_spill] sm:$0xff]  ;;  %v17394_v42 = vld [vmem:[#allocation227_spill] sm:$0xff]  ;;  %v13302_v35 = vpop.f32.mrf.mxu0 }
 0x36e   : > { %3539 = vmatpush.msra.mxu1 %v17388_v49  ;;  %3562 = vmatpush.msra.mxu2 %v17389_v63  ;;  %v13300_v49 = vld [vmem:[%s8014_s26 + $0xa8] sm:$0xff]  ;;  %17395 = vst [vmem:[#allocation239_spill] sm:$0xff] %v13302_v35  ;;  %v13304_v63 = vpop.permute.xlu0 %7098  ;;  %v13327_v40 = vpop.f32.mrf.mxu2 }
 0x36f   : > { %3585 = vmatpush.msra.mxu3 %v17390_v2  ;;  %7363 = vrot.lane.b32.xlu2 %v7362_v41, %s7865_s30  ;;  %v17396_v41 = vld [vmem:[#allocation313_spill] sm:$0xff]  ;;  %v7367_v35 = vpack.i.bf16 %v460_v59, %v13300_v49  ;;  %17402 = vst [vmem:[#allocation293_spill] sm:$0xff] %v13327_v40  ;;  %v17410_v59 = vld [vmem:[#allocation170_spill] sm:$0xff] }
 0x370   : > { %7353 = vrot.lane.b32.xlu0 %v7352_v20, %s7866_s23  ;;  %3517 = vmatpush.msra.mxu0 %v17391_v52  ;;  %v17397_v20 = vld [vmem:[#allocation179_spill] sm:$0xff]  ;;  %v17398_v52 = vunpack.i.h.bf16 %v13269_v45  ;;  %v13329_v4 = vpop.f32.mrf.mxu3  ;;  %v17421_v40 = vld [vmem:[#allocation245_spill] sm:$0xff] }
 0x371   : > { %3540 = vmatpush.msra.mxu1 %v17392_v25  ;;  %3563 = vmatpush.msra.mxu2 %v17393_v53  ;;  %v7357_v2 = vpack.i.bf16 %v17397_v20, %v17396_v41  ;;  %v13318_v53 = vpop.f32.mrf.mxu1  ;;  %17403 = vst [vmem:[#allocation294_spill] sm:$0xff] %v13329_v4  ;;  %v17411_v4 = vld [vmem:[#allocation171_spill] sm:$0xff] }
 0x372   : > { %3586 = vmatpush.msra.mxu3 %v17394_v42  ;;  %3518 = vmatpush.msra.mxu0 %v13019_v44  ;;  %v13316_v25 = vsel %vm3978_vm5, %v17398_v52, %v16271_v51  ;;  %17400 = vst [vmem:[#allocation249_spill] sm:$0xff] %v13318_v53  ;;  %v13320_v42 = vpop.permute.xlu2 %7108  ;;  %v17401_v44 = vld [vmem:[#allocation304_spill] sm:$0xff]  ;;  %v17404_v52 = vld [vmem:[#allocation257_spill] sm:$0xff]  ;;  %v17405_v51 = vld [vmem:[#allocation303_spill] sm:$0xff] }
 0x373   : > { %3541 = vmatpush.msra.mxu1 %v12924_v22  ;;  %17399 = vst [vmem:[#allocation248_spill] sm:$0xff] %v13316_v25  ;;  %3564 = vmatpush.msra.mxu2 %v7608_v36  ;;  %v7609_v22 = vld [vmem:[%s8006_s19 + $0xa0] sm:$0xff]  ;;  %v17406_v53 = vld [vmem:[#allocation209_spill] sm:$0xff] }
 0x374   : > { %3587 = vmatpush.msra.mxu3 %v17401_v44  ;;  %3519 = vmatpush.msra.mxu0 %v7609_v22  ;;  %v17407_v36 = vld [vmem:[#allocation149_spill] sm:$0xff]  ;;  %v17408_v44 = vld [vmem:[#allocation254_spill] sm:$0xff]  ;;  %v13337_v22 = vpop.permute.xlu1 %7118 }
 0x375   : > { %3542 = vmatpush.msra.mxu1 %v12927_v23  ;;  %3565 = vmatpush.msra.mxu2 %v17404_v52  ;;  %v17409_v23 = vld [vmem:[#allocation240_spill] sm:$0xff]  ;;  %v17412_v52 = vld [vmem:[#allocation185_spill] sm:$0xff] }
 0x376   : > { %3588 = vmatpush.msra.mxu3 %v17405_v51  ;;  %7358 = vrot.lane.b32.xlu1 %v7357_v2, %s7865_s30  ;;  %v17413_v51 = vld [vmem:[#allocation255_spill] sm:$0xff]  ;;  %v13347_v2 = vpop.f32.mrf.mxu0 }
 0x377   : > { %3520 = vmatpush.msra.mxu0 %v17406_v53  ;;  %3543 = vmatpush.msra.mxu1 %v17407_v36  ;;  %17414 = vst [vmem:[#allocation295_spill] sm:$0xff] %v13347_v2  ;;  %v13349_v53 = vpop.permute.xlu0 %7113  ;;  %v13366_v2 = vpop.f32.mrf.mxu2 }
 0x378   : > { %3566 = vmatpush.msra.mxu2 %v17408_v44  ;;  %3589 = vmatpush.msra.mxu3 %v17409_v23  ;;  %17422 = vst [vmem:[#allocation51_spill] sm:$0xff] %v13366_v2  ;;  %v13368_v25 = vpop.f32.mrf.mxu3 }
 0x379   : > { %7368 = vrot.lane.b32.xlu0 %v7367_v35, %s7865_s30  ;;  %3521 = vmatpush.msra.mxu0 %v17410_v59  ;;  %v17415_v35 = vld [vmem:[#allocation140_spill] sm:$0xff]  ;;  %v13359_v23 = vpop.f32.mrf.mxu1  ;;  %17423 = vst [vmem:[#allocation118_spill] sm:$0xff] %v13368_v25 }
 0x37a   : > { %3544 = vmatpush.msra.mxu1 %v17411_v4  ;;  %3567 = vmatpush.msra.mxu2 %v17412_v52  ;;  %v17416_v36 = vunpack.i.h.bf16 %v17415_v35  ;;  %v17417_v4 = vunpack.i.h.bf16 %v17328_v47  ;;  %17418 = vst [vmem:[#allocation296_spill] sm:$0xff] %v13359_v23  ;;  %v13361_v59 = vpop.permute.xlu2 %7123  ;;  %v17419_v52 = vld [vmem:[#allocation158_spill] sm:$0xff] }
 0x37b   : > { %3590 = vmatpush.msra.mxu3 %v17413_v51  ;;  %3522 = vmatmul.f32.vlgmr.msra.gmra.mxu0 %v13120_v17  ;;  %v17420_v51 = vld [vmem:[#allocation28_spill] sm:$0xff]  ;;  %v17424_v35 = vld [vmem:[#allocation242_spill] sm:$0xff] }
 0x37c   : > { %3545 = vmatmul.f32.vlgmr.msra.gmra.mxu1 %v13120_v17  ;;  %3568 = vmatmul.f32.vlgmr.msra.gmra.mxu2 %v13120_v17  ;;  %v3062_v44 = vsel %vm3054_vm4, %v17417_v4, %v17416_v36  ;;  %v17425_v47 = vld [vmem:[#allocation238_spill] sm:$0xff]  ;;  %v17426_v36 = vld [vmem:[#allocation208_spill] sm:$0xff]  ;;  %v17427_v4 = vld [vmem:[#allocation107_spill] sm:$0xff] }
 0x37d   : > { %3591 = vmatmul.f32.vlgmr.msra.gmra.mxu3 %v13120_v17  ;;  %3598 = vmatpush.msrb.mxu0 %v3062_v44  ;;  %v13376_v44 = vpop.permute.xlu1 %7133 }
 0x37e   : > { %3621 = vmatpush.msrb.mxu1 %v17419_v52  ;;  %3644 = vmatpush.msrb.mxu2 %v17420_v51  ;;  %v17436_v51 = vld [vmem:[#allocation213_spill] sm:$0xff] }
 0x37f   : > { %3667 = vmatpush.msrb.mxu3 %v17421_v40  ;;  %3599 = vmatpush.msrb.mxu0 %v17424_v35  ;;  %v13386_v40 = vpop.f32.mrf.mxu0  ;;  %v17437_v35 = vld [vmem:[#allocation214_spill] sm:$0xff] }
 0x380   : > { %3622 = vmatpush.msrb.mxu1 %v17425_v47  ;;  %3645 = vmatpush.msrb.mxu2 %v17426_v36  ;;  %17428 = vst [vmem:[#allocation299_spill] sm:$0xff] %v13386_v40  ;;  %v13402_v52 = vpop.f32.mrf.mxu3  ;;  %v17438_v47 = vld [vmem:[#allocation252_spill] sm:$0xff]  ;;  %v17439_v36 = vld [vmem:[#allocation253_spill] sm:$0xff] }
 0x381   : > { %3668 = vmatpush.msrb.mxu3 %v17427_v4  ;;  %3600 = vmatpush.msrb.mxu0 %v17396_v41  ;;  %v17433_v41 = vld [vmem:[#allocation251_spill] sm:$0xff]  ;;  %17435 = vst [vmem:[#allocation301_spill] sm:$0xff] %v13402_v52 }
 0x382   : > { %3623 = vmatpush.msrb.mxu1 %v13170_v10  ;;  %3646 = vmatpush.msrb.mxu2 %v12995_v9  ;;  %v13388_v10 = vpop.permute.xlu0 %7128  ;;  %v13392_v9 = vpop.f32.mrf.mxu1 }
 0x383   : > { %3669 = vmatpush.msrb.mxu3 %v13081_v16  ;;  %3601 = vmatpush.msrb.mxu0 %v17397_v20  ;;  %17429 = vst [vmem:[#allocation300_spill] sm:$0xff] %v13392_v9  ;;  %v13394_v16 = vpop.permute.xlu2 %7138  ;;  %v13400_v20 = vpop.f32.mrf.mxu2  ;;  %v17478_v9 = vunpack.i.h.bf16 %v13208_v11 }
 0x384   : > { %3624 = vmatpush.msrb.mxu1 %v13165_v61  ;;  %3647 = vmatpush.msrb.mxu2 %v13076_v27  ;;  %v17430_v61 = vld [vmem:[#allocation212_spill] sm:$0xff]  ;;  %v17431_v27 = vld [vmem:[#allocation231_spill] sm:$0xff]  ;;  %17434 = vst [vmem:[#allocation132_spill] sm:$0xff] %v13400_v20 }
 0x385   : > { %3670 = vmatpush.msrb.mxu3 %v13062_v58  ;;  %3525 = vmatmul.f32.gmra.mxu0 %v13196_v50  ;;  %v17432_v58 = vld [vmem:[#allocation147_spill] sm:$0xff]  ;;  %v13410_v4 = vpop.permute.xlu1 %7148 }
 0x386   : > { %3548 = vmatmul.f32.gmra.mxu1 %v13196_v50  ;;  %3571 = vmatmul.f32.gmra.mxu2 %v13196_v50  ;;  %17440 = vst [vmem:[#allocation289_spill] sm:$0xff] %v13410_v4 }
 0x387   : > { %3594 = vmatmul.f32.gmra.mxu3 %v13196_v50  ;;  %3602 = vmatpush.msrb.mxu0 %v17430_v61  ;;  %v17451_v61 = vld [vmem:[#allocation316_spill] sm:$0xff] }
 0x388   : > { %3625 = vmatpush.msrb.mxu1 %v17431_v27  ;;  %3648 = vmatpush.msrb.mxu2 %v17432_v58  ;;  %v7010_v27 = vunpack.i.l.bf16 %v17451_v61  ;;  %v17452_v58 = vld [vmem:[#allocation277_spill] sm:$0xff] }
 0x389   : > { %3671 = vmatpush.msrb.mxu3 %v17433_v41  ;;  %3603 = vmatpush.msrb.mxu0 %v17436_v51  ;;  %v17453_v41 = vld [vmem:[#allocation40_spill] sm:$0xff]  ;;  %v7011_v51 = vunpack.i.h.bf16 %v17451_v61 }
 0x38a   : > { %3626 = vmatpush.msrb.mxu1 %v17437_v35  ;;  %3649 = vmatpush.msrb.mxu2 %v17438_v47  ;;  %v17454_v35 = vld [vmem:[#allocation283_spill] sm:$0xff] }
 0x38b   : > { %3672 = vmatpush.msrb.mxu3 %v17439_v36  ;;  %3604 = vmatpush.msrb.mxu0 %v12705_v7  ;;  %v7372_v7 = vpack.i.bf16 %v13300_v49, %v13264_v13  ;;  %v7050_v49 = vunpack.i.l.bf16 %v13071_v34  ;;  %v16274_v47 = vunpack.i.l.bf16 %v17454_v35  ;;  %v17455_v36 = vld [vmem:[#allocation159_spill] sm:$0xff] }
 0x38c   : > { %3627 = vmatpush.msrb.mxu1 %v12729_v26  ;;  %3650 = vmatpush.msrb.mxu2 %v12743_v18  ;;  %v13422_v26 = vpop.f32.mrf.mxu0  ;;  %v13424_v18 = vpop.permute.xlu0 %7143 }
 0x38d   : > { %3673 = vmatpush.msrb.mxu3 %v12749_v21  ;;  %3605 = vmatpush.msrb.mxu0 %v12735_v38  ;;  %17441 = vst [vmem:[#allocation306_spill] sm:$0xff] %v13422_v26  ;;  %v13428_v38 = vpop.f32.mrf.mxu1  ;;  %v13436_v21 = vpop.f32.mrf.mxu2  ;;  %v17493_v26 = vunpack.i.l.bf16 %v13361_v59 }
 0x38e   : > { %3628 = vmatpush.msrb.mxu1 %v12756_v14  ;;  %3651 = vmatpush.msrb.mxu2 %v12760_v24  ;;  %17442 = vst [vmem:[#allocation309_spill] sm:$0xff] %v13428_v38  ;;  %v13430_v14 = vpop.permute.xlu2 %7153  ;;  %v13438_v24 = vpop.f32.mrf.mxu3  ;;  %v17485_v38 = vunpack.i.l.bf16 %v13320_v42 }
 0x38f   : > { %3674 = vmatpush.msrb.mxu3 %v12766_v31  ;;  %3606 = vmatpush.msrb.mxu0 %v12870_v43  ;;  %17443 = vst [vmem:[#allocation148_spill] sm:$0xff] %v13436_v21  ;;  %v13446_v31 = vpop.permute.xlu1 %7163  ;;  %v7615_v43 = vld [vmem:[%s8014_s26 + $0x8] sm:$0xff] }
 0x390   : > { %3629 = vmatpush.msrb.mxu1 %v12880_v48  ;;  %3652 = vmatpush.msrb.mxu2 %v12886_v32  ;;  %17444 = vst [vmem:[#allocation57_spill] sm:$0xff] %v13438_v24  ;;  %v7616_v48 = vld [vmem:[%s8014_s26 + $0x10] sm:$0xff] }
 0x391   : > { %3675 = vmatpush.msrb.mxu3 %v17270_v28  ;;  %3607 = vmatpush.msrb.mxu0 %v12896_v3 }
 0x392   : > { %3630 = vmatpush.msrb.mxu1 %v12900_v56  ;;  %3653 = vmatpush.msrb.mxu2 %v12912_v30  ;;  %v7617_v56 = vld [vmem:[%s8014_s26 + $0x18] sm:$0xff] }
 0x393   : > { %3676 = vmatpush.msrb.mxu3 %v17273_v54  ;;  %7373 = vrot.lane.b32.xlu1 %v7372_v7, %s7866_s23  ;;  %v17456_v7 = vld [vmem:[#allocation278_spill] sm:$0xff]  ;;  %v17458_v30 = vld [vmem:[#allocation47_spill] sm:$0xff]  ;;  %s15710_s23 = scalar_lea.vmem %s15868_s2, %s6074_s20 }
 0x394   : > { %3608 = vmatpush.msrb.mxu0 %v17274_v60  ;;  %3631 = vmatpush.msrb.mxu1 %v17278_v8  ;;  %v7610_v60 = vld [vmem:[%s8014_s26 + $0xc0] sm:$0xff]  ;;  %v7611_v8 = vld [vmem:[%s8014_s26 + $0xc8] sm:$0xff]  ;;  %v13456_v54 = vpop.f32.mrf.mxu0  ;;  %v13458_v28 = vpop.permute.xlu0 %7158 }
 0x395   : > { %3654 = vmatpush.msrb.mxu2 %v17279_v46  ;;  %3677 = vmatpush.msrb.mxu3 %v17284_v33  ;;  %v7612_v46 = vld [vmem:[%s8014_s26 + $0xd0] sm:$0xff]  ;;  %v7613_v33 = vld [vmem:[%s8014_s26 + $0xd8] sm:$0xff]  ;;  %17445 = vst [vmem:[#allocation162_spill] sm:$0xff] %v13456_v54  ;;  %v13462_v32 = vpop.f32.mrf.mxu1  ;;  %v7080_v54 = vunpack.i.l.bf16 %v13208_v11 }
 0x396   : > { %3609 = vmatpush.msrb.mxu0 %v17287_v37  ;;  %3632 = vmatpush.msrb.mxu1 %v17288_v0  ;;  %v7614_v37 = vld [vmem:[%s8014_s26] sm:$0xff]  ;;  %17446 = vst [vmem:[#allocation163_spill] sm:$0xff] %v13462_v32  ;;  %v13464_v3 = vpop.permute.xlu2 %7168  ;;  %v17448_v0 = vld [vmem:[#allocation145_spill] sm:$0xff]  ;;  %v13473_v13 = vpop.f32.mrf.mxu3 }
 0x397   : > { %3655 = vmatpush.msrb.mxu2 %v17292_v1  ;;  %3678 = vmatpush.msrb.mxu3 %v17293_v19  ;;  %v17447_v19 = vld [vmem:[#allocation234_spill] sm:$0xff]  ;;  %v13471_v1 = vpop.f32.mrf.mxu2  ;;  %17450 = vst [vmem:[#allocation221_spill] sm:$0xff] %v13473_v13  ;;  %v13488_v25 = vpop.permute.xlu1 %7178  ;;  %v7095_v13 = vunpack.i.l.bf16 %v13269_v45 }
 0x398   : > { %3610 = vmatpush.msrb.mxu0 %v7610_v60  ;;  %3633 = vmatpush.msrb.mxu1 %v7611_v8  ;;  %17449 = vst [vmem:[#allocation61_spill] sm:$0xff] %v13471_v1 }
 0x399   : > { %3656 = vmatpush.msrb.mxu2 %v7612_v46  ;;  %3679 = vmatpush.msrb.mxu3 %v7613_v33 }
 0x39a   : > { %3611 = vmatpush.msrb.mxu0 %v7614_v37  ;;  %3634 = vmatpush.msrb.mxu1 %v7615_v43 }
 0x39b   : > { %3657 = vmatpush.msrb.mxu2 %v7616_v48  ;;  %3680 = vmatpush.msrb.mxu3 %v7617_v56 }
 0x39c   : > { %3612 = vmatpush.msrb.mxu0 %v17294_v15  ;;  %3635 = vmatpush.msrb.mxu1 %v17447_v19  ;;  %v16273_v15 = vunpack.i.l.bf16 %v17453_v41  ;;  %v7061_v19 = vunpack.i.h.bf16 %v17454_v35 }
 0x39d   : > { %3658 = vmatpush.msrb.mxu2 %v17448_v0  ;;  %3681 = vmatpush.msrb.mxu3 %v17452_v58  ;;  %v17457_v0 = vld [vmem:[#allocation279_spill] sm:$0xff]  ;;  %v16275_v58 = vunpack.i.h.bf16 %v17458_v30  ;;  %v13544_v23 = vpop.f32.mrf.mxu1 }
 0x39e   : > { %3613 = vmatpush.msrb.mxu0 %v17296_v39  ;;  %3636 = vmatpush.msrb.mxu1 %v17455_v36  ;;  %v17459_v39 = vunpack.i.h.bf16 %v13035_v57  ;;  %v13502_v36 = vsel %vm4267_vm6, %v7050_v49, %v7010_v27  ;;  %17464 = vst [vmem:[#allocation227_spill] sm:$0xff] %v13544_v23  ;;  %v13552_v32 = vpop.f32.mrf.mxu3 }
 0x39f   : > { %3659 = vmatpush.msrb.mxu2 %v17456_v7  ;;  %3682 = vmatpush.msrb.mxu3 %v17457_v0  ;;  %v13506_v7 = vsel %vm4267_vm6, %v7010_v27, %v7011_v51  ;;  %v13514_v0 = vsel %vm4267_vm6, %v7011_v51, %v16273_v15  ;;  %v13532_v51 = vpop.permute.xlu0 %7173  ;;  %v17462_v15 = vld [vmem:[#allocation144_spill] sm:$0xff]  ;;  %v13550_v1 = vpop.f32.mrf.mxu2  ;;  %17467 = vst [vmem:[#allocation179_spill] sm:$0xff] %v13552_v32 }
 0x3a0   : > { %3614 = vmatmul.f32.vlgmr.msrb.gmra.mxu0 %v13120_v17  ;;  %3637 = vmatmul.f32.vlgmr.msrb.gmra.mxu1 %v13120_v17  ;;  %v13496_v61 = vsel %vm4267_vm6, %v17459_v39, %v7050_v49  ;;  %v17460_v49 = vunpack.i.h.bf16 %v17453_v41  ;;  %v13530_v39 = vpop.f32.mrf.mxu0  ;;  %17466 = vst [vmem:[#allocation313_spill] sm:$0xff] %v13550_v1  ;;  %v13562_v32 = vpop.permute.xlu1 %7193 }
 0x3a1   : > { %3660 = vmatmul.f32.vlgmr.msrb.gmra.mxu2 %v13120_v17  ;;  %3683 = vmatmul.f32.vlgmr.msrb.gmra.mxu3 %v13120_v17  ;;  %v13520_v17 = vsel %vm4267_vm6, %v16274_v47, %v7061_v19  ;;  %17461 = vst [vmem:[#allocation56_spill] sm:$0xff] %v13530_v39  ;;  %v17463_v47 = vunpack.i.l.bf16 %v17458_v30  ;;  %v17469_v39 = vld [vmem:[#allocation325_spill] sm:$0xff] }
 0x3a2   : > { %4367 = vmatpush.msra.mxu0 %v13496_v61  ;;  %4390 = vmatpush.msra.mxu1 %v13502_v36  ;;  %v13528_v27 = vsel %vm4267_vm6, %v7061_v19, %v17460_v49  ;;  %v13546_v19 = vpop.permute.xlu2 %7183  ;;  %v17465_v49 = vld [vmem:[#allocation274_spill] sm:$0xff] }
 0x3a3   : > { %4413 = vmatpush.msra.mxu2 %v13506_v7  ;;  %4436 = vmatpush.msra.mxu3 %v13514_v0  ;;  %v13542_v2 = vsel %vm4267_vm6, %v17463_v47, %v16275_v58  ;;  %v17468_v58 = vld [vmem:[#allocation190_spill] sm:$0xff] }
 0x3a4   : > { %4368 = vmatpush.msra.mxu0 %v13520_v17  ;;  %4391 = vmatpush.msra.mxu1 %v13528_v27  ;;  %v17475_v52 = vunpack.i.h.bf16 %v17468_v58 }
 0x3a5   : > { %4414 = vmatpush.msra.mxu2 %v17462_v15  ;;  %4437 = vmatpush.msra.mxu3 %v13542_v2 }
 0x3a6   : > { %4369 = vmatpush.msra.mxu0 %v7610_v60  ;;  %4392 = vmatpush.msra.mxu1 %v7611_v8  ;;  %v7030_v60 = vunpack.i.l.bf16 %v17469_v39  ;;  %v7051_v8 = vunpack.i.h.bf16 %v13071_v34  ;;  %v7111_v34 = vunpack.i.h.bf16 %v13320_v42 }
 0x3a7   : > { %4415 = vmatpush.msra.mxu2 %v7612_v46  ;;  %4438 = vmatpush.msra.mxu3 %v7613_v33  ;;  %v17470_v33 = vunpack.i.h.bf16 %v17465_v49  ;;  %v17472_v46 = vld [vmem:[#allocation267_spill] sm:$0xff]  ;;  %v13618_v21 = vpop.permute.xlu0 %7188 }
 0x3a8   : > { %4370 = vmatpush.msra.mxu0 %v7614_v37  ;;  %4393 = vmatpush.msra.mxu1 %v7615_v43  ;;  %v17473_v47 = vunpack.i.h.bf16 %v17472_v46  ;;  %v17474_v43 = vld [vmem:[#allocation273_spill] sm:$0xff]  ;;  %v13607_v40 = vsel %vm3978_vm5, %v7095_v13, %v7030_v60 }
 0x3a9   : > { %4416 = vmatpush.msra.mxu2 %v7616_v48  ;;  %4439 = vmatpush.msra.mxu3 %v7617_v56  ;;  %v13570_v37 = vsel %vm3978_vm5, %v17470_v33, %v7080_v54  ;;  %v17471_v48 = vld [vmem:[#allocation60_spill] sm:$0xff]  ;;  %v7126_v33 = vunpack.i.h.bf16 %v13361_v59  ;;  %17481 = vst [vmem:[#allocation303_spill] sm:$0xff] %v13607_v40 }
 0x3aa   : > { %3617 = vmatmul.f32.gmra.mxu0 %v13196_v50  ;;  %3640 = vmatmul.f32.gmra.mxu1 %v13196_v50  ;;  %v7040_v56 = vunpack.i.l.bf16 %v17471_v48  ;;  %v13581_v23 = vsel %vm3978_vm5, %v7080_v54, %v17473_v47  ;;  %v7041_v1 = vunpack.i.h.bf16 %v17471_v48  ;;  %v13599_v54 = vsel %vm3978_vm5, %v17478_v9, %v7095_v13  ;;  %v17480_v47 = vld [vmem:[#allocation284_spill] sm:$0xff]  ;;  %v13615_v9 = vpop.f32.mrf.mxu0 }
 0x3ab   : > { %3663 = vmatmul.f32.gmra.mxu2 %v13196_v50  ;;  %3686 = vmatmul.f32.gmra.mxu3 %v13196_v50  ;;  %v17476_v50 = vunpack.i.l.bf16 %v17468_v58  ;;  %17479 = vst [vmem:[#allocation257_spill] sm:$0xff] %v13599_v54  ;;  %v7055_v48 = vunpack.i.l.bf16 %v17480_v47  ;;  %v13626_v13 = vsel %vm4267_vm6, %v17485_v38, %v7111_v34  ;;  %v17491_v38 = vunpack.i.l.bf16 %v13035_v57 }
 0x3ac   : > { %4371 = vmatpush.msra.mxu0 %v13570_v37  ;;  %4394 = vmatpush.msra.mxu1 %v13581_v23  ;;  %17484 = vst [vmem:[#allocation149_spill] sm:$0xff] %v13615_v9  ;;  %v13636_v24 = vsel %vm4267_vm6, %v7111_v34, %v7040_v56  ;;  %v13640_v9 = vsel %vm4267_vm6, %v7040_v56, %v7041_v1  ;;  %v13658_v56 = vpop.f32.mrf.mxu3 }
 0x3ad   : > { %4417 = vmatpush.msra.mxu2 %v17474_v43  ;;  %v13593_v20 = vsel %vm3978_vm5, %v17476_v50, %v17475_v52  ;;  %v17482_v52 = vunpack.i.h.bf16 %v17469_v39  ;;  %17486 = vst [vmem:[#allocation254_spill] sm:$0xff] %v13626_v13  ;;  %v13628_v39 = vpop.f32.mrf.mxu1  ;;  %v13654_v34 = vsel %vm4267_vm6, %v17493_v26, %v7126_v33  ;;  %v17499_v26 = vunpack.i.h.bf16 %v17480_v47 }
 0x3ae   : > { %17477 = vst [vmem:[#allocation304_spill] sm:$0xff] %v13593_v20  ;;  %4440 = vmatpush.msra.mxu3 %v13593_v20  ;;  %4372 = vmatpush.msra.mxu0 %v13599_v54  ;;  %v7633_v54 = vld [vmem:[%s8014_s26 + $0x38] sm:$0xff]  ;;  %v7116_v20 = vunpack.i.h.bf16 %v13349_v53 }
 0x3af   : > { %v13613_v50 = vsel %vm3978_vm5, %v7030_v60, %v17482_v52  ;;  %4395 = vmatpush.msra.mxu1 %v13607_v40  ;;  %17487 = vst [vmem:[#allocation240_spill] sm:$0xff] %v13628_v39  ;;  %v13630_v60 = vpop.permute.xlu2 %7198  ;;  %v17488_v52 = vld [vmem:[#allocation282_spill] sm:$0xff]  ;;  %v13648_v39 = vsel %vm4267_vm6, %v7041_v1, %v17491_v38  ;;  %v13668_v1 = vsel %vm4267_vm6, %v7051_v8, %v7055_v48  ;;  %v17506_v38 = vld [vmem:[#allocation315_spill] sm:$0xff] }
 0x3b0   : > { %17483 = vst [vmem:[#allocation209_spill] sm:$0xff] %v13613_v50  ;;  %4418 = vmatpush.msra.mxu2 %v13613_v50  ;;  %4441 = vmatpush.msra.mxu3 %v17488_v52  ;;  %v17504_v52 = vld [vmem:[#allocation317_spill] sm:$0xff]  ;;  %v17509_v50 = vld [vmem:[#allocation319_spill] sm:$0xff] }
 0x3b1   : > { %4373 = vmatpush.msra.mxu0 %v13626_v13  ;;  %17489 = vst [vmem:[#allocation170_spill] sm:$0xff] %v13636_v24  ;;  %4396 = vmatpush.msra.mxu1 %v13636_v24  ;;  %v13656_v13 = vpop.f32.mrf.mxu2  ;;  %v7100_v24 = vunpack.i.l.bf16 %v13304_v63 }
 0x3b2   : > { %17490 = vst [vmem:[#allocation171_spill] sm:$0xff] %v13640_v9  ;;  %4419 = vmatpush.msra.mxu2 %v13640_v9  ;;  %4442 = vmatpush.msra.mxu3 %v13648_v39  ;;  %v13664_v9 = vsel %vm4267_vm6, %v7126_v33, %v7051_v8  ;;  %v7151_v33 = vunpack.i.h.bf16 %v13410_v4  ;;  %v17501_v8 = vld [vmem:[#allocation196_spill] sm:$0xff] }
 0x3b3   : > { %17492 = vst [vmem:[#allocation185_spill] sm:$0xff] %v13648_v39  ;;  %4374 = vmatpush.msra.mxu0 %v13654_v34  ;;  %4397 = vmatpush.msra.mxu1 %v13664_v9  ;;  %v17502_v39 = vld [vmem:[#allocation266_spill] sm:$0xff] }
 0x3b4   : > { %17494 = vst [vmem:[#allocation255_spill] sm:$0xff] %v13654_v34  ;;  %4420 = vmatpush.msra.mxu2 %v13668_v1  ;;  %v13686_v34 = vpop.permute.xlu1 %7208 }
 0x3b5   : > { %17495 = vst [vmem:[#allocation140_spill] sm:$0xff] %v13656_v13  ;;  %v7085_v13 = vunpack.i.l.bf16 %v13259_v29  ;;  %4375 = vmatpush.msra.mxu0 %v17501_v8  ;;  %4398 = vmatpush.msra.mxu1 %v17502_v39  ;;  %v17505_v8 = vld [vmem:[#allocation199_spill] sm:$0xff]  ;;  %v17508_v39 = vunpack.i.l.bf16 %v13410_v4  ;;  %v17511_v4 = vunpack.i.l.bf16 %v13237_v55 }
 0x3b6   : > { %17496 = vst [vmem:[#allocation158_spill] sm:$0xff] %v13658_v56  ;;  %v13677_v56 = vsel %vm4267_vm6, %v7055_v48, %v17499_v26  ;;  %v17503_v48 = vld [vmem:[#allocation314_spill] sm:$0xff]  ;;  %v7091_v26 = vunpack.i.h.bf16 %v13237_v55 }
 0x3b7   : > { %17497 = vst [vmem:[#allocation28_spill] sm:$0xff] %v13664_v9  ;;  %4443 = vmatpush.msra.mxu3 %v13677_v56  ;;  %v7086_v9 = vunpack.i.h.bf16 %v13259_v29  ;;  %4421 = vmatpush.msra.mxu2 %v17503_v48  ;;  %v4361_v48 = vsel %vm4267_vm6, %v17508_v39, %v7151_v33  ;;  %v4359_v40 = vsel %vm4267_vm6, %v7151_v33, %v7085_v13  ;;  %v13709_v29 = vpop.permute.xlu0 %7203 }
 0x3b8   : > { %17498 = vst [vmem:[#allocation245_spill] sm:$0xff] %v13668_v1  ;;  %4376 = vmatpush.msra.mxu0 %v17505_v8  ;;  %4399 = vmatpush.msra.mxu1 %v17506_v38  ;;  %v17507_v1 = vld [vmem:[#allocation318_spill] sm:$0xff] }
 0x3b9   : > { %17500 = vst [vmem:[#allocation242_spill] sm:$0xff] %v13677_v56  ;;  %v7165_v56 = vunpack.i.l.bf16 %v13446_v31  ;;  %4444 = vmatpush.msra.mxu3 %v17504_v52  ;;  %4422 = vmatpush.msra.mxu2 %v17507_v1  ;;  %v4357_v8 = vsel %vm4267_vm6, %v7085_v13, %v7086_v9  ;;  %v13707_v52 = vpop.f32.mrf.mxu0  ;;  %v4355_v39 = vsel %vm4267_vm6, %v7086_v9, %v17511_v4  ;;  %v13721_v13 = vpop.permute.xlu2 %7213  ;;  %v7619_v9 = vld [vmem:[%s8006_s19 + $0xc8] sm:$0xff]  ;;  %v17527_v1 = vld [vmem:[#allocation308_spill] sm:$0xff] }
 0x3ba   : > { %4377 = vmatpush.msra.mxu0 %v4361_v48  ;;  %17510 = vst [vmem:[#allocation238_spill] sm:$0xff] %v13707_v52  ;;  %4400 = vmatpush.msra.mxu1 %v4359_v40  ;;  %v17512_v48 = vunpack.i.h.bf16 %v13458_v28  ;;  %v4356_v4 = vsel %vm4267_vm6, %v7091_v26, %v7100_v24 }
 0x3bb   : > { %4445 = vmatpush.msra.mxu3 %v17509_v50  ;;  %4423 = vmatpush.msra.mxu2 %v4357_v8  ;;  %v13719_v50 = vpop.f32.mrf.mxu1  ;;  %v4358_v40 = vsel %vm4267_vm6, %v7165_v56, %v7091_v26  ;;  %v17514_v8 = vunpack.i.h.bf16 %v13304_v63 }
 0x3bc   : > { %v4360_v33 = vsel %vm4267_vm6, %v17512_v48, %v7165_v56  ;;  %17513 = vst [vmem:[#allocation208_spill] sm:$0xff] %v13719_v50  ;;  %4401 = vmatpush.msra.mxu1 %v4358_v40  ;;  %v7618_v56 = vld [vmem:[%s8006_s19 + $0xc0] sm:$0xff]  ;;  %v7620_v40 = vld [vmem:[%s8006_s19 + $0xd0] sm:$0xff] }
 0x3bd   : > { %4446 = vmatpush.msra.mxu3 %v4355_v39  ;;  %4378 = vmatpush.msra.mxu0 %v4360_v33  ;;  %v4354_v48 = vsel %vm4267_vm6, %v7100_v24, %v17514_v8  ;;  %v13732_v39 = vpop.f32.mrf.mxu2  ;;  %v13734_v33 = vpop.f32.mrf.mxu3  ;;  %v7622_v50 = vld [vmem:[%s8006_s19] sm:$0xff]  ;;  %v7623_v8 = vld [vmem:[%s8006_s19 + $0x8] sm:$0xff] }
 0x3be   : > { %4424 = vmatpush.msra.mxu2 %v4356_v4  ;;  %17515 = vst [vmem:[#allocation107_spill] sm:$0xff] %v13732_v39  ;;  %4402 = vmatpush.msra.mxu1 %v7619_v9  ;;  %v7621_v4 = vld [vmem:[%s8006_s19 + $0xd8] sm:$0xff]  ;;  %v13742_v24 = vpop.permute.xlu1 %7223 }
 0x3bf   : > { %17516 = vst [vmem:[#allocation212_spill] sm:$0xff] %v13734_v33  ;;  %4447 = vmatpush.msra.mxu3 %v4354_v48  ;;  %4379 = vmatpush.msra.mxu0 %v7618_v56  ;;  %v7624_v33 = vld [vmem:[%s8006_s19 + $0x10] sm:$0xff]  ;;  %v17517_v48 = vld [vmem:[#allocation119_spill] sm:$0xff]  ;;  %v17519_v56 = vunpack.i.l.bf16 %v13630_v60 }
 0x3c0   : > { %4425 = vmatpush.msra.mxu2 %v7620_v40  ;;  %4403 = vmatpush.msra.mxu1 %v7623_v8  ;;  %v17518_v39 = vunpack.i.h.bf16 %v17517_v48  ;;  %v7625_v9 = vld [vmem:[%s8006_s19 + $0x18] sm:$0xff]  ;;  %v7136_v40 = vunpack.i.h.bf16 %v13376_v44  ;;  %v17522_v8 = vunpack.i.l.bf16 %v17517_v48  ;;  %v7146_v48 = vunpack.i.h.bf16 %v13424_v18 }
 0x3c1   : > { %4448 = vmatpush.msra.mxu3 %v7621_v4  ;;  %4380 = vmatpush.msra.mxu0 %v7622_v50  ;;  %v17520_v4 = vld [vmem:[#allocation305_spill] sm:$0xff]  ;;  %v17521_v50 = vld [vmem:[#allocation307_spill] sm:$0xff] }
 0x3c2   : > { %4426 = vmatpush.msra.mxu2 %v7624_v33  ;;  %v4074_v26 = vsel %vm3978_vm5, %v17519_v56, %v17518_v39  ;;  %4404 = vmatpush.msra.mxu1 %v17520_v4  ;;  %v17523_v33 = vunpack.i.l.bf16 %v13721_v13  ;;  %v13765_v39 = vld [vmem:[%s15870_s4 + $0x20] sm:$0xff]  ;;  %v13767_v56 = vpop.f32.mrf.mxu0  ;;  %v17526_v4 = vld [vmem:[#allocation310_spill] sm:$0xff] }
 0x3c3   : > { %4449 = vmatpush.msra.mxu3 %v7625_v9  ;;  %4381 = vmatpush.msra.mxu0 %v4074_v26  ;;  %17524 = vst [vmem:[#allocation231_spill] sm:$0xff] %v13767_v56  ;;  %v13769_v26 = vpop.f32.mrf.mxu1  ;;  %v7065_v9 = vunpack.i.l.bf16 %v13147_v6  ;;  %v17531_v56 = vld [vmem:[#allocation312_spill] sm:$0xff] }
 0x3c4   : > { %4427 = vmatpush.msra.mxu2 %v17521_v50  ;;  %v4073_v52 = vsel %vm3978_vm5, %v17523_v33, %v17522_v8  ;;  %17525 = vst [vmem:[#allocation147_spill] sm:$0xff] %v13769_v26  ;;  %v13774_v50 = vpop.permute.xlu0 %7218  ;;  %4405 = vmatpush.msra.mxu1 %v17527_v1  ;;  %v17528_v8 = vld [vmem:[#allocation311_spill] sm:$0xff] }
 0x3c5   : > { %4450 = vmatpush.msra.mxu3 %v17526_v4  ;;  %4382 = vmatpush.msra.mxu0 %v4073_v52  ;;  %v13778_v33 = vpop.f32.mrf.mxu2  ;;  %v13780_v38 = vpop.f32.mrf.mxu3  ;;  %v17532_v52 = vunpack.i.l.bf16 %v17453_v41  ;;  %v17535_v4 = vunpack.i.h.bf16 %v13147_v6  ;;  %v17537_v41 = vunpack.i.h.bf16 %v17458_v30  ;;  %v17539_v6 = vld [vmem:[#allocation287_spill] sm:$0xff] }
 0x3c6   : > { %4428 = vmatpush.msra.mxu2 %v17528_v8  ;;  %17529 = vst [vmem:[#allocation251_spill] sm:$0xff] %v13778_v33  ;;  %4383 = vmatmul.f32.vlgmr.msra.gmra.mxu0 %v13765_v39  ;;  %v13823_v26 = vpop.permute.xlu1 %7238  ;;  %v17542_v30 = vld [vmem:[#allocation219_spill] sm:$0xff] }
 0x3c7   : > { %17530 = vst [vmem:[#allocation213_spill] sm:$0xff] %v13780_v38  ;;  %4451 = vmatpush.msra.mxu3 %v17531_v56  ;;  %4406 = vmatmul.f32.vlgmr.msra.gmra.mxu1 %v13765_v39  ;;  %v13791_v1 = vsel %vm4267_vm6, %v17532_v52, %v7136_v40  ;;  %v13797_v56 = vsel %vm4267_vm6, %v7136_v40, %v7065_v9  ;;  %v17540_v40 = vunpack.i.h.bf16 %v17539_v6  ;;  %v17544_v38 = vunpack.i.l.bf16 %v13181_v5 }
 0x3c8   : > { %4429 = vmatmul.f32.vlgmr.msra.gmra.mxu2 %v13765_v39  ;;  %17533 = vst [vmem:[#allocation214_spill] sm:$0xff] %v13791_v1  ;;  %4452 = vmatmul.f32.vlgmr.msra.gmra.mxu3 %v13765_v39  ;;  %v13803_v8 = vsel %vm4267_vm6, %v7065_v9, %v17535_v4  ;;  %v13811_v52 = vsel %vm4267_vm6, %v17537_v41, %v7146_v48  ;;  %v13821_v4 = vpop.permute.xlu2 %7228  ;;  %v17543_v41 = vunpack.i.h.bf16 %v13181_v5 }
 0x3c9   : > { %4459 = vmatpush.msrb.mxu0 %v13791_v1  ;;  %17534 = vst [vmem:[#allocation252_spill] sm:$0xff] %v13797_v56  ;;  %4482 = vmatpush.msrb.mxu1 %v13797_v56  ;;  %v13819_v9 = vsel %vm4267_vm6, %v7146_v48, %v17540_v40  ;;  %v7626_v48 = vld [vmem:[%s8014_s26 + $0xe0] sm:$0xff]  ;;  %v17546_v40 = vld [vmem:[#allocation203_spill] sm:$0xff] }
 0x3ca   : > { %17536 = vst [vmem:[#allocation253_spill] sm:$0xff] %v13803_v8  ;;  %4505 = vmatpush.msrb.mxu2 %v13803_v8  ;;  %4528 = vmatpush.msrb.mxu3 %v13233_v12  ;;  %v13833_v33 = vsel %vm4267_vm6, %v17544_v38, %v17543_v41  ;;  %v13841_v8 = vpop.f32.mrf.mxu0  ;;  %v7121_v38 = vunpack.i.h.bf16 %v13337_v22  ;;  %v7629_v41 = vld [vmem:[%s8014_s26 + $0xf8] sm:$0xff] }
 0x3cb   : > { %17538 = vst [vmem:[#allocation234_spill] sm:$0xff] %v13811_v52  ;;  %4460 = vmatpush.msrb.mxu0 %v13811_v52  ;;  %4483 = vmatpush.msrb.mxu1 %v13819_v9  ;;  %v17547_v52 = vld [vmem:[#allocation154_spill] sm:$0xff]  ;;  %v13843_v56 = vpop.f32.mrf.mxu1 }
 0x3cc   : > { %17541 = vst [vmem:[#allocation145_spill] sm:$0xff] %v13819_v9  ;;  %4506 = vmatpush.msrb.mxu2 %v17542_v30  ;;  %4529 = vmatpush.msrb.mxu3 %v13833_v33  ;;  %v7377_v12 = vpack.i.bf16 %v17547_v52, %v17546_v40  ;;  %v7627_v9 = vld [vmem:[%s8014_s26 + $0xe8] sm:$0xff]  ;;  %v7628_v30 = vld [vmem:[%s8014_s26 + $0xf0] sm:$0xff]  ;;  %v13854_v40 = vpop.permute.xlu0 %7233 }
 0x3cd   : > { %17545 = vst [vmem:[#allocation316_spill] sm:$0xff] %v13833_v33  ;;  %4461 = vmatpush.msrb.mxu0 %v7626_v48  ;;  %4484 = vmatpush.msrb.mxu1 %v7627_v9  ;;  %v7630_v33 = vld [vmem:[%s8014_s26 + $0x20] sm:$0xff]  ;;  %v13851_v52 = vld [vmem:[%s15870_s4 + $0x28] sm:$0xff]  ;;  %v13860_v1 = vpop.f32.mrf.mxu3 }
 0x3ce   : > { %4507 = vmatpush.msrb.mxu2 %v7628_v30  ;;  %17548 = vst [vmem:[#allocation277_spill] sm:$0xff] %v13841_v8  ;;  %4530 = vmatpush.msrb.mxu3 %v7629_v41  ;;  %v17550_v48 = vld [vmem:[#allocation241_spill] sm:$0xff]  ;;  %v7632_v8 = vld [vmem:[%s8014_s26 + $0x30] sm:$0xff]  ;;  %v7115_v41 = vunpack.i.l.bf16 %v13349_v53  ;;  %v17555_v53 = vunpack.i.h.bf16 %v13269_v45  ;;  %v7140_v45 = vunpack.i.l.bf16 %v13394_v16 }
 0x3cf   : > { %17549 = vst [vmem:[#allocation40_spill] sm:$0xff] %v13843_v56  ;;  %4462 = vmatpush.msrb.mxu0 %v7630_v33  ;;  %v7631_v30 = vld [vmem:[%s8014_s26 + $0x28] sm:$0xff]  ;;  %v13858_v56 = vpop.f32.mrf.mxu2  ;;  %v7185_v33 = vunpack.i.l.bf16 %v13546_v19  ;;  %7378 = vrot.lane.b32.xlu2 %v7377_v12, %s7865_s30  ;;  %v17558_v43 = vunpack.i.l.bf16 %v17550_v48 }
 0x3d0   : > { %4485 = vmatpush.msrb.mxu1 %v7631_v30  ;;  %4508 = vmatpush.msrb.mxu2 %v7632_v8  ;;  %17551 = vst [vmem:[#allocation283_spill] sm:$0xff] %v13858_v56  ;;  %v7130_v8 = vunpack.i.l.bf16 %v13388_v10  ;;  %v7205_v30 = vunpack.i.l.bf16 %v13709_v29  ;;  %v13884_v9 = vsel %vm3978_vm5, %v7121_v38, %v17555_v53  ;;  %v7131_v56 = vunpack.i.h.bf16 %v13388_v10  ;;  %v17560_v53 = vld [vmem:[#allocation248_spill] sm:$0xff] }
 0x3d1   : > { %17552 = vst [vmem:[#allocation159_spill] sm:$0xff] %v13860_v1  ;;  %4531 = vmatpush.msrb.mxu3 %v7633_v54  ;;  %4386 = vmatmul.f32.gmra.mxu0 %v13851_v52  ;;  %v17553_v54 = vunpack.i.h.bf16 %v17468_v58  ;;  %v17557_v58 = vunpack.i.h.bf16 %v17550_v48  ;;  %v17561_v10 = vunpack.i.l.bf16 %v17465_v49 }
 0x3d2   : > { %4409 = vmatmul.f32.gmra.mxu1 %v13851_v52  ;;  %4432 = vmatmul.f32.gmra.mxu2 %v13851_v52  ;;  %17556 = vst [vmem:[#allocation279_spill] sm:$0xff] %v13884_v9 }
 0x3d3   : > { %4455 = vmatmul.f32.gmra.mxu3 %v13851_v52  ;;  %v13878_v12 = vsel %vm3978_vm5, %v17553_v54, %v7121_v38  ;;  %4486 = vmatpush.msrb.mxu1 %v13884_v9  ;;  %v13896_v54 = vsel %vm3978_vm5, %v17558_v43, %v17557_v58  ;;  %v7206_v38 = vunpack.i.h.bf16 %v13709_v29  ;;  %v13906_v1 = vsel %vm3978_vm5, %v17561_v10, %v7185_v33  ;;  %v13916_v29 = vpop.permute.xlu1 %7253  ;;  %v13932_v58 = vpop.f32.mrf.mxu1 }
 0x3d4   : > { %17554 = vst [vmem:[#allocation278_spill] sm:$0xff] %v13878_v12  ;;  %4463 = vmatpush.msrb.mxu0 %v13878_v12  ;;  %4509 = vmatpush.msrb.mxu2 %v17560_v53  ;;  %v13910_v9 = vsel %vm3978_vm5, %v7185_v33, %v7115_v41  ;;  %v7141_v43 = vunpack.i.h.bf16 %v13394_v16  ;;  %v13914_v12 = vpop.permute.xlu2 %7243  ;;  %v13922_v10 = vsel %vm3978_vm5, %v7115_v41, %v7116_v20  ;;  %v13930_v16 = vpop.f32.mrf.mxu0 }
 0x3d5   : > { %17559 = vst [vmem:[#allocation47_spill] sm:$0xff] %v13896_v54  ;;  %4532 = vmatpush.msrb.mxu3 %v13896_v54  ;;  %4487 = vmatpush.msrb.mxu1 %v13910_v9  ;;  %v17564_v54 = vunpack.i.l.bf16 %v13337_v22 }
 0x3d6   : > { %17562 = vst [vmem:[#allocation144_spill] sm:$0xff] %v13906_v1  ;;  %4464 = vmatpush.msrb.mxu0 %v13906_v1  ;;  %4510 = vmatpush.msrb.mxu2 %v13922_v10  ;;  %v13944_v1 = vsel %vm4267_vm6, %v7205_v30, %v7130_v8 }
 0x3d7   : > { %17563 = vst [vmem:[#allocation274_spill] sm:$0xff] %v13910_v9  ;;  %v13928_v33 = vsel %vm3978_vm5, %v7116_v20, %v17564_v54  ;;  %v17568_v9 = vunpack.i.l.bf16 %v13035_v57  ;;  %4488 = vmatpush.msrb.mxu1 %v13944_v1  ;;  %v13950_v20 = vsel %vm4267_vm6, %v7130_v8, %v7131_v56  ;;  %v17572_v54 = vunpack.i.l.bf16 %v13376_v44 }
 0x3d8   : > { %17565 = vst [vmem:[#allocation190_spill] sm:$0xff] %v13928_v33  ;;  %4533 = vmatpush.msrb.mxu3 %v13928_v33  ;;  %4511 = vmatpush.msrb.mxu2 %v13950_v20 }
 0x3d9   : > { %17566 = vst [vmem:[#allocation325_spill] sm:$0xff] %v13930_v16  ;;  %v13940_v41 = vsel %vm4267_vm6, %v17568_v9, %v7205_v30  ;;  %v13958_v9 = vpop.f32.mrf.mxu2  ;;  %v13960_v16 = vpop.f32.mrf.mxu3  ;;  %v17576_v30 = vunpack.i.h.bf16 %v17480_v47  ;;  %v17580_v47 = vunpack.i.l.bf16 %v13424_v18 }
 0x3da   : > { %17567 = vst [vmem:[#allocation60_spill] sm:$0xff] %v13932_v58  ;;  %4465 = vmatpush.msrb.mxu0 %v13940_v41  ;;  %v13956_v58 = vsel %vm4267_vm6, %v7131_v56, %v17572_v54  ;;  %v13974_v56 = vpop.permute.xlu0 %7248  ;;  %v13980_v54 = vsel %vm4267_vm6, %v7140_v45, %v7141_v43 }
 0x3db   : > { %17569 = vst [vmem:[#allocation267_spill] sm:$0xff] %v13940_v41  ;;  %4534 = vmatpush.msrb.mxu3 %v13956_v58  ;;  %v13968_v8 = vsel %vm4267_vm6, %v17576_v30, %v7206_v38  ;;  %v13986_v30 = vsel %vm4267_vm6, %v7141_v43, %v17580_v47  ;;  %4512 = vmatpush.msrb.mxu2 %v13980_v54  ;;  %v7255_v43 = vunpack.i.l.bf16 %v13916_v29  ;;  %v17584_v47 = vld [vmem:[#allocation269_spill] sm:$0xff]  ;;  %v17586_v41 = vld [vmem:[#allocation16_spill] sm:$0xff] }
 0x3dc   : > { %17570 = vst [vmem:[#allocation284_spill] sm:$0xff] %v13944_v1  ;;  %v13972_v1 = vsel %vm4267_vm6, %v7206_v38, %v7140_v45  ;;  %4466 = vmatpush.msrb.mxu0 %v13968_v8  ;;  %v7240_v38 = vunpack.i.l.bf16 %v13823_v26  ;;  %v17582_v45 = vld [vmem:[#allocation233_spill] sm:$0xff] }
 0x3dd   : > { %17571 = vst [vmem:[#allocation119_spill] sm:$0xff] %v13950_v20  ;;  %4489 = vmatpush.msrb.mxu1 %v13972_v1  ;;  %4535 = vmatpush.msrb.mxu3 %v13986_v30  ;;  %v17585_v20 = vld [vmem:[#allocation275_spill] sm:$0xff] }
 0x3de   : > { %17573 = vst [vmem:[#allocation305_spill] sm:$0xff] %v13956_v58  ;;  %4467 = vmatpush.msrb.mxu0 %v17582_v45  ;;  %v7181_v58 = vunpack.i.h.bf16 %v13488_v25  ;;  %4513 = vmatpush.msrb.mxu2 %v17584_v47  ;;  %v17589_v45 = vld [vmem:[#allocation276_spill] sm:$0xff]  ;;  %v14012_v47 = vpop.permute.xlu2 %7258 }
 0x3df   : > { %17574 = vst [vmem:[#allocation307_spill] sm:$0xff] %v13958_v9  ;;  %4536 = vmatpush.msrb.mxu3 %v17585_v20  ;;  %v17587_v9 = vld [vmem:[#allocation268_spill] sm:$0xff] }
 0x3e0   : > { %17575 = vst [vmem:[#allocation310_spill] sm:$0xff] %v13960_v16  ;;  %v7175_v16 = vunpack.i.l.bf16 %v13532_v51  ;;  %4468 = vmatpush.msrb.mxu0 %v17586_v41  ;;  %v7170_v41 = vunpack.i.l.bf16 %v13464_v3 }
 0x3e1   : > { %17577 = vst [vmem:[#allocation308_spill] sm:$0xff] %v13968_v8  ;;  %v17583_v8 = vld [vmem:[#allocation102_spill] sm:$0xff]  ;;  %4537 = vmatpush.msrb.mxu3 %v17589_v45  ;;  %v14022_v45 = vpop.f32.mrf.mxu0 }
 0x3e2   : > { %17578 = vst [vmem:[#allocation311_spill] sm:$0xff] %v13972_v1  ;;  %v7176_v1 = vunpack.i.h.bf16 %v13532_v51  ;;  %4490 = vmatpush.msrb.mxu1 %v17583_v8  ;;  %v17588_v51 = vld [vmem:[#allocation326_spill] sm:$0xff]  ;;  %v17590_v8 = vunpack.i.l.bf16 %v13237_v55  ;;  %v4351_v20 = vsel %vm4267_vm6, %v7240_v38, %v7175_v16 }
 0x3e3   : > { %17579 = vst [vmem:[#allocation312_spill] sm:$0xff] %v13980_v54  ;;  %4514 = vmatpush.msrb.mxu2 %v17588_v51  ;;  %v14014_v54 = vpop.permute.xlu1 %7268  ;;  %v17591_v51 = vunpack.i.l.bf16 %v13488_v25 }
 0x3e4   : > { %17581 = vst [vmem:[#allocation287_spill] sm:$0xff] %v13986_v30  ;;  %v7190_v30 = vunpack.i.l.bf16 %v13618_v21  ;;  %4491 = vmatpush.msrb.mxu1 %v17587_v9  ;;  %v4353_v33 = vsel %vm4267_vm6, %v17590_v8, %v7240_v38  ;;  %v4349_v9 = vsel %vm4267_vm6, %v7175_v16, %v7176_v1  ;;  %v14024_v8 = vpop.f32.mrf.mxu1  ;;  %v17594_v38 = vunpack.i.h.bf16 %v13304_v63  ;;  %v14038_v63 = vpop.f32.mrf.mxu2 }
 0x3e5   : > { %4469 = vmatpush.msrb.mxu0 %v4353_v33  ;;  %v4347_v55 = vsel %vm4267_vm6, %v7176_v1, %v17591_v51  ;;  %17592 = vst [vmem:[#allocation203_spill] sm:$0xff] %v14022_v45  ;;  %4515 = vmatpush.msrb.mxu2 %v4349_v9  ;;  %v4350_v16 = vsel %vm4267_vm6, %v7255_v43, %v7181_v58  ;;  %v14040_v51 = vpop.f32.mrf.mxu3  ;;  %v17608_v45 = vld [vmem:[#allocation187_spill] sm:$0xff] }
 0x3e6   : > { %4492 = vmatpush.msrb.mxu1 %v4351_v20  ;;  %17593 = vst [vmem:[#allocation154_spill] sm:$0xff] %v14024_v8  ;;  %4538 = vmatpush.msrb.mxu3 %v4347_v55  ;;  %v4352_v33 = vsel %vm4267_vm6, %v17594_v38, %v7255_v43  ;;  %v4348_v1 = vsel %vm4267_vm6, %v7181_v58, %v7190_v30  ;;  %v17595_v20 = vunpack.i.h.bf16 %v13618_v21  ;;  %v14042_v43 = vpop.permute.xlu0 %7263  ;;  %v7634_v55 = vld [vmem:[%s8006_s19 + $0xe0] sm:$0xff]  ;;  %v7635_v38 = vld [vmem:[%s8006_s19 + $0xe8] sm:$0xff]  ;;  %v7636_v58 = vld [vmem:[%s8006_s19 + $0xf0] sm:$0xff] }
 0x3e7   : > { %4470 = vmatpush.msrb.mxu0 %v4352_v33  ;;  %17596 = vst [vmem:[#allocation241_spill] sm:$0xff] %v14038_v63  ;;  %4516 = vmatpush.msrb.mxu2 %v4348_v1  ;;  %v7637_v33 = vld [vmem:[%s8006_s19 + $0xf8] sm:$0xff]  ;;  %v17598_v1 = vld [vmem:[#allocation201_spill] sm:$0xff]  ;;  %v17605_v8 = vld [vmem:[#allocation194_spill] sm:$0xff] }
 0x3e8   : > { %4493 = vmatpush.msrb.mxu1 %v4350_v16  ;;  %v4346_v9 = vsel %vm4267_vm6, %v7190_v30, %v17595_v20  ;;  %17597 = vst [vmem:[#allocation248_spill] sm:$0xff] %v14040_v51  ;;  %v7638_v30 = vld [vmem:[%s8006_s19 + $0x20] sm:$0xff]  ;;  %v7639_v16 = vld [vmem:[%s8006_s19 + $0x28] sm:$0xff]  ;;  %v7640_v20 = vld [vmem:[%s8006_s19 + $0x30] sm:$0xff] }
 0x3e9   : > { %4539 = vmatpush.msrb.mxu3 %v4346_v9  ;;  %4471 = vmatpush.msrb.mxu0 %v7634_v55  ;;  %v7641_v51 = vld [vmem:[%s8006_s19 + $0x38] sm:$0xff]  ;;  %v7155_v55 = vunpack.i.l.bf16 %v13430_v14  ;;  %v14055_v63 = vpop.f32.mrf.mxu0 }
 0x3ea   : > { %4494 = vmatpush.msrb.mxu1 %v7635_v38  ;;  %4517 = vmatpush.msrb.mxu2 %v7636_v58  ;;  %v17599_v9 = vld [vmem:[#allocation207_spill] sm:$0xff]  ;;  %17600 = vst [vmem:[#allocation201_spill] sm:$0xff] %v14055_v63  ;;  %v7225_v58 = vunpack.i.l.bf16 %v13742_v24 }
 0x3eb   : > { %4540 = vmatpush.msrb.mxu3 %v7637_v33  ;;  %4472 = vmatpush.msrb.mxu0 %v7638_v30  ;;  %v17602_v33 = vld [vmem:[#allocation188_spill] sm:$0xff]  ;;  %v17603_v30 = vld [vmem:[#allocation258_spill] sm:$0xff] }
 0x3ec   : > { %4495 = vmatpush.msrb.mxu1 %v7639_v16  ;;  %4518 = vmatpush.msrb.mxu2 %v7640_v20  ;;  %v14057_v38 = vpop.f32.mrf.mxu1  ;;  %v7156_v16 = vunpack.i.h.bf16 %v13430_v14  ;;  %v14064_v20 = vpop.permute.xlu2 %7273  ;;  %v17609_v14 = vld [vmem:[#allocation259_spill] sm:$0xff] }
 0x3ed   : > { %4541 = vmatpush.msrb.mxu3 %v7641_v51  ;;  %4473 = vmatpush.msrb.mxu0 %v17598_v1  ;;  %17601 = vst [vmem:[#allocation207_spill] sm:$0xff] %v14057_v38  ;;  %v14066_v1 = vpop.permute.xlu1 %7283  ;;  %v14070_v63 = vpop.f32.mrf.mxu2 }
 0x3ee   : > { %4496 = vmatpush.msrb.mxu1 %v17599_v9  ;;  %4519 = vmatpush.msrb.mxu2 %v17602_v33  ;;  %v17604_v9 = vld [vmem:[#allocation256_spill] sm:$0xff]  ;;  %17606 = vst [vmem:[#allocation188_spill] sm:$0xff] %v14070_v63  ;;  %v14072_v38 = vpop.f32.mrf.mxu3  ;;  %v7166_v33 = vunpack.i.h.bf16 %v13446_v31  ;;  %v17610_v31 = vunpack.i.l.bf16 %v17539_v6  ;;  %v17614_v6 = vunpack.i.l.bf16 %v13458_v28  ;;  %v7186_v63 = vunpack.i.h.bf16 %v13546_v19 }
 0x3ef   : > { %4542 = vmatpush.msrb.mxu3 %v17603_v30  ;;  %4474 = vmatpush.msrb.mxu0 %v17604_v9  ;;  %17607 = vst [vmem:[#allocation258_spill] sm:$0xff] %v14072_v38  ;;  %v7231_v30 = vunpack.i.h.bf16 %v13821_v4  ;;  %v14094_v9 = vpop.permute.xlu0 %7278 }
 0x3f0   : > { %4497 = vmatpush.msrb.mxu1 %v17605_v8  ;;  %4520 = vmatpush.msrb.mxu2 %v17608_v45  ;;  %v14088_v8 = vsel %vm4267_vm6, %v17610_v31, %v7225_v58  ;;  %v14092_v45 = vsel %vm4267_vm6, %v7225_v58, %v7155_v55  ;;  %v14106_v31 = vsel %vm4267_vm6, %v7156_v16, %v17614_v6  ;;  %v17616_v58 = vunpack.i.h.bf16 %v13181_v5 }
 0x3f1   : > { %4543 = vmatpush.msrb.mxu3 %v17609_v14  ;;  %4475 = vmatmul.f32.vlgmr.msrb.gmra.mxu0 %v13765_v39  ;;  %17611 = vst [vmem:[#allocation256_spill] sm:$0xff] %v14088_v8  ;;  %v14100_v14 = vsel %vm4267_vm6, %v7155_v55, %v7156_v16  ;;  %v14118_v55 = vsel %vm4267_vm6, %v7231_v30, %v7166_v33  ;;  %v17620_v5 = vunpack.i.h.bf16 %v13464_v3  ;;  %v14136_v38 = vpop.f32.mrf.mxu0 }
 0x3f2   : > { %4498 = vmatmul.f32.vlgmr.msrb.gmra.mxu1 %v13765_v39  ;;  %4521 = vmatmul.f32.vlgmr.msrb.gmra.mxu2 %v13765_v39  ;;  %17612 = vst [vmem:[#allocation194_spill] sm:$0xff] %v14092_v45  ;;  %v14114_v51 = vsel %vm4267_vm6, %v17616_v58, %v7231_v30  ;;  %v14124_v16 = vsel %vm4267_vm6, %v7166_v33, %v7170_v41  ;;  %v7642_v30 = vld [vmem:[%s8014_s26 + $0x100] sm:$0xff]  ;;  %v7643_v58 = vld [vmem:[%s8014_s26 + $0x108] sm:$0xff] }
 0x3f3   : > { %4544 = vmatmul.f32.vlgmr.msrb.gmra.mxu3 %v13765_v39  ;;  %4551 = vmatpush.msra.mxu0 %v14088_v8  ;;  %17613 = vst [vmem:[#allocation187_spill] sm:$0xff] %v14100_v14  ;;  %v14130_v6 = vsel %vm4267_vm6, %v7170_v41, %v17620_v5  ;;  %v7644_v41 = vld [vmem:[%s8014_s26 + $0x110] sm:$0xff]  ;;  %v7645_v5 = vld [vmem:[%s8014_s26 + $0x118] sm:$0xff] }
 0x3f4   : > { %4574 = vmatpush.msra.mxu1 %v14092_v45  ;;  %17615 = vst [vmem:[#allocation259_spill] sm:$0xff] %v14106_v31  ;;  %4597 = vmatpush.msra.mxu2 %v14100_v14  ;;  %v14138_v33 = vpop.f32.mrf.mxu1  ;;  %v7210_v45 = vunpack.i.l.bf16 %v13686_v34 }
 0x3f5   : > { %4620 = vmatpush.msra.mxu3 %v14106_v31  ;;  %17617 = vst [vmem:[#allocation327_spill] sm:$0xff] %v14114_v51  ;;  %4552 = vmatpush.msra.mxu0 %v14114_v51  ;;  %v14152_v19 = vpop.f32.mrf.mxu2  ;;  %v7648_v31 = vld [vmem:[%s8014_s26 + $0x50] sm:$0xff] }
 0x3f6   : > { %17618 = vst [vmem:[#allocation328_spill] sm:$0xff] %v14118_v55  ;;  %4575 = vmatpush.msra.mxu1 %v14118_v55  ;;  %4598 = vmatpush.msra.mxu2 %v14124_v16  ;;  %v7251_v55 = vunpack.i.h.bf16 %v13974_v56  ;;  %v14154_v51 = vpop.f32.mrf.mxu3 }
 0x3f7   : > { %17619 = vst [vmem:[#allocation329_spill] sm:$0xff] %v14124_v16  ;;  %4621 = vmatpush.msra.mxu3 %v14130_v6  ;;  %4553 = vmatpush.msra.mxu0 %v7642_v30  ;;  %v7195_v30 = vunpack.i.l.bf16 %v13562_v32  ;;  %v14146_v16 = vpop.permute.xlu2 %7288 }
 0x3f8   : > { %17621 = vst [vmem:[#allocation330_spill] sm:$0xff] %v14130_v6  ;;  %4576 = vmatpush.msra.mxu1 %v7643_v58  ;;  %4599 = vmatpush.msra.mxu2 %v7644_v41  ;;  %v14148_v58 = vpop.permute.xlu1 %7298  ;;  %v7201_v41 = vunpack.i.h.bf16 %v13630_v60  ;;  %v7649_v6 = vld [vmem:[%s8014_s26 + $0x58] sm:$0xff]  ;;  %v14176_v14 = vsel %vm3978_vm5, %v7251_v55, %v7186_v63  ;;  %v17789_v62 = vld [vmem:[#allocation256_spill] sm:$0xff] }
 0x3f9   : > { %17622 = vst [vmem:[#allocation331_spill] sm:$0xff] %v14136_v38  ;;  %4622 = vmatpush.msra.mxu3 %v7645_v5  ;;  %v7646_v38 = vld [vmem:[%s8014_s26 + $0x40] sm:$0xff]  ;;  %v7270_v5 = vunpack.i.l.bf16 %v14014_v54  ;;  %4478 = vmatmul.f32.gmra.mxu0 %v13851_v52  ;;  %v14185_v8 = vsel %vm3978_vm5, %v7186_v63, %v7195_v30 }
 0x3fa   : > { %17623 = vst [vmem:[#allocation332_spill] sm:$0xff] %v14138_v33  ;;  %4554 = vmatpush.msra.mxu0 %v7646_v38  ;;  %v7647_v33 = vld [vmem:[%s8014_s26 + $0x48] sm:$0xff]  ;;  %4600 = vmatpush.msra.mxu2 %v7648_v31  ;;  %v7220_v38 = vunpack.i.l.bf16 %v13774_v50  ;;  %v17626_v31 = vunpack.i.h.bf16 %v17550_v48  ;;  %v17629_v48 = vunpack.i.h.bf16 %v13562_v32 }
 0x3fb   : > { %4577 = vmatpush.msra.mxu1 %v7647_v33  ;;  %17624 = vst [vmem:[#allocation333_spill] sm:$0xff] %v14152_v19  ;;  %4623 = vmatpush.msra.mxu3 %v7649_v6  ;;  %v7285_v33 = vunpack.i.l.bf16 %v14066_v1  ;;  %v14179_v19 = vpop.permute.xlu0 %7293 }
 0x3fc   : > { %17625 = vst [vmem:[#allocation334_spill] sm:$0xff] %v14154_v51  ;;  %4501 = vmatmul.f32.gmra.mxu1 %v13851_v52  ;;  %4524 = vmatmul.f32.gmra.mxu2 %v13851_v52  ;;  %v14172_v6 = vsel %vm3978_vm5, %v17626_v31, %v7251_v55  ;;  %v7221_v51 = vunpack.i.h.bf16 %v13774_v50  ;;  %v14191_v31 = vsel %vm3978_vm5, %v7195_v30, %v17629_v48  ;;  %v7226_v55 = vunpack.i.h.bf16 %v13742_v24 }
 0x3fd   : > { %4547 = vmatmul.f32.gmra.mxu3 %v13851_v52  ;;  %17627 = vst [vmem:[#allocation335_spill] sm:$0xff] %v14172_v6  ;;  %4555 = vmatpush.msra.mxu0 %v14172_v6  ;;  %v7286_v50 = vunpack.i.h.bf16 %v14066_v1  ;;  %v14205_v6 = vsel %vm3978_vm5, %v7270_v5, %v7201_v41  ;;  %v7230_v30 = vunpack.i.l.bf16 %v13821_v4  ;;  %v14212_v24 = vsel %vm3978_vm5, %v7201_v41, %v7210_v45 }
 0x3fe   : > { %17628 = vst [vmem:[#allocation336_spill] sm:$0xff] %v14176_v14  ;;  %4578 = vmatpush.msra.mxu1 %v14176_v14  ;;  %4601 = vmatpush.msra.mxu2 %v14185_v8  ;;  %v17630_v14 = vunpack.i.l.bf16 %v13337_v22  ;;  %v17632_v22 = vunpack.i.h.bf16 %v13686_v34  ;;  %v17634_v4 = vunpack.i.l.bf16 %v13376_v44  ;;  %v14231_v41 = vsel %vm4267_vm6, %v7285_v33, %v7220_v38 }
 0x3ff   : > { %4624 = vmatpush.msra.mxu3 %v14191_v31  ;;  %17631 = vst [vmem:[#allocation337_spill] sm:$0xff] %v14212_v24  ;;  %v7216_v48 = vunpack.i.h.bf16 %v13721_v13  ;;  %v14243_v44 = vsel %vm4267_vm6, %v7220_v38, %v7221_v51 }
 0x400   : > { %v14201_v63 = vsel %vm3978_vm5, %v17630_v14, %v7270_v5  ;;  %4579 = vmatpush.msra.mxu1 %v14205_v6  ;;  %v14218_v1 = vsel %vm3978_vm5, %v7210_v45, %v17632_v22  ;;  %v7296_v14 = vunpack.i.h.bf16 %v14179_v19  ;;  %4602 = vmatpush.msra.mxu2 %v14212_v24  ;;  %v14227_v5 = vsel %vm4267_vm6, %v17634_v4, %v7285_v33  ;;  %v14234_v45 = vpop.f32.mrf.mxu0  ;;  %v14236_v22 = vpop.f32.mrf.mxu1 }
 0x401   : > { %4556 = vmatpush.msra.mxu0 %v14201_v63  ;;  %17633 = vst [vmem:[#allocation338_spill] sm:$0xff] %v14218_v1  ;;  %4625 = vmatpush.msra.mxu3 %v14218_v1  ;;  %v7235_v24 = vunpack.i.l.bf16 %v13854_v40  ;;  %v17638_v4 = vunpack.i.h.bf16 %v13035_v57  ;;  %v14251_v1 = vpop.f32.mrf.mxu2  ;;  %v14266_v57 = vsel %vm4267_vm6, %v7286_v50, %v7226_v55 }
 0x402   : > { %17635 = vst [vmem:[#allocation339_spill] sm:$0xff] %v14231_v41  ;;  %4580 = vmatpush.msra.mxu1 %v14231_v41  ;;  %4603 = vmatpush.msra.mxu2 %v14243_v44  ;;  %v17641_v41 = vunpack.i.l.bf16 %v13424_v18  ;;  %v14277_v18 = vsel %vm4267_vm6, %v7226_v55, %v7230_v30 }
 0x403   : > { %17636 = vst [vmem:[#allocation340_spill] sm:$0xff] %v14234_v45  ;;  %4557 = vmatpush.msra.mxu0 %v14227_v5  ;;  %v14249_v33 = vsel %vm4267_vm6, %v7221_v51, %v17638_v4  ;;  %v14253_v45 = vpop.f32.mrf.mxu3  ;;  %v14268_v51 = vpop.permute.xlu2 %7303  ;;  %v7250_v4 = vunpack.i.l.bf16 %v13974_v56  ;;  %v7265_v56 = vunpack.i.l.bf16 %v14042_v43 }
 0x404   : > { %17637 = vst [vmem:[#allocation341_spill] sm:$0xff] %v14236_v22  ;;  %v7236_v22 = vunpack.i.h.bf16 %v13854_v40  ;;  %4626 = vmatpush.msra.mxu3 %v14249_v33  ;;  %v14262_v38 = vsel %vm4267_vm6, %v17641_v41, %v7286_v50  ;;  %4581 = vmatpush.msra.mxu1 %v14266_v57  ;;  %v17643_v40 = vunpack.i.l.bf16 %v17454_v35  ;;  %v7305_v41 = vunpack.i.l.bf16 %v14268_v51 }
 0x405   : > { %17639 = vst [vmem:[#allocation342_spill] sm:$0xff] %v14251_v1  ;;  %4558 = vmatpush.msra.mxu0 %v14262_v38  ;;  %4604 = vmatpush.msra.mxu2 %v14277_v18  ;;  %v17645_v1 = vld [vmem:[#allocation150_spill] sm:$0xff]  ;;  %v14297_v35 = vsel %vm3978_vm5, %v7296_v14, %v7216_v48 }
 0x406   : > { %17640 = vst [vmem:[#allocation343_spill] sm:$0xff] %v14253_v45  ;;  %v14271_v45 = vpop.permute.xlu1 %7313  ;;  %v14283_v50 = vsel %vm4267_vm6, %v7230_v30, %v17643_v40  ;;  %v7266_v30 = vunpack.i.h.bf16 %v14042_v43  ;;  %4582 = vmatpush.msra.mxu1 %v14297_v35  ;;  %v14304_v40 = vsel %vm3978_vm5, %v7216_v48, %v7235_v24  ;;  %v17650_v43 = vunpack.i.l.bf16 %v17472_v46 }
 0x407   : > { %17642 = vst [vmem:[#allocation344_spill] sm:$0xff] %v14266_v57  ;;  %4627 = vmatpush.msra.mxu3 %v14283_v50  ;;  %v17646_v57 = vunpack.i.h.bf16 %v17645_v1  ;;  %v17648_v1 = vunpack.i.h.bf16 %v17465_v49  ;;  %4605 = vmatpush.msra.mxu2 %v14304_v40  ;;  %v7276_v49 = vunpack.i.h.bf16 %v14064_v20  ;;  %v17653_v46 = vunpack.i.l.bf16 %v13488_v25 }
 0x408   : > { %17644 = vst [vmem:[#allocation345_spill] sm:$0xff] %v14283_v50  ;;  %v7275_v50 = vunpack.i.l.bf16 %v14064_v20  ;;  %v14320_v48 = vsel %vm3978_vm5, %v17650_v43, %v7236_v22  ;;  %v4343_v43 = vsel %vm4267_vm6, %v7305_v41, %v7265_v56  ;;  %v17655_v25 = vunpack.i.h.bf16 %v13618_v21  ;;  %v14361_v21 = vpop.f32.mrf.mxu0 }
 0x409   : > { %v14293_v55 = vsel %vm3978_vm5, %v17646_v57, %v7296_v14  ;;  %17647 = vst [vmem:[#allocation150_spill] sm:$0xff] %v14297_v35  ;;  %v14310_v57 = vsel %vm3978_vm5, %v7235_v24, %v17648_v1  ;;  %v7315_v14 = vunpack.i.l.bf16 %v14271_v45  ;;  %v17651_v35 = vld [vmem:[#allocation246_spill] sm:$0xff]  ;;  %4583 = vmatpush.msra.mxu1 %v14320_v48  ;;  %v14327_v24 = vsel %vm3978_vm5, %v7236_v22, %v7250_v4 }
 0x40a   : > { %4559 = vmatpush.msra.mxu0 %v14293_v55  ;;  %17649 = vst [vmem:[#allocation346_spill] sm:$0xff] %v14310_v57  ;;  %4628 = vmatpush.msra.mxu3 %v14310_v57  ;;  %v17652_v1 = vunpack.i.h.bf16 %v13208_v11  ;;  %v4345_v20 = vsel %vm4267_vm6, %v17653_v46, %v7305_v41  ;;  %v4341_v11 = vsel %vm4267_vm6, %v7265_v56, %v7266_v30  ;;  %v17654_v22 = vunpack.i.l.bf16 %v13320_v42  ;;  %v14363_v46 = vpop.f32.mrf.mxu1 }
 0x40b   : > { %4606 = vmatpush.msra.mxu2 %v14327_v24  ;;  %4584 = vmatpush.msra.mxu1 %v4343_v43  ;;  %v4342_v41 = vsel %vm4267_vm6, %v7315_v14, %v7275_v50  ;;  %v4340_v42 = vsel %vm4267_vm6, %v7275_v50, %v7276_v49  ;;  %v17656_v56 = vunpack.i.l.bf16 %v13361_v59  ;;  %v7650_v50 = vld [vmem:[%s8006_s19 + $0x100] sm:$0xff]  ;;  %v7651_v59 = vld [vmem:[%s8006_s19 + $0x108] sm:$0xff]  ;;  %v7652_v43 = vld [vmem:[%s8006_s19 + $0x110] sm:$0xff] }
 0x40c   : > { %4560 = vmatpush.msra.mxu0 %v17651_v35  ;;  %v14333_v57 = vsel %vm3978_vm5, %v7250_v4, %v17652_v1  ;;  %v4339_v4 = vsel %vm4267_vm6, %v7266_v30, %v17654_v22  ;;  %v4344_v1 = vsel %vm4267_vm6, %v17655_v25, %v7315_v14  ;;  %v14365_v14 = vpop.f32.mrf.mxu2  ;;  %v7654_v22 = vld [vmem:[%s8006_s19 + $0x40] sm:$0xff]  ;;  %v7656_v25 = vld [vmem:[%s8006_s19 + $0x50] sm:$0xff] }
 0x40d   : > { %4629 = vmatpush.msra.mxu3 %v14333_v57  ;;  %4607 = vmatpush.msra.mxu2 %v4341_v11  ;;  %v4338_v30 = vsel %vm4267_vm6, %v7276_v49, %v17656_v56  ;;  %v7653_v49 = vld [vmem:[%s8006_s19 + $0x118] sm:$0xff]  ;;  %v14373_v11 = vpop.permute.xlu0 %7308  ;;  %v7241_v56 = vunpack.i.h.bf16 %v13823_v26  ;;  %v7256_v26 = vunpack.i.h.bf16 %v13916_v29  ;;  %v17670_v29 = vunpack.i.l.bf16 %v13458_v28 }
 0x40e   : > { %4561 = vmatpush.msra.mxu0 %v4345_v20  ;;  %4585 = vmatpush.msra.mxu1 %v4342_v41  ;;  %v14367_v20 = vpop.f32.mrf.mxu3  ;;  %v17658_v41 = vld [vmem:[#allocation153_spill] sm:$0xff] }
 0x40f   : > { %4630 = vmatpush.msra.mxu3 %v4339_v4  ;;  %4608 = vmatpush.msra.mxu2 %v4340_v42  ;;  %17657 = vst [vmem:[#allocation246_spill] sm:$0xff] %v14367_v20  ;;  %v7655_v4 = vld [vmem:[%s8006_s19 + $0x48] sm:$0xff]  ;;  %v17659_v42 = vld [vmem:[#allocation262_spill] sm:$0xff] }
 0x410   : > { %4562 = vmatpush.msra.mxu0 %v4344_v1  ;;  %4586 = vmatpush.msra.mxu1 %v7651_v59  ;;  %v7657_v1 = vld [vmem:[%s8006_s19 + $0x58] sm:$0xff] }
 0x411   : > { %4631 = vmatpush.msra.mxu3 %v4338_v30  ;;  %4609 = vmatpush.msra.mxu2 %v7652_v43  ;;  %v7300_v30 = vunpack.i.l.bf16 %v14148_v58  ;;  %v17661_v59 = vld [vmem:[#allocation271_spill] sm:$0xff]  ;;  %v7260_v43 = vunpack.i.l.bf16 %v14012_v47 }
 0x412   : > { %4563 = vmatpush.msra.mxu0 %v7650_v50  ;;  %4587 = vmatpush.msra.mxu1 %v7655_v4  ;;  %v17660_v50 = vld [vmem:[#allocation270_spill] sm:$0xff]  ;;  %v17663_v4 = vld [vmem:[#allocation197_spill] sm:$0xff] }
 0x413   : > { %4632 = vmatpush.msra.mxu3 %v7653_v49  ;;  %4610 = vmatpush.msra.mxu2 %v7656_v25  ;;  %v7245_v49 = vunpack.i.l.bf16 %v13914_v12  ;;  %v14389_v25 = vpop.f32.mrf.mxu0 }
 0x414   : > { %4564 = vmatpush.msra.mxu0 %v7654_v22  ;;  %4588 = vmatpush.msra.mxu1 %v17659_v42  ;;  %v17662_v22 = vld [vmem:[#allocation260_spill] sm:$0xff]  ;;  %17664 = vst [vmem:[#allocation153_spill] sm:$0xff] %v14389_v25  ;;  %v14399_v20 = vpop.f32.mrf.mxu2 }
 0x415   : > { %4633 = vmatpush.msra.mxu3 %v7657_v1  ;;  %4611 = vmatpush.msra.mxu2 %v17660_v50  ;;  %v14391_v1 = vpop.f32.mrf.mxu1  ;;  %v17666_v42 = vld [vmem:[#allocation320_spill] sm:$0xff]  ;;  %v17667_v50 = vld [vmem:[#allocation131_spill] sm:$0xff]  ;;  %17668 = vst [vmem:[#allocation270_spill] sm:$0xff] %v14399_v20 }
 0x416   : > { %4565 = vmatpush.msra.mxu0 %v17658_v41  ;;  %4589 = vmatpush.msra.mxu1 %v17663_v4  ;;  %17665 = vst [vmem:[#allocation262_spill] sm:$0xff] %v14391_v1  ;;  %v7301_v41 = vunpack.i.h.bf16 %v14148_v58  ;;  %v4289_v58 = vsel %vm4267_vm6, %v17670_v29, %v7300_v30  ;;  %v4287_v4 = vsel %vm4267_vm6, %v7300_v30, %v7241_v56  ;;  %v17827_v20 = vld [vmem:[#allocation79_spill] sm:$0xff]  ;;  %v17828_v1 = vld [vmem:[#allocation337_spill] sm:$0xff] }
 0x417   : > { %4634 = vmatpush.msra.mxu3 %v17661_v59  ;;  %4612 = vmatpush.msra.mxu2 %v17666_v42  ;;  %v4285_v42 = vsel %vm4267_vm6, %v7241_v56, %v7245_v49  ;;  %v4284_v56 = vsel %vm4267_vm6, %v7256_v26, %v7260_v43 }
 0x418   : > { %4566 = vmatpush.msra.mxu0 %v17662_v22  ;;  %v14401_v22 = vpop.f32.mrf.mxu3  ;;  %4590 = vmatmul.f32.vlgmr.msra.gmra.mxu1 %v13765_v39  ;;  %v4286_v29 = vsel %vm4267_vm6, %v7301_v41, %v7256_v26  ;;  %v7661_v26 = vld [vmem:[%s8014_s26 + $0x138] sm:$0xff] }
 0x419   : > { %4635 = vmatpush.msra.mxu3 %v17667_v50  ;;  %17669 = vst [vmem:[#allocation271_spill] sm:$0xff] %v14401_v22  ;;  %4567 = vmatmul.f32.vlgmr.msra.gmra.mxu0 %v13765_v39  ;;  %v17671_v50 = vunpack.i.h.bf16 %v13914_v12  ;;  %v17672_v22 = vunpack.i.h.bf16 %v13464_v3 }
 0x41a   : > { %4613 = vmatmul.f32.vlgmr.msra.gmra.mxu2 %v13765_v39  ;;  %4636 = vmatmul.f32.vlgmr.msra.gmra.mxu3 %v13765_v39 }
 0x41b   : > { %4643 = vmatpush.msrb.mxu0 %v4289_v58  ;;  %4666 = vmatpush.msrb.mxu1 %v4287_v4  ;;  %v4283_v59 = vsel %vm4267_vm6, %v7245_v49, %v17671_v50  ;;  %v4288_v30 = vsel %vm4267_vm6, %v17672_v22, %v7301_v41  ;;  %v7324_v58 = vpop.permute.xlu0 %7323  ;;  %v17673_v49 = vunpack.i.h.bf16 %v14012_v47  ;;  %v7659_v22 = vld [vmem:[%s8014_s26 + $0x128] sm:$0xff]  ;;  %v7271_v41 = vunpack.i.h.bf16 %v14014_v54 }
 0x41c   : > { %4689 = vmatpush.msrb.mxu2 %v4285_v42  ;;  %4712 = vmatpush.msrb.mxu3 %v4283_v59  ;;  %v7658_v59 = vld [vmem:[%s8014_s26 + $0x120] sm:$0xff]  ;;  %v7325_v4 = vunpack.i.l.bf16 %v7324_v58  ;;  %v7660_v42 = vld [vmem:[%s8014_s26 + $0x130] sm:$0xff]  ;;  %v7290_v54 = vunpack.i.l.bf16 %v14146_v16 }
 0x41d   : > { %4644 = vmatpush.msrb.mxu0 %v4288_v30  ;;  %4667 = vmatpush.msrb.mxu1 %v4286_v29  ;;  %v4282_v3 = vsel %vm4267_vm6, %v7260_v43, %v17673_v49  ;;  %v7280_v43 = vunpack.i.l.bf16 %v14094_v9  ;;  %v7662_v30 = vld [vmem:[%s8014_s26 + $0x60] sm:$0xff]  ;;  %v7663_v29 = vld [vmem:[%s8014_s26 + $0x68] sm:$0xff]  ;;  %v14442_v49 = vpop.f32.mrf.mxu1 }
 0x41e   : > { %4690 = vmatpush.msrb.mxu2 %v4284_v56  ;;  %4713 = vmatpush.msrb.mxu3 %v4282_v3  ;;  %v14440_v56 = vpop.f32.mrf.mxu0  ;;  %17675 = vst [vmem:[#allocation197_spill] sm:$0xff] %v14442_v49  ;;  %v7326_v3 = vunpack.i.h.bf16 %v7324_v58  ;;  %v17678_v58 = vunpack.i.h.bf16 %v13562_v32  ;;  %v17680_v32 = vunpack.i.h.bf16 %v13686_v34 }
 0x41f   : > { %4645 = vmatpush.msrb.mxu0 %v7658_v59  ;;  %4668 = vmatpush.msrb.mxu1 %v7659_v22  ;;  %17674 = vst [vmem:[#allocation260_spill] sm:$0xff] %v14440_v56  ;;  %v7664_v59 = vld [vmem:[%s8014_s26 + $0x70] sm:$0xff]  ;;  %v7665_v22 = vld [vmem:[%s8014_s26 + $0x78] sm:$0xff] }
 0x420   : > { %4691 = vmatpush.msrb.mxu2 %v7660_v42  ;;  %4714 = vmatpush.msrb.mxu3 %v7661_v26  ;;  %v7291_v42 = vunpack.i.h.bf16 %v14146_v16  ;;  %v14448_v26 = vpop.f32.mrf.mxu2  ;;  %v14450_v50 = vpop.f32.mrf.mxu3  ;;  %v4000_v16 = vsel %vm3978_vm5, %v7325_v4, %v7271_v41 }
 0x421   : > { %4646 = vmatpush.msrb.mxu0 %v7662_v30  ;;  %4669 = vmatpush.msrb.mxu1 %v7663_v29  ;;  %17676 = vst [vmem:[#allocation320_spill] sm:$0xff] %v14448_v26  ;;  %v4002_v29 = vsel %vm3978_vm5, %v17678_v58, %v7325_v4  ;;  %v4001_v58 = vsel %vm3978_vm5, %v17680_v32, %v7326_v3  ;;  %v17834_v26 = vld [vmem:[#allocation29_spill] sm:$0xff] }
 0x422   : > { %4692 = vmatpush.msrb.mxu2 %v7664_v59  ;;  %4715 = vmatpush.msrb.mxu3 %v7665_v22  ;;  %17677 = vst [vmem:[#allocation131_spill] sm:$0xff] %v14450_v50  ;;  %v3998_v59 = vsel %vm3978_vm5, %v7271_v41, %v7280_v43  ;;  %v17679_v22 = vunpack.i.h.bf16 %v14094_v9  ;;  %v3999_v4 = vsel %vm3978_vm5, %v7326_v3, %v7290_v54  ;;  %v17832_v50 = vld [vmem:[#allocation82_spill] sm:$0xff] }
 0x423   : > { %4570 = vmatmul.f32.gmra.mxu0 %v13851_v52  ;;  %4593 = vmatmul.f32.gmra.mxu1 %v13851_v52  ;;  %v3997_v41 = vsel %vm3978_vm5, %v7290_v54, %v7291_v42 }
 0x424   : > { %4616 = vmatmul.f32.gmra.mxu2 %v13851_v52  ;;  %4639 = vmatmul.f32.gmra.mxu3 %v13851_v52  ;;  %v3996_v30 = vsel %vm3978_vm5, %v7280_v43, %v17679_v22 }
 0x425   : > { %4647 = vmatpush.msrb.mxu0 %v4002_v29  ;;  %4670 = vmatpush.msrb.mxu1 %v4000_v16  ;;  %v17681_v29 = vunpack.i.l.bf16 %v14179_v19  ;;  %v17696_v16 = vld [vmem:[#allocation255_spill] sm:$0xff] }
 0x426   : > { %4693 = vmatpush.msrb.mxu2 %v3998_v59  ;;  %4716 = vmatpush.msrb.mxu3 %v3996_v30  ;;  %v14483_v34 = vpop.f32.mrf.mxu0  ;;  %v14485_v30 = vpop.f32.mrf.mxu1  ;;  %v17697_v59 = vld [vmem:[#allocation28_spill] sm:$0xff] }
 0x427   : > { %4648 = vmatpush.msrb.mxu0 %v4001_v58  ;;  %4671 = vmatpush.msrb.mxu1 %v3999_v4  ;;  %v3995_v43 = vsel %vm3978_vm5, %v7291_v42, %v17681_v29  ;;  %17682 = vst [vmem:[#allocation347_spill] sm:$0xff] %v14483_v34  ;;  %v17689_v42 = vld [vmem:[#allocation303_spill] sm:$0xff]  ;;  %v17700_v58 = vld [vmem:[#allocation245_spill] sm:$0xff]  ;;  %v17701_v4 = vld [vmem:[#allocation242_spill] sm:$0xff] }
 0x428   : > { %4694 = vmatpush.msrb.mxu2 %v3997_v41  ;;  %4717 = vmatpush.msrb.mxu3 %v3995_v43  ;;  %17683 = vst [vmem:[#allocation348_spill] sm:$0xff] %v14485_v30  ;;  %v14489_v54 = vpop.f32.mrf.mxu2  ;;  %v14491_v3 = vpop.f32.mrf.mxu3  ;;  %v7666_v43 = vld [vmem:[%s8006_s19 + $0x120] sm:$0xff]  ;;  %v17819_v30 = vld [vmem:[#allocation71_spill] sm:$0xff]  ;;  %v17826_v34 = vld [vmem:[#allocation30_spill] sm:$0xff] }
 0x429   : > { %4649 = vmatpush.msrb.mxu0 %v13496_v61  ;;  %4672 = vmatpush.msrb.mxu1 %v13502_v36  ;;  %17684 = vst [vmem:[#allocation349_spill] sm:$0xff] %v14489_v54  ;;  %v14497_v61 = vpop.permute.xlu1 %7328  ;;  %v17686_v36 = vld [vmem:[#allocation273_spill] sm:$0xff]  ;;  %v17814_v54 = vld [vmem:[#allocation335_spill] sm:$0xff] }
 0x42a   : > { %4695 = vmatpush.msrb.mxu2 %v13506_v7  ;;  %4718 = vmatpush.msrb.mxu3 %v13514_v0  ;;  %17685 = vst [vmem:[#allocation350_spill] sm:$0xff] %v14491_v3  ;;  %v17687_v7 = vld [vmem:[#allocation304_spill] sm:$0xff]  ;;  %v17688_v0 = vld [vmem:[#allocation257_spill] sm:$0xff]  ;;  %v17813_v3 = vld [vmem:[#allocation66_spill] sm:$0xff] }
 0x42b   : > { %4650 = vmatpush.msrb.mxu0 %v13520_v17  ;;  %4673 = vmatpush.msrb.mxu1 %v13528_v27  ;;  %v17690_v17 = vld [vmem:[#allocation209_spill] sm:$0xff]  ;;  %v17693_v27 = vld [vmem:[#allocation170_spill] sm:$0xff] }
 0x42c   : > { %4696 = vmatpush.msrb.mxu2 %v17462_v15  ;;  %4719 = vmatpush.msrb.mxu3 %v13542_v2  ;;  %v17691_v15 = vld [vmem:[#allocation282_spill] sm:$0xff] }
 0x42d   : > { %4651 = vmatpush.msrb.mxu0 %v13570_v37  ;;  %4674 = vmatpush.msrb.mxu1 %v13581_v23  ;;  %v17692_v2 = vld [vmem:[#allocation254_spill] sm:$0xff]  ;;  %v17694_v23 = vld [vmem:[#allocation171_spill] sm:$0xff]  ;;  %v17695_v37 = vld [vmem:[#allocation185_spill] sm:$0xff] }
 0x42e   : > { %4697 = vmatpush.msrb.mxu2 %v17686_v36  ;;  %4720 = vmatpush.msrb.mxu3 %v17687_v7  ;;  %v14513_v22 = vpop.f32.mrf.mxu0  ;;  %v14515_v32 = vpop.f32.mrf.mxu1  ;;  %v7667_v36 = vld [vmem:[%s8006_s19 + $0x128] sm:$0xff]  ;;  %v7668_v7 = vld [vmem:[%s8006_s19 + $0x130] sm:$0xff] }
 0x42f   : > { %4652 = vmatpush.msrb.mxu0 %v17688_v0  ;;  %4675 = vmatpush.msrb.mxu1 %v17689_v42  ;;  %17698 = vst [vmem:[#allocation273_spill] sm:$0xff] %v14513_v22  ;;  %v7669_v0 = vld [vmem:[%s8006_s19 + $0x138] sm:$0xff]  ;;  %v17823_v22 = vld [vmem:[#allocation76_spill] sm:$0xff] }
 0x430   : > { %4698 = vmatpush.msrb.mxu2 %v17690_v17  ;;  %4721 = vmatpush.msrb.mxu3 %v17691_v15  ;;  %17699 = vst [vmem:[#allocation304_spill] sm:$0xff] %v14515_v32  ;;  %v14519_v41 = vpop.f32.mrf.mxu2  ;;  %v14521_v29 = vpop.f32.mrf.mxu3  ;;  %v7670_v17 = vld [vmem:[%s8006_s19 + $0x60] sm:$0xff]  ;;  %v7671_v15 = vld [vmem:[%s8006_s19 + $0x68] sm:$0xff]  ;;  %v17822_v32 = vld [vmem:[#allocation75_spill] sm:$0xff] }
 0x431   : > { %4653 = vmatpush.msrb.mxu0 %v17692_v2  ;;  %4676 = vmatpush.msrb.mxu1 %v17693_v27  ;;  %17702 = vst [vmem:[#allocation257_spill] sm:$0xff] %v14519_v41  ;;  %v7344_v42 = vpop.permute.xlu1 %7343  ;;  %v7672_v2 = vld [vmem:[%s8006_s19 + $0x70] sm:$0xff]  ;;  %v7673_v27 = vld [vmem:[%s8006_s19 + $0x78] sm:$0xff] }
 0x432   : > { %4699 = vmatpush.msrb.mxu2 %v17694_v23  ;;  %4722 = vmatpush.msrb.mxu3 %v17695_v37  ;;  %17703 = vst [vmem:[#allocation303_spill] sm:$0xff] %v14521_v29  ;;  %v17704_v23 = vld [vmem:[#allocation196_spill] sm:$0xff]  ;;  %v17705_v37 = vld [vmem:[#allocation266_spill] sm:$0xff] }
 0x433   : > { %4654 = vmatpush.msrb.mxu0 %v17696_v16  ;;  %4677 = vmatpush.msrb.mxu1 %v17697_v59  ;;  %v7306_v16 = vunpack.i.h.bf16 %v14268_v51  ;;  %v14534_v59 = vpop.permute.xlu2 %7318  ;;  %v17816_v29 = vld [vmem:[#allocation18_spill] sm:$0xff] }
 0x434   : > { %4700 = vmatpush.msrb.mxu2 %v17700_v58  ;;  %4723 = vmatpush.msrb.mxu3 %v17701_v4  ;;  %v7345_v58 = vunpack.i.l.bf16 %v7344_v42  ;;  %v17706_v4 = vld [vmem:[#allocation314_spill] sm:$0xff] }
 0x435   : > { %4655 = vmatpush.msrb.mxu0 %v7666_v43  ;;  %4678 = vmatpush.msrb.mxu1 %v7667_v36  ;;  %v17707_v43 = vld [vmem:[#allocation317_spill] sm:$0xff] }
 0x436   : > { %4701 = vmatpush.msrb.mxu2 %v7668_v7  ;;  %4724 = vmatpush.msrb.mxu3 %v7669_v0  ;;  %v7310_v7 = vunpack.i.l.bf16 %v14373_v11  ;;  %v17708_v0 = vld [vmem:[#allocation199_spill] sm:$0xff]  ;;  %v14545_v51 = vpop.f32.mrf.mxu1 }
 0x437   : > { %4656 = vmatpush.msrb.mxu0 %v7670_v17  ;;  %4679 = vmatpush.msrb.mxu1 %v7671_v15  ;;  %v17709_v17 = vld [vmem:[#allocation315_spill] sm:$0xff]  ;;  %v7316_v15 = vunpack.i.h.bf16 %v14271_v45  ;;  %17711 = vst [vmem:[#allocation282_spill] sm:$0xff] %v14545_v51  ;;  %v17716_v45 = vunpack.i.h.bf16 %v13914_v12  ;;  %v17718_v12 = vunpack.i.h.bf16 %v14012_v47  ;;  %v7674_v47 = vld [vmem:[%s8014_s26 + $0x140] sm:$0xff]  ;;  %v17808_v51 = vld [vmem:[#allocation62_spill] sm:$0xff] }
 0x438   : > { %4702 = vmatpush.msrb.mxu2 %v7672_v2  ;;  %4725 = vmatpush.msrb.mxu3 %v7673_v27  ;;  %v14543_v2 = vpop.f32.mrf.mxu0  ;;  %v7346_v27 = vunpack.i.h.bf16 %v7344_v42  ;;  %v14551_v36 = vpop.f32.mrf.mxu2 }
 0x439   : > { %4657 = vmatpush.msrb.mxu0 %v17704_v23  ;;  %4680 = vmatpush.msrb.mxu1 %v17705_v37  ;;  %17710 = vst [vmem:[#allocation209_spill] sm:$0xff] %v14543_v2  ;;  %v17712_v23 = vld [vmem:[#allocation318_spill] sm:$0xff]  ;;  %v17713_v37 = vld [vmem:[#allocation319_spill] sm:$0xff]  ;;  %v4281_v42 = vsel %vm4267_vm6, %v17716_v45, %v7345_v58  ;;  %v17809_v2 = vld [vmem:[#allocation329_spill] sm:$0xff] }
 0x43a   : > { %4703 = vmatpush.msrb.mxu2 %v17706_v4  ;;  %4726 = vmatpush.msrb.mxu3 %v17707_v43  ;;  %v16327_v4 = vunpack.i.h.bf16 %v14534_v59  ;;  %v7320_v43 = vunpack.i.l.bf16 %v14534_v59  ;;  %17714 = vst [vmem:[#allocation254_spill] sm:$0xff] %v14551_v36  ;;  %v4280_v45 = vsel %vm4267_vm6, %v17718_v12, %v7346_v27 }
 0x43b   : > { %4658 = vmatpush.msrb.mxu0 %v17708_v0  ;;  %4681 = vmatpush.msrb.mxu1 %v17709_v17  ;;  %v14553_v0 = vpop.f32.mrf.mxu3  ;;  %v4279_v17 = vsel %vm4267_vm6, %v7345_v58, %v7306_v16  ;;  %v4278_v58 = vsel %vm4267_vm6, %v7346_v27, %v7316_v15  ;;  %v7675_v27 = vld [vmem:[%s8014_s26 + $0x148] sm:$0xff] }
 0x43c   : > { %4704 = vmatpush.msrb.mxu2 %v17712_v23  ;;  %4727 = vmatpush.msrb.mxu3 %v17713_v37  ;;  %17715 = vst [vmem:[#allocation170_spill] sm:$0xff] %v14553_v0  ;;  %v4277_v23 = vsel %vm4267_vm6, %v7306_v16, %v7310_v7  ;;  %v17717_v37 = vunpack.i.h.bf16 %v14373_v11  ;;  %v4276_v16 = vsel %vm4267_vm6, %v7316_v15, %v7320_v43  ;;  %v7680_v0 = vld [vmem:[%s8014_s26 + $0x90] sm:$0xff] }
 0x43d   : > { %4659 = vmatmul.f32.vlgmr.msrb.gmra.mxu0 %v13765_v39  ;;  %4682 = vmatmul.f32.vlgmr.msrb.gmra.mxu1 %v13765_v39 }
 0x43e   : > { %4705 = vmatmul.f32.vlgmr.msrb.gmra.mxu2 %v13765_v39  ;;  %4728 = vmatmul.f32.vlgmr.msrb.gmra.mxu3 %v13765_v39  ;;  %v4275_v39 = vsel %vm4267_vm6, %v7310_v7, %v17717_v37  ;;  %v4274_v7 = vsel %vm4267_vm6, %v7320_v43, %v16327_v4  ;;  %v14588_v37 = vpop.permute.xlu0 %7338  ;;  %v7677_v43 = vld [vmem:[%s8014_s26 + $0x158] sm:$0xff]  ;;  %v14600_v4 = vpop.f32.mrf.mxu1 }
 0x43f   : > { %4735 = vmatpush.msra.mxu0 %v4281_v42  ;;  %4758 = vmatpush.msra.mxu1 %v4279_v17  ;;  %v7359_v42 = vpop.permute.xlu1 %7358  ;;  %v14585_v17 = vpop.permute.xlu2 %7333  ;;  %17720 = vst [vmem:[#allocation185_spill] sm:$0xff] %v14600_v4  ;;  %v7340_v12 = vunpack.i.l.bf16 %v14588_v37  ;;  %v17810_v4 = vld [vmem:[#allocation330_spill] sm:$0xff] }
 0x440   : > { %4781 = vmatpush.msra.mxu2 %v4277_v23  ;;  %4804 = vmatpush.msra.mxu3 %v4275_v39  ;;  %v7330_v23 = vunpack.i.l.bf16 %v14497_v61  ;;  %v7360_v15 = vunpack.i.l.bf16 %v7359_v42  ;;  %v7676_v39 = vld [vmem:[%s8014_s26 + $0x150] sm:$0xff] }
 0x441   : > { %4736 = vmatpush.msra.mxu0 %v4280_v45  ;;  %4759 = vmatpush.msra.mxu1 %v4278_v58  ;;  %v7331_v45 = vunpack.i.h.bf16 %v14497_v61  ;;  %v14605_v61 = vpop.f32.mrf.mxu2 }
 0x442   : > { %4782 = vmatpush.msra.mxu2 %v4276_v16  ;;  %4805 = vmatpush.msra.mxu3 %v4274_v7  ;;  %v7678_v16 = vld [vmem:[%s8014_s26 + $0x80] sm:$0xff]  ;;  %v7679_v7 = vld [vmem:[%s8014_s26 + $0x88] sm:$0xff]  ;;  %17721 = vst [vmem:[#allocation255_spill] sm:$0xff] %v14605_v61  ;;  %v17807_v61 = vld [vmem:[#allocation26_spill] sm:$0xff] }
 0x443   : > { %4737 = vmatpush.msra.mxu0 %v7674_v47  ;;  %4760 = vmatpush.msra.mxu1 %v7675_v27  ;;  %v7336_v47 = vunpack.i.h.bf16 %v14585_v17  ;;  %v14598_v27 = vpop.f32.mrf.mxu0  ;;  %v14607_v58 = vpop.f32.mrf.mxu3 }
 0x444   : > { %4783 = vmatpush.msra.mxu2 %v7676_v39  ;;  %4806 = vmatpush.msra.mxu3 %v7677_v43  ;;  %17719 = vst [vmem:[#allocation171_spill] sm:$0xff] %v14598_v27  ;;  %v7361_v39 = vunpack.i.h.bf16 %v7359_v42  ;;  %v7681_v43 = vld [vmem:[%s8014_s26 + $0x98] sm:$0xff]  ;;  %v17723_v42 = vunpack.i.h.bf16 %v14094_v9 }
 0x445   : > { %4738 = vmatpush.msra.mxu0 %v7678_v16  ;;  %4761 = vmatpush.msra.mxu1 %v7679_v7  ;;  %17722 = vst [vmem:[#allocation28_spill] sm:$0xff] %v14607_v58  ;;  %v3992_v16 = vsel %vm3978_vm5, %v7360_v15, %v7330_v23  ;;  %v3990_v7 = vsel %vm3978_vm5, %v7330_v23, %v7331_v45 }
 0x446   : > { %4784 = vmatpush.msra.mxu2 %v7680_v0  ;;  %4807 = vmatpush.msra.mxu3 %v7681_v43  ;;  %v3994_v0 = vsel %vm3978_vm5, %v17723_v42, %v7360_v15  ;;  %v17724_v43 = vunpack.i.l.bf16 %v14585_v17  ;;  %v17726_v42 = vunpack.i.l.bf16 %v14179_v19  ;;  %v3991_v23 = vsel %vm3978_vm5, %v7361_v39, %v7336_v47  ;;  %v14641_v19 = vpop.f32.mrf.mxu1 }
 0x447   : > { %4662 = vmatmul.f32.gmra.mxu0 %v13851_v52  ;;  %4685 = vmatmul.f32.gmra.mxu1 %v13851_v52  ;;  %17730 = vst [vmem:[#allocation242_spill] sm:$0xff] %v14641_v19  ;;  %v17759_v19 = vld [vmem:[#allocation269_spill] sm:$0xff] }
 0x448   : > { %4708 = vmatmul.f32.gmra.mxu2 %v13851_v52  ;;  %4731 = vmatmul.f32.gmra.mxu3 %v13851_v52  ;;  %v3988_v36 = vsel %vm3978_vm5, %v7331_v45, %v17724_v43  ;;  %v17725_v52 = vunpack.i.h.bf16 %v14588_v37  ;;  %v3993_v15 = vsel %vm3978_vm5, %v17726_v42, %v7361_v39  ;;  %v3989_v45 = vsel %vm3978_vm5, %v7336_v47, %v7340_v12  ;;  %v17732_v43 = vld [vmem:[#allocation280_spill] sm:$0xff]  ;;  %v17735_v42 = vld [vmem:[#allocation234_spill] sm:$0xff]  ;;  %v17737_v47 = vld [vmem:[#allocation219_spill] sm:$0xff] }
 0x449   : > { %4739 = vmatpush.msra.mxu0 %v3994_v0  ;;  %4762 = vmatpush.msra.mxu1 %v3992_v16  ;;  %v17727_v0 = vld [vmem:[#allocation214_spill] sm:$0xff]  ;;  %v17728_v16 = vld [vmem:[#allocation252_spill] sm:$0xff]  ;;  %v14645_v39 = vpop.f32.mrf.mxu2 }
 0x44a   : > { %v3987_v9 = vsel %vm3978_vm5, %v7340_v12, %v17725_v52  ;;  %4785 = vmatpush.msra.mxu2 %v3990_v7  ;;  %4808 = vmatpush.msra.mxu3 %v3988_v36  ;;  %v17731_v7 = vld [vmem:[#allocation253_spill] sm:$0xff]  ;;  %17733 = vst [vmem:[#allocation196_spill] sm:$0xff] %v14645_v39  ;;  %v7689_v39 = vld [vmem:[%s8006_s19 + $0x98] sm:$0xff] }
 0x44b   : > { %4740 = vmatpush.msra.mxu0 %v3993_v15  ;;  %4763 = vmatpush.msra.mxu1 %v3991_v23  ;;  %v14639_v36 = vpop.f32.mrf.mxu0  ;;  %v14647_v52 = vpop.f32.mrf.mxu3  ;;  %v17736_v12 = vld [vmem:[#allocation145_spill] sm:$0xff]  ;;  %v17739_v15 = vld [vmem:[#allocation278_spill] sm:$0xff]  ;;  %v17740_v23 = vld [vmem:[#allocation279_spill] sm:$0xff] }
 0x44c   : > { %4786 = vmatpush.msra.mxu2 %v3989_v45  ;;  %4809 = vmatpush.msra.mxu3 %v3987_v9  ;;  %17729 = vst [vmem:[#allocation245_spill] sm:$0xff] %v14639_v36  ;;  %v17738_v9 = vld [vmem:[#allocation316_spill] sm:$0xff]  ;;  %v17741_v45 = vld [vmem:[#allocation47_spill] sm:$0xff] }
 0x44d   : > { %4741 = vmatpush.msra.mxu0 %v17727_v0  ;;  %4764 = vmatpush.msra.mxu1 %v17728_v16  ;;  %17734 = vst [vmem:[#allocation266_spill] sm:$0xff] %v14647_v52  ;;  %v14657_v0 = vpop.permute.xlu2 %7348  ;;  %v17742_v16 = vld [vmem:[#allocation144_spill] sm:$0xff]  ;;  %v7688_v52 = vld [vmem:[%s8006_s19 + $0x90] sm:$0xff] }
 0x44e   : > { %4787 = vmatpush.msra.mxu2 %v17731_v7  ;;  %4810 = vmatpush.msra.mxu3 %v17732_v43  ;;  %v17743_v7 = vld [vmem:[#allocation274_spill] sm:$0xff]  ;;  %v17761_v36 = vld [vmem:[#allocation16_spill] sm:$0xff] }
 0x44f   : > { %4742 = vmatpush.msra.mxu0 %v17735_v42  ;;  %4765 = vmatpush.msra.mxu1 %v17736_v12  ;;  %v17744_v43 = vld [vmem:[#allocation190_spill] sm:$0xff]  ;;  %v17745_v42 = vld [vmem:[#allocation267_spill] sm:$0xff]  ;;  %v17746_v12 = vld [vmem:[#allocation284_spill] sm:$0xff] }
 0x450   : > { %4788 = vmatpush.msra.mxu2 %v17737_v47  ;;  %4811 = vmatpush.msra.mxu3 %v17738_v9  ;;  %v17748_v47 = vld [vmem:[#allocation305_spill] sm:$0xff]  ;;  %v17749_v9 = vld [vmem:[#allocation308_spill] sm:$0xff] }
 0x451   : > { %4743 = vmatpush.msra.mxu0 %v17739_v15  ;;  %4766 = vmatpush.msra.mxu1 %v17740_v23  ;;  %v17750_v15 = vld [vmem:[#allocation311_spill] sm:$0xff] }
 0x452   : > { %4789 = vmatpush.msra.mxu2 %v17560_v53  ;;  %4812 = vmatpush.msra.mxu3 %v17741_v45  ;;  %v17747_v53 = vld [vmem:[#allocation119_spill] sm:$0xff]  ;;  %v17753_v45 = vld [vmem:[#allocation312_spill] sm:$0xff] }
 0x453   : > { %4744 = vmatpush.msra.mxu0 %v17742_v16  ;;  %4767 = vmatpush.msra.mxu1 %v17743_v7  ;;  %v14669_v23 = vpop.f32.mrf.mxu0  ;;  %v17754_v16 = vld [vmem:[#allocation287_spill] sm:$0xff]  ;;  %v14675_v7 = vpop.f32.mrf.mxu2 }
 0x454   : > { %4790 = vmatpush.msra.mxu2 %v13922_v10  ;;  %4813 = vmatpush.msra.mxu3 %v17744_v43  ;;  %17751 = vst [vmem:[#allocation314_spill] sm:$0xff] %v14669_v23  ;;  %v14671_v10 = vpop.f32.mrf.mxu1  ;;  %v14677_v43 = vpop.f32.mrf.mxu3 }
 0x455   : > { %4745 = vmatpush.msra.mxu0 %v17745_v42  ;;  %4768 = vmatpush.msra.mxu1 %v17746_v12  ;;  %17752 = vst [vmem:[#allocation317_spill] sm:$0xff] %v14671_v10  ;;  %v7682_v42 = vld [vmem:[%s8006_s19 + $0x140] sm:$0xff]  ;;  %v7683_v12 = vld [vmem:[%s8006_s19 + $0x148] sm:$0xff] }
 0x456   : > { %4791 = vmatpush.msra.mxu2 %v17747_v53  ;;  %4814 = vmatpush.msra.mxu3 %v17748_v47  ;;  %17755 = vst [vmem:[#allocation199_spill] sm:$0xff] %v14675_v7  ;;  %v7684_v53 = vld [vmem:[%s8006_s19 + $0x150] sm:$0xff]  ;;  %v7685_v47 = vld [vmem:[%s8006_s19 + $0x158] sm:$0xff]  ;;  %v17757_v7 = vld [vmem:[#allocation233_spill] sm:$0xff] }
 0x457   : > { %4746 = vmatpush.msra.mxu0 %v17749_v9  ;;  %4769 = vmatpush.msra.mxu1 %v17750_v15  ;;  %17756 = vst [vmem:[#allocation315_spill] sm:$0xff] %v14677_v43  ;;  %v7374_v9 = vpop.permute.xlu1 %7373  ;;  %v7686_v15 = vld [vmem:[%s8006_s19 + $0x80] sm:$0xff]  ;;  %v14688_v43 = vpop.permute.xlu2 %7363 }
 0x458   : > { %4792 = vmatpush.msra.mxu2 %v17753_v45  ;;  %4815 = vmatpush.msra.mxu3 %v17754_v16  ;;  %v7687_v45 = vld [vmem:[%s8006_s19 + $0x88] sm:$0xff]  ;;  %v7350_v16 = vunpack.i.l.bf16 %v14657_v0 }
 0x459   : > { %4747 = vmatpush.msra.mxu0 %v7682_v42  ;;  %4770 = vmatpush.msra.mxu1 %v7683_v12  ;;  %v7354_v42 = vpop.permute.xlu0 %7353  ;;  %v17758_v12 = vld [vmem:[#allocation102_spill] sm:$0xff] }
 0x45a   : > { %4793 = vmatpush.msra.mxu2 %v7684_v53  ;;  %4816 = vmatpush.msra.mxu3 %v7685_v47  ;;  %v7355_v53 = vunpack.i.l.bf16 %v7354_v42  ;;  %v7375_v47 = vunpack.i.l.bf16 %v7374_v9  ;;  %v7356_v58 = vunpack.i.h.bf16 %v7354_v42  ;;  %v17769_v42 = vunpack.i.h.bf16 %v14373_v11 }
 0x45b   : > { %4748 = vmatpush.msra.mxu0 %v7686_v15  ;;  %4771 = vmatpush.msra.mxu1 %v7687_v45  ;;  %v17760_v15 = vld [vmem:[#allocation275_spill] sm:$0xff]  ;;  %v7351_v45 = vunpack.i.h.bf16 %v14657_v0  ;;  %v14697_v10 = vpop.f32.mrf.mxu0  ;;  %v17772_v11 = vunpack.i.h.bf16 %v14534_v59 }
 0x45c   : > { %4794 = vmatpush.msra.mxu2 %v7688_v52  ;;  %4817 = vmatpush.msra.mxu3 %v7689_v39  ;;  %v17762_v52 = vld [vmem:[#allocation268_spill] sm:$0xff]  ;;  %v7376_v39 = vunpack.i.h.bf16 %v7374_v9  ;;  %17763 = vst [vmem:[#allocation318_spill] sm:$0xff] %v14697_v10  ;;  %v14699_v23 = vpop.f32.mrf.mxu1  ;;  %v14707_v0 = vpop.f32.mrf.mxu3 }
 0x45d   : > { %4749 = vmatpush.msra.mxu0 %v17757_v7  ;;  %4772 = vmatpush.msra.mxu1 %v17758_v12  ;;  %17764 = vst [vmem:[#allocation319_spill] sm:$0xff] %v14699_v23  ;;  %v17765_v7 = vld [vmem:[#allocation326_spill] sm:$0xff]  ;;  %v17766_v12 = vld [vmem:[#allocation276_spill] sm:$0xff]  ;;  %v4269_v9 = vsel %vm4267_vm6, %v7350_v16, %v7351_v45 }
 0x45e   : > { %4795 = vmatpush.msra.mxu2 %v17759_v19  ;;  %4818 = vmatpush.msra.mxu3 %v17760_v15  ;;  %v4271_v19 = vsel %vm4267_vm6, %v7375_v47, %v7350_v16  ;;  %v14705_v15 = vpop.f32.mrf.mxu2  ;;  %17768 = vst [vmem:[#allocation252_spill] sm:$0xff] %v14707_v0 }
 0x45f   : > { %4750 = vmatpush.msra.mxu0 %v17761_v36  ;;  %4773 = vmatpush.msra.mxu1 %v17762_v52  ;;  %17767 = vst [vmem:[#allocation214_spill] sm:$0xff] %v14705_v15  ;;  %v14712_v36 = vld [vmem:[%s15870_s4 + $0x20] sm:$0xff]  ;;  %v4273_v52 = vsel %vm4267_vm6, %v17769_v42, %v7375_v47  ;;  %v4268_v15 = vsel %vm4267_vm6, %v7355_v53, %v7356_v58  ;;  %v7379_v42 = vpop.permute.xlu2 %7378 }
 0x460   : > { %4796 = vmatpush.msra.mxu2 %v17765_v7  ;;  %4819 = vmatpush.msra.mxu3 %v17766_v12  ;;  %v4270_v7 = vsel %vm4267_vm6, %v7376_v39, %v7355_v53  ;;  %v17770_v12 = vld [vmem:[#allocation289_spill] sm:$0xff]  ;;  %v4272_v47 = vsel %vm4267_vm6, %v17772_v11, %v7376_v39  ;;  %v7365_v53 = vunpack.i.l.bf16 %v14688_v43 }
 0x461   : > { %4751 = vmatmul.f32.vlgmr.msra.gmra.mxu0 %v14712_v36  ;;  %4774 = vmatmul.f32.vlgmr.msra.gmra.mxu1 %v14712_v36  ;;  %v17771_v0 = vunpack.i.l.bf16 %v17770_v12  ;;  %v7369_v59 = vpop.permute.xlu0 %7368  ;;  %v7695_v12 = vld [vmem:[%s8014_s26 + $0xa0] sm:$0xff] }
 0x462   : > { %4797 = vmatmul.f32.vlgmr.msra.gmra.mxu2 %v14712_v36  ;;  %4820 = vmatmul.f32.vlgmr.msra.gmra.mxu3 %v14712_v36  ;;  %v7370_v39 = vunpack.i.l.bf16 %v7369_v59 }
 0x463   : > { %4827 = vmatpush.msrb.mxu0 %v4273_v52  ;;  %4850 = vmatpush.msrb.mxu1 %v4271_v19  ;;  %v4363_v16 = vsel %vm4267_vm6, %v7351_v45, %v17771_v0  ;;  %v17773_v19 = vunpack.i.h.bf16 %v13458_v28  ;;  %v7691_v0 = vld [vmem:[%s8014_s26 + $0x160] sm:$0xff]  ;;  %v7380_v52 = vunpack.i.l.bf16 %v7379_v42  ;;  %v7694_v28 = vld [vmem:[%s8014_s26 + $0x178] sm:$0xff]  ;;  %v14748_v11 = vpop.f32.mrf.mxu0 }
 0x464   : > { %4873 = vmatpush.msrb.mxu2 %v4269_v9  ;;  %4896 = vmatpush.msrb.mxu3 %v4363_v16  ;;  %v7692_v9 = vld [vmem:[%s8014_s26 + $0x168] sm:$0xff]  ;;  %v7381_v16 = vunpack.i.h.bf16 %v7379_v42  ;;  %17774 = vst [vmem:[#allocation253_spill] sm:$0xff] %v14748_v11  ;;  %v17805_v11 = vld [vmem:[#allocation59_spill] sm:$0xff] }
 0x465   : > { %4828 = vmatpush.msrb.mxu0 %v4272_v47  ;;  %4851 = vmatpush.msrb.mxu1 %v4270_v7  ;;  %v4362_v45 = vsel %vm4267_vm6, %v7356_v58, %v17773_v19  ;;  %v7693_v7 = vld [vmem:[%s8014_s26 + $0x170] sm:$0xff]  ;;  %v7366_v58 = vunpack.i.h.bf16 %v14688_v43  ;;  %v14750_v47 = vpop.f32.mrf.mxu1  ;;  %v14758_v43 = vpop.f32.mrf.mxu3  ;;  %v14763_v42 = vld [vmem:[%s15870_s4 + $0x28] sm:$0xff] }
 0x466   : > { %4874 = vmatpush.msrb.mxu2 %v4268_v15  ;;  %4897 = vmatpush.msrb.mxu3 %v4362_v45  ;;  %v7696_v15 = vld [vmem:[%s8014_s26 + $0xa8] sm:$0xff]  ;;  %17775 = vst [vmem:[#allocation280_spill] sm:$0xff] %v14750_v47  ;;  %v7697_v19 = vld [vmem:[%s8014_s26 + $0xb0] sm:$0xff]  ;;  %v7698_v45 = vld [vmem:[%s8014_s26 + $0xb8] sm:$0xff] }
 0x467   : > { %4829 = vmatpush.msrb.mxu0 %v7691_v0  ;;  %4852 = vmatpush.msrb.mxu1 %v7692_v9  ;;  %v3984_v0 = vsel %vm3978_vm5, %v7380_v52, %v7365_v53  ;;  %v7371_v9 = vunpack.i.h.bf16 %v7369_v59  ;;  %17777 = vst [vmem:[#allocation145_spill] sm:$0xff] %v14758_v43  ;;  %v17779_v59 = vunpack.i.l.bf16 %v14585_v17  ;;  %v17781_v17 = vunpack.i.h.bf16 %v14588_v37  ;;  %v17786_v37 = vld [vmem:[#allocation41_spill] sm:$0xff]  ;;  %v17801_v47 = vld [vmem:[#allocation327_spill] sm:$0xff] }
 0x468   : > { %4875 = vmatpush.msrb.mxu2 %v7693_v7  ;;  %4898 = vmatpush.msrb.mxu3 %v7694_v28  ;;  %v14756_v7 = vpop.f32.mrf.mxu2  ;;  %17778 = vst [vmem:[#allocation219_spill] sm:$0xff] %v14763_v42  ;;  %v3982_v28 = vsel %vm3978_vm5, %v7365_v53, %v7366_v58  ;;  %v17799_v43 = vld [vmem:[#allocation53_spill] sm:$0xff] }
 0x469   : > { %4830 = vmatpush.msrb.mxu0 %v7695_v12  ;;  %4853 = vmatpush.msrb.mxu1 %v7696_v15  ;;  %17776 = vst [vmem:[#allocation234_spill] sm:$0xff] %v14756_v7  ;;  %v3986_v12 = vsel %vm3978_vm5, %v17779_v59, %v7380_v52  ;;  %v3983_v15 = vsel %vm3978_vm5, %v7381_v16, %v7370_v39  ;;  %v17782_v59 = vunpack.i.l.bf16 %v13721_v13  ;;  %v17800_v7 = vld [vmem:[#allocation55_spill] sm:$0xff] }
 0x46a   : > { %4876 = vmatpush.msrb.mxu2 %v7697_v19  ;;  %4899 = vmatpush.msrb.mxu3 %v7698_v45  ;;  %v17780_v19 = vunpack.i.l.bf16 %v13630_v60  ;;  %v3981_v53 = vsel %vm3978_vm5, %v7370_v39, %v7371_v9  ;;  %v3985_v52 = vsel %vm3978_vm5, %v17781_v17, %v7381_v16  ;;  %v17785_v39 = vld [vmem:[#allocation39_spill] sm:$0xff]  ;;  %v17793_v17 = vld [vmem:[#allocation46_spill] sm:$0xff] }
 0x46b   : > { %4754 = vmatmul.f32.gmra.mxu0 %v14763_v42  ;;  %4777 = vmatmul.f32.gmra.mxu1 %v14763_v42  ;;  %v3979_v60 = vsel %vm3978_vm5, %v7371_v9, %v17782_v59  ;;  %v17790_v9 = vld [vmem:[#allocation194_spill] sm:$0xff]  ;;  %v17794_v59 = vld [vmem:[#allocation49_spill] sm:$0xff] }
 0x46c   : > { %4800 = vmatmul.f32.gmra.mxu2 %v14763_v42  ;;  %4823 = vmatmul.f32.gmra.mxu3 %v14763_v42  ;;  %v3980_v45 = vsel %vm3978_vm5, %v7366_v58, %v17780_v19  ;;  %v17791_v19 = vld [vmem:[#allocation27_spill] sm:$0xff] }
 0x46d   : > { %4831 = vmatpush.msrb.mxu0 %v3986_v12  ;;  %4854 = vmatpush.msrb.mxu1 %v3984_v0  ;;  %v17783_v0 = vld [vmem:[#allocation24_spill] sm:$0xff]  ;;  %v17784_v12 = vld [vmem:[#allocation38_spill] sm:$0xff]  ;;  %v14841_v10 = vpop.f32.mrf.mxu3 }
 0x46e   : > { %4877 = vmatpush.msrb.mxu2 %v3982_v28  ;;  %4900 = vmatpush.msrb.mxu3 %v3980_v45  ;;  %v14793_v58 = vadd.f32 %v17784_v12, %v17783_v0  ;;  %v14797_v28 = vadd.f32 %v17785_v39, %v17783_v0  ;;  %v14801_v16 = vadd.f32 %v17786_v37, %v17783_v0  ;;  %v17792_v45 = vld [vmem:[#allocation45_spill] sm:$0xff]  ;;  %v14821_v12 = vpop.f32.mrf.mxu0  ;;  %v14823_v39 = vpop.f32.mrf.mxu1  ;;  %v17795_v37 = vld [vmem:[#allocation187_spill] sm:$0xff] }
 0x46f   : > { %4832 = vmatpush.msrb.mxu0 %v3985_v52  ;;  %4855 = vmatpush.msrb.mxu1 %v3983_v15  ;;  %v17788_v15 = vld [vmem:[#allocation42_spill] sm:$0xff]  ;;  %v14815_v52 = vadd.f32 %v17793_v17, %v17791_v19 }
 0x470   : > { %4878 = vmatpush.msrb.mxu2 %v3981_v53  ;;  %4901 = vmatpush.msrb.mxu3 %v3979_v60  ;;  %17787 = vst [vmem:[#allocation316_spill] sm:$0xff] %v14801_v16  ;;  %v14805_v13 = vadd.f32 %v17788_v15, %v17783_v0  ;;  %v14811_v53 = vadd.f32 %v17792_v45, %v17791_v19  ;;  %v17796_v15 = vld [vmem:[#allocation259_spill] sm:$0xff]  ;;  %v14839_v23 = vpop.f32.mrf.mxu2 }
 0x471   : > { %4833 = vmatpush.msrb.mxu0 %v17789_v62  ;;  %4856 = vmatpush.msrb.mxu1 %v17790_v9  ;;  %v14819_v60 = vadd.f32 %v17794_v59, %v17791_v19  ;;  %v17797_v62 = vld [vmem:[#allocation52_spill] sm:$0xff]  ;;  %v17798_v45 = vld [vmem:[#allocation23_spill] sm:$0xff] }
 0x472   : > { %4879 = vmatpush.msrb.mxu2 %v17795_v37  ;;  %4902 = vmatpush.msrb.mxu3 %v17796_v15  ;;  %v14829_v9 = vadd.f32 %v17797_v62, %v17791_v19  ;;  %v14833_v17 = vadd.f32 %v17799_v43, %v17798_v45  ;;  %v14837_v59 = vadd.f32 %v17800_v7, %v17798_v45  ;;  %v17802_v37 = vld [vmem:[#allocation328_spill] sm:$0xff]  ;;  %v17803_v15 = vld [vmem:[#allocation58_spill] sm:$0xff] }
 0x473   : > { %4834 = vmatpush.msrb.mxu0 %v17801_v47  ;;  %4857 = vmatpush.msrb.mxu1 %v17802_v37  ;;  %v14847_v62 = vadd.f32 %v17803_v15, %v17798_v45  ;;  %v14851_v43 = vadd.f32 %v17805_v11, %v17798_v45  ;;  %v14855_v7 = vadd.f32 %v17808_v51, %v17807_v61  ;;  %v17811_v47 = vld [vmem:[#allocation63_spill] sm:$0xff]  ;;  %v17812_v37 = vld [vmem:[#allocation65_spill] sm:$0xff]  ;;  %v17815_v51 = vld [vmem:[#allocation336_spill] sm:$0xff] }
 0x474   : > { %4880 = vmatpush.msrb.mxu2 %v17809_v2  ;;  %4903 = vmatpush.msrb.mxu3 %v17810_v4  ;;  %v14861_v27 = vadd.f32 %v17811_v47, %v17807_v61  ;;  %v14865_v15 = vadd.f32 %v17812_v37, %v17807_v61  ;;  %v14869_v11 = vadd.f32 %v17813_v3, %v17807_v61  ;;  %v17817_v2 = vld [vmem:[#allocation69_spill] sm:$0xff]  ;;  %v17818_v4 = vld [vmem:[#allocation70_spill] sm:$0xff] }
 0x475   : > { %17804 = vst [vmem:[#allocation278_spill] sm:$0xff] %v14847_v62  ;;  %4835 = vmatpush.msrb.mxu0 %v17814_v54  ;;  %4858 = vmatpush.msrb.mxu1 %v17815_v51  ;;  %v14875_v41 = vadd.f32 %v17817_v2, %v17816_v29  ;;  %v14879_v47 = vadd.f32 %v17818_v4, %v17816_v29  ;;  %v17820_v54 = vld [vmem:[#allocation72_spill] sm:$0xff]  ;;  %v17821_v51 = vld [vmem:[#allocation21_spill] sm:$0xff] }
 0x476   : > { %17806 = vst [vmem:[#allocation279_spill] sm:$0xff] %v14851_v43  ;;  %v14883_v37 = vadd.f32 %v17819_v30, %v17816_v29  ;;  %4881 = vmatpush.msrb.mxu2 %v14185_v8  ;;  %4904 = vmatpush.msrb.mxu3 %v14191_v31  ;;  %v14889_v3 = vadd.f32 %v17820_v54, %v17816_v29  ;;  %v17824_v8 = vld [vmem:[#allocation77_spill] sm:$0xff]  ;;  %v17825_v31 = vld [vmem:[#allocation78_spill] sm:$0xff]  ;;  %v4410_v62 = vpop.f32.mrf.mxu1 }
 0x477   : > { %v14893_v2 = vadd.f32 %v17822_v32, %v17821_v51  ;;  %v14897_v4 = vadd.f32 %v17823_v22, %v17821_v51  ;;  %4836 = vmatpush.msrb.mxu0 %v14201_v63  ;;  %4859 = vmatpush.msrb.mxu1 %v14205_v6  ;;  %v14903_v30 = vadd.f32 %v17824_v8, %v17821_v51  ;;  %v17829_v22 = vld [vmem:[#allocation338_spill] sm:$0xff]  ;;  %v17830_v63 = vld [vmem:[#allocation80_spill] sm:$0xff]  ;;  %v17831_v6 = vld [vmem:[#allocation81_spill] sm:$0xff] }
 0x478   : > { %v14907_v54 = vadd.f32 %v17825_v31, %v17821_v51  ;;  %v14911_v32 = vadd.f32 %v17827_v20, %v17826_v34  ;;  %4882 = vmatpush.msrb.mxu2 %v17828_v1  ;;  %4905 = vmatpush.msrb.mxu3 %v17829_v22  ;;  %v14917_v25 = vadd.f32 %v17830_v63, %v17826_v34  ;;  %v17833_v20 = vld [vmem:[#allocation339_spill] sm:$0xff]  ;;  %v17836_v22 = vld [vmem:[#allocation84_spill] sm:$0xff]  ;;  %v17837_v63 = vld [vmem:[#allocation85_spill] sm:$0xff] }
 0x479   : > { %v14921_v8 = vadd.f32 %v17831_v6, %v17826_v34  ;;  %v14925_v31 = vadd.f32 %v17832_v50, %v17826_v34  ;;  %4837 = vmatpush.msrb.mxu0 %v14227_v5  ;;  %4860 = vmatpush.msrb.mxu1 %v17833_v20  ;;  %v17835_v1 = vld [vmem:[#allocation83_spill] sm:$0xff]  ;;  %v647_v56 = vadd.f32 %v17836_v22, %v17834_v26  ;;  %v17838_v50 = vld [vmem:[#allocation86_spill] sm:$0xff]  ;;  %v17840_v20 = vld [vmem:[#allocation88_spill] sm:$0xff] }
 0x47a   : > { %v606_v49 = vadd.f32 %v17835_v1, %v17834_v26  ;;  %v688_v42 = vadd.f32 %v17837_v63, %v17834_v26  ;;  %4883 = vmatpush.msrb.mxu2 %v14243_v44  ;;  %4906 = vmatpush.msrb.mxu3 %v14249_v33  ;;  %v729_v6 = vadd.f32 %v17838_v50, %v17834_v26  ;;  %v17839_v5 = vld [vmem:[#allocation87_spill] sm:$0xff]  ;;  %v17842_v22 = vld [vmem:[#allocation344_spill] sm:$0xff]  ;;  %v17843_v44 = vld [vmem:[#allocation89_spill] sm:$0xff] }
 0x47b   : > { %v14941_v43 = vadd.f32 %v17839_v5, %v17783_v0  ;;  %v14945_v1 = vadd.f32 %v17840_v20, %v17783_v0  ;;  %4838 = vmatpush.msrb.mxu0 %v14262_v38  ;;  %4861 = vmatpush.msrb.mxu1 %v17842_v22  ;;  %v14951_v33 = vadd.f32 %v17843_v44, %v17783_v0  ;;  %v17845_v63 = vld [vmem:[#allocation90_spill] sm:$0xff]  ;;  %v17847_v5 = vld [vmem:[#allocation91_spill] sm:$0xff]  ;;  %v4387_v20 = vpop.f32.mrf.mxu0  ;;  %v17849_v38 = vld [vmem:[#allocation345_spill] sm:$0xff] }
 0x47c   : > { %v14955_v50 = vadd.f32 %v17845_v63, %v17783_v0  ;;  %v14959_v26 = vadd.f32 %v17847_v5, %v17791_v19  ;;  %4884 = vmatpush.msrb.mxu2 %v14277_v18  ;;  %4907 = vmatpush.msrb.mxu3 %v17849_v38  ;;  %v17850_v44 = vld [vmem:[#allocation92_spill] sm:$0xff]  ;;  %v17852_v63 = vld [vmem:[#allocation93_spill] sm:$0xff]  ;;  %v17854_v5 = vld [vmem:[#allocation94_spill] sm:$0xff]  ;;  %v4456_v18 = vpop.f32.mrf.mxu3 }
 0x47d   : > { %17841 = vst [vmem:[#allocation47_spill] sm:$0xff] %v14945_v1  ;;  %v14970_v0 = vadd.f32 %v17852_v63, %v17791_v19  ;;  %v7700_v1 = vld [vmem:[%s8006_s19 + $0x160] sm:$0xff]  ;;  %v7701_v38 = vld [vmem:[%s8006_s19 + $0x168] sm:$0xff]  ;;  %v17862_v22 = vld [vmem:[#allocation98_spill] sm:$0xff] }
 0x47e   : > { %17844 = vst [vmem:[#allocation144_spill] sm:$0xff] %v14951_v33  ;;  %v14966_v33 = vadd.f32 %v17850_v44, %v17791_v19  ;;  %4839 = vmatpush.msrb.mxu0 %v7700_v1  ;;  %4862 = vmatpush.msrb.mxu1 %v7701_v38  ;;  %v17856_v44 = vld [vmem:[#allocation95_spill] sm:$0xff]  ;;  %v17858_v63 = vld [vmem:[#allocation96_spill] sm:$0xff]  ;;  %v17868_v38 = vld [vmem:[#allocation109_spill] sm:$0xff] }
 0x47f   : > { %17846 = vst [vmem:[#allocation274_spill] sm:$0xff] %v14955_v50  ;;  %v4433_v50 = vpop.f32.mrf.mxu2  ;;  %v7703_v1 = vld [vmem:[%s8006_s19 + $0x178] sm:$0xff]  ;;  %v15011_v16 = vadd.f32 %v17868_v38, %v17807_v61  ;;  %v4943_v38 = vadd.f32 %v4387_v20, %v606_v49  ;;  %v4922_v20 = vadd.f32 %v14841_v10, %v14925_v31  ;;  %v17880_v10 = vld [vmem:[#allocation246_spill] sm:$0xff] }
 0x480   : > { %17848 = vst [vmem:[#allocation190_spill] sm:$0xff] %v14959_v26  ;;  %v14974_v26 = vadd.f32 %v17854_v5, %v17791_v19  ;;  %v17860_v5 = vld [vmem:[#allocation97_spill] sm:$0xff]  ;;  %4908 = vmatpush.msrb.mxu3 %v7703_v1 }
 0x481   : > { %17851 = vst [vmem:[#allocation267_spill] sm:$0xff] %v14966_v33  ;;  %v14981_v33 = vadd.f32 %v17856_v44, %v17798_v45  ;;  %v14989_v19 = vadd.f32 %v17860_v5, %v17798_v45  ;;  %v14996_v44 = vadd.f32 %v17862_v22, %v17798_v45  ;;  %v17870_v22 = vld [vmem:[#allocation111_spill] sm:$0xff] }
 0x482   : > { %17853 = vst [vmem:[#allocation284_spill] sm:$0xff] %v14970_v0  ;;  %v14985_v0 = vadd.f32 %v17858_v63, %v17798_v45 }
 0x483   : > { %17855 = vst [vmem:[#allocation119_spill] sm:$0xff] %v14974_v26  ;;  %v7702_v26 = vld [vmem:[%s8006_s19 + $0x170] sm:$0xff] }
 0x484   : > { %17857 = vst [vmem:[#allocation305_spill] sm:$0xff] %v14981_v33  ;;  %4885 = vmatpush.msrb.mxu2 %v7702_v26  ;;  %v17864_v33 = vld [vmem:[#allocation104_spill] sm:$0xff]  ;;  %v7705_v26 = vld [vmem:[%s8006_s19 + $0xa8] sm:$0xff] }
 0x485   : > { %17859 = vst [vmem:[#allocation308_spill] sm:$0xff] %v14985_v0  ;;  %v15000_v63 = vadd.f32 %v17864_v33, %v17807_v61  ;;  %v17866_v0 = vld [vmem:[#allocation108_spill] sm:$0xff]  ;;  %4863 = vmatpush.msrb.mxu1 %v7705_v26  ;;  %v17872_v33 = vld [vmem:[#allocation17_spill] sm:$0xff]  ;;  %v17874_v26 = vld [vmem:[#allocation19_spill] sm:$0xff] }
 0x486   : > { %17861 = vst [vmem:[#allocation311_spill] sm:$0xff] %v14989_v19  ;;  %v15004_v5 = vadd.f32 %v17866_v0, %v17807_v61  ;;  %v7704_v19 = vld [vmem:[%s8006_s19 + $0xa0] sm:$0xff]  ;;  %v7706_v0 = vld [vmem:[%s8006_s19 + $0xb0] sm:$0xff]  ;;  %v15026_v1 = vadd.f32 %v17874_v26, %v17816_v29  ;;  %v1577_v26 = vmax.f32 %v14819_v60, 0.0  ;;  %v17920_v60 = vld [vmem:[#allocation197_spill] sm:$0xff] }
 0x487   : > { %17863 = vst [vmem:[#allocation312_spill] sm:$0xff] %v14996_v44  ;;  %4840 = vmatpush.msrb.mxu0 %v7704_v19  ;;  %v15015_v44 = vadd.f32 %v17870_v22, %v17807_v61  ;;  %4886 = vmatpush.msrb.mxu2 %v7706_v0  ;;  %v17875_v22 = vld [vmem:[#allocation150_spill] sm:$0xff]  ;;  %v4945_v0 = vadd.f32 %v4433_v50, %v688_v42  ;;  %v17879_v42 = vld [vmem:[#allocation113_spill] sm:$0xff] }
 0x488   : > { %17865 = vst [vmem:[#allocation287_spill] sm:$0xff] %v15000_v63  ;;  %v15019_v63 = vadd.f32 %v17872_v33, %v17816_v29  ;;  %4864 = vmatpush.msrb.mxu1 %v17875_v22  ;;  %v17876_v33 = vld [vmem:[#allocation22_spill] sm:$0xff]  ;;  %v4921_v50 = vadd.f32 %v14839_v23, %v14921_v8  ;;  %v15069_v23 = vpop.f32.mrf.mxu2  ;;  %v3717_v8 = vadd.f32 %v17880_v10, %v14907_v54  ;;  %v17884_v54 = vld [vmem:[#allocation343_spill] sm:$0xff] }
 0x489   : > { %17867 = vst [vmem:[#allocation233_spill] sm:$0xff] %v15004_v5  ;;  %v7707_v5 = vld [vmem:[%s8006_s19 + $0xb8] sm:$0xff]  ;;  %4841 = vmatpush.msrb.mxu0 %v14293_v55  ;;  %4887 = vmatpush.msrb.mxu2 %v14304_v40  ;;  %v17877_v19 = vld [vmem:[#allocation346_spill] sm:$0xff]  ;;  %v4919_v55 = vadd.f32 %v14821_v12, %v14911_v32  ;;  %v1578_v40 = vmax.f32 %v14829_v9, 0.0  ;;  %v3715_v12 = vadd.f32 %v14363_v46, %v14897_v4  ;;  %v17881_v46 = vld [vmem:[#allocation340_spill] sm:$0xff]  ;;  %v17921_v9 = vmax.f32 %v14793_v58, 0.0 }
 0x48a   : > { %17869 = vst [vmem:[#allocation102_spill] sm:$0xff] %v15011_v16  ;;  %4909 = vmatpush.msrb.mxu3 %v7707_v5  ;;  %v4944_v16 = vadd.f32 %v4410_v62, %v647_v56  ;;  %v4946_v5 = vadd.f32 %v4456_v18, %v729_v6  ;;  %v17878_v56 = vld [vmem:[#allocation31_spill] sm:$0xff]  ;;  %v4920_v62 = vadd.f32 %v14823_v39, %v14917_v25  ;;  %v15059_v25 = vpop.f32.mrf.mxu0  ;;  %v4991_v39 = vmax.f32 %v4943_v38, 0.0  ;;  %v17882_v4 = vld [vmem:[#allocation341_spill] sm:$0xff]  ;;  %s7783_s19 = sshra.s32 %s5692_s16, 4  ;;  %s7784_s19 = int_to_ptr.hbm [resolvable:$true] %s7783_s19 }
 0x48b   : > { %17871 = vst [vmem:[#allocation269_spill] sm:$0xff] %v15015_v44  ;;  %v1576_v44 = vmax.f32 %v14815_v52, 0.0  ;;  %v15040_v49 = vadd.f32 %v17878_v56, %v17816_v29  ;;  %4842 = vmatpush.msrb.mxu0 %v17651_v35  ;;  %4865 = vmatpush.msrb.mxu1 %v14320_v48  ;;  %v15051_v6 = vadd.f32 %v17879_v42, %v17821_v51  ;;  %v15061_v35 = vpop.f32.mrf.mxu1  ;;  %v4967_v18 = vmax.f32 %v4919_v55, 0.0  ;;  %v17918_v52 = vld [vmem:[#allocation173_spill] sm:$0xff]  ;;  %s7785_s26 = scalar_lea.hbm %s7784_s19, 384  ;;  %p7790_p8 = scmp.lt.s32.totalorder %s7784_s19, %s15873_s7 }
 0x48c   : > { %17873 = vst [vmem:[#allocation275_spill] sm:$0xff] %v15019_v63  ;;  %v15033_v63 = vadd.f32 %v17876_v33, %v17816_v29  ;;  %4910 = vmatpush.msrb.mxu3 %v17877_v19  ;;  %4888 = vmatpush.msrb.mxu2 %v14327_v24  ;;  %v3714_v48 = vadd.f32 %v14361_v21, %v14893_v2  ;;  %v4992_v32 = vmax.f32 %v4944_v16, 0.0  ;;  %v15071_v24 = vpop.f32.mrf.mxu3  ;;  %v4993_v21 = vmax.f32 %v4945_v0, 0.0  ;;  %p7786_p5 = scmp.ne.s32.totalorder %s7784_s19, %s7785_s26  ;;  %p7791_p10 = scmp.lt.s32.totalorder %s7789_s13, %s7785_s26 }
 0x48d   : > { %4843 = vmatmul.f32.vlgmr.msrb.gmra.mxu0 %v14712_v36  ;;  %4866 = vmatmul.f32.vlgmr.msrb.gmra.mxu1 %v14712_v36  ;;  %v4994_v2 = vmax.f32 %v4946_v5, 0.0  ;;  %v3690_v16 = vadd.f32 %v17881_v46, %v14875_v41  ;;  %v3691_v31 = vadd.f32 %v17882_v4, %v14879_v47  ;;  %v4968_v19 = vmax.f32 %v4920_v62, 0.0  ;;  %v17886_v47 = vld [vmem:[#allocation115_spill] sm:$0xff]  ;;  %v17892_v46 = vld [vmem:[#allocation57_spill] sm:$0xff] }
 0x48e   : > { %4911 = vmatpush.msrb.mxu3 %v14333_v57  ;;  %v3716_v57 = vadd.f32 %v14365_v14, %v14903_v30  ;;  %4889 = vmatmul.f32.vlgmr.msrb.gmra.mxu2 %v14712_v36  ;;  %v17883_v14 = vld [vmem:[#allocation342_spill] sm:$0xff]  ;;  %v3693_v38 = vadd.f32 %v17884_v54, %v14889_v3  ;;  %v4969_v22 = vmax.f32 %v4921_v50, 0.0  ;;  %v4970_v33 = vmax.f32 %v4922_v20, 0.0  ;;  %v17888_v3 = vld [vmem:[#allocation120_spill] sm:$0xff]  ;;  %p7787_p6 = pnand %p7786_p5, %p7960_p9  ;;  %p7792_p13 = por %p7791_p10, %p7790_p8 }
 0x48f   : > { %4912 = vmatmul.f32.vlgmr.msrb.gmra.mxu3 %v14712_v36  ;;  %5034 = vmatpush.msra.mxu0 %v4991_v39  ;;  %v3692_v30 = vadd.f32 %v17883_v14, %v14883_v37  ;;  %v17885_v36 = vld [vmem:[#allocation114_spill] sm:$0xff]  ;;  %v15093_v0 = vadd.f32 %v17886_v47, %v17821_v51  ;;  %v3762_v5 = vmax.f32 %v3714_v48, 0.0  ;;  %v3763_v56 = vmax.f32 %v3715_v12, 0.0  ;;  %v17887_v37 = vld [vmem:[#allocation117_spill] sm:$0xff] }
 0x490   : > { %5057 = vmatpush.msra.mxu1 %v4992_v32  ;;  %5080 = vmatpush.msra.mxu2 %v4993_v21  ;;  %v15089_v41 = vadd.f32 %v17885_v36, %v17821_v51  ;;  %v15097_v55 = vadd.f32 %v17887_v37, %v17821_v51  ;;  %v15101_v62 = vadd.f32 %v17888_v3, %v17826_v34  ;;  %v3764_v42 = vmax.f32 %v3716_v57, 0.0  ;;  %v17889_v20 = vld [vmem:[#allocation306_spill] sm:$0xff]  ;;  %v17890_v48 = vld [vmem:[#allocation309_spill] sm:$0xff]  ;;  %v17891_v21 = vld [vmem:[#allocation148_spill] sm:$0xff]  ;;  %p7788_p7 = pneg %p7787_p6 }
 0x491   : > { %5103 = vmatpush.msra.mxu3 %v4994_v2  ;;  %5035 = vmatpush.msra.mxu0 %v4967_v18  ;;  %v3765_v50 = vmax.f32 %v3717_v8, 0.0  ;;  %v2573_v39 = vadd.f32 %v17889_v20, %v14855_v7  ;;  %v2574_v12 = vadd.f32 %v17890_v48, %v14861_v27  ;;  %v3738_v32 = vmax.f32 %v3690_v16, 0.0  ;;  %v17893_v7 = vld [vmem:[#allocation121_spill] sm:$0xff]  ;;  %v17894_v27 = vld [vmem:[#allocation299_spill] sm:$0xff]  ;;  %v17903_v3 = vld [vmem:[#allocation126_spill] sm:$0xff] }
 0x492   : > { %5058 = vmatpush.msra.mxu1 %v4968_v19  ;;  %5081 = vmatpush.msra.mxu2 %v4969_v22  ;;  %v3739_v10 = vmax.f32 %v3691_v31, 0.0  ;;  %v2575_v2 = vadd.f32 %v17891_v21, %v14865_v15  ;;  %v2576_v4 = vadd.f32 %v17892_v46, %v14869_v11  ;;  %v3740_v57 = vmax.f32 %v3692_v30, 0.0  ;;  %v17895_v31 = vld [vmem:[#allocation300_spill] sm:$0xff]  ;;  %v17896_v15 = vld [vmem:[#allocation47_spill] sm:$0xff]  ;;  %v17897_v11 = vld [vmem:[#allocation122_spill] sm:$0xff]  ;;  %p7793_p0 = pnand %p7792_p13, %p7788_p7 }
 0x493   : > { %5104 = vmatpush.msra.mxu3 %v4970_v33  ;;  %5036 = vmatpush.msra.mxu0 %v3762_v5  ;;  %v3741_v8 = vmax.f32 %v3693_v38, 0.0  ;;  %v1555_v18 = vmax.f32 %v14941_v43, 0.0  ;;  %v808_v19 = vadd.f32 %v17893_v7, %v17826_v34  ;;  %v2549_v16 = vadd.f32 %v17894_v27, %v14833_v17  ;;  %v17898_v38 = vld [vmem:[#allocation278_spill] sm:$0xff]  ;;  %v17899_v22 = vld [vmem:[#allocation132_spill] sm:$0xff]  ;;  %v17900_v36 = vld [vmem:[#allocation279_spill] sm:$0xff]  ;;  %v4502_v17 = vpop.f32.mrf.mxu1 }
 0x494   : > { %5059 = vmatpush.msra.mxu1 %v3763_v56  ;;  %5082 = vmatpush.msra.mxu2 %v3764_v42  ;;  %v2550_v14 = vadd.f32 %v17895_v31, %v14837_v59  ;;  %v1556_v54 = vmax.f32 %v17896_v15, 0.0  ;;  %v849_v30 = vadd.f32 %v17897_v11, %v17826_v34  ;;  %v2551_v33 = vadd.f32 %v17899_v22, %v17898_v38  ;;  %v17901_v47 = vld [vmem:[#allocation301_spill] sm:$0xff]  ;;  %v4479_v56 = vpop.f32.mrf.mxu0  ;;  %v17904_v42 = vld [vmem:[#allocation127_spill] sm:$0xff]  ;;  %v4548_v21 = vpop.f32.mrf.mxu3  ;;  %v17906_v46 = vld [vmem:[#allocation128_spill] sm:$0xff] }
 0x495   : > { %5105 = vmatpush.msra.mxu3 %v3765_v50  ;;  %5037 = vmatpush.msra.mxu0 %v3738_v32  ;;  %v2552_v5 = vadd.f32 %v17901_v47, %v17900_v36  ;;  %v17902_v37 = vld [vmem:[#allocation29_spill] sm:$0xff]  ;;  %v2621_v20 = vmax.f32 %v2573_v39, 0.0  ;;  %v2622_v48 = vmax.f32 %v2574_v12, 0.0  ;;  %v17905_v32 = vld [vmem:[#allocation219_spill] sm:$0xff]  ;;  %v2623_v27 = vmax.f32 %v2575_v2, 0.0 }
 0x496   : > { %5060 = vmatpush.msra.mxu1 %v3739_v10  ;;  %5083 = vmatpush.msra.mxu2 %v3740_v57  ;;  %v770_v59 = vadd.f32 %v17903_v3, %v17902_v37  ;;  %v811_v50 = vadd.f32 %v17904_v42, %v17902_v37  ;;  %v4525_v10 = vpop.f32.mrf.mxu2  ;;  %v852_v57 = vadd.f32 %v17906_v46, %v17902_v37  ;;  %v2624_v31 = vmax.f32 %v2576_v4, 0.0  ;;  %v17908_v42 = vld [vmem:[#allocation144_spill] sm:$0xff]  ;;  %v17909_v2 = vld [vmem:[#allocation123_spill] sm:$0xff] }
 0x497   : > { %5106 = vmatpush.msra.mxu3 %v3741_v8  ;;  %4846 = vmatmul.f32.gmra.mxu0 %v17905_v32  ;;  %v17907_v8 = vld [vmem:[#allocation130_spill] sm:$0xff]  ;;  %v2597_v39 = vmax.f32 %v2549_v16, 0.0  ;;  %v2598_v12 = vmax.f32 %v2550_v14, 0.0  ;;  %v2599_v22 = vmax.f32 %v2551_v33, 0.0  ;;  %v2600_v36 = vmax.f32 %v2552_v5, 0.0 }
 0x498   : > { %4869 = vmatmul.f32.gmra.mxu1 %v17905_v32  ;;  %v893_v7 = vadd.f32 %v17907_v8, %v17902_v37  ;;  %4892 = vmatmul.f32.gmra.mxu2 %v17905_v32  ;;  %v4947_v11 = vadd.f32 %v4479_v56, %v770_v59  ;;  %v4948_v38 = vadd.f32 %v4502_v17, %v811_v50  ;;  %v1557_v46 = vmax.f32 %v17908_v42, 0.0  ;;  %v17910_v8 = vld [vmem:[#allocation165_spill] sm:$0xff]  ;;  %v17911_v16 = vld [vmem:[#allocation166_spill] sm:$0xff]  ;;  %v17913_v56 = vld [vmem:[#allocation167_spill] sm:$0xff] }
 0x499   : > { %4915 = vmatmul.f32.gmra.mxu3 %v17905_v32  ;;  %5038 = vmatpush.msra.mxu0 %v2621_v20  ;;  %v4949_v47 = vadd.f32 %v4525_v10, %v852_v57  ;;  %v890_v4 = vadd.f32 %v17909_v2, %v17826_v34  ;;  %v15142_v32 = vadd.f32 %v17910_v8, %v17798_v45  ;;  %v17912_v33 = vld [vmem:[#allocation274_spill] sm:$0xff]  ;;  %v17914_v59 = vld [vmem:[#allocation169_spill] sm:$0xff]  ;;  %v17915_v20 = vld [vmem:[#allocation172_spill] sm:$0xff]  ;;  %v17929_v58 = vmax.f32 %v14805_v13, 0.0 }
 0x49a   : > { %5061 = vmatpush.msra.mxu1 %v2622_v48  ;;  %5084 = vmatpush.msra.mxu2 %v2623_v27  ;;  %v4950_v3 = vadd.f32 %v4548_v21, %v893_v7  ;;  %v15146_v14 = vadd.f32 %v17911_v16, %v17798_v45  ;;  %v1558_v5 = vmax.f32 %v17912_v33, 0.0  ;;  %v15151_v17 = vadd.f32 %v17913_v56, %v17798_v45  ;;  %v17927_v2 = vld [vmem:[#allocation316_spill] sm:$0xff]  ;;  %v17932_v16 = vld [vmem:[#allocation262_spill] sm:$0xff]  ;;  %v17935_v13 = vld [vmem:[#allocation287_spill] sm:$0xff] }
 0x49b   : > { %5107 = vmatpush.msra.mxu3 %v2624_v31  ;;  %5039 = vmatpush.msra.mxu0 %v2597_v39  ;;  %v15155_v50 = vadd.f32 %v17914_v59, %v17798_v45  ;;  %v15159_v48 = vadd.f32 %v17915_v20, %v17807_v61  ;;  %v4923_v10 = vadd.f32 %v15059_v25, %v15101_v62  ;;  %v4995_v57 = vmax.f32 %v4947_v11, 0.0  ;;  %v17973_v33 = vld [vmem:[#allocation20_spill] sm:$0xff] }
 0x49c   : > { %5062 = vmatpush.msra.mxu1 %v2598_v12  ;;  %5085 = vmatpush.msra.mxu2 %v2599_v22  ;;  %v4924_v21 = vadd.f32 %v15061_v35, %v808_v19  ;;  %v4996_v7 = vmax.f32 %v4948_v38, 0.0  ;;  %v17916_v27 = vmax.f32 %v14811_v53, 0.0  ;;  %v4925_v31 = vadd.f32 %v15069_v23, %v849_v30  ;;  %v15174_v62 = vpop.f32.mrf.mxu0  ;;  %v15176_v19 = vpop.f32.mrf.mxu1  ;;  %v17917_v53 = vld [vmem:[#allocation190_spill] sm:$0xff]  ;;  %v17919_v23 = vld [vmem:[#allocation260_spill] sm:$0xff]  ;;  %v17923_v30 = vld [vmem:[#allocation267_spill] sm:$0xff] }
 0x49d   : > { %5108 = vmatpush.msra.mxu3 %v2600_v36  ;;  %v4926_v39 = vadd.f32 %v15071_v24, %v890_v4  ;;  %v4997_v25 = vmax.f32 %v4949_v47, 0.0  ;;  %v4998_v35 = vmax.f32 %v4950_v3, 0.0  ;;  %v1579_v12 = vmax.f32 %v17917_v53, 0.0  ;;  %v17924_v38 = vld [vmem:[#allocation174_spill] sm:$0xff]  ;;  %v17925_v36 = vld [vmem:[#allocation320_spill] sm:$0xff]  ;;  %v17931_v4 = vld [vmem:[#allocation153_spill] sm:$0xff] }
 0x49e   : > { %5040 = vmatpush.msra.mxu0 %v17916_v27  ;;  %5063 = vmatpush.msra.mxu1 %v1576_v44  ;;  %v15181_v44 = vadd.f32 %v17918_v52, %v17807_v61  ;;  %v3718_v24 = vadd.f32 %v17919_v23, %v15051_v6  ;;  %v1580_v11 = vmax.f32 %v17923_v30, 0.0  ;;  %v15194_v22 = vadd.f32 %v17924_v38, %v17807_v61  ;;  %v17926_v6 = vld [vmem:[#allocation131_spill] sm:$0xff]  ;;  %v17937_v38 = vld [vmem:[#allocation233_spill] sm:$0xff]  ;;  %v17968_v53 = vld [vmem:[#allocation186_spill] sm:$0xff] }
 0x49f   : > { %5086 = vmatpush.msra.mxu2 %v1577_v26  ;;  %5109 = vmatpush.msra.mxu3 %v1578_v40  ;;  %v3719_v26 = vadd.f32 %v17920_v60, %v15089_v41  ;;  %v17922_v40 = vmax.f32 %v14797_v28, 0.0  ;;  %v3720_v47 = vadd.f32 %v17925_v36, %v15093_v0  ;;  %v3721_v3 = vadd.f32 %v17926_v6, %v15097_v55  ;;  %v17930_v28 = vld [vmem:[#allocation275_spill] sm:$0xff]  ;;  %v17933_v0 = vld [vmem:[#allocation270_spill] sm:$0xff]  ;;  %v17941_v6 = vld [vmem:[#allocation269_spill] sm:$0xff] }
 0x4a0   : > { %5041 = vmatpush.msra.mxu0 %v17921_v9  ;;  %v17928_v41 = vmax.f32 %v17927_v2, 0.0  ;;  %v3694_v8 = vadd.f32 %v17931_v4, %v17930_v28  ;;  %v3695_v56 = vadd.f32 %v17932_v16, %v15026_v1  ;;  %v4971_v59 = vmax.f32 %v4923_v10, 0.0  ;;  %v17934_v55 = vld [vmem:[#allocation271_spill] sm:$0xff]  ;;  %v17936_v9 = vld [vmem:[#allocation56_spill] sm:$0xff]  ;;  %v15224_v16 = vpop.f32.mrf.mxu2 }
 0x4a1   : > { %5064 = vmatpush.msra.mxu1 %v17922_v40  ;;  %5110 = vmatpush.msra.mxu3 %v17929_v58  ;;  %v4972_v20 = vmax.f32 %v4924_v21, 0.0  ;;  %v3696_v27 = vadd.f32 %v17933_v0, %v15033_v63  ;;  %v3697_v52 = vadd.f32 %v17934_v55, %v15040_v49  ;;  %v4973_v23 = vmax.f32 %v4925_v31, 0.0  ;;  %v17938_v36 = vld [vmem:[#allocation227_spill] sm:$0xff]  ;;  %v17945_v58 = vld [vmem:[#allocation308_spill] sm:$0xff]  ;;  %v17948_v0 = vld [vmem:[#allocation61_spill] sm:$0xff] }
 0x4a2   : > { %5087 = vmatpush.msra.mxu2 %v17928_v41  ;;  %5126 = vmatpush.msrb.mxu0 %v4995_v57  ;;  %v4974_v60 = vmax.f32 %v4926_v39, 0.0  ;;  %v2577_v40 = vadd.f32 %v17936_v9, %v17935_v13  ;;  %v2578_v1 = vadd.f32 %v17938_v36, %v17937_v38  ;;  %v3766_v10 = vmax.f32 %v3718_v24, 0.0  ;;  %v17939_v57 = vld [vmem:[#allocation102_spill] sm:$0xff]  ;;  %v17942_v2 = vld [vmem:[#allocation179_spill] sm:$0xff]  ;;  %v17950_v55 = vld [vmem:[#allocation221_spill] sm:$0xff] }
 0x4a3   : > { %5149 = vmatpush.msrb.mxu1 %v4996_v7  ;;  %5195 = vmatpush.msrb.mxu3 %v4998_v35  ;;  %v3767_v21 = vmax.f32 %v3719_v26, 0.0  ;;  %v17940_v7 = vld [vmem:[#allocation313_spill] sm:$0xff]  ;;  %v2580_v49 = vadd.f32 %v17942_v2, %v17941_v6  ;;  %v3768_v31 = vmax.f32 %v3720_v47, 0.0  ;;  %v3769_v39 = vmax.f32 %v3721_v3, 0.0  ;;  %v17944_v35 = vld [vmem:[#allocation162_spill] sm:$0xff]  ;;  %v17946_v28 = vld [vmem:[#allocation163_spill] sm:$0xff] }
 0x4a4   : > { %5172 = vmatpush.msrb.mxu2 %v4997_v25  ;;  %5127 = vmatpush.msrb.mxu0 %v4971_v59  ;;  %v2579_v63 = vadd.f32 %v17940_v7, %v17939_v57  ;;  %v17943_v25 = vld [vmem:[#allocation305_spill] sm:$0xff]  ;;  %v2554_v4 = vadd.f32 %v17946_v28, %v17945_v58  ;;  %v3742_v24 = vmax.f32 %v3694_v8, 0.0  ;;  %v3743_v26 = vmax.f32 %v3695_v56, 0.0  ;;  %v15226_v59 = vpop.f32.mrf.mxu3  ;;  %v17949_v3 = vld [vmem:[#allocation312_spill] sm:$0xff]  ;;  %v4571_v2 = vpop.f32.mrf.mxu0 }
 0x4a5   : > { %5150 = vmatpush.msrb.mxu1 %v4972_v20  ;;  %5196 = vmatpush.msrb.mxu3 %v4974_v60  ;;  %v2553_v41 = vadd.f32 %v17944_v35, %v17943_v25  ;;  %v17947_v20 = vld [vmem:[#allocation311_spill] sm:$0xff]  ;;  %v3744_v60 = vmax.f32 %v3696_v27, 0.0  ;;  %v3745_v13 = vmax.f32 %v3697_v52, 0.0  ;;  %v17951_v9 = vld [vmem:[#allocation176_spill] sm:$0xff]  ;;  %v17952_v56 = vld [vmem:[#allocation101_spill] sm:$0xff]  ;;  %v2625_v36 = vmax.f32 %v2577_v40, 0.0 }
 0x4a6   : > { %5173 = vmatpush.msrb.mxu2 %v4973_v23  ;;  %5128 = vmatpush.msrb.mxu0 %v3766_v10  ;;  %v2555_v47 = vadd.f32 %v17948_v0, %v17947_v20  ;;  %v2556_v23 = vadd.f32 %v17950_v55, %v17949_v3  ;;  %v15234_v8 = vadd.f32 %v17951_v9, %v17807_v61  ;;  %v2626_v10 = vmax.f32 %v2578_v1, 0.0  ;;  %v17954_v7 = vld [vmem:[#allocation192_spill] sm:$0xff]  ;;  %v17958_v0 = vld [vmem:[#allocation105_spill] sm:$0xff] }
 0x4a7   : > { %5151 = vmatpush.msrb.mxu1 %v3767_v21  ;;  %5197 = vmatpush.msrb.mxu3 %v3769_v39  ;;  %v925_v38 = vadd.f32 %v17952_v56, %v17816_v29  ;;  %v17953_v21 = vld [vmem:[#allocation191_spill] sm:$0xff]  ;;  %v975_v27 = vadd.f32 %v17954_v7, %v17902_v37  ;;  %v2627_v52 = vmax.f32 %v2579_v63, 0.0  ;;  %v2628_v6 = vmax.f32 %v2580_v49, 0.0  ;;  %v17956_v40 = vld [vmem:[#allocation100_spill] sm:$0xff]  ;;  %v17959_v55 = vld [vmem:[#allocation33_spill] sm:$0xff] }
 0x4a8   : > { %5174 = vmatpush.msrb.mxu2 %v3768_v31  ;;  %5129 = vmatpush.msrb.mxu0 %v3742_v24  ;;  %v934_v57 = vadd.f32 %v17953_v21, %v17902_v37  ;;  %v4594_v31 = vpop.f32.mrf.mxu1  ;;  %v17955_v39 = vld [vmem:[#allocation99_spill] sm:$0xff]  ;;  %v15246_v1 = vadd.f32 %v17956_v40, %v17816_v29  ;;  %v2601_v35 = vmax.f32 %v2553_v41, 0.0  ;;  %v2602_v58 = vmax.f32 %v2554_v4, 0.0  ;;  %v17963_v56 = vld [vmem:[#allocation182_spill] sm:$0xff] }
 0x4a9   : > { %5152 = vmatpush.msrb.mxu1 %v3743_v26  ;;  %5198 = vmatpush.msrb.mxu3 %v3745_v13  ;;  %v966_v25 = vadd.f32 %v17955_v39, %v17816_v29  ;;  %v2603_v28 = vmax.f32 %v2555_v47, 0.0  ;;  %v2604_v24 = vmax.f32 %v2556_v23, 0.0  ;;  %v4952_v49 = vadd.f32 %v4594_v31, %v975_v27  ;;  %v17957_v26 = vld [vmem:[#allocation284_spill] sm:$0xff]  ;;  %v17960_v13 = vld [vmem:[#allocation106_spill] sm:$0xff]  ;;  %v17961_v4 = vld [vmem:[#allocation119_spill] sm:$0xff] }
 0x4aa   : > { %5175 = vmatpush.msrb.mxu2 %v3744_v60  ;;  %5130 = vmatpush.msrb.mxu0 %v2625_v36  ;;  %v4951_v63 = vadd.f32 %v4571_v2, %v934_v57  ;;  %v1581_v20 = vmax.f32 %v17957_v26, 0.0  ;;  %v928_v3 = vadd.f32 %v17958_v0, %v17821_v51  ;;  %v969_v60 = vadd.f32 %v17959_v55, %v17821_v51  ;;  %v17962_v23 = vld [vmem:[#allocation110_spill] sm:$0xff]  ;;  %v17965_v57 = vld [vmem:[#allocation184_spill] sm:$0xff]  ;;  %v17966_v27 = vld [vmem:[#allocation193_spill] sm:$0xff] }
 0x4ab   : > { %5153 = vmatpush.msrb.mxu1 %v2626_v10  ;;  %5199 = vmatpush.msrb.mxu3 %v2628_v6  ;;  %v1010_v41 = vadd.f32 %v17960_v13, %v17821_v51  ;;  %v1582_v47 = vmax.f32 %v17961_v4, 0.0  ;;  %v1051_v9 = vadd.f32 %v17962_v23, %v17821_v51  ;;  %v931_v36 = vadd.f32 %v17963_v56, %v17826_v34  ;;  %v17964_v10 = vld [vmem:[#allocation183_spill] sm:$0xff]  ;;  %v17977_v13 = vld [vmem:[#allocation208_spill] sm:$0xff] }
 0x4ac   : > { %5176 = vmatpush.msrb.mxu2 %v2627_v52  ;;  %5131 = vmatpush.msrb.mxu0 %v2601_v35  ;;  %v972_v21 = vadd.f32 %v17964_v10, %v17826_v34  ;;  %v1013_v7 = vadd.f32 %v17965_v57, %v17826_v34  ;;  %v1016_v52 = vadd.f32 %v17966_v27, %v17902_v37  ;;  %v17967_v6 = vld [vmem:[#allocation195_spill] sm:$0xff]  ;;  %v4999_v40 = vmax.f32 %v4951_v63, 0.0  ;;  %v17971_v63 = vld [vmem:[#allocation304_spill] sm:$0xff]  ;;  %v17980_v57 = vld [vmem:[#allocation149_spill] sm:$0xff] }
 0x4ad   : > { %5154 = vmatpush.msrb.mxu1 %v2602_v58  ;;  %5200 = vmatpush.msrb.mxu3 %v2604_v24  ;;  %v1057_v2 = vadd.f32 %v17967_v6, %v17902_v37  ;;  %v4927_v31 = vadd.f32 %v15174_v62, %v931_v36  ;;  %v5000_v35 = vmax.f32 %v4952_v49, 0.0  ;;  %v15277_v58 = vld [vmem:[%s15872_s6] sm:$0xff]  ;;  %v4617_v62 = vpop.f32.mrf.mxu2  ;;  %v3723_v49 = vadd.f32 %v17971_v63, %v969_v60  ;;  %v17982_v6 = vld [vmem:[#allocation107_spill] sm:$0xff] }
 0x4ae   : > { %5177 = vmatpush.msrb.mxu2 %v2603_v28  ;;  %5132 = vmatpush.msrb.mxu0 %v1579_v12  ;;  %v4928_v39 = vadd.f32 %v15176_v19, %v972_v21  ;;  %v1054_v12 = vadd.f32 %v17968_v53, %v17826_v34  ;;  %v17969_v28 = vld [vmem:[#allocation347_spill] sm:$0xff]  ;;  %v4640_v19 = vpop.f32.mrf.mxu3  ;;  %v4953_v26 = vadd.f32 %v4617_v62, %v1016_v52  ;;  %v17985_v53 = vld [vmem:[#allocation152_spill] sm:$0xff] }
 0x4af   : > { %5155 = vmatpush.msrb.mxu1 %v1580_v11  ;;  %5201 = vmatpush.msrb.mxu3 %v1582_v47  ;;  %v3698_v30 = vadd.f32 %v17969_v28, %v925_v38  ;;  %v17970_v11 = vld [vmem:[#allocation273_spill] sm:$0xff]  ;;  %v4954_v38 = vadd.f32 %v4640_v19, %v1057_v2  ;;  %v4929_v43 = vadd.f32 %v15224_v16, %v1013_v7  ;;  %v4975_v15 = vmax.f32 %v4927_v31, 0.0  ;;  %v17975_v16 = vld [vmem:[#allocation303_spill] sm:$0xff]  ;;  %v17989_v63 = vld [vmem:[#allocation24_spill] sm:$0xff] }
 0x4b0   : > { %5178 = vmatpush.msrb.mxu2 %v1581_v20  ;;  %v3722_v24 = vadd.f32 %v17970_v11, %v928_v3  ;;  %5133 = vmatpush.msrb.mxu0 %v1555_v18  ;;  %v17972_v20 = vld [vmem:[#allocation348_spill] sm:$0xff]  ;;  %v4930_v18 = vadd.f32 %v15226_v59, %v1054_v12  ;;  %v5001_v42 = vmax.f32 %v4953_v26, 0.0  ;;  %v3725_v55 = vadd.f32 %v17975_v16, %v1051_v9  ;;  %v17976_v59 = vld [vmem:[#allocation238_spill] sm:$0xff] }
 0x4b1   : > { %5156 = vmatpush.msrb.mxu1 %v1556_v54  ;;  %5202 = vmatpush.msrb.mxu3 %v1558_v5  ;;  %v3699_v0 = vadd.f32 %v17972_v20, %v966_v25  ;;  %v4976_v54 = vmax.f32 %v4928_v39, 0.0  ;;  %v1048_v5 = vadd.f32 %v17973_v33, %v17816_v29  ;;  %v17974_v25 = vld [vmem:[#allocation257_spill] sm:$0xff]  ;;  %v2581_v60 = vadd.f32 %v17976_v59, %v15159_v48  ;;  %v17979_v9 = vld [vmem:[#allocation350_spill] sm:$0xff]  ;;  %v17981_v48 = vld [vmem:[#allocation240_spill] sm:$0xff] }
 0x4b2   : > { %5179 = vmatpush.msrb.mxu2 %v1557_v46  ;;  %6023 = vmatmul.msk.f32.vlgmr.msra.gmra.mxu0 %vm5019_vm7, %v15277_v58  ;;  %v5002_v46 = vmax.f32 %v4954_v38, 0.0  ;;  %v3724_v3 = vadd.f32 %v17974_v25, %v1010_v41  ;;  %v2582_v4 = vadd.f32 %v17977_v13, %v15181_v44  ;;  %v3770_v47 = vmax.f32 %v3722_v24, 0.0  ;;  %v17978_v41 = vld [vmem:[#allocation349_spill] sm:$0xff]  ;;  %v17986_v12 = vld [vmem:[#allocation36_spill] sm:$0xff]  ;;  %v17988_v24 = vld [vmem:[#allocation158_spill] sm:$0xff] }
 0x4b3   : > { %6025 = vmatmul.msk.f32.vlgmr.msra.gmra.mxu1 %vm5019_vm7, %v15277_v58  ;;  %5218 = vmatpush.msra.mxu0 %v4999_v40  ;;  %v3771_v23 = vmax.f32 %v3723_v49, 0.0  ;;  %v3700_v56 = vadd.f32 %v17978_v41, %v15246_v1  ;;  %v3701_v36 = vadd.f32 %v17979_v9, %v1048_v5  ;;  %v4977_v10 = vmax.f32 %v4929_v43, 0.0  ;;  %v17983_v1 = vld [vmem:[#allocation212_spill] sm:$0xff]  ;;  %v17990_v49 = vld [vmem:[#allocation133_spill] sm:$0xff]  ;;  %v17991_v38 = vld [vmem:[#allocation134_spill] sm:$0xff] }
 0x4b4   : > { %5241 = vmatpush.msra.mxu1 %v5000_v35  ;;  %6027 = vmatmul.msk.f32.vlgmr.msra.gmra.mxu2 %vm5019_vm7, %v15277_v58  ;;  %v4978_v21 = vmax.f32 %v4930_v18, 0.0  ;;  %v2557_v7 = vadd.f32 %v17980_v57, %v15142_v32  ;;  %v2558_v27 = vadd.f32 %v17981_v48, %v15146_v14  ;;  %v3746_v44 = vmax.f32 %v3698_v30, 0.0  ;;  %v17984_v35 = vld [vmem:[#allocation27_spill] sm:$0xff]  ;;  %v17987_v11 = vld [vmem:[#allocation140_spill] sm:$0xff]  ;;  %v17992_v18 = vld [vmem:[#allocation37_spill] sm:$0xff] }
 0x4b5   : > { %6029 = vmatmul.msk.f32.vlgmr.msra.gmra.mxu3 %vm5019_vm7, %v15277_v58  ;;  %5219 = vmatpush.msra.mxu0 %v4975_v15  ;;  %v3747_v52 = vmax.f32 %v3699_v0, 0.0  ;;  %v2583_v2 = vadd.f32 %v17982_v6, %v15194_v22  ;;  %v2584_v31 = vadd.f32 %v17983_v1, %v15234_v8  ;;  %v3772_v39 = vmax.f32 %v3724_v3, 0.0  ;;  %v17993_v15 = vld [vmem:[#allocation44_spill] sm:$0xff]  ;;  %v17994_v5 = vld [vmem:[#allocation135_spill] sm:$0xff]  ;;  %v17995_v3 = vld [vmem:[#allocation137_spill] sm:$0xff] }
 0x4b6   : > { %5242 = vmatpush.msra.mxu1 %v4976_v54  ;;  %5264 = vmatpush.msra.mxu2 %v5001_v42  ;;  %v3773_v40 = vmax.f32 %v3725_v55, 0.0  ;;  %v916_v32 = vadd.f32 %v17985_v53, %v17984_v35  ;;  %v957_v14 = vadd.f32 %v17986_v12, %v17984_v35  ;;  %v2629_v28 = vmax.f32 %v2581_v60, 0.0  ;;  %v17997_v57 = vld [vmem:[#allocation124_spill] sm:$0xff]  ;;  %v17998_v48 = vld [vmem:[#allocation25_spill] sm:$0xff]  ;;  %v18000_v1 = vld [vmem:[#allocation138_spill] sm:$0xff] }
 0x4b7   : > { %5287 = vmatpush.msra.mxu3 %v5002_v46  ;;  %5220 = vmatpush.msra.mxu0 %v3770_v47  ;;  %v2630_v30 = vmax.f32 %v2582_v4, 0.0  ;;  %v2559_v22 = vadd.f32 %v17987_v11, %v15151_v17  ;;  %v2560_v8 = vadd.f32 %v17988_v24, %v15155_v50  ;;  %v3748_v62 = vmax.f32 %v3700_v56, 0.0  ;;  %v18002_v53 = vld [vmem:[#allocation146_spill] sm:$0xff]  ;;  %v18003_v12 = vld [vmem:[#allocation155_spill] sm:$0xff] }
 0x4b8   : > { %5243 = vmatpush.msra.mxu1 %v3771_v23  ;;  %5265 = vmatpush.msra.mxu2 %v4977_v10  ;;  %v3749_v19 = vmax.f32 %v3701_v36, 0.0  ;;  %v913_v26 = vadd.f32 %v17990_v49, %v17989_v63  ;;  %v954_v20 = vadd.f32 %v17991_v38, %v17989_v63  ;;  %v2605_v0 = vmax.f32 %v2557_v7, 0.0  ;;  %v15345_v23 = vld [vmem:[%s15872_s6 + $0x8] sm:$0xff]  ;;  %v18005_v11 = vld [vmem:[#allocation222_spill] sm:$0xff]  ;;  %v18009_v38 = vld [vmem:[#allocation228_spill] sm:$0xff] }
 0x4b9   : > { %5288 = vmatpush.msra.mxu3 %v4978_v21  ;;  %5221 = vmatpush.msra.mxu0 %v3746_v44  ;;  %v2606_v43 = vmax.f32 %v2558_v27, 0.0  ;;  %v998_v17 = vadd.f32 %v17992_v18, %v17984_v35  ;;  %v1039_v50 = vadd.f32 %v17993_v15, %v17984_v35  ;;  %v2631_v54 = vmax.f32 %v2583_v2, 0.0  ;;  %v17996_v10 = vld [vmem:[#allocation125_spill] sm:$0xff]  ;;  %v17999_v44 = vld [vmem:[#allocation35_spill] sm:$0xff]  ;;  %v18006_v24 = vld [vmem:[#allocation218_spill] sm:$0xff] }
 0x4ba   : > { %5244 = vmatpush.msra.mxu1 %v3747_v52  ;;  %5266 = vmatpush.msra.mxu2 %v3772_v39  ;;  %v2632_v42 = vmax.f32 %v2584_v31, 0.0  ;;  %v1583_v46 = vmax.f32 %v916_v32, 0.0  ;;  %v1584_v33 = vmax.f32 %v957_v14, 0.0  ;;  %v995_v25 = vadd.f32 %v17994_v5, %v17989_v63  ;;  %v4660_v9 = vpop.f32.mrf.mxu0  ;;  %v4683_v36 = vpop.f32.mrf.mxu1  ;;  %v18001_v39 = vld [vmem:[#allocation139_spill] sm:$0xff]  ;;  %v18008_v49 = vld [vmem:[#allocation54_spill] sm:$0xff]  ;;  %v18012_v5 = vld [vmem:[#allocation224_spill] sm:$0xff] }
 0x4bb   : > { %5289 = vmatpush.msra.mxu3 %v3773_v40  ;;  %5222 = vmatpush.msra.mxu0 %v2629_v28  ;;  %v1036_v16 = vadd.f32 %v17995_v3, %v17989_v63  ;;  %v2607_v55 = vmax.f32 %v2559_v22, 0.0  ;;  %v2608_v59 = vmax.f32 %v2560_v8, 0.0  ;;  %v1559_v60 = vmax.f32 %v913_v26, 0.0  ;;  %v18004_v28 = vld [vmem:[#allocation156_spill] sm:$0xff]  ;;  %v18013_v3 = vld [vmem:[#allocation225_spill] sm:$0xff] }
 0x4bc   : > { %5245 = vmatpush.msra.mxu1 %v2630_v30  ;;  %5267 = vmatpush.msra.mxu2 %v3748_v62  ;;  %v1560_v13 = vmax.f32 %v954_v20, 0.0  ;;  %v1585_v4 = vmax.f32 %v998_v17, 0.0  ;;  %v1586_v47 = vmax.f32 %v1039_v50, 0.0  ;;  %v1561_v41 = vmax.f32 %v995_v25, 0.0  ;;  %v18007_v62 = vld [vmem:[#allocation160_spill] sm:$0xff] }
 0x4bd   : > { %5290 = vmatpush.msra.mxu3 %v3749_v19  ;;  %5223 = vmatpush.msra.mxu0 %v2605_v0  ;;  %v1562_v56 = vmax.f32 %v1036_v16, 0.0  ;;  %v15357_v21 = vadd.f32 %v17996_v10, %v17989_v63  ;;  %v15361_v7 = vadd.f32 %v17997_v57, %v17989_v63  ;;  %v15365_v27 = vadd.f32 %v17998_v48, %v17984_v35  ;;  %v18018_v10 = vld [vmem:[#allocation157_spill] sm:$0xff] }
 0x4be   : > { %5246 = vmatpush.msra.mxu1 %v2606_v43  ;;  %5268 = vmatpush.msra.mxu2 %v2631_v54  ;;  %v15369_v52 = vadd.f32 %v17999_v44, %v17984_v35  ;;  %v1083_v31 = vadd.f32 %v18000_v1, %v17798_v45  ;;  %v1124_v40 = vadd.f32 %v18001_v39, %v17798_v45  ;;  %v18010_v54 = vld [vmem:[#allocation136_spill] sm:$0xff]  ;;  %v18019_v48 = vld [vmem:[#allocation161_spill] sm:$0xff] }
 0x4bf   : > { %5291 = vmatpush.msra.mxu3 %v2632_v42  ;;  %5224 = vmatpush.msra.mxu0 %v1583_v46  ;;  %v1086_v32 = vadd.f32 %v18002_v53, %v17807_v61  ;;  %v1095_v14 = vadd.f32 %v18003_v12, %v17826_v34  ;;  %v1136_v30 = vadd.f32 %v18004_v28, %v17826_v34  ;;  %v18011_v46 = vld [vmem:[#allocation223_spill] sm:$0xff]  ;;  %v18020_v1 = vld [vmem:[#allocation209_spill] sm:$0xff]  ;;  %v18021_v53 = vld [vmem:[#allocation282_spill] sm:$0xff] }
 0x4c0   : > { %5247 = vmatpush.msra.mxu1 %v1584_v33  ;;  %5269 = vmatpush.msra.mxu2 %v2607_v55  ;;  %v1098_v22 = vadd.f32 %v18005_v11, %v17902_v37  ;;  %v1139_v8 = vadd.f32 %v18006_v24, %v17902_v37  ;;  %v1127_v19 = vadd.f32 %v18007_v62, %v17807_v61  ;;  %v18014_v55 = vld [vmem:[#allocation171_spill] sm:$0xff] }
 0x4c1   : > { %5292 = vmatpush.msra.mxu3 %v2608_v59  ;;  %5225 = vmatpush.msra.mxu0 %v1559_v60  ;;  %v4706_v6 = vpop.f32.mrf.mxu2  ;;  %v4729_v2 = vpop.f32.mrf.mxu3  ;;  %v1092_v26 = vadd.f32 %v18008_v49, %v17821_v51  ;;  %v1133_v20 = vadd.f32 %v18009_v38, %v17821_v51  ;;  %v4931_v18 = vadd.f32 %v4660_v9, %v1095_v14  ;;  %v18015_v60 = vld [vmem:[#allocation185_spill] sm:$0xff]  ;;  %v18017_v9 = vld [vmem:[#allocation230_spill] sm:$0xff]  ;;  %v18025_v49 = vld [vmem:[#allocation40_spill] sm:$0xff] }
 0x4c2   : > { %5248 = vmatpush.msra.mxu1 %v1560_v13  ;;  %5270 = vmatpush.msra.mxu2 %v1585_v4  ;;  %v4932_v17 = vadd.f32 %v4683_v36, %v1136_v30  ;;  %v1089_v42 = vadd.f32 %v18010_v54, %v17816_v29  ;;  %v1130_v33 = vadd.f32 %v18011_v46, %v17816_v29  ;;  %v18022_v30 = vld [vmem:[#allocation189_spill] sm:$0xff] }
 0x4c3   : > { %5293 = vmatpush.msra.mxu3 %v1586_v47  ;;  %6024 = vmatmul.msk.f32.gmra.mxu0 %vm5019_vm7, %v15345_v23  ;;  %v1171_v25 = vadd.f32 %v18012_v5, %v17816_v29  ;;  %v1212_v16 = vadd.f32 %v18013_v3, %v17816_v29  ;;  %v3726_v59 = vadd.f32 %v18014_v55, %v1092_v26  ;;  %v4979_v14 = vmax.f32 %v4931_v18, 0.0  ;;  %v18029_v3 = vld [vmem:[#allocation28_spill] sm:$0xff] }
 0x4c4   : > { %6026 = vmatmul.msk.f32.gmra.mxu1 %vm5019_vm7, %v15345_v23  ;;  %5271 = vmatpush.msra.mxu2 %v1561_v41  ;;  %v4663_v0 = vpop.f32.mrf.mxu0  ;;  %v4686_v43 = vpop.f32.mrf.mxu1  ;;  %v3727_v13 = vadd.f32 %v18015_v60, %v1133_v20  ;;  %v18016_v41 = vld [vmem:[#allocation229_spill] sm:$0xff]  ;;  %v1215_v36 = vadd.f32 %v18017_v9, %v17821_v51  ;;  %v1177_v57 = vadd.f32 %v18018_v10, %v17826_v34  ;;  %v4980_v28 = vmax.f32 %v4932_v17, 0.0  ;;  %v18030_v60 = vld [vmem:[#allocation215_spill] sm:$0xff]  ;;  %v18033_v10 = vld [vmem:[#allocation170_spill] sm:$0xff] }
 0x4c5   : > { %5294 = vmatpush.msra.mxu3 %v1562_v56  ;;  %6028 = vmatmul.msk.f32.gmra.mxu2 %vm5019_vm7, %v15345_v23  ;;  %v4955_v15 = vadd.f32 %v4663_v0, %v1098_v22  ;;  %v4956_v50 = vadd.f32 %v4686_v43, %v1139_v8  ;;  %v1174_v56 = vadd.f32 %v18016_v41, %v17821_v51  ;;  %v18023_v22 = vld [vmem:[#allocation198_spill] sm:$0xff]  ;;  %v18024_v8 = vld [vmem:[#allocation277_spill] sm:$0xff]  ;;  %v3774_v38 = vmax.f32 %v3726_v59, 0.0 }
 0x4c6   : > { %6030 = vmatmul.msk.f32.gmra.mxu3 %vm5019_vm7, %v15345_v23  ;;  %v1218_v44 = vadd.f32 %v18019_v48, %v17826_v34  ;;  %v3702_v39 = vadd.f32 %v18020_v1, %v1089_v42  ;;  %v3703_v12 = vadd.f32 %v18021_v53, %v1130_v33  ;;  %v1180_v11 = vadd.f32 %v18022_v30, %v17902_v37  ;;  %v18027_v42 = vld [vmem:[#allocation147_spill] sm:$0xff]  ;;  %v18035_v1 = vld [vmem:[#allocation112_spill] sm:$0xff] }
 0x4c7   : > { %v5003_v4 = vmax.f32 %v4955_v15, 0.0  ;;  %v5004_v47 = vmax.f32 %v4956_v50, 0.0  ;;  %v1221_v24 = vadd.f32 %v18023_v22, %v17902_v37  ;;  %v2585_v62 = vadd.f32 %v18024_v8, %v1086_v32  ;;  %v18026_v32 = vld [vmem:[#allocation231_spill] sm:$0xff] }
 0x4c8   : > { %v2586_v26 = vadd.f32 %v18025_v49, %v1127_v19  ;;  %v3775_v20 = vmax.f32 %v3727_v13, 0.0  ;;  %v4933_v0 = vadd.f32 %v4706_v6, %v1177_v57  ;;  %v4934_v17 = vadd.f32 %v4729_v2, %v1218_v44  ;;  %v18028_v6 = vld [vmem:[#allocation255_spill] sm:$0xff]  ;;  %v18039_v49 = vld [vmem:[#allocation213_spill] sm:$0xff] }
 0x4c9   : > { %v2561_v54 = vadd.f32 %v18026_v32, %v1083_v31  ;;  %v2562_v19 = vadd.f32 %v18027_v42, %v1124_v40  ;;  %v3750_v46 = vmax.f32 %v3702_v39, 0.0  ;;  %v3751_v33 = vmax.f32 %v3703_v12, 0.0  ;;  %v18032_v40 = vld [vmem:[#allocation254_spill] sm:$0xff]  ;;  %v18037_v30 = vld [vmem:[#allocation159_spill] sm:$0xff]  ;;  %v18042_v32 = vld [vmem:[#allocation204_spill] sm:$0xff] }
 0x4ca   : > { %v3728_v5 = vadd.f32 %v18028_v6, %v1174_v56  ;;  %v3729_v2 = vadd.f32 %v18029_v3, %v1215_v36  ;;  %v1168_v13 = vadd.f32 %v18030_v60, %v17807_v61  ;;  %v2633_v41 = vmax.f32 %v2585_v62, 0.0  ;;  %v18034_v36 = vld [vmem:[#allocation143_spill] sm:$0xff] }
 0x4cb   : > { %6031 = vmatmul.msk.f32.vlgmr.msrb.gmra.mxu0 %vm5019_vm7, %v15277_v58  ;;  %v4709_v43 = vpop.f32.mrf.mxu2  ;;  %v4732_v18 = vpop.f32.mrf.mxu3  ;;  %v2634_v31 = vmax.f32 %v2586_v26, 0.0  ;;  %v3704_v9 = vadd.f32 %v18032_v40, %v1171_v25  ;;  %v3705_v57 = vadd.f32 %v18033_v10, %v1212_v16  ;;  %v4981_v48 = vmax.f32 %v4933_v0, 0.0  ;;  %v18038_v8 = vld [vmem:[#allocation251_spill] sm:$0xff]  ;;  %v18047_v40 = vld [vmem:[#allocation73_spill] sm:$0xff]  ;;  %v18048_v10 = vld [vmem:[#allocation180_spill] sm:$0xff] }
 0x4cc   : > { %6033 = vmatmul.msk.f32.vlgmr.msrb.gmra.mxu1 %vm5019_vm7, %v15277_v58  ;;  %5310 = vmatpush.msrb.mxu0 %v5003_v4  ;;  %v4957_v15 = vadd.f32 %v4709_v43, %v1180_v11  ;;  %v4958_v50 = vadd.f32 %v4732_v18, %v1221_v24  ;;  %v18031_v4 = vld [vmem:[#allocation216_spill] sm:$0xff]  ;;  %v4982_v56 = vmax.f32 %v4934_v17, 0.0  ;;  %v1165_v44 = vadd.f32 %v18034_v36, %v17798_v45  ;;  %v18050_v36 = vld [vmem:[#allocation290_spill] sm:$0xff] }
 0x4cd   : > { %6035 = vmatmul.msk.f32.vlgmr.msrb.gmra.mxu2 %vm5019_vm7, %v15277_v58  ;;  %5333 = vmatpush.msrb.mxu1 %v5004_v47  ;;  %v1209_v47 = vadd.f32 %v18031_v4, %v17807_v61  ;;  %v1206_v39 = vadd.f32 %v18035_v1, %v17798_v45  ;;  %v2609_v53 = vmax.f32 %v2561_v54, 0.0  ;;  %v2610_v12 = vmax.f32 %v2562_v19, 0.0  ;;  %v18045_v4 = vld [vmem:[#allocation50_spill] sm:$0xff]  ;;  %v18051_v1 = vld [vmem:[#allocation129_spill] sm:$0xff] }
 0x4ce   : > { %6037 = vmatmul.msk.f32.vlgmr.msrb.gmra.mxu3 %vm5019_vm7, %v15277_v58  ;;  %5311 = vmatpush.msrb.mxu0 %v4979_v14  ;;  %v5005_v55 = vmax.f32 %v4957_v15, 0.0  ;;  %v5006_v59 = vmax.f32 %v4958_v50, 0.0  ;;  %v18036_v14 = vld [vmem:[#allocation283_spill] sm:$0xff]  ;;  %v3776_v11 = vmax.f32 %v3728_v5, 0.0  ;;  %v3777_v16 = vmax.f32 %v3729_v2, 0.0 }
 0x4cf   : > { %5334 = vmatpush.msrb.mxu1 %v4980_v28  ;;  %v2587_v28 = vadd.f32 %v18036_v14, %v1168_v13  ;;  %v2588_v25 = vadd.f32 %v18037_v30, %v1209_v47  ;;  %v1587_v22 = vmax.f32 %v15365_v27, 0.0  ;;  %v1588_v24 = vmax.f32 %v15369_v52, 0.0  ;;  %v18040_v27 = vld [vmem:[#allocation32_spill] sm:$0xff]  ;;  %v18053_v14 = vld [vmem:[#allocation34_spill] sm:$0xff] }
 0x4d0   : > { %5312 = vmatpush.msrb.mxu0 %v3774_v38  ;;  %5356 = vmatpush.msrb.mxu2 %v5005_v55  ;;  %v2563_v62 = vadd.f32 %v18038_v8, %v1165_v44  ;;  %v2564_v26 = vadd.f32 %v18039_v49, %v1206_v39  ;;  %v3752_v38 = vmax.f32 %v3704_v9, 0.0  ;;  %v1563_v0 = vmax.f32 %v15357_v21, 0.0  ;;  %v18041_v52 = vld [vmem:[#allocation48_spill] sm:$0xff]  ;;  %v18043_v21 = vld [vmem:[#allocation205_spill] sm:$0xff] }
 0x4d1   : > { %5335 = vmatpush.msrb.mxu1 %v3775_v20  ;;  %5379 = vmatpush.msrb.mxu3 %v5006_v59  ;;  %v3753_v20 = vmax.f32 %v3705_v57, 0.0  ;;  %v1564_v43 = vmax.f32 %v15361_v7, 0.0  ;;  %v1162_v18 = vadd.f32 %v18040_v27, %v17984_v35  ;;  %v1203_v17 = vadd.f32 %v18041_v52, %v17984_v35  ;;  %v18044_v55 = vld [vmem:[#allocation168_spill] sm:$0xff] }
 0x4d2   : > { %5313 = vmatpush.msrb.mxu0 %v3750_v46  ;;  %5357 = vmatpush.msrb.mxu2 %v4981_v48  ;;  %v2635_v15 = vmax.f32 %v2587_v28, 0.0  ;;  %v2636_v50 = vmax.f32 %v2588_v25, 0.0  ;;  %v1159_v54 = vadd.f32 %v18042_v32, %v17989_v63  ;;  %v1200_v7 = vadd.f32 %v18043_v21, %v17989_v63  ;;  %v18049_v48 = vld [vmem:[#allocation142_spill] sm:$0xff]  ;;  %v18054_v30 = vld [vmem:[#allocation116_spill] sm:$0xff]  ;;  %v18061_v32 = vld [vmem:[#allocation317_spill] sm:$0xff] }
 0x4d3   : > { %6032 = vmatmul.msk.f32.gmra.mxu0 %vm5019_vm7, %v15345_v23  ;;  %5336 = vmatpush.msrb.mxu1 %v3751_v33  ;;  %v2611_v42 = vmax.f32 %v2563_v62, 0.0  ;;  %v2612_v19 = vmax.f32 %v2564_v26, 0.0  ;;  %v1589_v46 = vmax.f32 %v1162_v18, 0.0  ;;  %v1590_v33 = vmax.f32 %v1203_v17, 0.0  ;;  %v18058_v27 = vld [vmem:[#allocation68_spill] sm:$0xff] }
 0x4d4   : > { %6034 = vmatmul.msk.f32.gmra.mxu1 %vm5019_vm7, %v15345_v23  ;;  %5314 = vmatpush.msrb.mxu0 %v2633_v41  ;;  %v1565_v6 = vmax.f32 %v1159_v54, 0.0  ;;  %v1566_v5 = vmax.f32 %v1200_v7, 0.0  ;;  %v15481_v59 = vadd.f32 %v18044_v55, %v17989_v63  ;;  %v15485_v47 = vadd.f32 %v18045_v4, %v17989_v63  ;;  %v18046_v41 = vld [vmem:[#allocation67_spill] sm:$0xff]  ;;  %v18059_v52 = vld [vmem:[#allocation220_spill] sm:$0xff]  ;;  %v18066_v55 = vld [vmem:[#allocation245_spill] sm:$0xff] }
 0x4d5   : > { %6036 = vmatmul.msk.f32.gmra.mxu2 %vm5019_vm7, %v15345_v23  ;;  %5337 = vmatpush.msrb.mxu1 %v2634_v31  ;;  %v15489_v31 = vadd.f32 %v18046_v41, %v17984_v35  ;;  %v15493_v9 = vadd.f32 %v18047_v40, %v17984_v35  ;;  %v1259_v57 = vadd.f32 %v18048_v10, %v17826_v34  ;;  %v18067_v41 = vld [vmem:[#allocation242_spill] sm:$0xff] }
 0x4d6   : > { %6038 = vmatmul.msk.f32.gmra.mxu3 %vm5019_vm7, %v15345_v23  ;;  %5315 = vmatpush.msrb.mxu0 %v2609_v53  ;;  %v1300_v44 = vadd.f32 %v18050_v36, %v17826_v34  ;;  %v1262_v39 = vadd.f32 %v18051_v1, %v17902_v37  ;;  %v18052_v53 = vld [vmem:[#allocation297_spill] sm:$0xff]  ;;  %v1288_v28 = vadd.f32 %v18053_v14, %v17798_v45 }
 0x4d7   : > { %5380 = vmatpush.msrb.mxu3 %v4982_v56  ;;  %5338 = vmatpush.msrb.mxu1 %v2610_v12  ;;  %v1247_v56 = vadd.f32 %v18049_v48, %v17798_v45  ;;  %v1303_v12 = vadd.f32 %v18052_v53, %v17902_v37  ;;  %v1256_v25 = vadd.f32 %v18054_v30, %v17821_v51  ;;  %v18068_v48 = vld [vmem:[#allocation291_spill] sm:$0xff] }
 0x4d8   : > { %5358 = vmatpush.msrb.mxu2 %v3776_v11  ;;  %5316 = vmatpush.msrb.mxu0 %v1587_v22  ;;  %v18055_v11 = vld [vmem:[#allocation243_spill] sm:$0xff]  ;;  %v1253_v18 = vadd.f32 %v18058_v27, %v17816_v29  ;;  %v1294_v17 = vadd.f32 %v18059_v52, %v17816_v29  ;;  %v1341_v36 = vadd.f32 %v18068_v48, %v17826_v34  ;;  %v18074_v27 = vld [vmem:[#allocation325_spill] sm:$0xff]  ;;  %v18075_v52 = vld [vmem:[#allocation60_spill] sm:$0xff] }
 0x4d9   : > { %5381 = vmatpush.msrb.mxu3 %v3777_v16  ;;  %5339 = vmatpush.msrb.mxu1 %v1588_v24  ;;  %v1297_v16 = vadd.f32 %v18055_v11, %v17821_v51  ;;  %v18072_v30 = vld [vmem:[#allocation203_spill] sm:$0xff]  ;;  %v18073_v11 = vld [vmem:[#allocation154_spill] sm:$0xff] }
 0x4da   : > { %5359 = vmatpush.msrb.mxu2 %v3752_v38  ;;  %5317 = vmatpush.msrb.mxu0 %v1563_v0  ;;  %v18056_v38 = vld [vmem:[#allocation206_spill] sm:$0xff]  ;;  %v18057_v0 = vld [vmem:[#allocation43_spill] sm:$0xff]  ;;  %v3706_v4 = vadd.f32 %v18066_v55, %v1253_v18  ;;  %v3707_v40 = vadd.f32 %v18067_v41, %v1294_v17  ;;  %v2565_v18 = vadd.f32 %v18074_v27, %v1247_v56  ;;  %v18082_v41 = vld [vmem:[#allocation141_spill] sm:$0xff] }
 0x4db   : > { %5382 = vmatpush.msrb.mxu3 %v3753_v20  ;;  %5340 = vmatpush.msrb.mxu1 %v1564_v43  ;;  %v1250_v20 = vadd.f32 %v18056_v38, %v17807_v61  ;;  %v1291_v43 = vadd.f32 %v18057_v0, %v17807_v61  ;;  %v3731_v54 = vadd.f32 %v18061_v32, %v1297_v16  ;;  %v18079_v56 = vld [vmem:[#allocation151_spill] sm:$0xff]  ;;  %v18090_v27 = vld [vmem:[#allocation232_spill] sm:$0xff] }
 0x4dc   : > { %5360 = vmatpush.msrb.mxu2 %v2635_v15  ;;  %6039 = vmatmul.msk.f32.vlgmr.msra.gmra.mxu0 %vm5019_vm7, %v15277_v58  ;;  %v18060_v15 = vld [vmem:[#allocation314_spill] sm:$0xff]  ;;  %v2566_v17 = vadd.f32 %v18075_v52, %v1288_v28  ;;  %v3755_v32 = vmax.f32 %v3707_v40, 0.0  ;;  %v1373_v28 = vadd.f32 %v18079_v56, %v17807_v61  ;;  %v1329_v40 = vadd.f32 %v18082_v41, %v17798_v45  ;;  %v18093_v56 = vld [vmem:[#allocation261_spill] sm:$0xff] }
 0x4dd   : > { %5383 = vmatpush.msrb.mxu3 %v2636_v50  ;;  %6041 = vmatmul.msk.f32.vlgmr.msra.gmra.mxu1 %vm5019_vm7, %v15277_v58  ;;  %v3730_v50 = vadd.f32 %v18060_v15, %v1256_v25  ;;  %v2589_v25 = vadd.f32 %v18072_v30, %v1250_v20  ;;  %v2590_v16 = vadd.f32 %v18073_v11, %v1291_v43  ;;  %v3754_v15 = vmax.f32 %v3706_v4, 0.0  ;;  %v18076_v20 = vld [vmem:[#allocation199_spill] sm:$0xff]  ;;  %v18087_v11 = vld [vmem:[#allocation310_spill] sm:$0xff] }
 0x4de   : > { %5361 = vmatpush.msrb.mxu2 %v2611_v42  ;;  %6045 = vmatmul.msk.f32.vlgmr.msra.gmra.mxu3 %vm5019_vm7, %v15277_v58  ;;  %v4752_v3 = vpop.f32.mrf.mxu0  ;;  %v4775_v2 = vpop.f32.mrf.mxu1  ;;  %v18062_v42 = vld [vmem:[#allocation177_spill] sm:$0xff]  ;;  %v2613_v48 = vmax.f32 %v2565_v18, 0.0  ;;  %v18086_v30 = vld [vmem:[#allocation307_spill] sm:$0xff]  ;;  %v1323_v18 = vadd.f32 %v18090_v27, %v17989_v63 }
 0x4df   : > { %5384 = vmatpush.msrb.mxu3 %v2612_v19  ;;  %6043 = vmatmul.msk.f32.vlgmr.msra.gmra.mxu2 %vm5019_vm7, %v15277_v58  ;;  %v4935_v22 = vadd.f32 %v4752_v3, %v1259_v57  ;;  %v4936_v62 = vadd.f32 %v4775_v2, %v1300_v44  ;;  %v1335_v19 = vadd.f32 %v18062_v42, %v17816_v29  ;;  %v18065_v3 = vld [vmem:[#allocation181_spill] sm:$0xff]  ;;  %v18069_v44 = vld [vmem:[#allocation292_spill] sm:$0xff]  ;;  %v2637_v42 = vmax.f32 %v2589_v25, 0.0 }
 0x4e0   : > { %5362 = vmatpush.msrb.mxu2 %v1589_v46  ;;  %v18063_v46 = vld [vmem:[#allocation178_spill] sm:$0xff]  ;;  %v1379_v2 = vadd.f32 %v18065_v3, %v17821_v51  ;;  %v1382_v1 = vadd.f32 %v18069_v44, %v17826_v34  ;;  %v18084_v44 = vld [vmem:[#allocation241_spill] sm:$0xff]  ;;  %v2567_v25 = vadd.f32 %v18086_v30, %v1329_v40  ;;  %v18099_v40 = vld [vmem:[#allocation295_spill] sm:$0xff] }
 0x4e1   : > { %5385 = vmatpush.msrb.mxu3 %v1590_v33  ;;  %v1376_v33 = vadd.f32 %v18063_v46, %v17816_v29  ;;  %v4983_v10 = vmax.f32 %v4935_v22, 0.0  ;;  %v4984_v57 = vmax.f32 %v4936_v62, 0.0  ;;  %v3778_v22 = vmax.f32 %v3730_v50, 0.0  ;;  %v18077_v50 = vld [vmem:[#allocation315_spill] sm:$0xff]  ;;  %v18081_v3 = vld [vmem:[#allocation266_spill] sm:$0xff] }
 0x4e2   : > { %5363 = vmatpush.msrb.mxu2 %v1565_v6  ;;  %v18064_v6 = vld [vmem:[#allocation235_spill] sm:$0xff]  ;;  %v2638_v46 = vmax.f32 %v2590_v16, 0.0  ;;  %v2615_v52 = vmax.f32 %v2567_v25, 0.0 }
 0x4e3   : > { %5386 = vmatpush.msrb.mxu3 %v1566_v5  ;;  %v1338_v5 = vadd.f32 %v18064_v6, %v17821_v51  ;;  %v18080_v6 = vld [vmem:[#allocation196_spill] sm:$0xff] }
 0x4e4   : > { %6040 = vmatmul.msk.f32.gmra.mxu0 %vm5019_vm7, %v15345_v23 }
 0x4e5   : > { %6042 = vmatmul.msk.f32.gmra.mxu1 %vm5019_vm7, %v15345_v23  ;;  %v4798_v60 = vpop.f32.mrf.mxu2  ;;  %v4821_v13 = vpop.f32.mrf.mxu3  ;;  %v3732_v43 = vadd.f32 %v18076_v20, %v1338_v5  ;;  %v3708_v5 = vadd.f32 %v18080_v6, %v1335_v19  ;;  %v1569_v20 = vmax.f32 %v1323_v18, 0.0 }
 0x4e6   : > { %6046 = vmatmul.msk.f32.gmra.mxu3 %vm5019_vm7, %v15345_v23 }
 0x4e7   : > { %6044 = vmatmul.msk.f32.gmra.mxu2 %vm5019_vm7, %v15345_v23 }
 0x4e8   : > { %v4755_v24 = vpop.f32.mrf.mxu0  ;;  %v4778_v8 = vpop.f32.mrf.mxu1 }
 0x4e9   : > { %v4959_v49 = vadd.f32 %v4755_v24, %v1262_v39  ;;  %v4960_v26 = vadd.f32 %v4778_v8, %v1303_v12  ;;  %v18070_v39 = vld [vmem:[#allocation298_spill] sm:$0xff]  ;;  %v3779_v24 = vmax.f32 %v3731_v54, 0.0  ;;  %v3733_v54 = vadd.f32 %v18077_v50, %v1379_v2 }
 0x4ea   : > { %v1344_v53 = vadd.f32 %v18070_v39, %v17902_v37  ;;  %v18071_v12 = vld [vmem:[#allocation302_spill] sm:$0xff]  ;;  %v3709_v2 = vadd.f32 %v18081_v3, %v1376_v33  ;;  %v18085_v39 = vld [vmem:[#allocation248_spill] sm:$0xff] }
 0x4eb   : > { %v5007_v21 = vmax.f32 %v4959_v49, 0.0  ;;  %v5008_v7 = vmax.f32 %v4960_v26, 0.0  ;;  %v1385_v14 = vadd.f32 %v18071_v12, %v17902_v37  ;;  %v4937_v49 = vadd.f32 %v4798_v60, %v1341_v36  ;;  %v18078_v60 = vld [vmem:[#allocation210_spill] sm:$0xff] }
 0x4ec   : > { %6047 = vmatmul.msk.f32.vlgmr.msrb.gmra.mxu0 %vm5019_vm7, %v15277_v58  ;;  %v4938_v26 = vadd.f32 %v4821_v13, %v1382_v1  ;;  %v1332_v13 = vadd.f32 %v18078_v60, %v17807_v61  ;;  %v2614_v36 = vmax.f32 %v2566_v17, 0.0  ;;  %v2592_v19 = vadd.f32 %v18085_v39, %v1373_v28 }
 0x4ed   : > { %6049 = vmatmul.msk.f32.vlgmr.msrb.gmra.mxu1 %vm5019_vm7, %v15277_v58  ;;  %5402 = vmatpush.msra.mxu0 %v5007_v21  ;;  %v4985_v55 = vmax.f32 %v4937_v49, 0.0  ;;  %v3781_v33 = vmax.f32 %v3733_v54, 0.0  ;;  %v1591_v12 = vmax.f32 %v15489_v31, 0.0  ;;  %v18088_v31 = vld [vmem:[#allocation74_spill] sm:$0xff]  ;;  %v15605_v28 = vadd.f32 %v18093_v56, %v17989_v63  ;;  %v18115_v56 = vld [vmem:[#allocation319_spill] sm:$0xff] }
 0x4ee   : > { %6053 = vmatmul.msk.f32.vlgmr.msrb.gmra.mxu3 %vm5019_vm7, %v15277_v58  ;;  %5425 = vmatpush.msra.mxu1 %v5008_v7  ;;  %v4986_v4 = vmax.f32 %v4938_v26, 0.0  ;;  %v2591_v1 = vadd.f32 %v18084_v44, %v1332_v13  ;;  %v1326_v49 = vadd.f32 %v18088_v31, %v17984_v35 }
 0x4ef   : > { %6051 = vmatmul.msk.f32.vlgmr.msrb.gmra.mxu2 %vm5019_vm7, %v15277_v58  ;;  %v4801_v8 = vpop.f32.mrf.mxu2  ;;  %v4824_v62 = vpop.f32.mrf.mxu3  ;;  %5403 = vmatpush.msra.mxu0 %v4983_v10  ;;  %v18083_v10 = vld [vmem:[#allocation164_spill] sm:$0xff] }
 0x4f0   : > { %5426 = vmatpush.msra.mxu1 %v4984_v57  ;;  %v4961_v38 = vadd.f32 %v4801_v8, %v1344_v53  ;;  %v4962_v0 = vadd.f32 %v4824_v62, %v1385_v14  ;;  %v1370_v57 = vadd.f32 %v18083_v10, %v17798_v45  ;;  %v3780_v53 = vmax.f32 %v3732_v43, 0.0 }
 0x4f1   : > { %5404 = vmatpush.msra.mxu0 %v3778_v22  ;;  %v1592_v14 = vmax.f32 %v15493_v9, 0.0  ;;  %v3756_v22 = vmax.f32 %v3708_v5, 0.0  ;;  %v1567_v8 = vmax.f32 %v15481_v59, 0.0  ;;  %v1568_v62 = vmax.f32 %v15485_v47, 0.0  ;;  %v18089_v9 = vld [vmem:[#allocation217_spill] sm:$0xff]  ;;  %v18091_v59 = vld [vmem:[#allocation211_spill] sm:$0xff] }
 0x4f2   : > { %5427 = vmatpush.msra.mxu1 %v3779_v24  ;;  %v5009_v21 = vmax.f32 %v4961_v38, 0.0  ;;  %v5010_v7 = vmax.f32 %v4962_v0, 0.0  ;;  %v2568_v16 = vadd.f32 %v18087_v11, %v1370_v57  ;;  %v3757_v24 = vmax.f32 %v3709_v2, 0.0  ;;  %v18096_v5 = vld [vmem:[#allocation239_spill] sm:$0xff]  ;;  %v18097_v2 = vld [vmem:[#allocation202_spill] sm:$0xff]  ;;  %v18100_v57 = vld [vmem:[#allocation296_spill] sm:$0xff] }
 0x4f3   : > { %5405 = vmatpush.msra.mxu0 %v3754_v15  ;;  %v1367_v26 = vadd.f32 %v18089_v9, %v17984_v35  ;;  %v2639_v38 = vmax.f32 %v2591_v1, 0.0  ;;  %v2640_v0 = vmax.f32 %v2592_v19, 0.0  ;;  %v1364_v47 = vadd.f32 %v18091_v59, %v17989_v63  ;;  %v18102_v1 = vld [vmem:[#allocation226_spill] sm:$0xff]  ;;  %v18103_v19 = vld [vmem:[#allocation236_spill] sm:$0xff] }
 0x4f4   : > { %6048 = vmatmul.msk.f32.gmra.mxu0 %vm5019_vm7, %v15345_v23  ;;  %5428 = vmatpush.msra.mxu1 %v3755_v32  ;;  %v2616_v17 = vmax.f32 %v2568_v16, 0.0  ;;  %v1593_v15 = vmax.f32 %v1326_v49, 0.0  ;;  %v1423_v3 = vadd.f32 %v18096_v5, %v17826_v34  ;;  %v1426_v10 = vadd.f32 %v18099_v40, %v17902_v37  ;;  %v18104_v16 = vld [vmem:[#allocation272_spill] sm:$0xff]  ;;  %v18107_v49 = vld [vmem:[#allocation103_spill] sm:$0xff] }
 0x4f5   : > { %6050 = vmatmul.msk.f32.gmra.mxu1 %vm5019_vm7, %v15345_v23  ;;  %5448 = vmatpush.msra.mxu2 %v5009_v21  ;;  %v1594_v32 = vmax.f32 %v1367_v26, 0.0  ;;  %v1570_v43 = vmax.f32 %v1364_v47, 0.0  ;;  %v18092_v21 = vld [vmem:[#allocation263_spill] sm:$0xff]  ;;  %v1420_v39 = vadd.f32 %v18102_v1, %v17821_v51  ;;  %v1458_v9 = vadd.f32 %v18107_v49, %v17816_v29  ;;  %v18108_v26 = vld [vmem:[#allocation253_spill] sm:$0xff]  ;;  %v18110_v47 = vld [vmem:[#allocation64_spill] sm:$0xff] }
 0x4f6   : > { %5471 = vmatpush.msra.mxu3 %v5010_v7  ;;  %5406 = vmatpush.msra.mxu0 %v2637_v42  ;;  %v15601_v7 = vadd.f32 %v18092_v21, %v17989_v63  ;;  %v18094_v42 = vld [vmem:[#allocation321_spill] sm:$0xff] }
 0x4f7   : > { %5429 = vmatpush.msra.mxu1 %v2638_v46  ;;  %5449 = vmatpush.msra.mxu2 %v4985_v55  ;;  %v15609_v46 = vadd.f32 %v18094_v42, %v17984_v35  ;;  %v1411_v55 = vadd.f32 %v18097_v2, %v17798_v45  ;;  %v3711_v42 = vadd.f32 %v18115_v56, %v1458_v9  ;;  %v18132_v56 = vld [vmem:[#allocation333_spill] sm:$0xff] }
 0x4f8   : > { %5472 = vmatpush.msra.mxu3 %v4986_v4  ;;  %5407 = vmatpush.msra.mxu0 %v2613_v48  ;;  %v18098_v4 = vld [vmem:[#allocation249_spill] sm:$0xff]  ;;  %v1467_v48 = vadd.f32 %v18100_v57, %v17902_v37  ;;  %v18120_v57 = vld [vmem:[#allocation331_spill] sm:$0xff] }
 0x4f9   : > { %5430 = vmatpush.msra.mxu1 %v2614_v36  ;;  %5450 = vmatpush.msra.mxu2 %v3780_v53  ;;  %v1464_v41 = vadd.f32 %v18098_v4, %v17826_v34  ;;  %v18101_v36 = vld [vmem:[#allocation250_spill] sm:$0xff]  ;;  %v1461_v53 = vadd.f32 %v18103_v19, %v17821_v51 }
 0x4fa   : > { %5473 = vmatpush.msra.mxu3 %v3781_v33  ;;  %5408 = vmatpush.msra.mxu0 %v1591_v12  ;;  %v1452_v44 = vadd.f32 %v18101_v36, %v17798_v45  ;;  %v18117_v4 = vld [vmem:[#allocation294_spill] sm:$0xff]  ;;  %v18121_v36 = vld [vmem:[#allocation332_spill] sm:$0xff] }
 0x4fb   : > { %5431 = vmatpush.msra.mxu1 %v1592_v14  ;;  %5451 = vmatpush.msra.mxu2 %v3756_v22  ;;  %v1414_v22 = vadd.f32 %v18104_v16, %v17807_v61  ;;  %v18123_v16 = vld [vmem:[#allocation207_spill] sm:$0xff] }
 0x4fc   : > { %5474 = vmatpush.msra.mxu3 %v3757_v24  ;;  %5409 = vmatpush.msra.mxu0 %v1567_v8  ;;  %v18105_v24 = vld [vmem:[#allocation175_spill] sm:$0xff] }
 0x4fd   : > { %5432 = vmatpush.msra.mxu1 %v1568_v62  ;;  %5452 = vmatpush.msra.mxu2 %v2639_v38  ;;  %v1455_v8 = vadd.f32 %v18105_v24, %v17807_v61  ;;  %v18106_v62 = vld [vmem:[#allocation288_spill] sm:$0xff]  ;;  %v3734_v38 = vadd.f32 %v18108_v26, %v1420_v39  ;;  %v2570_v24 = vadd.f32 %v18123_v16, %v1452_v44  ;;  %v18128_v44 = vld [vmem:[#allocation214_spill] sm:$0xff] }
 0x4fe   : > { %5475 = vmatpush.msra.mxu3 %v2640_v0  ;;  %6052 = vmatmul.msk.f32.gmra.mxu2 %vm5019_vm7, %v15345_v23  ;;  %v1417_v31 = vadd.f32 %v18106_v62, %v17816_v29  ;;  %v18109_v0 = vld [vmem:[#allocation280_spill] sm:$0xff]  ;;  %v3759_v62 = vmax.f32 %v3711_v42, 0.0  ;;  %v18133_v42 = vld [vmem:[#allocation334_spill] sm:$0xff] }
 0x4ff   : > { %6054 = vmatmul.msk.f32.gmra.mxu3 %vm5019_vm7, %v15345_v23  ;;  %5453 = vmatpush.msra.mxu2 %v2615_v52  ;;  %v3735_v27 = vadd.f32 %v18109_v0, %v1461_v53  ;;  %v1499_v52 = vadd.f32 %v18110_v47, %v17816_v29  ;;  %v2594_v1 = vadd.f32 %v18121_v36, %v1455_v8  ;;  %v3782_v39 = vmax.f32 %v3734_v38, 0.0  ;;  %v18127_v38 = vld [vmem:[#allocation286_spill] sm:$0xff] }
 0x500   : > { %5476 = vmatpush.msra.mxu3 %v2616_v17  ;;  %6055 = vmatmul.msk.f32.vlgmr.msra.gmra.mxu0 %vm5019_vm7, %v15277_v58  ;;  %v18111_v17 = vld [vmem:[#allocation200_spill] sm:$0xff]  ;;  %v1537_v0 = vadd.f32 %v18127_v38, %v17807_v61 }
 0x501   : > { %6057 = vmatmul.msk.f32.vlgmr.msra.gmra.mxu1 %vm5019_vm7, %v15277_v58  ;;  %5454 = vmatpush.msra.mxu2 %v1593_v15  ;;  %v1540_v15 = vadd.f32 %v18111_v17, %v17816_v29  ;;  %v1546_v29 = vadd.f32 %v18117_v4, %v17826_v34  ;;  %v3783_v19 = vmax.f32 %v3735_v27, 0.0  ;;  %v2642_v27 = vmax.f32 %v2594_v1, 0.0 }
 0x502   : > { %5477 = vmatpush.msra.mxu3 %v1594_v32  ;;  %v18112_v32 = vld [vmem:[#allocation247_spill] sm:$0xff] }
 0x503   : > { %5455 = vmatpush.msra.mxu2 %v1569_v20  ;;  %v1502_v20 = vadd.f32 %v18112_v32, %v17821_v51 }
 0x504   : > { %5478 = vmatpush.msra.mxu3 %v1570_v43  ;;  %v18113_v43 = vld [vmem:[#allocation237_spill] sm:$0xff] }
 0x506   : > { %6059 = vmatmul.msk.f32.vlgmr.msra.gmra.mxu2 %vm5019_vm7, %v15277_v58 }
 0x507   : > { %6061 = vmatmul.msk.f32.vlgmr.msra.gmra.mxu3 %vm5019_vm7, %v15277_v58  ;;  %v18095_v58 = vld [vmem:[#allocation322_spill] sm:$0xff] }
 0x508   : > { %6056 = vmatmul.msk.f32.gmra.mxu0 %vm5019_vm7, %v15345_v23  ;;  %v15613_v6 = vadd.f32 %v18095_v58, %v17984_v35 }
 0x509   : > { %6058 = vmatmul.msk.f32.gmra.mxu1 %vm5019_vm7, %v15345_v23 }
 0x50a   : > { %v4844_v50 = vpop.f32.mrf.mxu0  ;;  %v4867_v54 = vpop.f32.mrf.mxu1 }
 0x50b   : > { %v4939_v33 = vadd.f32 %v4844_v50, %v1423_v3  ;;  %v4940_v30 = vadd.f32 %v4867_v54, %v1464_v41  ;;  %v1543_v50 = vadd.f32 %v18113_v43, %v17821_v51  ;;  %v18114_v54 = vld [vmem:[#allocation318_spill] sm:$0xff]  ;;  %v18116_v3 = vld [vmem:[#allocation293_spill] sm:$0xff]  ;;  %v18118_v41 = vld [vmem:[#allocation51_spill] sm:$0xff] }
 0x50c   : > { %v3710_v21 = vadd.f32 %v18114_v54, %v1417_v31  ;;  %v1505_v2 = vadd.f32 %v18116_v3, %v17826_v34  ;;  %v1508_v40 = vadd.f32 %v18118_v41, %v17902_v37  ;;  %v18125_v31 = vld [vmem:[#allocation145_spill] sm:$0xff]  ;;  %v1595_v3 = vmax.f32 %v15609_v46, 0.0  ;;  %v18136_v46 = vld [vmem:[#allocation323_spill] sm:$0xff] }
 0x50d   : > { %v4987_v58 = vmax.f32 %v4939_v33, 0.0  ;;  %v4988_v5 = vmax.f32 %v4940_v30, 0.0  ;;  %v3737_v49 = vadd.f32 %v18125_v31, %v1543_v50  ;;  %v18131_v50 = vld [vmem:[#allocation281_spill] sm:$0xff] }
 0x50e   : > { %6060 = vmatmul.msk.f32.gmra.mxu2 %vm5019_vm7, %v15345_v23 }
 0x50f   : > { %6062 = vmatmul.msk.f32.gmra.mxu3 %vm5019_vm7, %v15345_v23 }
 0x511   : > { %v4890_v60 = vpop.f32.mrf.mxu2 }
 0x512   : > { %v4913_v13 = vpop.f32.mrf.mxu3 }
 0x514   : > { %v4847_v12 = vpop.f32.mrf.mxu0 }
 0x515   : > { %v4870_v14 = vpop.f32.mrf.mxu1  ;;  %v4963_v25 = vadd.f32 %v4847_v12, %v1426_v10  ;;  %v18119_v10 = vld [vmem:[#allocation118_spill] sm:$0xff]  ;;  %v4941_v12 = vadd.f32 %v4890_v60, %v1505_v2  ;;  %v18126_v60 = vld [vmem:[#allocation285_spill] sm:$0xff]  ;;  %v1596_v2 = vmax.f32 %v15613_v6, 0.0  ;;  %v1490_v6 = vadd.f32 %v18136_v46, %v17984_v35 }
 0x516   : > { %v4964_v11 = vadd.f32 %v4870_v14, %v1467_v48  ;;  %v1549_v51 = vadd.f32 %v18119_v10, %v17902_v37  ;;  %v2593_v48 = vadd.f32 %v18120_v57, %v1414_v22  ;;  %v4942_v14 = vadd.f32 %v4913_v13, %v1546_v29  ;;  %v18124_v22 = vld [vmem:[#allocation234_spill] sm:$0xff] }
 0x517   : > { %v5011_v18 = vmax.f32 %v4963_v25, 0.0  ;;  %v18122_v25 = vld [vmem:[#allocation201_spill] sm:$0xff]  ;;  %v3758_v37 = vmax.f32 %v3710_v21, 0.0  ;;  %v3736_v8 = vadd.f32 %v18124_v22, %v1502_v20  ;;  %v1496_v13 = vadd.f32 %v18126_v60, %v17807_v61  ;;  %v18130_v20 = vld [vmem:[#allocation244_spill] sm:$0xff]  ;;  %v18135_v29 = vld [vmem:[#allocation258_spill] sm:$0xff] }
 0x518   : > { %v5012_v59 = vmax.f32 %v4964_v11, 0.0  ;;  %v2569_v11 = vadd.f32 %v18122_v25, %v1411_v55  ;;  %v2641_v55 = vmax.f32 %v2593_v48, 0.0  ;;  %v4989_v17 = vmax.f32 %v4941_v12, 0.0  ;;  %v18137_v48 = vld [vmem:[#allocation324_spill] sm:$0xff] }
 0x519   : > { %5494 = vmatpush.msrb.mxu0 %v5011_v18  ;;  %v3712_v18 = vadd.f32 %v18128_v44, %v1499_v52  ;;  %v4990_v32 = vmax.f32 %v4942_v14, 0.0  ;;  %v1493_v43 = vadd.f32 %v18130_v20, %v17798_v45  ;;  %v1534_v61 = vadd.f32 %v18131_v50, %v17798_v45  ;;  %v18134_v45 = vld [vmem:[#allocation188_spill] sm:$0xff] }
 0x51a   : > { %5517 = vmatpush.msrb.mxu1 %v5012_v59  ;;  %v18129_v59 = vld [vmem:[#allocation252_spill] sm:$0xff]  ;;  %v2617_v54 = vmax.f32 %v2569_v11, 0.0  ;;  %v2618_v21 = vmax.f32 %v2570_v24, 0.0  ;;  %v2595_v52 = vadd.f32 %v18132_v56, %v1496_v13  ;;  %v1572_v57 = vmax.f32 %v15605_v28, 0.0  ;;  %v18139_v28 = vld [vmem:[#allocation265_spill] sm:$0xff] }
 0x51b   : > { %v4893_v53 = vpop.f32.mrf.mxu2  ;;  %5495 = vmatpush.msrb.mxu0 %v4987_v58  ;;  %v3713_v47 = vadd.f32 %v18129_v59, %v1540_v15  ;;  %v2596_v15 = vadd.f32 %v18133_v42, %v1537_v0  ;;  %v3784_v58 = vmax.f32 %v3736_v8, 0.0  ;;  %v2571_v4 = vadd.f32 %v18134_v45, %v1493_v43  ;;  %v15713_v25 = vld [vmem:[%s15710_s23] sm:$0xff]  ;;  %v15737_v13 = vld [vmem:[%s15710_s23 + $0x8] sm:$0xff] }
 0x51c   : > { %v4916_v33 = vpop.f32.mrf.mxu3  ;;  %5518 = vmatpush.msrb.mxu1 %v4988_v5  ;;  %v4965_v34 = vadd.f32 %v4893_v53, %v1508_v40  ;;  %v3785_v5 = vmax.f32 %v3737_v49, 0.0  ;;  %v2572_v41 = vadd.f32 %v18135_v29, %v1534_v61  ;;  %v3760_v40 = vmax.f32 %v3712_v18, 0.0 }
 0x51d   : > { %v4966_v30 = vadd.f32 %v4916_v33, %v1549_v51  ;;  %5496 = vmatpush.msrb.mxu0 %v3782_v39  ;;  %v3761_v10 = vmax.f32 %v3713_v47, 0.0  ;;  %v1571_v51 = vmax.f32 %v15601_v7, 0.0  ;;  %v1531_v36 = vadd.f32 %v18137_v48, %v17984_v35  ;;  %v7708_v35 = vld [vmem:[%s15872_s6] sm:$0xff] }
 0x51e   : > { %5519 = vmatpush.msrb.mxu1 %v3783_v19  ;;  %v5013_v9 = vmax.f32 %v4965_v34, 0.0  ;;  %v2643_v1 = vmax.f32 %v2595_v52, 0.0  ;;  %v2644_v39 = vmax.f32 %v2596_v15, 0.0  ;;  %v18138_v19 = vld [vmem:[#allocation264_spill] sm:$0xff]  ;;  %v1528_v53 = vadd.f32 %v18139_v28, %v17989_v63 }
 0x51f   : > { %v5014_v26 = vmax.f32 %v4966_v30, 0.0  ;;  %5497 = vmatpush.msrb.mxu0 %v3758_v37  ;;  %v1487_v7 = vadd.f32 %v18138_v19, %v17989_v63  ;;  %v2619_v33 = vmax.f32 %v2571_v4, 0.0  ;;  %v2620_v12 = vmax.f32 %v2572_v41, 0.0 }
 0x520   : > { %5520 = vmatpush.msrb.mxu1 %v3759_v62  ;;  %5540 = vmatpush.msrb.mxu2 %v5013_v9  ;;  %v1597_v14 = vmax.f32 %v1490_v6, 0.0  ;;  %v1598_v63 = vmax.f32 %v1531_v36, 0.0  ;;  %v1574_v30 = vmax.f32 %v1528_v53, 0.0 }
 0x521   : > { %5563 = vmatpush.msrb.mxu3 %v5014_v26  ;;  %5498 = vmatpush.msrb.mxu0 %v2641_v55  ;;  %v1573_v34 = vmax.f32 %v1487_v7, 0.0 }
 0x522   : > { %5521 = vmatpush.msrb.mxu1 %v2642_v27  ;;  %5541 = vmatpush.msrb.mxu2 %v4989_v17 }
 0x523   : > { %5564 = vmatpush.msrb.mxu3 %v4990_v32  ;;  %5499 = vmatpush.msrb.mxu0 %v2617_v54 }
 0x524   : > { %5522 = vmatpush.msrb.mxu1 %v2618_v21  ;;  %5542 = vmatpush.msrb.mxu2 %v3784_v58 }
 0x525   : > { %5565 = vmatpush.msrb.mxu3 %v3785_v5  ;;  %5500 = vmatpush.msrb.mxu0 %v1595_v3 }
 0x526   : > { %5523 = vmatpush.msrb.mxu1 %v1596_v2  ;;  %5543 = vmatpush.msrb.mxu2 %v3760_v40 }
 0x527   : > { %5566 = vmatpush.msrb.mxu3 %v3761_v10  ;;  %5501 = vmatpush.msrb.mxu0 %v1571_v51 }
 0x528   : > { %5524 = vmatpush.msrb.mxu1 %v1572_v57  ;;  %5544 = vmatpush.msrb.mxu2 %v2643_v1 }
 0x529   : > { %5567 = vmatpush.msrb.mxu3 %v2644_v39  ;;  %6063 = vmatmul.msk.f32.vlgmr.msrb.gmra.mxu0 %vm5019_vm7, %v7708_v35 }
 0x52a   : > { %6065 = vmatmul.msk.f32.vlgmr.msrb.gmra.mxu1 %vm5019_vm7, %v7708_v35  ;;  %5545 = vmatpush.msrb.mxu2 %v2619_v33 }
 0x52b   : > { %5568 = vmatpush.msrb.mxu3 %v2620_v12 }
 0x52c   : > { %5546 = vmatpush.msrb.mxu2 %v1597_v14 }
 0x52d   : > { %5569 = vmatpush.msrb.mxu3 %v1598_v63 }
 0x52e   : > { %5547 = vmatpush.msrb.mxu2 %v1573_v34 }
 0x52f   : > { %5570 = vmatpush.msrb.mxu3 %v1574_v30  ;;  %v5043_v11 = vpop.f32.mrf.mxu0  ;;  %6067 = vmatmul.msk.f32.vlgmr.msrb.gmra.mxu2 %vm5019_vm7, %v7708_v35 }
 0x530   : > { %v5066_v16 = vpop.f32.mrf.mxu1  ;;  %6069 = vmatmul.msk.f32.vlgmr.msrb.gmra.mxu3 %vm5019_vm7, %v7708_v35  ;;  %v5044_v24 = vadd.f32 %v5043_v11, %v15713_v25 }
 0x531   : > { %v5067_v37 = vadd.f32 %v5066_v16, %v15713_v25  ;;  %6064 = vmatmul.msk.f32.gmra.mxu0 %vm5019_vm7, %v15345_v23 }
 0x532   : > { %6066 = vmatmul.msk.f32.gmra.mxu1 %vm5019_vm7, %v15345_v23  ;;  %v5578_v62 = vmax.f32 %v5044_v24, 0.0 }
 0x533   : > { %v5579_v22 = vmax.f32 %v5067_v37, 0.0 }
 0x534   : > { %5626 = vst [vmem:[%s15724_s15] sm:$0xff] %v5578_v62 }
 0x535   : > { %5627 = vst [vmem:[%s15724_s15 + $0x8] sm:$0xff] %v5579_v22 }
 0x537   : > { %v5089_v8 = vpop.f32.mrf.mxu2  ;;  %6068 = vmatmul.msk.f32.gmra.mxu2 %vm5019_vm7, %v15345_v23 }
 0x538   : > { %v5112_v31 = vpop.f32.mrf.mxu3  ;;  %6070 = vmatmul.msk.f32.gmra.mxu3 %vm5019_vm7, %v15345_v23  ;;  %v5090_v49 = vadd.f32 %v5089_v8, %v15713_v25 }
 0x539   : > { %v5113_v9 = vadd.f32 %v5112_v31, %v15713_v25 }
 0x53a   : > { %v5580_v26 = vmax.f32 %v5090_v49, 0.0 }
 0x53b   : > { %v5581_v60 = vmax.f32 %v5113_v9, 0.0 }
 0x53c   : > { %5628 = vst [vmem:[%s15724_s15 + $0x10] sm:$0xff] %v5580_v26 }
 0x53d   : > { %5629 = vst [vmem:[%s15724_s15 + $0x18] sm:$0xff] %v5581_v60 }
 0x540   : > { %v5046_v38 = vpop.f32.mrf.mxu0 }
 0x541   : > { %v5069_v0 = vpop.f32.mrf.mxu1  ;;  %v5047_v55 = vadd.f32 %v5046_v38, %v15737_v13 }
 0x542   : > { %v5070_v27 = vadd.f32 %v5069_v0, %v15737_v13 }
 0x543   : > { %v5602_v44 = vmax.f32 %v5047_v55, 0.0 }
 0x544   : > { %v5603_v18 = vmax.f32 %v5070_v27, 0.0 }
 0x545   : > { %5650 = vst [vmem:[%s15724_s15 + $0xc0] sm:$0xff] %v5602_v44 }
 0x546   : > { %5651 = vst [vmem:[%s15724_s15 + $0xc8] sm:$0xff] %v5603_v18 }
 0x548   : > { %v5092_v23 = vpop.f32.mrf.mxu2  ;;  %v5135_v32 = vpop.f32.mrf.mxu0 }
 0x549   : > { %v5115_v59 = vpop.f32.mrf.mxu3  ;;  %v5093_v47 = vadd.f32 %v5092_v23, %v15737_v13  ;;  %v5158_v20 = vpop.f32.mrf.mxu1  ;;  %v5136_v43 = vadd.f32 %v5135_v32, %v15713_v25 }
 0x54a   : > { %v5116_v17 = vadd.f32 %v5115_v59, %v15737_v13  ;;  %v5159_v50 = vadd.f32 %v5158_v20, %v15713_v25 }
 0x54b   : > { %v5604_v61 = vmax.f32 %v5093_v47, 0.0  ;;  %v5582_v21 = vmax.f32 %v5136_v43, 0.0 }
 0x54c   : > { %v5605_v54 = vmax.f32 %v5116_v17, 0.0  ;;  %v5583_v56 = vmax.f32 %v5159_v50, 0.0 }
 0x54d   : > { %5652 = vst [vmem:[%s15724_s15 + $0xd0] sm:$0xff] %v5604_v61 }
 0x54e   : > { %5653 = vst [vmem:[%s15724_s15 + $0xd8] sm:$0xff] %v5605_v54 }
 0x54f   : > { %5630 = vst [vmem:[%s15724_s15 + $0x20] sm:$0xff] %v5582_v21 }
 0x550   : > { %5631 = vst [vmem:[%s15724_s15 + $0x28] sm:$0xff] %v5583_v56  ;;  %v5181_v52 = vpop.f32.mrf.mxu2  ;;  %v5138_v5 = vpop.f32.mrf.mxu0 }
 0x551   : > { %v5204_v42 = vpop.f32.mrf.mxu3  ;;  %v5182_v15 = vadd.f32 %v5181_v52, %v15713_v25  ;;  %v5161_v3 = vpop.f32.mrf.mxu1  ;;  %v5139_v2 = vadd.f32 %v5138_v5, %v15737_v13 }
 0x552   : > { %v5205_v58 = vadd.f32 %v5204_v42, %v15713_v25  ;;  %v5162_v45 = vadd.f32 %v5161_v3, %v15737_v13 }
 0x553   : > { %v5584_v4 = vmax.f32 %v5182_v15, 0.0  ;;  %v5606_v41 = vmax.f32 %v5139_v2, 0.0 }
 0x554   : > { %v5585_v29 = vmax.f32 %v5205_v58, 0.0  ;;  %v5607_v40 = vmax.f32 %v5162_v45, 0.0 }
 0x555   : > { %5632 = vst [vmem:[%s15724_s15 + $0x30] sm:$0xff] %v5584_v4 }
 0x556   : > { %5633 = vst [vmem:[%s15724_s15 + $0x38] sm:$0xff] %v5585_v29 }
 0x557   : > { %5654 = vst [vmem:[%s15724_s15 + $0xe0] sm:$0xff] %v5606_v41 }
 0x558   : > { %5655 = vst [vmem:[%s15724_s15 + $0xe8] sm:$0xff] %v5607_v40  ;;  %v5184_v10 = vpop.f32.mrf.mxu2 }
 0x559   : > { %v5207_v51 = vpop.f32.mrf.mxu3  ;;  %v5185_v57 = vadd.f32 %v5184_v10, %v15737_v13  ;;  %v5227_v36 = vpop.f32.mrf.mxu0 }
 0x55a   : > { %v5208_v46 = vadd.f32 %v5207_v51, %v15737_v13  ;;  %v5250_v1 = vpop.f32.mrf.mxu1  ;;  %v5228_v39 = vadd.f32 %v5227_v36, %v15713_v25 }
 0x55b   : > { %v5608_v6 = vmax.f32 %v5185_v57, 0.0  ;;  %v5251_v19 = vadd.f32 %v5250_v1, %v15713_v25 }
 0x55c   : > { %v5609_v48 = vmax.f32 %v5208_v46, 0.0  ;;  %v5586_v7 = vmax.f32 %v5228_v39, 0.0 }
 0x55d   : > { %5656 = vst [vmem:[%s15724_s15 + $0xf0] sm:$0xff] %v5608_v6  ;;  %v5587_v28 = vmax.f32 %v5251_v19, 0.0 }
 0x55e   : > { %5657 = vst [vmem:[%s15724_s15 + $0xf8] sm:$0xff] %v5609_v48 }
 0x55f   : > { %5634 = vst [vmem:[%s15724_s15 + $0x40] sm:$0xff] %v5586_v7 }
 0x560   : > { %5635 = vst [vmem:[%s15724_s15 + $0x48] sm:$0xff] %v5587_v28 }
 0x561   : > { %v5296_v33 = vpop.f32.mrf.mxu3  ;;  %v5230_v14 = vpop.f32.mrf.mxu0 }
 0x562   : > { %v5273_v53 = vpop.f32.mrf.mxu2  ;;  %v5297_v35 = vadd.f32 %v5296_v33, %v15713_v25  ;;  %v5253_v63 = vpop.f32.mrf.mxu1  ;;  %v5231_v34 = vadd.f32 %v5230_v14, %v15737_v13 }
 0x563   : > { %v5274_v12 = vadd.f32 %v5273_v53, %v15713_v25  ;;  %v5254_v30 = vadd.f32 %v5253_v63, %v15737_v13 }
 0x564   : > { %v5589_v16 = vmax.f32 %v5297_v35, 0.0  ;;  %v5610_v24 = vmax.f32 %v5231_v34, 0.0 }
 0x565   : > { %v5588_v11 = vmax.f32 %v5274_v12, 0.0  ;;  %v5611_v37 = vmax.f32 %v5254_v30, 0.0 }
 0x566   : > { %5637 = vst [vmem:[%s15724_s15 + $0x58] sm:$0xff] %v5589_v16 }
 0x567   : > { %5636 = vst [vmem:[%s15724_s15 + $0x50] sm:$0xff] %v5588_v11 }
 0x568   : > { %5658 = vst [vmem:[%s15724_s15 + $0x100] sm:$0xff] %v5610_v24 }
 0x569   : > { %5659 = vst [vmem:[%s15724_s15 + $0x108] sm:$0xff] %v5611_v37  ;;  %v5299_v22 = vpop.f32.mrf.mxu3  ;;  %v5319_v49 = vpop.f32.mrf.mxu0 }
 0x56a   : > { %v5276_v62 = vpop.f32.mrf.mxu2  ;;  %v5300_v31 = vadd.f32 %v5299_v22, %v15737_v13  ;;  %v5342_v9 = vpop.f32.mrf.mxu1  ;;  %v5320_v26 = vadd.f32 %v5319_v49, %v15713_v25 }
 0x56b   : > { %v5277_v8 = vadd.f32 %v5276_v62, %v15737_v13  ;;  %v5343_v60 = vadd.f32 %v5342_v9, %v15713_v25 }
 0x56c   : > { %v5613_v0 = vmax.f32 %v5300_v31, 0.0  ;;  %v5590_v55 = vmax.f32 %v5320_v26, 0.0 }
 0x56d   : > { %v5612_v38 = vmax.f32 %v5277_v8, 0.0  ;;  %v5591_v27 = vmax.f32 %v5343_v60, 0.0 }
 0x56e   : > { %5661 = vst [vmem:[%s15724_s15 + $0x118] sm:$0xff] %v5613_v0 }
 0x56f   : > { %5660 = vst [vmem:[%s15724_s15 + $0x110] sm:$0xff] %v5612_v38 }
 0x570   : > { %5638 = vst [vmem:[%s15724_s15 + $0x60] sm:$0xff] %v5590_v55 }
 0x571   : > { %5639 = vst [vmem:[%s15724_s15 + $0x68] sm:$0xff] %v5591_v27  ;;  %v5388_v18 = vpop.f32.mrf.mxu3  ;;  %v5322_v47 = vpop.f32.mrf.mxu0 }
 0x572   : > { %v5365_v44 = vpop.f32.mrf.mxu2  ;;  %v5389_v59 = vadd.f32 %v5388_v18, %v15713_v25  ;;  %v5345_v17 = vpop.f32.mrf.mxu1  ;;  %v5323_v32 = vadd.f32 %v5322_v47, %v15737_v13 }
 0x573   : > { %v5366_v23 = vadd.f32 %v5365_v44, %v15713_v25  ;;  %v5346_v20 = vadd.f32 %v5345_v17, %v15737_v13 }
 0x574   : > { %v5593_v50 = vmax.f32 %v5389_v59, 0.0  ;;  %v5614_v61 = vmax.f32 %v5323_v32, 0.0 }
 0x575   : > { %v5592_v43 = vmax.f32 %v5366_v23, 0.0  ;;  %v5615_v54 = vmax.f32 %v5346_v20, 0.0 }
 0x576   : > { %5641 = vst [vmem:[%s15724_s15 + $0x78] sm:$0xff] %v5593_v50 }
 0x577   : > { %5640 = vst [vmem:[%s15724_s15 + $0x70] sm:$0xff] %v5592_v43 }
 0x578   : > { %5662 = vst [vmem:[%s15724_s15 + $0x120] sm:$0xff] %v5614_v61 }
 0x579   : > { %5663 = vst [vmem:[%s15724_s15 + $0x128] sm:$0xff] %v5615_v54 }
 0x57d   : > { %v5411_v21 = vpop.f32.mrf.mxu0 }
 0x57e   : > { %v5434_v56 = vpop.f32.mrf.mxu1  ;;  %v5412_v52 = vadd.f32 %v5411_v21, %v15713_v25 }
 0x57f   : > { %v5435_v42 = vadd.f32 %v5434_v56, %v15713_v25 }
 0x580   : > { %v5594_v15 = vmax.f32 %v5412_v52, 0.0 }
 0x581   : > { %v5595_v58 = vmax.f32 %v5435_v42, 0.0  ;;  %v5368_v5 = vpop.f32.mrf.mxu2 }
 0x582   : > { %v5391_v3 = vpop.f32.mrf.mxu3  ;;  %v5369_v2 = vadd.f32 %v5368_v5, %v15737_v13  ;;  %5642 = vst [vmem:[%s15724_s15 + $0x80] sm:$0xff] %v5594_v15 }
 0x583   : > { %v5392_v45 = vadd.f32 %v5391_v3, %v15737_v13  ;;  %5643 = vst [vmem:[%s15724_s15 + $0x88] sm:$0xff] %v5595_v58 }
 0x584   : > { %v5616_v4 = vmax.f32 %v5369_v2, 0.0 }
 0x585   : > { %v5617_v29 = vmax.f32 %v5392_v45, 0.0  ;;  %v5414_v41 = vpop.f32.mrf.mxu0 }
 0x586   : > { %v5437_v40 = vpop.f32.mrf.mxu1  ;;  %5664 = vst [vmem:[%s15724_s15 + $0x130] sm:$0xff] %v5616_v4  ;;  %v5415_v10 = vadd.f32 %v5414_v41, %v15737_v13 }
 0x587   : > { %v5438_v51 = vadd.f32 %v5437_v40, %v15737_v13  ;;  %5665 = vst [vmem:[%s15724_s15 + $0x138] sm:$0xff] %v5617_v29 }
 0x588   : > { %v5618_v57 = vmax.f32 %v5415_v10, 0.0 }
 0x589   : > { %v5619_v46 = vmax.f32 %v5438_v51, 0.0  ;;  %v5457_v6 = vpop.f32.mrf.mxu2 }
 0x58a   : > { %v5480_v48 = vpop.f32.mrf.mxu3  ;;  %v5458_v36 = vadd.f32 %v5457_v6, %v15713_v25  ;;  %5666 = vst [vmem:[%s15724_s15 + $0x140] sm:$0xff] %v5618_v57 }
 0x58b   : > { %v5481_v1 = vadd.f32 %v5480_v48, %v15713_v25  ;;  %5667 = vst [vmem:[%s15724_s15 + $0x148] sm:$0xff] %v5619_v46 }
 0x58c   : > { %v5596_v39 = vmax.f32 %v5458_v36, 0.0 }
 0x58d   : > { %v5597_v19 = vmax.f32 %v5481_v1, 0.0 }
 0x58e   : > { %5644 = vst [vmem:[%s15724_s15 + $0x90] sm:$0xff] %v5596_v39 }
 0x58f   : > { %5645 = vst [vmem:[%s15724_s15 + $0x98] sm:$0xff] %v5597_v19 }
 0x591   : > { %v5460_v7 = vpop.f32.mrf.mxu2 }
 0x592   : > { %v5483_v28 = vpop.f32.mrf.mxu3  ;;  %v5461_v53 = vadd.f32 %v5460_v7, %v15737_v13 }
 0x593   : > { %v5484_v33 = vadd.f32 %v5483_v28, %v15737_v13 }
 0x594   : > { %v5620_v12 = vmax.f32 %v5461_v53, 0.0 }
 0x595   : > { %v5621_v35 = vmax.f32 %v5484_v33, 0.0 }
 0x596   : > { %5668 = vst [vmem:[%s15724_s15 + $0x150] sm:$0xff] %v5620_v12 }
 0x597   : > { %5669 = vst [vmem:[%s15724_s15 + $0x158] sm:$0xff] %v5621_v35 }
 0x5a6   : > { %v5503_v14 = vpop.f32.mrf.mxu0 }
 0x5a7   : > { %v5526_v63 = vpop.f32.mrf.mxu1  ;;  %v5504_v34 = vadd.f32 %v5503_v14, %v15713_v25 }
 0x5a8   : > { %v5527_v30 = vadd.f32 %v5526_v63, %v15713_v25 }
 0x5a9   : > { %v5598_v11 = vmax.f32 %v5504_v34, 0.0 }
 0x5aa   : > { %v5599_v16 = vmax.f32 %v5527_v30, 0.0 }
 0x5ab   : > { %5646 = vst [vmem:[%s15724_s15 + $0xa0] sm:$0xff] %v5598_v11 }
 0x5ac   : > { %5647 = vst [vmem:[%s15724_s15 + $0xa8] sm:$0xff] %v5599_v16 }
 0x5ae   : > { %v5506_v24 = vpop.f32.mrf.mxu0 }
 0x5af   : > { %v5529_v37 = vpop.f32.mrf.mxu1  ;;  %v5507_v62 = vadd.f32 %v5506_v24, %v15737_v13 }
 0x5b0   : > { %v5530_v22 = vadd.f32 %v5529_v37, %v15737_v13 }
 0x5b1   : > { %v5622_v8 = vmax.f32 %v5507_v62, 0.0 }
 0x5b2   : > { %v5623_v31 = vmax.f32 %v5530_v22, 0.0  ;;  %v5549_v49 = vpop.f32.mrf.mxu2 }
 0x5b3   : > { %v5572_v9 = vpop.f32.mrf.mxu3  ;;  %v5550_v26 = vadd.f32 %v5549_v49, %v15713_v25  ;;  %5670 = vst [vmem:[%s15724_s15 + $0x160] sm:$0xff] %v5622_v8 }
 0x5b4   : > { %v5573_v60 = vadd.f32 %v5572_v9, %v15713_v25  ;;  %5671 = vst [vmem:[%s15724_s15 + $0x168] sm:$0xff] %v5623_v31 }
 0x5b5   : > { %v5600_v38 = vmax.f32 %v5550_v26, 0.0 }
 0x5b6   : > { %v5601_v0 = vmax.f32 %v5573_v60, 0.0 }
 0x5b7   : > { %5648 = vst [vmem:[%s15724_s15 + $0xb0] sm:$0xff] %v5600_v38 }
 0x5b8   : > { %5649 = vst [vmem:[%s15724_s15 + $0xb8] sm:$0xff] %v5601_v0 }
 0x5ba   : > { %v5552_v55 = vpop.f32.mrf.mxu2 }
 0x5bb   : > { %v5575_v27 = vpop.f32.mrf.mxu3  ;;  %v5553_v25 = vadd.f32 %v5552_v55, %v15737_v13 }
 0x5bc   : > { %v5576_v44 = vadd.f32 %v5575_v27, %v15737_v13 }
 0x5bd   : > { %v5624_v18 = vmax.f32 %v5553_v25, 0.0 }
 0x5be   : > { %v5625_v23 = vmax.f32 %v5576_v44, 0.0 }
 0x5bf   : > { %5672 = vst [vmem:[%s15724_s15 + $0x170] sm:$0xff] %v5624_v18 }
 0x5c0   : > { %5673 = vst [vmem:[%s15724_s15 + $0x178] sm:$0xff] %v5625_v23 }
 0x5c1   : > { %7796 = shalt.err (!%p7793_p0)
}
 0x5c2   : > { %s7867_s8 = smov 3072   ;;  %s7868_s11 = smov 192  }
 0x5c3   : > { %6084 = dma.vmem_to_hbm [thread:$0]  (%p7960_p9), %s5690_s9, 6144, %s5692_s16, %s5675_s27, %s7867_s8, %s7867_s8, %s7868_s11  }
 0x5c4 PF: > { %s5706_s22 = sand.u32 1, %s7835_s24   ;;  %p6094_p1 = pnand %p5821_p12, %p7967_p11 }
 0x5c5   : > { %s5707_s23 = scalar_lea.sflag [#allocation4], %s5706_s22 }
 0x5c6   : > { %p6095_p2 = pneg %p6094_p1 }
 0x5c8   : > { %7830 = dma.done.wait (%p6095_p2), %s5707_s23, 6144  }
 0x5c9   : > { %7832 = vsyncadd (%p6095_p2), %s5707_s23, 4294961152  ;;  %s26_s29 = sadd.s32 1, %s7855_s29   ;;  %s18141_s15 = sld [smem:[#allocation11_spill]] }
 0x5ca   : > { %p23_p3 = scmp.ge.s32.totalorder %s26_s29, 4   ;;  %s18142_s26 = sld [smem:[#allocation14_spill]] }
 0x5cb   : > { %s18143_s27 = sld [smem:[#allocation12_spill]]  ;;  %s18145_s24 = smov %s7839_s25 }
 0x5cc   : > { %s18144_s28 = sld [smem:[#allocation13_spill]]  ;;  %25 = sbr.rel (!%p23_p3) target bundleno = 10 (0xa), region = 111 }
 0x5cf   : > { %s18146_s25 = smov %s18141_s15 }
 0x5d1   :  { %5713 = vsyncpa [#allocation3], 1 }
 0x5d2   :  { %5715 = vsyncpa [#allocation3 + $0x1], 1 }
 0x5d3   :  { %5716 = vsyncpa [#allocation6], 1 }
 0x5d4   :  { %5718 = vsyncpa [#allocation6 + $0x1], 1 }
 0x5d5   :  { %5719 = vsyncpa [#allocation4], 1 }
 0x5d6   :  { %5721 = vsyncpa [#allocation4 + $0x1], 1 }

</bundles_post_ra>
